<compile_context>
chip_gen: v7x
topology: tpu7x:2x2x1
jax: 0.10.0
libtpu: 0.0.40
codegen_flags: <defaults>
</compile_context>

<pallas_src>
import functools

import jax
import jax.numpy as jnp
from jax.experimental import pallas as pl
from jax.experimental.pallas import tpu as pltpu


# ---------------------------------------------------------------------------
# Implicit-GEMM 3x3x3 conv + folded-BN + ReLU kernel.
#
# Activation layout in HBM: (N, D+2, Cin, P2) bf16, where the last axis is the
# zero-padded (H+2, W+2) plane flattened row-major plus 2 spare columns,
# P2 = (H+2)*(W+2) + 2.  For an output voxel at flat plane index p = h*(W+2)+w,
# tap (kd, kh, kw) reads flat index p + kh*(W+2) + kw of depth slice d + kd, so
# every tap is a static lane-offset slice of a depth slice already in VMEM.
# ---------------------------------------------------------------------------
def _conv3_kernel(w_ref, b_ref, x0_ref, x1_ref, x2_ref, o_ref, *, wp, q):
    cin = x0_ref.shape[2]
    cout = o_ref.shape[2]
    xs = (x0_ref[0, 0, :, :], x1_ref[0, 0, :, :], x2_ref[0, 0, :, :])  # (Cin, P2)
    acc = jnp.zeros((cout, q), jnp.float32)
    if cin == 1:
        # Depthwise first layer: VPU broadcast-multiply.  Hoist the f32 casts out
        # of the 27-tap loop (they are loop-invariant).
        w32 = w_ref[...].astype(jnp.float32)                    # (27, Cout, 1)
        xs32 = tuple(xk.astype(jnp.float32) for xk in xs)       # (1, P2) each
        for kd in range(3):
            xk = xs32[kd]
            for kh in range(3):
                for kw in range(3):
                    off = kh * wp + kw
                    acc = acc + w32[kd * 9 + kh * 3 + kw] * xk[:, off:off + q]
    else:
        # MXU path: one (Cout,Cin)x(Cin,Q) matmul per tap, f32 accumulation.
        for kd in range(3):
            xk = xs[kd]
            for kh in range(3):
                for kw in range(3):
                    off = kh * wp + kw
                    patch = xk[:, off:off + q]                  # (Cin, Q) bf16
                    wt = w_ref[kd * 9 + kh * 3 + kw, :, :]      # (Cout, Cin) bf16
                    acc = acc + jnp.dot(wt, patch,
                                        preferred_element_type=jnp.float32)
    y = jnp.maximum(acc + b_ref[...], 0.0)        # folded BN bias + ReLU
    o_ref[0, 0, :, :] = y.astype(o_ref.dtype)


def conv3x3x3_bn_relu(x, cp):
    """Conv3d(k=3, pad=1) + BatchNorm3d (eval, folded) + ReLU.
    x: (N, D, Cin, H, W) bf16 -> (N, D, Cout, H, W) bf16."""
    n, d, cin, h, w = x.shape
    cout = cp["w"].shape[1]
    hp, wp = h + 2, w + 2
    q = h * wp                     # flattened output width (cols >= W are discarded)
    p2 = hp * wp + 2               # every tap slice of length q stays in bounds
    xp = jnp.pad(x, ((0, 0), (1, 1), (0, 0), (1, 1), (1, 1)))   # (N, D+2, Cin, Hp, Wp)
    xpf = xp.reshape(n, d + 2, cin, hp * wp)
    xpf = jnp.pad(xpf, ((0, 0), (0, 0), (0, 0), (0, 2)))        # (N, D+2, Cin, P2)

    out = pl.pallas_call(
        functools.partial(_conv3_kernel, wp=wp, q=q),
        out_shape=jax.ShapeDtypeStruct((n, d, cout, q), x.dtype),
        grid_spec=pltpu.PrefetchScalarGridSpec(
            num_scalar_prefetch=0,
            grid=(n, d),
            in_specs=[
                # Weights / bias: constant block index -> stay resident in VMEM.
                pl.BlockSpec((27, cout, cin), lambda i, j: (0, 0, 0)),
                pl.BlockSpec((cout, 1), lambda i, j: (0, 0)),
                # Depth halo: three consecutive padded depth slices of the SAME
                # array (overlapping windows cannot be expressed by one Blocked
                # spec, and per-step HBM traffic is identical either way).
                pl.BlockSpec((1, 1, cin, p2), lambda i, j: (i, j, 0, 0)),
                pl.BlockSpec((1, 1, cin, p2), lambda i, j: (i, j + 1, 0, 0)),
                pl.BlockSpec((1, 1, cin, p2), lambda i, j: (i, j + 2, 0, 0)),
            ],
            out_specs=pl.BlockSpec((1, 1, cout, q), lambda i, j: (i, j, 0, 0)),
        ),
        compiler_params=pltpu.CompilerParams(
            dimension_semantics=("parallel", "parallel")),
    )(cp["w"], cp["b"], xpf, xpf, xpf)

    # (N, D, Cout, Q) -> (N, D, Cout, H, Wp) -> drop the Wp-W junk columns.
    return out.reshape(n, d, cout, h, wp)[..., :w]


# ---------------------------------------------------------------------------
# Fused Linear kernel (used for the big FC1 only): y = act(x @ wt + b)
# ---------------------------------------------------------------------------
def _linear_kernel(x_ref, w_ref, b_ref, o_ref, acc_ref, *, act):
    @pl.when(pl.program_id(2) == 0)
    def _():
        acc_ref[...] = jnp.zeros_like(acc_ref)

    acc_ref[...] += jnp.dot(x_ref[...], w_ref[...],
                            preferred_element_type=jnp.float32)

    @pl.when(pl.program_id(2) == pl.num_programs(2) - 1)
    def _():
        y = acc_ref[...] + b_ref[...]
        if act == "relu":
            y = jnp.maximum(y, 0.0)
        o_ref[...] = y.astype(o_ref.dtype)


def fused_linear(x, wt, b, *, act="none"):
    """x: (M, K) bf16, wt: (K, F) bf16 (pre-transposed/cast at init), b: (1, F) f32.
    No M/N padding: partial edge blocks are masked by Pallas; K tiles divide K."""
    m, k = x.shape
    k2, f = wt.shape
    assert k == k2 and k % 128 == 0
    tm = m if m <= 256 else 128
    tn = f if f <= 2048 else 1024
    tk = k if k <= 2048 else max(t for t in (2048, 1024, 512, 256, 128) if k % t == 0)
    grid = (pl.cdiv(m, tm), pl.cdiv(f, tn), pl.cdiv(k, tk))
    return pl.pallas_call(
        functools.partial(_linear_kernel, act=act),
        out_shape=jax.ShapeDtypeStruct((m, f), jnp.float32),
        grid_spec=pltpu.PrefetchScalarGridSpec(
            num_scalar_prefetch=0,
            grid=grid,
            in_specs=[
                pl.BlockSpec((tm, tk), lambda i, j, kk: (i, kk)),
                pl.BlockSpec((tk, tn), lambda i, j, kk: (kk, j)),
                pl.BlockSpec((1, tn), lambda i, j, kk: (0, j)),
            ],
            out_specs=pl.BlockSpec((tm, tn), lambda i, j, kk: (i, j)),
            scratch_shapes=[pltpu.VMEM((tm, tn), jnp.float32)],
        ),
        compiler_params=pltpu.CompilerParams(
            dimension_semantics=("parallel", "parallel", "arbitrary")),
    )(x, wt, b)


# ---------------------------------------------------------------------------
# Plain-JAX glue layers (pure data movement / tiny ops)
# ---------------------------------------------------------------------------
def pad_max_pool_2(x):
    """clinicadl PadMaxPool3d(2, 2): zero-pad each odd spatial dim at the FRONT,
    then 2x2x2 max-pool.  Activations here are >= 0, so the zero pad never wins."""
    n, d, c, h, w = x.shape
    pd, ph, pw = d % 2, h % 2, w % 2
    x = jnp.pad(x, ((0, 0), (pd, 0), (0, 0), (ph, 0), (pw, 0)))
    d2, h2, w2 = (d + pd) // 2, (h + ph) // 2, (w + pw) // 2
    x = x.reshape(n, d2, 2, c, h2, 2, w2, 2)
    return x.max(axis=(2, 5, 7))


def dam_3d(x, p):
    # TODO(synk): upstream DAM_3d source unavailable; approximated as channel +
    # per-anatomical-plane squeeze -> Linear(plane, plane) -> sigmoid attention,
    # broadcast-multiplied onto the feature map.  Tiny matmuls stay in plain XLA.
    xf = x.astype(jnp.float32)

    def att(feat, w, b):                                 # feat: (N, f)
        return jax.nn.sigmoid(feat @ w.T + b)

    a_ch = att(xf.mean(axis=(1, 3, 4)), p["w_ch"], p["b_ch"])     # (N, C)
    a_sag = att(xf.mean(axis=(2, 3, 4)), p["w_sag"], p["b_sag"])  # (N, D)
    a_cor = att(xf.mean(axis=(1, 2, 4)), p["w_cor"], p["b_cor"])  # (N, H)
    a_ax = att(xf.mean(axis=(1, 2, 3)), p["w_ax"], p["b_ax"])     # (N, W)
    y = (xf
         * a_ch[:, None, :, None, None]
         * a_sag[:, :, None, None, None]
         * a_cor[:, None, None, :, None]
         * a_ax[:, None, None, None, :])
    return y.astype(x.dtype)


# ---------------------------------------------------------------------------
# Parameters (deterministic synthetic init) and forward pass
# ---------------------------------------------------------------------------
def _pool_out(v):
    return (v + v % 2) // 2


def _feature_dims(spatial):
    d, h, w = spatial
    for _ in range(4):
        d, h, w = _pool_out(d), _pool_out(h), _pool_out(w)
    dam_planes = (d, h, w)
    final = (_pool_out(d), _pool_out(h), _pool_out(w))
    return dam_planes, final


def init_params(key, spatial):
    """Parameters mirroring Conv5_FC3_DAM_last; DAM plane sizes and the FC1 input
    width are derived from the input volume (at the reference full-scale input
    they become 11/13/12 and 128*6*7*6)."""
    (d4, h4, w4), (d5, h5, w5) = _feature_dims(spatial)
    fc_in = 128 * d5 * h5 * w5
    keys = iter(jax.random.split(key, 64))
    params = {"convs": []}
    for cin, cout in [(1, 8), (8, 16), (16, 32), (32, 64), (64, 128)]:
        params["convs"].append(dict(
            w=jax.random.normal(next(keys), (cout, cin, 3, 3, 3), jnp.float32)
              * (2.0 / (cin * 27)) ** 0.5,
            b=0.01 * jax.random.normal(next(keys), (cout,), jnp.float32),
            bn_gamma=1.0 + 0.1 * jax.random.normal(next(keys), (cout,), jnp.float32),
            bn_beta=0.05 * jax.random.normal(next(keys), (cout,), jnp.float32),
            bn_mean=0.05 * jax.random.normal(next(keys), (cout,), jnp.float32),
            bn_var=1.0 + 0.1 * jax.random.uniform(next(keys), (cout,), jnp.float32),
        ))

    def lin(fout, fin):
        return dict(
            w=jax.random.normal(next(keys), (fout, fin), jnp.float32) / fin ** 0.5,
            b=0.01 * jax.random.normal(next(keys), (fout,), jnp.float32))

    params["dam"] = {}
    for name, f in [("ch", 128), ("sag", d4), ("cor", h4), ("ax", w4)]:
        l = lin(f, f)
        params["dam"]["w_" + name] = l["w"]
        params["dam"]["b_" + name] = l["b"]
    params["fcs"] = [lin(1300, fc_in), lin(50, 1300), lin(2, 50)]
    return params


def prepare_params(params):
    """One-time (outside the forward) BN folding, bf16 casts and weight transposes
    so the per-inference path only moves already-prepared constants."""
    pp = {"convs": [], "dam": params["dam"]}
    for cp in params["convs"]:
        s = cp["bn_gamma"] / jnp.sqrt(cp["bn_var"] + 1e-5)          # (Cout,)
        w = cp["w"] * s[:, None, None, None, None]                  # (Cout,Cin,3,3,3)
        w = jnp.transpose(w, (2, 3, 4, 0, 1))                       # (3,3,3,Cout,Cin)
        cout, cin = w.shape[3], w.shape[4]
        pp["convs"].append(dict(
            w=w.reshape(27, cout, cin).astype(jnp.bfloat16),
            b=((cp["b"] - cp["bn_mean"]) * s + cp["bn_beta"])
              .reshape(cout, 1).astype(jnp.float32)))
    pp["fc1_wt"] = params["fcs"][0]["w"].T.astype(jnp.bfloat16)     # (K, 1300)
    pp["fc1_b"] = params["fcs"][0]["b"].reshape(1, -1).astype(jnp.float32)
    pp["fc2_w"] = params["fcs"][1]["w"]
    pp["fc2_b"] = params["fcs"][1]["b"]
    pp["fc3_w"] = params["fcs"][2]["w"]
    pp["fc3_b"] = params["fcs"][2]["b"]
    return pp


def forward(x, pp):
    # x: (N, 1, D, H, W) f32 (PyTorch NCDHW) -> internal layout (N, D, C, H, W) bf16.
    x = jnp.transpose(x, (0, 2, 1, 3, 4)).astype(jnp.bfloat16)
    for i, cp in enumerate(pp["convs"]):
        x = conv3x3x3_bn_relu(x, cp)
        if i == 4:
            x = dam_3d(x, pp["dam"])          # DAM_3d sits before the last pool
        x = pad_max_pool_2(x)                 # PadMaxPool3d(2, 2)
    n = x.shape[0]
    # Flatten exactly like torch: (N, C, D, H, W) row-major.
    feat = jnp.transpose(x, (0, 2, 1, 3, 4)).reshape(n, -1)
    # nn.Dropout(p=0.5) is identity in eval mode.
    h1 = fused_linear(feat, pp["fc1_wt"], pp["fc1_b"], act="relu")  # Pallas, (N,1300)
    # Tiny FC2 / FC3 stay in plain XLA.
    h2 = jnp.maximum(h1 @ pp["fc2_w"].T + pp["fc2_b"], 0.0)
    return h2 @ pp["fc3_w"].T + pp["fc3_b"]


if __name__ == "__main__":
    key = jax.random.PRNGKey(0)
    pkey, xkey = jax.random.split(key)
    # Small test volume (the full-scale model input is ~(161,193,177)).  Layer
    # structure is identical; the derived DAM planes here are (2, 3, 2) and the
    # FC1 input width is 128*1*2*1 = 256.
    N, D, H, W = 2, 17, 34, 20
    params = init_params(pkey, (D, H, W))
    pp = prepare_params(params)
    x = jax.random.normal(xkey, (N, 1, D, H, W), jnp.float32)
    fwd = jax.jit(forward)
    logits = jax.block_until_ready(fwd(x, pp))
    assert logits.shape == (N, 2) and logits.dtype == jnp.float32
    print("KERNEL_OK")
</pallas_src>

<mosaic_0001>
module attributes {stable_mosaic.version = 11 : i64} {
  func.func @_conv3_kernel(%arg0: i32, %arg1: i32, %arg2: memref<27x8x1xbf16, #tpu.memory_space<vmem>>, %arg3: memref<8x1xf32, #tpu.memory_space<vmem>>, %arg4: memref<1x1x1x794xbf16, #tpu.memory_space<vmem>>, %arg5: memref<1x1x1x794xbf16, #tpu.memory_space<vmem>>, %arg6: memref<1x1x1x794xbf16, #tpu.memory_space<vmem>>, %arg7: memref<1x1x8x748xbf16, #tpu.memory_space<vmem>>) attributes {dimension_semantics = [#tpu.dimension_semantics<parallel>, #tpu.dimension_semantics<parallel>], iteration_bounds = array<i64: 2, 17>, scalar_prefetch = 0 : i64, scratch_operands = 0 : i64, tpu.core_type = #tpu.core_type<tc>, window_params = [{pipeline_mode = #tpu.pipeline_mode<synchronous>, transform_indices = @transform_0, window_bounds = array<i64: 27, 8, 1>}, {pipeline_mode = #tpu.pipeline_mode<synchronous>, transform_indices = @transform_1, window_bounds = array<i64: 8, 1>}, {transform_indices = @transform_2, window_bounds = array<i64: 1, 1, 1, 794>}, {transform_indices = @transform_3, window_bounds = array<i64: 1, 1, 1, 794>}, {transform_indices = @transform_4, window_bounds = array<i64: 1, 1, 1, 794>}, {transform_indices = @transform_5, window_bounds = array<i64: 1, 1, 8, 748>}]} {
    %c0 = arith.constant 0 : index
    %c0_0 = arith.constant 0 : index
    %c0_1 = arith.constant 0 : index
    %c0_2 = arith.constant 0 : index
    %0 = vector.load %arg4[%c0, %c0_0, %c0_1, %c0_2] : memref<1x1x1x794xbf16, #tpu.memory_space<vmem>>, vector<1x1x1x794xbf16>
    %1 = vector.shape_cast %0 : vector<1x1x1x794xbf16> to vector<1x794xbf16>
    %c0_3 = arith.constant 0 : index
    %c0_4 = arith.constant 0 : index
    %c0_5 = arith.constant 0 : index
    %c0_6 = arith.constant 0 : index
    %2 = vector.load %arg5[%c0_3, %c0_4, %c0_5, %c0_6] : memref<1x1x1x794xbf16, #tpu.memory_space<vmem>>, vector<1x1x1x794xbf16>
    %3 = vector.shape_cast %2 : vector<1x1x1x794xbf16> to vector<1x794xbf16>
    %c0_7 = arith.constant 0 : index
    %c0_8 = arith.constant 0 : index
    %c0_9 = arith.constant 0 : index
    %c0_10 = arith.constant 0 : index
    %4 = vector.load %arg6[%c0_7, %c0_8, %c0_9, %c0_10] : memref<1x1x1x794xbf16, #tpu.memory_space<vmem>>, vector<1x1x1x794xbf16>
    %5 = vector.shape_cast %4 : vector<1x1x1x794xbf16> to vector<1x794xbf16>
    %cst = arith.constant 0.000000e+00 : f32
    %6 = vector.broadcast %cst : f32 to vector<8x748xf32>
    %c0_11 = arith.constant 0 : index
    %c0_12 = arith.constant 0 : index
    %c0_13 = arith.constant 0 : index
    %7 = vector.load %arg2[%c0_11, %c0_12, %c0_13] : memref<27x8x1xbf16, #tpu.memory_space<vmem>>, vector<27x8x1xbf16>
    %8 = arith.extf %7 : vector<27x8x1xbf16> to vector<27x8x1xf32>
    %9 = arith.extf %1 : vector<1x794xbf16> to vector<1x794xf32>
    %10 = arith.extf %3 : vector<1x794xbf16> to vector<1x794xf32>
    %11 = arith.extf %5 : vector<1x794xbf16> to vector<1x794xf32>
    %12 = vector.extract_strided_slice %8 {offsets = [0, 0, 0], sizes = [1, 8, 1], strides = [1, 1, 1]} : vector<27x8x1xf32> to vector<1x8x1xf32>
    %13 = vector.shape_cast %12 : vector<1x8x1xf32> to vector<8x1xf32>
    %14 = vector.extract_strided_slice %9 {offsets = [0, 0], sizes = [1, 748], strides = [1, 1]} : vector<1x794xf32> to vector<1x748xf32>
    %15 = vector.broadcast %13 : vector<8x1xf32> to vector<8x748xf32>
    %16 = vector.broadcast %14 : vector<1x748xf32> to vector<8x748xf32>
    %17 = arith.mulf %15, %16 : vector<8x748xf32>
    %18 = arith.addf %6, %17 : vector<8x748xf32>
    %19 = vector.extract_strided_slice %8 {offsets = [1, 0, 0], sizes = [1, 8, 1], strides = [1, 1, 1]} : vector<27x8x1xf32> to vector<1x8x1xf32>
    %20 = vector.shape_cast %19 : vector<1x8x1xf32> to vector<8x1xf32>
    %21 = vector.extract_strided_slice %9 {offsets = [0, 1], sizes = [1, 748], strides = [1, 1]} : vector<1x794xf32> to vector<1x748xf32>
    %22 = vector.broadcast %20 : vector<8x1xf32> to vector<8x748xf32>
    %23 = vector.broadcast %21 : vector<1x748xf32> to vector<8x748xf32>
    %24 = arith.mulf %22, %23 : vector<8x748xf32>
    %25 = arith.addf %18, %24 : vector<8x748xf32>
    %26 = vector.extract_strided_slice %8 {offsets = [2, 0, 0], sizes = [1, 8, 1], strides = [1, 1, 1]} : vector<27x8x1xf32> to vector<1x8x1xf32>
    %27 = vector.shape_cast %26 : vector<1x8x1xf32> to vector<8x1xf32>
    %28 = vector.extract_strided_slice %9 {offsets = [0, 2], sizes = [1, 748], strides = [1, 1]} : vector<1x794xf32> to vector<1x748xf32>
    %29 = vector.broadcast %27 : vector<8x1xf32> to vector<8x748xf32>
    %30 = vector.broadcast %28 : vector<1x748xf32> to vector<8x748xf32>
    %31 = arith.mulf %29, %30 : vector<8x748xf32>
    %32 = arith.addf %25, %31 : vector<8x748xf32>
    %33 = vector.extract_strided_slice %8 {offsets = [3, 0, 0], sizes = [1, 8, 1], strides = [1, 1, 1]} : vector<27x8x1xf32> to vector<1x8x1xf32>
    %34 = vector.shape_cast %33 : vector<1x8x1xf32> to vector<8x1xf32>
    %35 = vector.extract_strided_slice %9 {offsets = [0, 22], sizes = [1, 748], strides = [1, 1]} : vector<1x794xf32> to vector<1x748xf32>
    %36 = vector.broadcast %34 : vector<8x1xf32> to vector<8x748xf32>
    %37 = vector.broadcast %35 : vector<1x748xf32> to vector<8x748xf32>
    %38 = arith.mulf %36, %37 : vector<8x748xf32>
    %39 = arith.addf %32, %38 : vector<8x748xf32>
    %40 = vector.extract_strided_slice %8 {offsets = [4, 0, 0], sizes = [1, 8, 1], strides = [1, 1, 1]} : vector<27x8x1xf32> to vector<1x8x1xf32>
    %41 = vector.shape_cast %40 : vector<1x8x1xf32> to vector<8x1xf32>
    %42 = vector.extract_strided_slice %9 {offsets = [0, 23], sizes = [1, 748], strides = [1, 1]} : vector<1x794xf32> to vector<1x748xf32>
    %43 = vector.broadcast %41 : vector<8x1xf32> to vector<8x748xf32>
    %44 = vector.broadcast %42 : vector<1x748xf32> to vector<8x748xf32>
    %45 = arith.mulf %43, %44 : vector<8x748xf32>
    %46 = arith.addf %39, %45 : vector<8x748xf32>
    %47 = vector.extract_strided_slice %8 {offsets = [5, 0, 0], sizes = [1, 8, 1], strides = [1, 1, 1]} : vector<27x8x1xf32> to vector<1x8x1xf32>
    %48 = vector.shape_cast %47 : vector<1x8x1xf32> to vector<8x1xf32>
    %49 = vector.extract_strided_slice %9 {offsets = [0, 24], sizes = [1, 748], strides = [1, 1]} : vector<1x794xf32> to vector<1x748xf32>
    %50 = vector.broadcast %48 : vector<8x1xf32> to vector<8x748xf32>
    %51 = vector.broadcast %49 : vector<1x748xf32> to vector<8x748xf32>
    %52 = arith.mulf %50, %51 : vector<8x748xf32>
    %53 = arith.addf %46, %52 : vector<8x748xf32>
    %54 = vector.extract_strided_slice %8 {offsets = [6, 0, 0], sizes = [1, 8, 1], strides = [1, 1, 1]} : vector<27x8x1xf32> to vector<1x8x1xf32>
    %55 = vector.shape_cast %54 : vector<1x8x1xf32> to vector<8x1xf32>
    %56 = vector.extract_strided_slice %9 {offsets = [0, 44], sizes = [1, 748], strides = [1, 1]} : vector<1x794xf32> to vector<1x748xf32>
    %57 = vector.broadcast %55 : vector<8x1xf32> to vector<8x748xf32>
    %58 = vector.broadcast %56 : vector<1x748xf32> to vector<8x748xf32>
    %59 = arith.mulf %57, %58 : vector<8x748xf32>
    %60 = arith.addf %53, %59 : vector<8x748xf32>
    %61 = vector.extract_strided_slice %8 {offsets = [7, 0, 0], sizes = [1, 8, 1], strides = [1, 1, 1]} : vector<27x8x1xf32> to vector<1x8x1xf32>
    %62 = vector.shape_cast %61 : vector<1x8x1xf32> to vector<8x1xf32>
    %63 = vector.extract_strided_slice %9 {offsets = [0, 45], sizes = [1, 748], strides = [1, 1]} : vector<1x794xf32> to vector<1x748xf32>
    %64 = vector.broadcast %62 : vector<8x1xf32> to vector<8x748xf32>
    %65 = vector.broadcast %63 : vector<1x748xf32> to vector<8x748xf32>
    %66 = arith.mulf %64, %65 : vector<8x748xf32>
    %67 = arith.addf %60, %66 : vector<8x748xf32>
    %68 = vector.extract_strided_slice %8 {offsets = [8, 0, 0], sizes = [1, 8, 1], strides = [1, 1, 1]} : vector<27x8x1xf32> to vector<1x8x1xf32>
    %69 = vector.shape_cast %68 : vector<1x8x1xf32> to vector<8x1xf32>
    %70 = vector.extract_strided_slice %9 {offsets = [0, 46], sizes = [1, 748], strides = [1, 1]} : vector<1x794xf32> to vector<1x748xf32>
    %71 = vector.broadcast %69 : vector<8x1xf32> to vector<8x748xf32>
    %72 = vector.broadcast %70 : vector<1x748xf32> to vector<8x748xf32>
    %73 = arith.mulf %71, %72 : vector<8x748xf32>
    %74 = arith.addf %67, %73 : vector<8x748xf32>
    %75 = vector.extract_strided_slice %8 {offsets = [9, 0, 0], sizes = [1, 8, 1], strides = [1, 1, 1]} : vector<27x8x1xf32> to vector<1x8x1xf32>
    %76 = vector.shape_cast %75 : vector<1x8x1xf32> to vector<8x1xf32>
    %77 = vector.extract_strided_slice %10 {offsets = [0, 0], sizes = [1, 748], strides = [1, 1]} : vector<1x794xf32> to vector<1x748xf32>
    %78 = vector.broadcast %76 : vector<8x1xf32> to vector<8x748xf32>
    %79 = vector.broadcast %77 : vector<1x748xf32> to vector<8x748xf32>
    %80 = arith.mulf %78, %79 : vector<8x748xf32>
    %81 = arith.addf %74, %80 : vector<8x748xf32>
    %82 = vector.extract_strided_slice %8 {offsets = [10, 0, 0], sizes = [1, 8, 1], strides = [1, 1, 1]} : vector<27x8x1xf32> to vector<1x8x1xf32>
    %83 = vector.shape_cast %82 : vector<1x8x1xf32> to vector<8x1xf32>
    %84 = vector.extract_strided_slice %10 {offsets = [0, 1], sizes = [1, 748], strides = [1, 1]} : vector<1x794xf32> to vector<1x748xf32>
    %85 = vector.broadcast %83 : vector<8x1xf32> to vector<8x748xf32>
    %86 = vector.broadcast %84 : vector<1x748xf32> to vector<8x748xf32>
    %87 = arith.mulf %85, %86 : vector<8x748xf32>
    %88 = arith.addf %81, %87 : vector<8x748xf32>
    %89 = vector.extract_strided_slice %8 {offsets = [11, 0, 0], sizes = [1, 8, 1], strides = [1, 1, 1]} : vector<27x8x1xf32> to vector<1x8x1xf32>
    %90 = vector.shape_cast %89 : vector<1x8x1xf32> to vector<8x1xf32>
    %91 = vector.extract_strided_slice %10 {offsets = [0, 2], sizes = [1, 748], strides = [1, 1]} : vector<1x794xf32> to vector<1x748xf32>
    %92 = vector.broadcast %90 : vector<8x1xf32> to vector<8x748xf32>
    %93 = vector.broadcast %91 : vector<1x748xf32> to vector<8x748xf32>
    %94 = arith.mulf %92, %93 : vector<8x748xf32>
    %95 = arith.addf %88, %94 : vector<8x748xf32>
    %96 = vector.extract_strided_slice %8 {offsets = [12, 0, 0], sizes = [1, 8, 1], strides = [1, 1, 1]} : vector<27x8x1xf32> to vector<1x8x1xf32>
    %97 = vector.shape_cast %96 : vector<1x8x1xf32> to vector<8x1xf32>
    %98 = vector.extract_strided_slice %10 {offsets = [0, 22], sizes = [1, 748], strides = [1, 1]} : vector<1x794xf32> to vector<1x748xf32>
    %99 = vector.broadcast %97 : vector<8x1xf32> to vector<8x748xf32>
    %100 = vector.broadcast %98 : vector<1x748xf32> to vector<8x748xf32>
    %101 = arith.mulf %99, %100 : vector<8x748xf32>
    %102 = arith.addf %95, %101 : vector<8x748xf32>
    %103 = vector.extract_strided_slice %8 {offsets = [13, 0, 0], sizes = [1, 8, 1], strides = [1, 1, 1]} : vector<27x8x1xf32> to vector<1x8x1xf32>
    %104 = vector.shape_cast %103 : vector<1x8x1xf32> to vector<8x1xf32>
    %105 = vector.extract_strided_slice %10 {offsets = [0, 23], sizes = [1, 748], strides = [1, 1]} : vector<1x794xf32> to vector<1x748xf32>
    %106 = vector.broadcast %104 : vector<8x1xf32> to vector<8x748xf32>
    %107 = vector.broadcast %105 : vector<1x748xf32> to vector<8x748xf32>
    %108 = arith.mulf %106, %107 : vector<8x748xf32>
    %109 = arith.addf %102, %108 : vector<8x748xf32>
    %110 = vector.extract_strided_slice %8 {offsets = [14, 0, 0], sizes = [1, 8, 1], strides = [1, 1, 1]} : vector<27x8x1xf32> to vector<1x8x1xf32>
    %111 = vector.shape_cast %110 : vector<1x8x1xf32> to vector<8x1xf32>
    %112 = vector.extract_strided_slice %10 {offsets = [0, 24], sizes = [1, 748], strides = [1, 1]} : vector<1x794xf32> to vector<1x748xf32>
    %113 = vector.broadcast %111 : vector<8x1xf32> to vector<8x748xf32>
    %114 = vector.broadcast %112 : vector<1x748xf32> to vector<8x748xf32>
    %115 = arith.mulf %113, %114 : vector<8x748xf32>
    %116 = arith.addf %109, %115 : vector<8x748xf32>
    %117 = vector.extract_strided_slice %8 {offsets = [15, 0, 0], sizes = [1, 8, 1], strides = [1, 1, 1]} : vector<27x8x1xf32> to vector<1x8x1xf32>
    %118 = vector.shape_cast %117 : vector<1x8x1xf32> to vector<8x1xf32>
    %119 = vector.extract_strided_slice %10 {offsets = [0, 44], sizes = [1, 748], strides = [1, 1]} : vector<1x794xf32> to vector<1x748xf32>
    %120 = vector.broadcast %118 : vector<8x1xf32> to vector<8x748xf32>
    %121 = vector.broadcast %119 : vector<1x748xf32> to vector<8x748xf32>
    %122 = arith.mulf %120, %121 : vector<8x748xf32>
    %123 = arith.addf %116, %122 : vector<8x748xf32>
    %124 = vector.extract_strided_slice %8 {offsets = [16, 0, 0], sizes = [1, 8, 1], strides = [1, 1, 1]} : vector<27x8x1xf32> to vector<1x8x1xf32>
    %125 = vector.shape_cast %124 : vector<1x8x1xf32> to vector<8x1xf32>
    %126 = vector.extract_strided_slice %10 {offsets = [0, 45], sizes = [1, 748], strides = [1, 1]} : vector<1x794xf32> to vector<1x748xf32>
    %127 = vector.broadcast %125 : vector<8x1xf32> to vector<8x748xf32>
    %128 = vector.broadcast %126 : vector<1x748xf32> to vector<8x748xf32>
    %129 = arith.mulf %127, %128 : vector<8x748xf32>
    %130 = arith.addf %123, %129 : vector<8x748xf32>
    %131 = vector.extract_strided_slice %8 {offsets = [17, 0, 0], sizes = [1, 8, 1], strides = [1, 1, 1]} : vector<27x8x1xf32> to vector<1x8x1xf32>
    %132 = vector.shape_cast %131 : vector<1x8x1xf32> to vector<8x1xf32>
    %133 = vector.extract_strided_slice %10 {offsets = [0, 46], sizes = [1, 748], strides = [1, 1]} : vector<1x794xf32> to vector<1x748xf32>
    %134 = vector.broadcast %132 : vector<8x1xf32> to vector<8x748xf32>
    %135 = vector.broadcast %133 : vector<1x748xf32> to vector<8x748xf32>
    %136 = arith.mulf %134, %135 : vector<8x748xf32>
    %137 = arith.addf %130, %136 : vector<8x748xf32>
    %138 = vector.extract_strided_slice %8 {offsets = [18, 0, 0], sizes = [1, 8, 1], strides = [1, 1, 1]} : vector<27x8x1xf32> to vector<1x8x1xf32>
    %139 = vector.shape_cast %138 : vector<1x8x1xf32> to vector<8x1xf32>
    %140 = vector.extract_strided_slice %11 {offsets = [0, 0], sizes = [1, 748], strides = [1, 1]} : vector<1x794xf32> to vector<1x748xf32>
    %141 = vector.broadcast %139 : vector<8x1xf32> to vector<8x748xf32>
    %142 = vector.broadcast %140 : vector<1x748xf32> to vector<8x748xf32>
    %143 = arith.mulf %141, %142 : vector<8x748xf32>
    %144 = arith.addf %137, %143 : vector<8x748xf32>
    %145 = vector.extract_strided_slice %8 {offsets = [19, 0, 0], sizes = [1, 8, 1], strides = [1, 1, 1]} : vector<27x8x1xf32> to vector<1x8x1xf32>
    %146 = vector.shape_cast %145 : vector<1x8x1xf32> to vector<8x1xf32>
    %147 = vector.extract_strided_slice %11 {offsets = [0, 1], sizes = [1, 748], strides = [1, 1]} : vector<1x794xf32> to vector<1x748xf32>
    %148 = vector.broadcast %146 : vector<8x1xf32> to vector<8x748xf32>
    %149 = vector.broadcast %147 : vector<1x748xf32> to vector<8x748xf32>
    %150 = arith.mulf %148, %149 : vector<8x748xf32>
    %151 = arith.addf %144, %150 : vector<8x748xf32>
    %152 = vector.extract_strided_slice %8 {offsets = [20, 0, 0], sizes = [1, 8, 1], strides = [1, 1, 1]} : vector<27x8x1xf32> to vector<1x8x1xf32>
    %153 = vector.shape_cast %152 : vector<1x8x1xf32> to vector<8x1xf32>
    %154 = vector.extract_strided_slice %11 {offsets = [0, 2], sizes = [1, 748], strides = [1, 1]} : vector<1x794xf32> to vector<1x748xf32>
    %155 = vector.broadcast %153 : vector<8x1xf32> to vector<8x748xf32>
    %156 = vector.broadcast %154 : vector<1x748xf32> to vector<8x748xf32>
    %157 = arith.mulf %155, %156 : vector<8x748xf32>
    %158 = arith.addf %151, %157 : vector<8x748xf32>
    %159 = vector.extract_strided_slice %8 {offsets = [21, 0, 0], sizes = [1, 8, 1], strides = [1, 1, 1]} : vector<27x8x1xf32> to vector<1x8x1xf32>
    %160 = vector.shape_cast %159 : vector<1x8x1xf32> to vector<8x1xf32>
    %161 = vector.extract_strided_slice %11 {offsets = [0, 22], sizes = [1, 748], strides = [1, 1]} : vector<1x794xf32> to vector<1x748xf32>
    %162 = vector.broadcast %160 : vector<8x1xf32> to vector<8x748xf32>
    %163 = vector.broadcast %161 : vector<1x748xf32> to vector<8x748xf32>
    %164 = arith.mulf %162, %163 : vector<8x748xf32>
    %165 = arith.addf %158, %164 : vector<8x748xf32>
    %166 = vector.extract_strided_slice %8 {offsets = [22, 0, 0], sizes = [1, 8, 1], strides = [1, 1, 1]} : vector<27x8x1xf32> to vector<1x8x1xf32>
    %167 = vector.shape_cast %166 : vector<1x8x1xf32> to vector<8x1xf32>
    %168 = vector.extract_strided_slice %11 {offsets = [0, 23], sizes = [1, 748], strides = [1, 1]} : vector<1x794xf32> to vector<1x748xf32>
    %169 = vector.broadcast %167 : vector<8x1xf32> to vector<8x748xf32>
    %170 = vector.broadcast %168 : vector<1x748xf32> to vector<8x748xf32>
    %171 = arith.mulf %169, %170 : vector<8x748xf32>
    %172 = arith.addf %165, %171 : vector<8x748xf32>
    %173 = vector.extract_strided_slice %8 {offsets = [23, 0, 0], sizes = [1, 8, 1], strides = [1, 1, 1]} : vector<27x8x1xf32> to vector<1x8x1xf32>
    %174 = vector.shape_cast %173 : vector<1x8x1xf32> to vector<8x1xf32>
    %175 = vector.extract_strided_slice %11 {offsets = [0, 24], sizes = [1, 748], strides = [1, 1]} : vector<1x794xf32> to vector<1x748xf32>
    %176 = vector.broadcast %174 : vector<8x1xf32> to vector<8x748xf32>
    %177 = vector.broadcast %175 : vector<1x748xf32> to vector<8x748xf32>
    %178 = arith.mulf %176, %177 : vector<8x748xf32>
    %179 = arith.addf %172, %178 : vector<8x748xf32>
    %180 = vector.extract_strided_slice %8 {offsets = [24, 0, 0], sizes = [1, 8, 1], strides = [1, 1, 1]} : vector<27x8x1xf32> to vector<1x8x1xf32>
    %181 = vector.shape_cast %180 : vector<1x8x1xf32> to vector<8x1xf32>
    %182 = vector.extract_strided_slice %11 {offsets = [0, 44], sizes = [1, 748], strides = [1, 1]} : vector<1x794xf32> to vector<1x748xf32>
    %183 = vector.broadcast %181 : vector<8x1xf32> to vector<8x748xf32>
    %184 = vector.broadcast %182 : vector<1x748xf32> to vector<8x748xf32>
    %185 = arith.mulf %183, %184 : vector<8x748xf32>
    %186 = arith.addf %179, %185 : vector<8x748xf32>
    %187 = vector.extract_strided_slice %8 {offsets = [25, 0, 0], sizes = [1, 8, 1], strides = [1, 1, 1]} : vector<27x8x1xf32> to vector<1x8x1xf32>
    %188 = vector.shape_cast %187 : vector<1x8x1xf32> to vector<8x1xf32>
    %189 = vector.extract_strided_slice %11 {offsets = [0, 45], sizes = [1, 748], strides = [1, 1]} : vector<1x794xf32> to vector<1x748xf32>
    %190 = vector.broadcast %188 : vector<8x1xf32> to vector<8x748xf32>
    %191 = vector.broadcast %189 : vector<1x748xf32> to vector<8x748xf32>
    %192 = arith.mulf %190, %191 : vector<8x748xf32>
    %193 = arith.addf %186, %192 : vector<8x748xf32>
    %194 = vector.extract_strided_slice %8 {offsets = [26, 0, 0], sizes = [1, 8, 1], strides = [1, 1, 1]} : vector<27x8x1xf32> to vector<1x8x1xf32>
    %195 = vector.shape_cast %194 : vector<1x8x1xf32> to vector<8x1xf32>
    %196 = vector.extract_strided_slice %11 {offsets = [0, 46], sizes = [1, 748], strides = [1, 1]} : vector<1x794xf32> to vector<1x748xf32>
    %197 = vector.broadcast %195 : vector<8x1xf32> to vector<8x748xf32>
    %198 = vector.broadcast %196 : vector<1x748xf32> to vector<8x748xf32>
    %199 = arith.mulf %197, %198 : vector<8x748xf32>
    %200 = arith.addf %193, %199 : vector<8x748xf32>
    %c0_14 = arith.constant 0 : index
    %c0_15 = arith.constant 0 : index
    %201 = vector.load %arg3[%c0_14, %c0_15] : memref<8x1xf32, #tpu.memory_space<vmem>>, vector<8x1xf32>
    %202 = vector.broadcast %201 : vector<8x1xf32> to vector<8x748xf32>
    %203 = arith.addf %200, %202 : vector<8x748xf32>
    %cst_16 = arith.constant 0.000000e+00 : f32
    %204 = vector.broadcast %cst_16 : f32 to vector<8x748xf32>
    %205 = arith.maximumf %203, %204 : vector<8x748xf32>
    %206 = arith.truncf %205 : vector<8x748xf32> to vector<8x748xbf16>
    %c0_17 = arith.constant 0 : index
    %c0_18 = arith.constant 0 : index
    %c0_19 = arith.constant 0 : index
    %c0_20 = arith.constant 0 : index
    %207 = vector.load %arg7[%c0_17, %c0_18, %c0_19, %c0_20] : memref<1x1x8x748xbf16, #tpu.memory_space<vmem>>, vector<1x1x8x748xbf16>
    %208 = vector.shape_cast %207 : vector<1x1x8x748xbf16> to vector<8x748xbf16>
    %209 = vector.shape_cast %206 : vector<8x748xbf16> to vector<1x1x8x748xbf16>
    tpu.vector_store %arg7[%c0_17, %c0_18, %c0_19, %c0_20], %209 {strides = array<i32>} : memref<1x1x8x748xbf16, #tpu.memory_space<vmem>>, vector<1x1x8x748xbf16>,
    return
  }
  func.func @transform_0(%arg0: i32, %arg1: i32) -> (i32, i32, i32) {
    %c0_i32 = arith.constant 0 : i32
    %c0_i32_0 = arith.constant 0 : i32
    %c0_i32_1 = arith.constant 0 : i32
    %c0_i32_2 = arith.constant 0 : i32
    return %c0_i32, %c0_i32_0, %c0_i32_1 : i32, i32, i32
  }
  func.func @transform_1(%arg0: i32, %arg1: i32) -> (i32, i32) {
    %c0_i32 = arith.constant 0 : i32
    %c0_i32_0 = arith.constant 0 : i32
    %c0_i32_1 = arith.constant 0 : i32
    return %c0_i32, %c0_i32_0 : i32, i32
  }
  func.func @transform_2(%arg0: i32, %arg1: i32) -> (i32, i32, i32, i32) {
    %c0_i32 = arith.constant 0 : i32
    %c0_i32_0 = arith.constant 0 : i32
    %c0_i32_1 = arith.constant 0 : i32
    return %arg0, %arg1, %c0_i32, %c0_i32_0 : i32, i32, i32, i32
  }
  func.func @transform_3(%arg0: i32, %arg1: i32) -> (i32, i32, i32, i32) {
    %c1_i32 = arith.constant 1 : i32
    %0 = arith.addi %arg1, %c1_i32 : i32
    %c0_i32 = arith.constant 0 : i32
    %c0_i32_0 = arith.constant 0 : i32
    %c0_i32_1 = arith.constant 0 : i32
    return %arg0, %0, %c0_i32, %c0_i32_0 : i32, i32, i32, i32
  }
  func.func @transform_4(%arg0: i32, %arg1: i32) -> (i32, i32, i32, i32) {
    %c2_i32 = arith.constant 2 : i32
    %0 = arith.addi %arg1, %c2_i32 : i32
    %c0_i32 = arith.constant 0 : i32
    %c0_i32_0 = arith.constant 0 : i32
    %c0_i32_1 = arith.constant 0 : i32
    return %arg0, %0, %c0_i32, %c0_i32_0 : i32, i32, i32, i32
  }
  func.func @transform_5(%arg0: i32, %arg1: i32) -> (i32, i32, i32, i32) {
    %c0_i32 = arith.constant 0 : i32
    %c0_i32_0 = arith.constant 0 : i32
    %c0_i32_1 = arith.constant 0 : i32
    return %arg0, %arg1, %c0_i32, %c0_i32_0 : i32, i32, i32, i32
  }
}

module attributes {stable_mosaic.version = 11 : i64} {
  func.func @_conv3_kernel(%arg0: i32, %arg1: i32, %arg2: memref<27x16x8xbf16, #tpu.memory_space<vmem>>, %arg3: memref<16x1xf32, #tpu.memory_space<vmem>>, %arg4: memref<1x1x8x230xbf16, #tpu.memory_space<vmem>>, %arg5: memref<1x1x8x230xbf16, #tpu.memory_space<vmem>>, %arg6: memref<1x1x8x230xbf16, #tpu.memory_space<vmem>>, %arg7: memref<1x1x16x204xbf16, #tpu.memory_space<vmem>>) attributes {dimension_semantics = [#tpu.dimension_semantics<parallel>, #tpu.dimension_semantics<parallel>], iteration_bounds = array<i64: 2, 9>, scalar_prefetch = 0 : i64, scratch_operands = 0 : i64, tpu.core_type = #tpu.core_type<tc>, window_params = [{pipeline_mode = #tpu.pipeline_mode<synchronous>, transform_indices = @transform_0, window_bounds = array<i64: 27, 16, 8>}, {pipeline_mode = #tpu.pipeline_mode<synchronous>, transform_indices = @transform_1, window_bounds = array<i64: 16, 1>}, {transform_indices = @transform_2, window_bounds = array<i64: 1, 1, 8, 230>}, {transform_indices = @transform_3, window_bounds = array<i64: 1, 1, 8, 230>}, {transform_indices = @transform_4, window_bounds = array<i64: 1, 1, 8, 230>}, {transform_indices = @transform_5, window_bounds = array<i64: 1, 1, 16, 204>}]} {
    %c0 = arith.constant 0 : index
    %c0_0 = arith.constant 0 : index
    %c0_1 = arith.constant 0 : index
    %c0_2 = arith.constant 0 : index
    %0 = vector.load %arg4[%c0, %c0_0, %c0_1, %c0_2] : memref<1x1x8x230xbf16, #tpu.memory_space<vmem>>, vector<1x1x8x230xbf16>
    %1 = vector.shape_cast %0 : vector<1x1x8x230xbf16> to vector<8x230xbf16>
    %c0_3 = arith.constant 0 : index
    %c0_4 = arith.constant 0 : index
    %c0_5 = arith.constant 0 : index
    %c0_6 = arith.constant 0 : index
    %2 = vector.load %arg5[%c0_3, %c0_4, %c0_5, %c0_6] : memref<1x1x8x230xbf16, #tpu.memory_space<vmem>>, vector<1x1x8x230xbf16>
    %3 = vector.shape_cast %2 : vector<1x1x8x230xbf16> to vector<8x230xbf16>
    %c0_7 = arith.constant 0 : index
    %c0_8 = arith.constant 0 : index
    %c0_9 = arith.constant 0 : index
    %c0_10 = arith.constant 0 : index
    %4 = vector.load %arg6[%c0_7, %c0_8, %c0_9, %c0_10] : memref<1x1x8x230xbf16, #tpu.memory_space<vmem>>, vector<1x1x8x230xbf16>
    %5 = vector.shape_cast %4 : vector<1x1x8x230xbf16> to vector<8x230xbf16>
    %cst = arith.constant 0.000000e+00 : f32
    %6 = vector.broadcast %cst : f32 to vector<16x204xf32>
    %7 = vector.extract_strided_slice %1 {offsets = [0, 0], sizes = [8, 204], strides = [1, 1]} : vector<8x230xbf16> to vector<8x204xbf16>
    %c0_11 = arith.constant 0 : index
    %c0_12 = arith.constant 0 : index
    %c0_13 = arith.constant 0 : index
    %8 = vector.load %arg2[%c0_11, %c0_12, %c0_13] : memref<27x16x8xbf16, #tpu.memory_space<vmem>>, vector<1x16x8xbf16>
    %9 = vector.shape_cast %8 : vector<1x16x8xbf16> to vector<16x8xbf16>
    %cst_14 = arith.constant dense<0.000000e+00> : vector<16x204xf32>
    %10 = tpu.matmul %9, %7, %cst_14 {dimension_numbers = #tpu.dot_dimension_numbers<[1], [0], [0], [1], [0, 0, 1, 1], [], []>} : vector<16x8xbf16>, vector<8x204xbf16>, vector<16x204xf32> -> vector<16x204xf32>
    %11 = arith.addf %6, %10 : vector<16x204xf32>
    %12 = vector.extract_strided_slice %1 {offsets = [0, 1], sizes = [8, 204], strides = [1, 1]} : vector<8x230xbf16> to vector<8x204xbf16>
    %c1 = arith.constant 1 : index
    %c0_15 = arith.constant 0 : index
    %c0_16 = arith.constant 0 : index
    %13 = vector.load %arg2[%c1, %c0_15, %c0_16] : memref<27x16x8xbf16, #tpu.memory_space<vmem>>, vector<1x16x8xbf16>
    %14 = vector.shape_cast %13 : vector<1x16x8xbf16> to vector<16x8xbf16>
    %cst_17 = arith.constant dense<0.000000e+00> : vector<16x204xf32>
    %15 = tpu.matmul %14, %12, %cst_17 {dimension_numbers = #tpu.dot_dimension_numbers<[1], [0], [0], [1], [0, 0, 1, 1], [], []>} : vector<16x8xbf16>, vector<8x204xbf16>, vector<16x204xf32> -> vector<16x204xf32>
    %16 = arith.addf %11, %15 : vector<16x204xf32>
    %17 = vector.extract_strided_slice %1 {offsets = [0, 2], sizes = [8, 204], strides = [1, 1]} : vector<8x230xbf16> to vector<8x204xbf16>
    %c2 = arith.constant 2 : index
    %c0_18 = arith.constant 0 : index
    %c0_19 = arith.constant 0 : index
    %18 = vector.load %arg2[%c2, %c0_18, %c0_19] : memref<27x16x8xbf16, #tpu.memory_space<vmem>>, vector<1x16x8xbf16>
    %19 = vector.shape_cast %18 : vector<1x16x8xbf16> to vector<16x8xbf16>
    %cst_20 = arith.constant dense<0.000000e+00> : vector<16x204xf32>
    %20 = tpu.matmul %19, %17, %cst_20 {dimension_numbers = #tpu.dot_dimension_numbers<[1], [0], [0], [1], [0, 0, 1, 1], [], []>} : vector<16x8xbf16>, vector<8x204xbf16>, vector<16x204xf32> -> vector<16x204xf32>
    %21 = arith.addf %16, %20 : vector<16x204xf32>
    %22 = vector.extract_strided_slice %1 {offsets = [0, 12], sizes = [8, 204], strides = [1, 1]} : vector<8x230xbf16> to vector<8x204xbf16>
    %c3 = arith.constant 3 : index
    %c0_21 = arith.constant 0 : index
    %c0_22 = arith.constant 0 : index
    %23 = vector.load %arg2[%c3, %c0_21, %c0_22] : memref<27x16x8xbf16, #tpu.memory_space<vmem>>, vector<1x16x8xbf16>
    %24 = vector.shape_cast %23 : vector<1x16x8xbf16> to vector<16x8xbf16>
    %cst_23 = arith.constant dense<0.000000e+00> : vector<16x204xf32>
    %25 = tpu.matmul %24, %22, %cst_23 {dimension_numbers = #tpu.dot_dimension_numbers<[1], [0], [0], [1], [0, 0, 1, 1], [], []>} : vector<16x8xbf16>, vector<8x204xbf16>, vector<16x204xf32> -> vector<16x204xf32>
    %26 = arith.addf %21, %25 : vector<16x204xf32>
    %27 = vector.extract_strided_slice %1 {offsets = [0, 13], sizes = [8, 204], strides = [1, 1]} : vector<8x230xbf16> to vector<8x204xbf16>
    %c4 = arith.constant 4 : index
    %c0_24 = arith.constant 0 : index
    %c0_25 = arith.constant 0 : index
    %28 = vector.load %arg2[%c4, %c0_24, %c0_25] : memref<27x16x8xbf16, #tpu.memory_space<vmem>>, vector<1x16x8xbf16>
    %29 = vector.shape_cast %28 : vector<1x16x8xbf16> to vector<16x8xbf16>
    %cst_26 = arith.constant dense<0.000000e+00> : vector<16x204xf32>
    %30 = tpu.matmul %29, %27, %cst_26 {dimension_numbers = #tpu.dot_dimension_numbers<[1], [0], [0], [1], [0, 0, 1, 1], [], []>} : vector<16x8xbf16>, vector<8x204xbf16>, vector<16x204xf32> -> vector<16x204xf32>
    %31 = arith.addf %26, %30 : vector<16x204xf32>
    %32 = vector.extract_strided_slice %1 {offsets = [0, 14], sizes = [8, 204], strides = [1, 1]} : vector<8x230xbf16> to vector<8x204xbf16>
    %c5 = arith.constant 5 : index
    %c0_27 = arith.constant 0 : index
    %c0_28 = arith.constant 0 : index
    %33 = vector.load %arg2[%c5, %c0_27, %c0_28] : memref<27x16x8xbf16, #tpu.memory_space<vmem>>, vector<1x16x8xbf16>
    %34 = vector.shape_cast %33 : vector<1x16x8xbf16> to vector<16x8xbf16>
    %cst_29 = arith.constant dense<0.000000e+00> : vector<16x204xf32>
    %35 = tpu.matmul %34, %32, %cst_29 {dimension_numbers = #tpu.dot_dimension_numbers<[1], [0], [0], [1], [0, 0, 1, 1], [], []>} : vector<16x8xbf16>, vector<8x204xbf16>, vector<16x204xf32> -> vector<16x204xf32>
    %36 = arith.addf %31, %35 : vector<16x204xf32>
    %37 = vector.extract_strided_slice %1 {offsets = [0, 24], sizes = [8, 204], strides = [1, 1]} : vector<8x230xbf16> to vector<8x204xbf16>
    %c6 = arith.constant 6 : index
    %c0_30 = arith.constant 0 : index
    %c0_31 = arith.constant 0 : index
    %38 = vector.load %arg2[%c6, %c0_30, %c0_31] : memref<27x16x8xbf16, #tpu.memory_space<vmem>>, vector<1x16x8xbf16>
    %39 = vector.shape_cast %38 : vector<1x16x8xbf16> to vector<16x8xbf16>
    %cst_32 = arith.constant dense<0.000000e+00> : vector<16x204xf32>
    %40 = tpu.matmul %39, %37, %cst_32 {dimension_numbers = #tpu.dot_dimension_numbers<[1], [0], [0], [1], [0, 0, 1, 1], [], []>} : vector<16x8xbf16>, vector<8x204xbf16>, vector<16x204xf32> -> vector<16x204xf32>
    %41 = arith.addf %36, %40 : vector<16x204xf32>
    %42 = vector.extract_strided_slice %1 {offsets = [0, 25], sizes = [8, 204], strides = [1, 1]} : vector<8x230xbf16> to vector<8x204xbf16>
    %c7 = arith.constant 7 : index
    %c0_33 = arith.constant 0 : index
    %c0_34 = arith.constant 0 : index
    %43 = vector.load %arg2[%c7, %c0_33, %c0_34] : memref<27x16x8xbf16, #tpu.memory_space<vmem>>, vector<1x16x8xbf16>
    %44 = vector.shape_cast %43 : vector<1x16x8xbf16> to vector<16x8xbf16>
    %cst_35 = arith.constant dense<0.000000e+00> : vector<16x204xf32>
    %45 = tpu.matmul %44, %42, %cst_35 {dimension_numbers = #tpu.dot_dimension_numbers<[1], [0], [0], [1], [0, 0, 1, 1], [], []>} : vector<16x8xbf16>, vector<8x204xbf16>, vector<16x204xf32> -> vector<16x204xf32>
    %46 = arith.addf %41, %45 : vector<16x204xf32>
    %47 = vector.extract_strided_slice %1 {offsets = [0, 26], sizes = [8, 204], strides = [1, 1]} : vector<8x230xbf16> to vector<8x204xbf16>
    %c8 = arith.constant 8 : index
    %c0_36 = arith.constant 0 : index
    %c0_37 = arith.constant 0 : index
    %48 = vector.load %arg2[%c8, %c0_36, %c0_37] : memref<27x16x8xbf16, #tpu.memory_space<vmem>>, vector<1x16x8xbf16>
    %49 = vector.shape_cast %48 : vector<1x16x8xbf16> to vector<16x8xbf16>
    %cst_38 = arith.constant dense<0.000000e+00> : vector<16x204xf32>
    %50 = tpu.matmul %49, %47, %cst_38 {dimension_numbers = #tpu.dot_dimension_numbers<[1], [0], [0], [1], [0, 0, 1, 1], [], []>} : vector<16x8xbf16>, vector<8x204xbf16>, vector<16x204xf32> -> vector<16x204xf32>
    %51 = arith.addf %46, %50 : vector<16x204xf32>
    %52 = vector.extract_strided_slice %3 {offsets = [0, 0], sizes = [8, 204], strides = [1, 1]} : vector<8x230xbf16> to vector<8x204xbf16>
    %c9 = arith.constant 9 : index
    %c0_39 = arith.constant 0 : index
    %c0_40 = arith.constant 0 : index
    %53 = vector.load %arg2[%c9, %c0_39, %c0_40] : memref<27x16x8xbf16, #tpu.memory_space<vmem>>, vector<1x16x8xbf16>
    %54 = vector.shape_cast %53 : vector<1x16x8xbf16> to vector<16x8xbf16>
    %cst_41 = arith.constant dense<0.000000e+00> : vector<16x204xf32>
    %55 = tpu.matmul %54, %52, %cst_41 {dimension_numbers = #tpu.dot_dimension_numbers<[1], [0], [0], [1], [0, 0, 1, 1], [], []>} : vector<16x8xbf16>, vector<8x204xbf16>, vector<16x204xf32> -> vector<16x204xf32>
    %56 = arith.addf %51, %55 : vector<16x204xf32>
    %57 = vector.extract_strided_slice %3 {offsets = [0, 1], sizes = [8, 204], strides = [1, 1]} : vector<8x230xbf16> to vector<8x204xbf16>
    %c10 = arith.constant 10 : index
    %c0_42 = arith.constant 0 : index
    %c0_43 = arith.constant 0 : index
    %58 = vector.load %arg2[%c10, %c0_42, %c0_43] : memref<27x16x8xbf16, #tpu.memory_space<vmem>>, vector<1x16x8xbf16>
    %59 = vector.shape_cast %58 : vector<1x16x8xbf16> to vector<16x8xbf16>
    %cst_44 = arith.constant dense<0.000000e+00> : vector<16x204xf32>
    %60 = tpu.matmul %59, %57, %cst_44 {dimension_numbers = #tpu.dot_dimension_numbers<[1], [0], [0], [1], [0, 0, 1, 1], [], []>} : vector<16x8xbf16>, vector<8x204xbf16>, vector<16x204xf32> -> vector<16x204xf32>
    %61 = arith.addf %56, %60 : vector<16x204xf32>
    %62 = vector.extract_strided_slice %3 {offsets = [0, 2], sizes = [8, 204], strides = [1, 1]} : vector<8x230xbf16> to vector<8x204xbf16>
    %c11 = arith.constant 11 : index
    %c0_45 = arith.constant 0 : index
    %c0_46 = arith.constant 0 : index
    %63 = vector.load %arg2[%c11, %c0_45, %c0_46] : memref<27x16x8xbf16, #tpu.memory_space<vmem>>, vector<1x16x8xbf16>
    %64 = vector.shape_cast %63 : vector<1x16x8xbf16> to vector<16x8xbf16>
    %cst_47 = arith.constant dense<0.000000e+00> : vector<16x204xf32>
    %65 = tpu.matmul %64, %62, %cst_47 {dimension_numbers = #tpu.dot_dimension_numbers<[1], [0], [0], [1], [0, 0, 1, 1], [], []>} : vector<16x8xbf16>, vector<8x204xbf16>, vector<16x204xf32> -> vector<16x204xf32>
    %66 = arith.addf %61, %65 : vector<16x204xf32>
    %67 = vector.extract_strided_slice %3 {offsets = [0, 12], sizes = [8, 204], strides = [1, 1]} : vector<8x230xbf16> to vector<8x204xbf16>
    %c12 = arith.constant 12 : index
    %c0_48 = arith.constant 0 : index
    %c0_49 = arith.constant 0 : index
    %68 = vector.load %arg2[%c12, %c0_48, %c0_49] : memref<27x16x8xbf16, #tpu.memory_space<vmem>>, vector<1x16x8xbf16>
    %69 = vector.shape_cast %68 : vector<1x16x8xbf16> to vector<16x8xbf16>
    %cst_50 = arith.constant dense<0.000000e+00> : vector<16x204xf32>
    %70 = tpu.matmul %69, %67, %cst_50 {dimension_numbers = #tpu.dot_dimension_numbers<[1], [0], [0], [1], [0, 0, 1, 1], [], []>} : vector<16x8xbf16>, vector<8x204xbf16>, vector<16x204xf32> -> vector<16x204xf32>
    %71 = arith.addf %66, %70 : vector<16x204xf32>
    %72 = vector.extract_strided_slice %3 {offsets = [0, 13], sizes = [8, 204], strides = [1, 1]} : vector<8x230xbf16> to vector<8x204xbf16>
    %c13 = arith.constant 13 : index
    %c0_51 = arith.constant 0 : index
    %c0_52 = arith.constant 0 : index
    %73 = vector.load %arg2[%c13, %c0_51, %c0_52] : memref<27x16x8xbf16, #tpu.memory_space<vmem>>, vector<1x16x8xbf16>
    %74 = vector.shape_cast %73 : vector<1x16x8xbf16> to vector<16x8xbf16>
    %cst_53 = arith.constant dense<0.000000e+00> : vector<16x204xf32>
    %75 = tpu.matmul %74, %72, %cst_53 {dimension_numbers = #tpu.dot_dimension_numbers<[1], [0], [0], [1], [0, 0, 1, 1], [], []>} : vector<16x8xbf16>, vector<8x204xbf16>, vector<16x204xf32> -> vector<16x204xf32>
    %76 = arith.addf %71, %75 : vector<16x204xf32>
    %77 = vector.extract_strided_slice %3 {offsets = [0, 14], sizes = [8, 204], strides = [1, 1]} : vector<8x230xbf16> to vector<8x204xbf16>
    %c14 = arith.constant 14 : index
    %c0_54 = arith.constant 0 : index
    %c0_55 = arith.constant 0 : index
    %78 = vector.load %arg2[%c14, %c0_54, %c0_55] : memref<27x16x8xbf16, #tpu.memory_space<vmem>>, vector<1x16x8xbf16>
    %79 = vector.shape_cast %78 : vector<1x16x8xbf16> to vector<16x8xbf16>
    %cst_56 = arith.constant dense<0.000000e+00> : vector<16x204xf32>
    %80 = tpu.matmul %79, %77, %cst_56 {dimension_numbers = #tpu.dot_dimension_numbers<[1], [0], [0], [1], [0, 0, 1, 1], [], []>} : vector<16x8xbf16>, vector<8x204xbf16>, vector<16x204xf32> -> vector<16x204xf32>
    %81 = arith.addf %76, %80 : vector<16x204xf32>
    %82 = vector.extract_strided_slice %3 {offsets = [0, 24], sizes = [8, 204], strides = [1, 1]} : vector<8x230xbf16> to vector<8x204xbf16>
    %c15 = arith.constant 15 : index
    %c0_57 = arith.constant 0 : index
    %c0_58 = arith.constant 0 : index
    %83 = vector.load %arg2[%c15, %c0_57, %c0_58] : memref<27x16x8xbf16, #tpu.memory_space<vmem>>, vector<1x16x8xbf16>
    %84 = vector.shape_cast %83 : vector<1x16x8xbf16> to vector<16x8xbf16>
    %cst_59 = arith.constant dense<0.000000e+00> : vector<16x204xf32>
    %85 = tpu.matmul %84, %82, %cst_59 {dimension_numbers = #tpu.dot_dimension_numbers<[1], [0], [0], [1], [0, 0, 1, 1], [], []>} : vector<16x8xbf16>, vector<8x204xbf16>, vector<16x204xf32> -> vector<16x204xf32>
    %86 = arith.addf %81, %85 : vector<16x204xf32>
    %87 = vector.extract_strided_slice %3 {offsets = [0, 25], sizes = [8, 204], strides = [1, 1]} : vector<8x230xbf16> to vector<8x204xbf16>
    %c16 = arith.constant 16 : index
    %c0_60 = arith.constant 0 : index
    %c0_61 = arith.constant 0 : index
    %88 = vector.load %arg2[%c16, %c0_60, %c0_61] : memref<27x16x8xbf16, #tpu.memory_space<vmem>>, vector<1x16x8xbf16>
    %89 = vector.shape_cast %88 : vector<1x16x8xbf16> to vector<16x8xbf16>
    %cst_62 = arith.constant dense<0.000000e+00> : vector<16x204xf32>
    %90 = tpu.matmul %89, %87, %cst_62 {dimension_numbers = #tpu.dot_dimension_numbers<[1], [0], [0], [1], [0, 0, 1, 1], [], []>} : vector<16x8xbf16>, vector<8x204xbf16>, vector<16x204xf32> -> vector<16x204xf32>
    %91 = arith.addf %86, %90 : vector<16x204xf32>
    %92 = vector.extract_strided_slice %3 {offsets = [0, 26], sizes = [8, 204], strides = [1, 1]} : vector<8x230xbf16> to vector<8x204xbf16>
    %c17 = arith.constant 17 : index
    %c0_63 = arith.constant 0 : index
    %c0_64 = arith.constant 0 : index
    %93 = vector.load %arg2[%c17, %c0_63, %c0_64] : memref<27x16x8xbf16, #tpu.memory_space<vmem>>, vector<1x16x8xbf16>
    %94 = vector.shape_cast %93 : vector<1x16x8xbf16> to vector<16x8xbf16>
    %cst_65 = arith.constant dense<0.000000e+00> : vector<16x204xf32>
    %95 = tpu.matmul %94, %92, %cst_65 {dimension_numbers = #tpu.dot_dimension_numbers<[1], [0], [0], [1], [0, 0, 1, 1], [], []>} : vector<16x8xbf16>, vector<8x204xbf16>, vector<16x204xf32> -> vector<16x204xf32>
    %96 = arith.addf %91, %95 : vector<16x204xf32>
    %97 = vector.extract_strided_slice %5 {offsets = [0, 0], sizes = [8, 204], strides = [1, 1]} : vector<8x230xbf16> to vector<8x204xbf16>
    %c18 = arith.constant 18 : index
    %c0_66 = arith.constant 0 : index
    %c0_67 = arith.constant 0 : index
    %98 = vector.load %arg2[%c18, %c0_66, %c0_67] : memref<27x16x8xbf16, #tpu.memory_space<vmem>>, vector<1x16x8xbf16>
    %99 = vector.shape_cast %98 : vector<1x16x8xbf16> to vector<16x8xbf16>
    %cst_68 = arith.constant dense<0.000000e+00> : vector<16x204xf32>
    %100 = tpu.matmul %99, %97, %cst_68 {dimension_numbers = #tpu.dot_dimension_numbers<[1], [0], [0], [1], [0, 0, 1, 1], [], []>} : vector<16x8xbf16>, vector<8x204xbf16>, vector<16x204xf32> -> vector<16x204xf32>
    %101 = arith.addf %96, %100 : vector<16x204xf32>
    %102 = vector.extract_strided_slice %5 {offsets = [0, 1], sizes = [8, 204], strides = [1, 1]} : vector<8x230xbf16> to vector<8x204xbf16>
    %c19 = arith.constant 19 : index
    %c0_69 = arith.constant 0 : index
    %c0_70 = arith.constant 0 : index
    %103 = vector.load %arg2[%c19, %c0_69, %c0_70] : memref<27x16x8xbf16, #tpu.memory_space<vmem>>, vector<1x16x8xbf16>
    %104 = vector.shape_cast %103 : vector<1x16x8xbf16> to vector<16x8xbf16>
    %cst_71 = arith.constant dense<0.000000e+00> : vector<16x204xf32>
    %105 = tpu.matmul %104, %102, %cst_71 {dimension_numbers = #tpu.dot_dimension_numbers<[1], [0], [0], [1], [0, 0, 1, 1], [], []>} : vector<16x8xbf16>, vector<8x204xbf16>, vector<16x204xf32> -> vector<16x204xf32>
    %106 = arith.addf %101, %105 : vector<16x204xf32>
    %107 = vector.extract_strided_slice %5 {offsets = [0, 2], sizes = [8, 204], strides = [1, 1]} : vector<8x230xbf16> to vector<8x204xbf16>
    %c20 = arith.constant 20 : index
    %c0_72 = arith.constant 0 : index
    %c0_73 = arith.constant 0 : index
    %108 = vector.load %arg2[%c20, %c0_72, %c0_73] : memref<27x16x8xbf16, #tpu.memory_space<vmem>>, vector<1x16x8xbf16>
    %109 = vector.shape_cast %108 : vector<1x16x8xbf16> to vector<16x8xbf16>
    %cst_74 = arith.constant dense<0.000000e+00> : vector<16x204xf32>
    %110 = tpu.matmul %109, %107, %cst_74 {dimension_numbers = #tpu.dot_dimension_numbers<[1], [0], [0], [1], [0, 0, 1, 1], [], []>} : vector<16x8xbf16>, vector<8x204xbf16>, vector<16x204xf32> -> vector<16x204xf32>
    %111 = arith.addf %106, %110 : vector<16x204xf32>
    %112 = vector.extract_strided_slice %5 {offsets = [0, 12], sizes = [8, 204], strides = [1, 1]} : vector<8x230xbf16> to vector<8x204xbf16>
    %c21 = arith.constant 21 : index
    %c0_75 = arith.constant 0 : index
    %c0_76 = arith.constant 0 : index
    %113 = vector.load %arg2[%c21, %c0_75, %c0_76] : memref<27x16x8xbf16, #tpu.memory_space<vmem>>, vector<1x16x8xbf16>
    %114 = vector.shape_cast %113 : vector<1x16x8xbf16> to vector<16x8xbf16>
    %cst_77 = arith.constant dense<0.000000e+00> : vector<16x204xf32>
    %115 = tpu.matmul %114, %112, %cst_77 {dimension_numbers = #tpu.dot_dimension_numbers<[1], [0], [0], [1], [0, 0, 1, 1], [], []>} : vector<16x8xbf16>, vector<8x204xbf16>, vector<16x204xf32> -> vector<16x204xf32>
    %116 = arith.addf %111, %115 : vector<16x204xf32>
    %117 = vector.extract_strided_slice %5 {offsets = [0, 13], sizes = [8, 204], strides = [1, 1]} : vector<8x230xbf16> to vector<8x204xbf16>
    %c22 = arith.constant 22 : index
    %c0_78 = arith.constant 0 : index
    %c0_79 = arith.constant 0 : index
    %118 = vector.load %arg2[%c22, %c0_78, %c0_79] : memref<27x16x8xbf16, #tpu.memory_space<vmem>>, vector<1x16x8xbf16>
    %119 = vector.shape_cast %118 : vector<1x16x8xbf16> to vector<16x8xbf16>
    %cst_80 = arith.constant dense<0.000000e+00> : vector<16x204xf32>
    %120 = tpu.matmul %119, %117, %cst_80 {dimension_numbers = #tpu.dot_dimension_numbers<[1], [0], [0], [1], [0, 0, 1, 1], [], []>} : vector<16x8xbf16>, vector<8x204xbf16>, vector<16x204xf32> -> vector<16x204xf32>
    %121 = arith.addf %116, %120 : vector<16x204xf32>
    %122 = vector.extract_strided_slice %5 {offsets = [0, 14], sizes = [8, 204], strides = [1, 1]} : vector<8x230xbf16> to vector<8x204xbf16>
    %c23 = arith.constant 23 : index
    %c0_81 = arith.constant 0 : index
    %c0_82 = arith.constant 0 : index
    %123 = vector.load %arg2[%c23, %c0_81, %c0_82] : memref<27x16x8xbf16, #tpu.memory_space<vmem>>, vector<1x16x8xbf16>
    %124 = vector.shape_cast %123 : vector<1x16x8xbf16> to vector<16x8xbf16>
    %cst_83 = arith.constant dense<0.000000e+00> : vector<16x204xf32>
    %125 = tpu.matmul %124, %122, %cst_83 {dimension_numbers = #tpu.dot_dimension_numbers<[1], [0], [0], [1], [0, 0, 1, 1], [], []>} : vector<16x8xbf16>, vector<8x204xbf16>, vector<16x204xf32> -> vector<16x204xf32>
    %126 = arith.addf %121, %125 : vector<16x204xf32>
    %127 = vector.extract_strided_slice %5 {offsets = [0, 24], sizes = [8, 204], strides = [1, 1]} : vector<8x230xbf16> to vector<8x204xbf16>
    %c24 = arith.constant 24 : index
    %c0_84 = arith.constant 0 : index
    %c0_85 = arith.constant 0 : index
    %128 = vector.load %arg2[%c24, %c0_84, %c0_85] : memref<27x16x8xbf16, #tpu.memory_space<vmem>>, vector<1x16x8xbf16>
    %129 = vector.shape_cast %128 : vector<1x16x8xbf16> to vector<16x8xbf16>
    %cst_86 = arith.constant dense<0.000000e+00> : vector<16x204xf32>
    %130 = tpu.matmul %129, %127, %cst_86 {dimension_numbers = #tpu.dot_dimension_numbers<[1], [0], [0], [1], [0, 0, 1, 1], [], []>} : vector<16x8xbf16>, vector<8x204xbf16>, vector<16x204xf32> -> vector<16x204xf32>
    %131 = arith.addf %126, %130 : vector<16x204xf32>
    %132 = vector.extract_strided_slice %5 {offsets = [0, 25], sizes = [8, 204], strides = [1, 1]} : vector<8x230xbf16> to vector<8x204xbf16>
    %c25 = arith.constant 25 : index
    %c0_87 = arith.constant 0 : index
    %c0_88 = arith.constant 0 : index
    %133 = vector.load %arg2[%c25, %c0_87, %c0_88] : memref<27x16x8xbf16, #tpu.memory_space<vmem>>, vector<1x16x8xbf16>
    %134 = vector.shape_cast %133 : vector<1x16x8xbf16> to vector<16x8xbf16>
    %cst_89 = arith.constant dense<0.000000e+00> : vector<16x204xf32>
    %135 = tpu.matmul %134, %132, %cst_89 {dimension_numbers = #tpu.dot_dimension_numbers<[1], [0], [0], [1], [0, 0, 1, 1], [], []>} : vector<16x8xbf16>, vector<8x204xbf16>, vector<16x204xf32> -> vector<16x204xf32>
    %136 = arith.addf %131, %135 : vector<16x204xf32>
    %137 = vector.extract_strided_slice %5 {offsets = [0, 26], sizes = [8, 204], strides = [1, 1]} : vector<8x230xbf16> to vector<8x204xbf16>
    %c26 = arith.constant 26 : index
    %c0_90 = arith.constant 0 : index
    %c0_91 = arith.constant 0 : index
    %138 = vector.load %arg2[%c26, %c0_90, %c0_91] : memref<27x16x8xbf16, #tpu.memory_space<vmem>>, vector<1x16x8xbf16>
    %139 = vector.shape_cast %138 : vector<1x16x8xbf16> to vector<16x8xbf16>
    %cst_92 = arith.constant dense<0.000000e+00> : vector<16x204xf32>
    %140 = tpu.matmul %139, %137, %cst_92 {dimension_numbers = #tpu.dot_dimension_numbers<[1], [0], [0], [1], [0, 0, 1, 1], [], []>} : vector<16x8xbf16>, vector<8x204xbf16>, vector<16x204xf32> -> vector<16x204xf32>
    %141 = arith.addf %136, %140 : vector<16x204xf32>
    %c0_93 = arith.constant 0 : index
    %c0_94 = arith.constant 0 : index
    %142 = vector.load %arg3[%c0_93, %c0_94] : memref<16x1xf32, #tpu.memory_space<vmem>>, vector<16x1xf32>
    %143 = vector.broadcast %142 : vector<16x1xf32> to vector<16x204xf32>
    %144 = arith.addf %141, %143 : vector<16x204xf32>
    %cst_95 = arith.constant 0.000000e+00 : f32
    %145 = vector.broadcast %cst_95 : f32 to vector<16x204xf32>
    %146 = arith.maximumf %144, %145 : vector<16x204xf32>
    %147 = arith.truncf %146 : vector<16x204xf32> to vector<16x204xbf16>
    %c0_96 = arith.constant 0 : index
    %c0_97 = arith.constant 0 : index
    %c0_98 = arith.constant 0 : index
    %c0_99 = arith.constant 0 : index
    %148 = vector.load %arg7[%c0_96, %c0_97, %c0_98, %c0_99] : memref<1x1x16x204xbf16, #tpu.memory_space<vmem>>, vector<1x1x16x204xbf16>
    %149 = vector.shape_cast %148 : vector<1x1x16x204xbf16> to vector<16x204xbf16>
    %150 = vector.shape_cast %147 : vector<16x204xbf16> to vector<1x1x16x204xbf16>
    tpu.vector_store %arg7[%c0_96, %c0_97, %c0_98, %c0_99], %150 {strides = array<i32>} : memref<1x1x16x204xbf16, #tpu.memory_space<vmem>>, vector<1x1x16x204xbf16>,
    return
  }
  func.func @transform_0(%arg0: i32, %arg1: i32) -> (i32, i32, i32) {
    %c0_i32 = arith.constant 0 : i32
    %c0_i32_0 = arith.constant 0 : i32
    %c0_i32_1 = arith.constant 0 : i32
    %c0_i32_2 = arith.constant 0 : i32
    return %c0_i32, %c0_i32_0, %c0_i32_1 : i32, i32, i32
  }
  func.func @transform_1(%arg0: i32, %arg1: i32) -> (i32, i32) {
    %c0_i32 = arith.constant 0 : i32
    %c0_i32_0 = arith.constant 0 : i32
    %c0_i32_1 = arith.constant 0 : i32
    return %c0_i32, %c0_i32_0 : i32, i32
  }
  func.func @transform_2(%arg0: i32, %arg1: i32) -> (i32, i32, i32, i32) {
    %c0_i32 = arith.constant 0 : i32
    %c0_i32_0 = arith.constant 0 : i32
    %c0_i32_1 = arith.constant 0 : i32
    return %arg0, %arg1, %c0_i32, %c0_i32_0 : i32, i32, i32, i32
  }
  func.func @transform_3(%arg0: i32, %arg1: i32) -> (i32, i32, i32, i32) {
    %c1_i32 = arith.constant 1 : i32
    %0 = arith.addi %arg1, %c1_i32 : i32
    %c0_i32 = arith.constant 0 : i32
    %c0_i32_0 = arith.constant 0 : i32
    %c0_i32_1 = arith.constant 0 : i32
    return %arg0, %0, %c0_i32, %c0_i32_0 : i32, i32, i32, i32
  }
  func.func @transform_4(%arg0: i32, %arg1: i32) -> (i32, i32, i32, i32) {
    %c2_i32 = arith.constant 2 : i32
    %0 = arith.addi %arg1, %c2_i32 : i32
    %c0_i32 = arith.constant 0 : i32
    %c0_i32_0 = arith.constant 0 : i32
    %c0_i32_1 = arith.constant 0 : i32
    return %arg0, %0, %c0_i32, %c0_i32_0 : i32, i32, i32, i32
  }
  func.func @transform_5(%arg0: i32, %arg1: i32) -> (i32, i32, i32, i32) {
    %c0_i32 = arith.constant 0 : i32
    %c0_i32_0 = arith.constant 0 : i32
    %c0_i32_1 = arith.constant 0 : i32
    return %arg0, %arg1, %c0_i32, %c0_i32_0 : i32, i32, i32, i32
  }
}

module attributes {stable_mosaic.version = 11 : i64} {
  func.func @_conv3_kernel(%arg0: i32, %arg1: i32, %arg2: memref<27x32x16xbf16, #tpu.memory_space<vmem>>, %arg3: memref<32x1xf32, #tpu.memory_space<vmem>>, %arg4: memref<1x1x16x79xbf16, #tpu.memory_space<vmem>>, %arg5: memref<1x1x16x79xbf16, #tpu.memory_space<vmem>>, %arg6: memref<1x1x16x79xbf16, #tpu.memory_space<vmem>>, %arg7: memref<1x1x32x63xbf16, #tpu.memory_space<vmem>>) attributes {dimension_semantics = [#tpu.dimension_semantics<parallel>, #tpu.dimension_semantics<parallel>], iteration_bounds = array<i64: 2, 5>, scalar_prefetch = 0 : i64, scratch_operands = 0 : i64, tpu.core_type = #tpu.core_type<tc>, window_params = [{pipeline_mode = #tpu.pipeline_mode<synchronous>, transform_indices = @transform_0, window_bounds = array<i64: 27, 32, 16>}, {pipeline_mode = #tpu.pipeline_mode<synchronous>, transform_indices = @transform_1, window_bounds = array<i64: 32, 1>}, {transform_indices = @transform_2, window_bounds = array<i64: 1, 1, 16, 79>}, {transform_indices = @transform_3, window_bounds = array<i64: 1, 1, 16, 79>}, {transform_indices = @transform_4, window_bounds = array<i64: 1, 1, 16, 79>}, {transform_indices = @transform_5, window_bounds = array<i64: 1, 1, 32, 63>}]} {
    %c0 = arith.constant 0 : index
    %c0_0 = arith.constant 0 : index
    %c0_1 = arith.constant 0 : index
    %c0_2 = arith.constant 0 : index
    %0 = vector.load %arg4[%c0, %c0_0, %c0_1, %c0_2] : memref<1x1x16x79xbf16, #tpu.memory_space<vmem>>, vector<1x1x16x79xbf16>
    %1 = vector.shape_cast %0 : vector<1x1x16x79xbf16> to vector<16x79xbf16>
    %c0_3 = arith.constant 0 : index
    %c0_4 = arith.constant 0 : index
    %c0_5 = arith.constant 0 : index
    %c0_6 = arith.constant 0 : index
    %2 = vector.load %arg5[%c0_3, %c0_4, %c0_5, %c0_6] : memref<1x1x16x79xbf16, #tpu.memory_space<vmem>>, vector<1x1x16x79xbf16>
    %3 = vector.shape_cast %2 : vector<1x1x16x79xbf16> to vector<16x79xbf16>
    %c0_7 = arith.constant 0 : index
    %c0_8 = arith.constant 0 : index
    %c0_9 = arith.constant 0 : index
    %c0_10 = arith.constant 0 : index
    %4 = vector.load %arg6[%c0_7, %c0_8, %c0_9, %c0_10] : memref<1x1x16x79xbf16, #tpu.memory_space<vmem>>, vector<1x1x16x79xbf16>
    %5 = vector.shape_cast %4 : vector<1x1x16x79xbf16> to vector<16x79xbf16>
    %cst = arith.constant 0.000000e+00 : f32
    %6 = vector.broadcast %cst : f32 to vector<32x63xf32>
    %7 = vector.extract_strided_slice %1 {offsets = [0, 0], sizes = [16, 63], strides = [1, 1]} : vector<16x79xbf16> to vector<16x63xbf16>
    %c0_11 = arith.constant 0 : index
    %c0_12 = arith.constant 0 : index
    %c0_13 = arith.constant 0 : index
    %8 = vector.load %arg2[%c0_11, %c0_12, %c0_13] : memref<27x32x16xbf16, #tpu.memory_space<vmem>>, vector<1x32x16xbf16>
    %9 = vector.shape_cast %8 : vector<1x32x16xbf16> to vector<32x16xbf16>
    %cst_14 = arith.constant dense<0.000000e+00> : vector<32x63xf32>
    %10 = tpu.matmul %9, %7, %cst_14 {dimension_numbers = #tpu.dot_dimension_numbers<[1], [0], [0], [1], [0, 0, 1, 1], [], []>} : vector<32x16xbf16>, vector<16x63xbf16>, vector<32x63xf32> -> vector<32x63xf32>
    %11 = arith.addf %6, %10 : vector<32x63xf32>
    %12 = vector.extract_strided_slice %1 {offsets = [0, 1], sizes = [16, 63], strides = [1, 1]} : vector<16x79xbf16> to vector<16x63xbf16>
    %c1 = arith.constant 1 : index
    %c0_15 = arith.constant 0 : index
    %c0_16 = arith.constant 0 : index
    %13 = vector.load %arg2[%c1, %c0_15, %c0_16] : memref<27x32x16xbf16, #tpu.memory_space<vmem>>, vector<1x32x16xbf16>
    %14 = vector.shape_cast %13 : vector<1x32x16xbf16> to vector<32x16xbf16>
    %cst_17 = arith.constant dense<0.000000e+00> : vector<32x63xf32>
    %15 = tpu.matmul %14, %12, %cst_17 {dimension_numbers = #tpu.dot_dimension_numbers<[1], [0], [0], [1], [0, 0, 1, 1], [], []>} : vector<32x16xbf16>, vector<16x63xbf16>, vector<32x63xf32> -> vector<32x63xf32>
    %16 = arith.addf %11, %15 : vector<32x63xf32>
    %17 = vector.extract_strided_slice %1 {offsets = [0, 2], sizes = [16, 63], strides = [1, 1]} : vector<16x79xbf16> to vector<16x63xbf16>
    %c2 = arith.constant 2 : index
    %c0_18 = arith.constant 0 : index
    %c0_19 = arith.constant 0 : index
    %18 = vector.load %arg2[%c2, %c0_18, %c0_19] : memref<27x32x16xbf16, #tpu.memory_space<vmem>>, vector<1x32x16xbf16>
    %19 = vector.shape_cast %18 : vector<1x32x16xbf16> to vector<32x16xbf16>
    %cst_20 = arith.constant dense<0.000000e+00> : vector<32x63xf32>
    %20 = tpu.matmul %19, %17, %cst_20 {dimension_numbers = #tpu.dot_dimension_numbers<[1], [0], [0], [1], [0, 0, 1, 1], [], []>} : vector<32x16xbf16>, vector<16x63xbf16>, vector<32x63xf32> -> vector<32x63xf32>
    %21 = arith.addf %16, %20 : vector<32x63xf32>
    %22 = vector.extract_strided_slice %1 {offsets = [0, 7], sizes = [16, 63], strides = [1, 1]} : vector<16x79xbf16> to vector<16x63xbf16>
    %c3 = arith.constant 3 : index
    %c0_21 = arith.constant 0 : index
    %c0_22 = arith.constant 0 : index
    %23 = vector.load %arg2[%c3, %c0_21, %c0_22] : memref<27x32x16xbf16, #tpu.memory_space<vmem>>, vector<1x32x16xbf16>
    %24 = vector.shape_cast %23 : vector<1x32x16xbf16> to vector<32x16xbf16>
    %cst_23 = arith.constant dense<0.000000e+00> : vector<32x63xf32>
    %25 = tpu.matmul %24, %22, %cst_23 {dimension_numbers = #tpu.dot_dimension_numbers<[1], [0], [0], [1], [0, 0, 1, 1], [], []>} : vector<32x16xbf16>, vector<16x63xbf16>, vector<32x63xf32> -> vector<32x63xf32>
    %26 = arith.addf %21, %25 : vector<32x63xf32>
    %27 = vector.extract_strided_slice %1 {offsets = [0, 8], sizes = [16, 63], strides = [1, 1]} : vector<16x79xbf16> to vector<16x63xbf16>
    %c4 = arith.constant 4 : index
    %c0_24 = arith.constant 0 : index
    %c0_25 = arith.constant 0 : index
    %28 = vector.load %arg2[%c4, %c0_24, %c0_25] : memref<27x32x16xbf16, #tpu.memory_space<vmem>>, vector<1x32x16xbf16>
    %29 = vector.shape_cast %28 : vector<1x32x16xbf16> to vector<32x16xbf16>
    %cst_26 = arith.constant dense<0.000000e+00> : vector<32x63xf32>
    %30 = tpu.matmul %29, %27, %cst_26 {dimension_numbers = #tpu.dot_dimension_numbers<[1], [0], [0], [1], [0, 0, 1, 1], [], []>} : vector<32x16xbf16>, vector<16x63xbf16>, vector<32x63xf32> -> vector<32x63xf32>
    %31 = arith.addf %26, %30 : vector<32x63xf32>
    %32 = vector.extract_strided_slice %1 {offsets = [0, 9], sizes = [16, 63], strides = [1, 1]} : vector<16x79xbf16> to vector<16x63xbf16>
    %c5 = arith.constant 5 : index
    %c0_27 = arith.constant 0 : index
    %c0_28 = arith.constant 0 : index
    %33 = vector.load %arg2[%c5, %c0_27, %c0_28] : memref<27x32x16xbf16, #tpu.memory_space<vmem>>, vector<1x32x16xbf16>
    %34 = vector.shape_cast %33 : vector<1x32x16xbf16> to vector<32x16xbf16>
    %cst_29 = arith.constant dense<0.000000e+00> : vector<32x63xf32>
    %35 = tpu.matmul %34, %32, %cst_29 {dimension_numbers = #tpu.dot_dimension_numbers<[1], [0], [0], [1], [0, 0, 1, 1], [], []>} : vector<32x16xbf16>, vector<16x63xbf16>, vector<32x63xf32> -> vector<32x63xf32>
    %36 = arith.addf %31, %35 : vector<32x63xf32>
    %37 = vector.extract_strided_slice %1 {offsets = [0, 14], sizes = [16, 63], strides = [1, 1]} : vector<16x79xbf16> to vector<16x63xbf16>
    %c6 = arith.constant 6 : index
    %c0_30 = arith.constant 0 : index
    %c0_31 = arith.constant 0 : index
    %38 = vector.load %arg2[%c6, %c0_30, %c0_31] : memref<27x32x16xbf16, #tpu.memory_space<vmem>>, vector<1x32x16xbf16>
    %39 = vector.shape_cast %38 : vector<1x32x16xbf16> to vector<32x16xbf16>
    %cst_32 = arith.constant dense<0.000000e+00> : vector<32x63xf32>
    %40 = tpu.matmul %39, %37, %cst_32 {dimension_numbers = #tpu.dot_dimension_numbers<[1], [0], [0], [1], [0, 0, 1, 1], [], []>} : vector<32x16xbf16>, vector<16x63xbf16>, vector<32x63xf32> -> vector<32x63xf32>
    %41 = arith.addf %36, %40 : vector<32x63xf32>
    %42 = vector.extract_strided_slice %1 {offsets = [0, 15], sizes = [16, 63], strides = [1, 1]} : vector<16x79xbf16> to vector<16x63xbf16>
    %c7 = arith.constant 7 : index
    %c0_33 = arith.constant 0 : index
    %c0_34 = arith.constant 0 : index
    %43 = vector.load %arg2[%c7, %c0_33, %c0_34] : memref<27x32x16xbf16, #tpu.memory_space<vmem>>, vector<1x32x16xbf16>
    %44 = vector.shape_cast %43 : vector<1x32x16xbf16> to vector<32x16xbf16>
    %cst_35 = arith.constant dense<0.000000e+00> : vector<32x63xf32>
    %45 = tpu.matmul %44, %42, %cst_35 {dimension_numbers = #tpu.dot_dimension_numbers<[1], [0], [0], [1], [0, 0, 1, 1], [], []>} : vector<32x16xbf16>, vector<16x63xbf16>, vector<32x63xf32> -> vector<32x63xf32>
    %46 = arith.addf %41, %45 : vector<32x63xf32>
    %47 = vector.extract_strided_slice %1 {offsets = [0, 16], sizes = [16, 63], strides = [1, 1]} : vector<16x79xbf16> to vector<16x63xbf16>
    %c8 = arith.constant 8 : index
    %c0_36 = arith.constant 0 : index
    %c0_37 = arith.constant 0 : index
    %48 = vector.load %arg2[%c8, %c0_36, %c0_37] : memref<27x32x16xbf16, #tpu.memory_space<vmem>>, vector<1x32x16xbf16>
    %49 = vector.shape_cast %48 : vector<1x32x16xbf16> to vector<32x16xbf16>
    %cst_38 = arith.constant dense<0.000000e+00> : vector<32x63xf32>
    %50 = tpu.matmul %49, %47, %cst_38 {dimension_numbers = #tpu.dot_dimension_numbers<[1], [0], [0], [1], [0, 0, 1, 1], [], []>} : vector<32x16xbf16>, vector<16x63xbf16>, vector<32x63xf32> -> vector<32x63xf32>
    %51 = arith.addf %46, %50 : vector<32x63xf32>
    %52 = vector.extract_strided_slice %3 {offsets = [0, 0], sizes = [16, 63], strides = [1, 1]} : vector<16x79xbf16> to vector<16x63xbf16>
    %c9 = arith.constant 9 : index
    %c0_39 = arith.constant 0 : index
    %c0_40 = arith.constant 0 : index
    %53 = vector.load %arg2[%c9, %c0_39, %c0_40] : memref<27x32x16xbf16, #tpu.memory_space<vmem>>, vector<1x32x16xbf16>
    %54 = vector.shape_cast %53 : vector<1x32x16xbf16> to vector<32x16xbf16>
    %cst_41 = arith.constant dense<0.000000e+00> : vector<32x63xf32>
    %55 = tpu.matmul %54, %52, %cst_41 {dimension_numbers = #tpu.dot_dimension_numbers<[1], [0], [0], [1], [0, 0, 1, 1], [], []>} : vector<32x16xbf16>, vector<16x63xbf16>, vector<32x63xf32> -> vector<32x63xf32>
    %56 = arith.addf %51, %55 : vector<32x63xf32>
    %57 = vector.extract_strided_slice %3 {offsets = [0, 1], sizes = [16, 63], strides = [1, 1]} : vector<16x79xbf16> to vector<16x63xbf16>
    %c10 = arith.constant 10 : index
    %c0_42 = arith.constant 0 : index
    %c0_43 = arith.constant 0 : index
    %58 = vector.load %arg2[%c10, %c0_42, %c0_43] : memref<27x32x16xbf16, #tpu.memory_space<vmem>>, vector<1x32x16xbf16>
    %59 = vector.shape_cast %58 : vector<1x32x16xbf16> to vector<32x16xbf16>
    %cst_44 = arith.constant dense<0.000000e+00> : vector<32x63xf32>
    %60 = tpu.matmul %59, %57, %cst_44 {dimension_numbers = #tpu.dot_dimension_numbers<[1], [0], [0], [1], [0, 0, 1, 1], [], []>} : vector<32x16xbf16>, vector<16x63xbf16>, vector<32x63xf32> -> vector<32x63xf32>
    %61 = arith.addf %56, %60 : vector<32x63xf32>
    %62 = vector.extract_strided_slice %3 {offsets = [0, 2], sizes = [16, 63], strides = [1, 1]} : vector<16x79xbf16> to vector<16x63xbf16>
    %c11 = arith.constant 11 : index
    %c0_45 = arith.constant 0 : index
    %c0_46 = arith.constant 0 : index
    %63 = vector.load %arg2[%c11, %c0_45, %c0_46] : memref<27x32x16xbf16, #tpu.memory_space<vmem>>, vector<1x32x16xbf16>
    %64 = vector.shape_cast %63 : vector<1x32x16xbf16> to vector<32x16xbf16>
    %cst_47 = arith.constant dense<0.000000e+00> : vector<32x63xf32>
    %65 = tpu.matmul %64, %62, %cst_47 {dimension_numbers = #tpu.dot_dimension_numbers<[1], [0], [0], [1], [0, 0, 1, 1], [], []>} : vector<32x16xbf16>, vector<16x63xbf16>, vector<32x63xf32> -> vector<32x63xf32>
    %66 = arith.addf %61, %65 : vector<32x63xf32>
    %67 = vector.extract_strided_slice %3 {offsets = [0, 7], sizes = [16, 63], strides = [1, 1]} : vector<16x79xbf16> to vector<16x63xbf16>
    %c12 = arith.constant 12 : index
    %c0_48 = arith.constant 0 : index
    %c0_49 = arith.constant 0 : index
    %68 = vector.load %arg2[%c12, %c0_48, %c0_49] : memref<27x32x16xbf16, #tpu.memory_space<vmem>>, vector<1x32x16xbf16>
    %69 = vector.shape_cast %68 : vector<1x32x16xbf16> to vector<32x16xbf16>
    %cst_50 = arith.constant dense<0.000000e+00> : vector<32x63xf32>
    %70 = tpu.matmul %69, %67, %cst_50 {dimension_numbers = #tpu.dot_dimension_numbers<[1], [0], [0], [1], [0, 0, 1, 1], [], []>} : vector<32x16xbf16>, vector<16x63xbf16>, vector<32x63xf32> -> vector<32x63xf32>
    %71 = arith.addf %66, %70 : vector<32x63xf32>
    %72 = vector.extract_strided_slice %3 {offsets = [0, 8], sizes = [16, 63], strides = [1, 1]} : vector<16x79xbf16> to vector<16x63xbf16>
    %c13 = arith.constant 13 : index
    %c0_51 = arith.constant 0 : index
    %c0_52 = arith.constant 0 : index
    %73 = vector.load %arg2[%c13, %c0_51, %c0_52] : memref<27x32x16xbf16, #tpu.memory_space<vmem>>, vector<1x32x16xbf16>
    %74 = vector.shape_cast %73 : vector<1x32x16xbf16> to vector<32x16xbf16>
    %cst_53 = arith.constant dense<0.000000e+00> : vector<32x63xf32>
    %75 = tpu.matmul %74, %72, %cst_53 {dimension_numbers = #tpu.dot_dimension_numbers<[1], [0], [0], [1], [0, 0, 1, 1], [], []>} : vector<32x16xbf16>, vector<16x63xbf16>, vector<32x63xf32> -> vector<32x63xf32>
    %76 = arith.addf %71, %75 : vector<32x63xf32>
    %77 = vector.extract_strided_slice %3 {offsets = [0, 9], sizes = [16, 63], strides = [1, 1]} : vector<16x79xbf16> to vector<16x63xbf16>
    %c14 = arith.constant 14 : index
    %c0_54 = arith.constant 0 : index
    %c0_55 = arith.constant 0 : index
    %78 = vector.load %arg2[%c14, %c0_54, %c0_55] : memref<27x32x16xbf16, #tpu.memory_space<vmem>>, vector<1x32x16xbf16>
    %79 = vector.shape_cast %78 : vector<1x32x16xbf16> to vector<32x16xbf16>
    %cst_56 = arith.constant dense<0.000000e+00> : vector<32x63xf32>
    %80 = tpu.matmul %79, %77, %cst_56 {dimension_numbers = #tpu.dot_dimension_numbers<[1], [0], [0], [1], [0, 0, 1, 1], [], []>} : vector<32x16xbf16>, vector<16x63xbf16>, vector<32x63xf32> -> vector<32x63xf32>
    %81 = arith.addf %76, %80 : vector<32x63xf32>
    %82 = vector.extract_strided_slice %3 {offsets = [0, 14], sizes = [16, 63], strides = [1, 1]} : vector<16x79xbf16> to vector<16x63xbf16>
    %c15 = arith.constant 15 : index
    %c0_57 = arith.constant 0 : index
    %c0_58 = arith.constant 0 : index
    %83 = vector.load %arg2[%c15, %c0_57, %c0_58] : memref<27x32x16xbf16, #tpu.memory_space<vmem>>, vector<1x32x16xbf16>
    %84 = vector.shape_cast %83 : vector<1x32x16xbf16> to vector<32x16xbf16>
    %cst_59 = arith.constant dense<0.000000e+00> : vector<32x63xf32>
    %85 = tpu.matmul %84, %82, %cst_59 {dimension_numbers = #tpu.dot_dimension_numbers<[1], [0], [0], [1], [0, 0, 1, 1], [], []>} : vector<32x16xbf16>, vector<16x63xbf16>, vector<32x63xf32> -> vector<32x63xf32>
    %86 = arith.addf %81, %85 : vector<32x63xf32>
    %87 = vector.extract_strided_slice %3 {offsets = [0, 15], sizes = [16, 63], strides = [1, 1]} : vector<16x79xbf16> to vector<16x63xbf16>
    %c16 = arith.constant 16 : index
    %c0_60 = arith.constant 0 : index
    %c0_61 = arith.constant 0 : index
    %88 = vector.load %arg2[%c16, %c0_60, %c0_61] : memref<27x32x16xbf16, #tpu.memory_space<vmem>>, vector<1x32x16xbf16>
    %89 = vector.shape_cast %88 : vector<1x32x16xbf16> to vector<32x16xbf16>
    %cst_62 = arith.constant dense<0.000000e+00> : vector<32x63xf32>
    %90 = tpu.matmul %89, %87, %cst_62 {dimension_numbers = #tpu.dot_dimension_numbers<[1], [0], [0], [1], [0, 0, 1, 1], [], []>} : vector<32x16xbf16>, vector<16x63xbf16>, vector<32x63xf32> -> vector<32x63xf32>
    %91 = arith.addf %86, %90 : vector<32x63xf32>
    %92 = vector.extract_strided_slice %3 {offsets = [0, 16], sizes = [16, 63], strides = [1, 1]} : vector<16x79xbf16> to vector<16x63xbf16>
    %c17 = arith.constant 17 : index
    %c0_63 = arith.constant 0 : index
    %c0_64 = arith.constant 0 : index
    %93 = vector.load %arg2[%c17, %c0_63, %c0_64] : memref<27x32x16xbf16, #tpu.memory_space<vmem>>, vector<1x32x16xbf16>
    %94 = vector.shape_cast %93 : vector<1x32x16xbf16> to vector<32x16xbf16>
    %cst_65 = arith.constant dense<0.000000e+00> : vector<32x63xf32>
    %95 = tpu.matmul %94, %92, %cst_65 {dimension_numbers = #tpu.dot_dimension_numbers<[1], [0], [0], [1], [0, 0, 1, 1], [], []>} : vector<32x16xbf16>, vector<16x63xbf16>, vector<32x63xf32> -> vector<32x63xf32>
    %96 = arith.addf %91, %95 : vector<32x63xf32>
    %97 = vector.extract_strided_slice %5 {offsets = [0, 0], sizes = [16, 63], strides = [1, 1]} : vector<16x79xbf16> to vector<16x63xbf16>
    %c18 = arith.constant 18 : index
    %c0_66 = arith.constant 0 : index
    %c0_67 = arith.constant 0 : index
    %98 = vector.load %arg2[%c18, %c0_66, %c0_67] : memref<27x32x16xbf16, #tpu.memory_space<vmem>>, vector<1x32x16xbf16>
    %99 = vector.shape_cast %98 : vector<1x32x16xbf16> to vector<32x16xbf16>
    %cst_68 = arith.constant dense<0.000000e+00> : vector<32x63xf32>
    %100 = tpu.matmul %99, %97, %cst_68 {dimension_numbers = #tpu.dot_dimension_numbers<[1], [0], [0], [1], [0, 0, 1, 1], [], []>} : vector<32x16xbf16>, vector<16x63xbf16>, vector<32x63xf32> -> vector<32x63xf32>
    %101 = arith.addf %96, %100 : vector<32x63xf32>
    %102 = vector.extract_strided_slice %5 {offsets = [0, 1], sizes = [16, 63], strides = [1, 1]} : vector<16x79xbf16> to vector<16x63xbf16>
    %c19 = arith.constant 19 : index
    %c0_69 = arith.constant 0 : index
    %c0_70 = arith.constant 0 : index
    %103 = vector.load %arg2[%c19, %c0_69, %c0_70] : memref<27x32x16xbf16, #tpu.memory_space<vmem>>, vector<1x32x16xbf16>
    %104 = vector.shape_cast %103 : vector<1x32x16xbf16> to vector<32x16xbf16>
    %cst_71 = arith.constant dense<0.000000e+00> : vector<32x63xf32>
    %105 = tpu.matmul %104, %102, %cst_71 {dimension_numbers = #tpu.dot_dimension_numbers<[1], [0], [0], [1], [0, 0, 1, 1], [], []>} : vector<32x16xbf16>, vector<16x63xbf16>, vector<32x63xf32> -> vector<32x63xf32>
    %106 = arith.addf %101, %105 : vector<32x63xf32>
    %107 = vector.extract_strided_slice %5 {offsets = [0, 2], sizes = [16, 63], strides = [1, 1]} : vector<16x79xbf16> to vector<16x63xbf16>
    %c20 = arith.constant 20 : index
    %c0_72 = arith.constant 0 : index
    %c0_73 = arith.constant 0 : index
    %108 = vector.load %arg2[%c20, %c0_72, %c0_73] : memref<27x32x16xbf16, #tpu.memory_space<vmem>>, vector<1x32x16xbf16>
    %109 = vector.shape_cast %108 : vector<1x32x16xbf16> to vector<32x16xbf16>
    %cst_74 = arith.constant dense<0.000000e+00> : vector<32x63xf32>
    %110 = tpu.matmul %109, %107, %cst_74 {dimension_numbers = #tpu.dot_dimension_numbers<[1], [0], [0], [1], [0, 0, 1, 1], [], []>} : vector<32x16xbf16>, vector<16x63xbf16>, vector<32x63xf32> -> vector<32x63xf32>
    %111 = arith.addf %106, %110 : vector<32x63xf32>
    %112 = vector.extract_strided_slice %5 {offsets = [0, 7], sizes = [16, 63], strides = [1, 1]} : vector<16x79xbf16> to vector<16x63xbf16>
    %c21 = arith.constant 21 : index
    %c0_75 = arith.constant 0 : index
    %c0_76 = arith.constant 0 : index
    %113 = vector.load %arg2[%c21, %c0_75, %c0_76] : memref<27x32x16xbf16, #tpu.memory_space<vmem>>, vector<1x32x16xbf16>
    %114 = vector.shape_cast %113 : vector<1x32x16xbf16> to vector<32x16xbf16>
    %cst_77 = arith.constant dense<0.000000e+00> : vector<32x63xf32>
    %115 = tpu.matmul %114, %112, %cst_77 {dimension_numbers = #tpu.dot_dimension_numbers<[1], [0], [0], [1], [0, 0, 1, 1], [], []>} : vector<32x16xbf16>, vector<16x63xbf16>, vector<32x63xf32> -> vector<32x63xf32>
    %116 = arith.addf %111, %115 : vector<32x63xf32>
    %117 = vector.extract_strided_slice %5 {offsets = [0, 8], sizes = [16, 63], strides = [1, 1]} : vector<16x79xbf16> to vector<16x63xbf16>
    %c22 = arith.constant 22 : index
    %c0_78 = arith.constant 0 : index
    %c0_79 = arith.constant 0 : index
    %118 = vector.load %arg2[%c22, %c0_78, %c0_79] : memref<27x32x16xbf16, #tpu.memory_space<vmem>>, vector<1x32x16xbf16>
    %119 = vector.shape_cast %118 : vector<1x32x16xbf16> to vector<32x16xbf16>
    %cst_80 = arith.constant dense<0.000000e+00> : vector<32x63xf32>
    %120 = tpu.matmul %119, %117, %cst_80 {dimension_numbers = #tpu.dot_dimension_numbers<[1], [0], [0], [1], [0, 0, 1, 1], [], []>} : vector<32x16xbf16>, vector<16x63xbf16>, vector<32x63xf32> -> vector<32x63xf32>
    %121 = arith.addf %116, %120 : vector<32x63xf32>
    %122 = vector.extract_strided_slice %5 {offsets = [0, 9], sizes = [16, 63], strides = [1, 1]} : vector<16x79xbf16> to vector<16x63xbf16>
    %c23 = arith.constant 23 : index
    %c0_81 = arith.constant 0 : index
    %c0_82 = arith.constant 0 : index
    %123 = vector.load %arg2[%c23, %c0_81, %c0_82] : memref<27x32x16xbf16, #tpu.memory_space<vmem>>, vector<1x32x16xbf16>
    %124 = vector.shape_cast %123 : vector<1x32x16xbf16> to vector<32x16xbf16>
    %cst_83 = arith.constant dense<0.000000e+00> : vector<32x63xf32>
    %125 = tpu.matmul %124, %122, %cst_83 {dimension_numbers = #tpu.dot_dimension_numbers<[1], [0], [0], [1], [0, 0, 1, 1], [], []>} : vector<32x16xbf16>, vector<16x63xbf16>, vector<32x63xf32> -> vector<32x63xf32>
    %126 = arith.addf %121, %125 : vector<32x63xf32>
    %127 = vector.extract_strided_slice %5 {offsets = [0, 14], sizes = [16, 63], strides = [1, 1]} : vector<16x79xbf16> to vector<16x63xbf16>
    %c24 = arith.constant 24 : index
    %c0_84 = arith.constant 0 : index
    %c0_85 = arith.constant 0 : index
    %128 = vector.load %arg2[%c24, %c0_84, %c0_85] : memref<27x32x16xbf16, #tpu.memory_space<vmem>>, vector<1x32x16xbf16>
    %129 = vector.shape_cast %128 : vector<1x32x16xbf16> to vector<32x16xbf16>
    %cst_86 = arith.constant dense<0.000000e+00> : vector<32x63xf32>
    %130 = tpu.matmul %129, %127, %cst_86 {dimension_numbers = #tpu.dot_dimension_numbers<[1], [0], [0], [1], [0, 0, 1, 1], [], []>} : vector<32x16xbf16>, vector<16x63xbf16>, vector<32x63xf32> -> vector<32x63xf32>
    %131 = arith.addf %126, %130 : vector<32x63xf32>
    %132 = vector.extract_strided_slice %5 {offsets = [0, 15], sizes = [16, 63], strides = [1, 1]} : vector<16x79xbf16> to vector<16x63xbf16>
    %c25 = arith.constant 25 : index
    %c0_87 = arith.constant 0 : index
    %c0_88 = arith.constant 0 : index
    %133 = vector.load %arg2[%c25, %c0_87, %c0_88] : memref<27x32x16xbf16, #tpu.memory_space<vmem>>, vector<1x32x16xbf16>
    %134 = vector.shape_cast %133 : vector<1x32x16xbf16> to vector<32x16xbf16>
    %cst_89 = arith.constant dense<0.000000e+00> : vector<32x63xf32>
    %135 = tpu.matmul %134, %132, %cst_89 {dimension_numbers = #tpu.dot_dimension_numbers<[1], [0], [0], [1], [0, 0, 1, 1], [], []>} : vector<32x16xbf16>, vector<16x63xbf16>, vector<32x63xf32> -> vector<32x63xf32>
    %136 = arith.addf %131, %135 : vector<32x63xf32>
    %137 = vector.extract_strided_slice %5 {offsets = [0, 16], sizes = [16, 63], strides = [1, 1]} : vector<16x79xbf16> to vector<16x63xbf16>
    %c26 = arith.constant 26 : index
    %c0_90 = arith.constant 0 : index
    %c0_91 = arith.constant 0 : index
    %138 = vector.load %arg2[%c26, %c0_90, %c0_91] : memref<27x32x16xbf16, #tpu.memory_space<vmem>>, vector<1x32x16xbf16>
    %139 = vector.shape_cast %138 : vector<1x32x16xbf16> to vector<32x16xbf16>
    %cst_92 = arith.constant dense<0.000000e+00> : vector<32x63xf32>
    %140 = tpu.matmul %139, %137, %cst_92 {dimension_numbers = #tpu.dot_dimension_numbers<[1], [0], [0], [1], [0, 0, 1, 1], [], []>} : vector<32x16xbf16>, vector<16x63xbf16>, vector<32x63xf32> -> vector<32x63xf32>
    %141 = arith.addf %136, %140 : vector<32x63xf32>
    %c0_93 = arith.constant 0 : index
    %c0_94 = arith.constant 0 : index
    %142 = vector.load %arg3[%c0_93, %c0_94] : memref<32x1xf32, #tpu.memory_space<vmem>>, vector<32x1xf32>
    %143 = vector.broadcast %142 : vector<32x1xf32> to vector<32x63xf32>
    %144 = arith.addf %141, %143 : vector<32x63xf32>
    %cst_95 = arith.constant 0.000000e+00 : f32
    %145 = vector.broadcast %cst_95 : f32 to vector<32x63xf32>
    %146 = arith.maximumf %144, %145 : vector<32x63xf32>
    %147 = arith.truncf %146 : vector<32x63xf32> to vector<32x63xbf16>
    %c0_96 = arith.constant 0 : index
    %c0_97 = arith.constant 0 : index
    %c0_98 = arith.constant 0 : index
    %c0_99 = arith.constant 0 : index
    %148 = vector.load %arg7[%c0_96, %c0_97, %c0_98, %c0_99] : memref<1x1x32x63xbf16, #tpu.memory_space<vmem>>, vector<1x1x32x63xbf16>
    %149 = vector.shape_cast %148 : vector<1x1x32x63xbf16> to vector<32x63xbf16>
    %150 = vector.shape_cast %147 : vector<32x63xbf16> to vector<1x1x32x63xbf16>
    tpu.vector_store %arg7[%c0_96, %c0_97, %c0_98, %c0_99], %150 {strides = array<i32>} : memref<1x1x32x63xbf16, #tpu.memory_space<vmem>>, vector<1x1x32x63xbf16>,
    return
  }
  func.func @transform_0(%arg0: i32, %arg1: i32) -> (i32, i32, i32) {
    %c0_i32 = arith.constant 0 : i32
    %c0_i32_0 = arith.constant 0 : i32
    %c0_i32_1 = arith.constant 0 : i32
    %c0_i32_2 = arith.constant 0 : i32
    return %c0_i32, %c0_i32_0, %c0_i32_1 : i32, i32, i32
  }
  func.func @transform_1(%arg0: i32, %arg1: i32) -> (i32, i32) {
    %c0_i32 = arith.constant 0 : i32
    %c0_i32_0 = arith.constant 0 : i32
    %c0_i32_1 = arith.constant 0 : i32
    return %c0_i32, %c0_i32_0 : i32, i32
  }
  func.func @transform_2(%arg0: i32, %arg1: i32) -> (i32, i32, i32, i32) {
    %c0_i32 = arith.constant 0 : i32
    %c0_i32_0 = arith.constant 0 : i32
    %c0_i32_1 = arith.constant 0 : i32
    return %arg0, %arg1, %c0_i32, %c0_i32_0 : i32, i32, i32, i32
  }
  func.func @transform_3(%arg0: i32, %arg1: i32) -> (i32, i32, i32, i32) {
    %c1_i32 = arith.constant 1 : i32
    %0 = arith.addi %arg1, %c1_i32 : i32
    %c0_i32 = arith.constant 0 : i32
    %c0_i32_0 = arith.constant 0 : i32
    %c0_i32_1 = arith.constant 0 : i32
    return %arg0, %0, %c0_i32, %c0_i32_0 : i32, i32, i32, i32
  }
  func.func @transform_4(%arg0: i32, %arg1: i32) -> (i32, i32, i32, i32) {
    %c2_i32 = arith.constant 2 : i32
    %0 = arith.addi %arg1, %c2_i32 : i32
    %c0_i32 = arith.constant 0 : i32
    %c0_i32_0 = arith.constant 0 : i32
    %c0_i32_1 = arith.constant 0 : i32
    return %arg0, %0, %c0_i32, %c0_i32_0 : i32, i32, i32, i32
  }
  func.func @transform_5(%arg0: i32, %arg1: i32) -> (i32, i32, i32, i32) {
    %c0_i32 = arith.constant 0 : i32
    %c0_i32_0 = arith.constant 0 : i32
    %c0_i32_1 = arith.constant 0 : i32
    return %arg0, %arg1, %c0_i32, %c0_i32_0 : i32, i32, i32, i32
  }
}

module attributes {stable_mosaic.version = 11 : i64} {
  func.func @_conv3_kernel(%arg0: i32, %arg1: i32, %arg2: memref<27x64x32xbf16, #tpu.memory_space<vmem>>, %arg3: memref<64x1xf32, #tpu.memory_space<vmem>>, %arg4: memref<1x1x32x37xbf16, #tpu.memory_space<vmem>>, %arg5: memref<1x1x32x37xbf16, #tpu.memory_space<vmem>>, %arg6: memref<1x1x32x37xbf16, #tpu.memory_space<vmem>>, %arg7: memref<1x1x64x25xbf16, #tpu.memory_space<vmem>>) attributes {dimension_semantics = [#tpu.dimension_semantics<parallel>, #tpu.dimension_semantics<parallel>], iteration_bounds = array<i64: 2, 3>, scalar_prefetch = 0 : i64, scratch_operands = 0 : i64, tpu.core_type = #tpu.core_type<tc>, window_params = [{pipeline_mode = #tpu.pipeline_mode<synchronous>, transform_indices = @transform_0, window_bounds = array<i64: 27, 64, 32>}, {pipeline_mode = #tpu.pipeline_mode<synchronous>, transform_indices = @transform_1, window_bounds = array<i64: 64, 1>}, {transform_indices = @transform_2, window_bounds = array<i64: 1, 1, 32, 37>}, {transform_indices = @transform_3, window_bounds = array<i64: 1, 1, 32, 37>}, {transform_indices = @transform_4, window_bounds = array<i64: 1, 1, 32, 37>}, {transform_indices = @transform_5, window_bounds = array<i64: 1, 1, 64, 25>}]} {
    %c0 = arith.constant 0 : index
    %c0_0 = arith.constant 0 : index
    %c0_1 = arith.constant 0 : index
    %c0_2 = arith.constant 0 : index
    %0 = vector.load %arg4[%c0, %c0_0, %c0_1, %c0_2] : memref<1x1x32x37xbf16, #tpu.memory_space<vmem>>, vector<1x1x32x37xbf16>
    %1 = vector.shape_cast %0 : vector<1x1x32x37xbf16> to vector<32x37xbf16>
    %c0_3 = arith.constant 0 : index
    %c0_4 = arith.constant 0 : index
    %c0_5 = arith.constant 0 : index
    %c0_6 = arith.constant 0 : index
    %2 = vector.load %arg5[%c0_3, %c0_4, %c0_5, %c0_6] : memref<1x1x32x37xbf16, #tpu.memory_space<vmem>>, vector<1x1x32x37xbf16>
    %3 = vector.shape_cast %2 : vector<1x1x32x37xbf16> to vector<32x37xbf16>
    %c0_7 = arith.constant 0 : index
    %c0_8 = arith.constant 0 : index
    %c0_9 = arith.constant 0 : index
    %c0_10 = arith.constant 0 : index
    %4 = vector.load %arg6[%c0_7, %c0_8, %c0_9, %c0_10] : memref<1x1x32x37xbf16, #tpu.memory_space<vmem>>, vector<1x1x32x37xbf16>
    %5 = vector.shape_cast %4 : vector<1x1x32x37xbf16> to vector<32x37xbf16>
    %cst = arith.constant 0.000000e+00 : f32
    %6 = vector.broadcast %cst : f32 to vector<64x25xf32>
    %7 = vector.extract_strided_slice %1 {offsets = [0, 0], sizes = [32, 25], strides = [1, 1]} : vector<32x37xbf16> to vector<32x25xbf16>
    %c0_11 = arith.constant 0 : index
    %c0_12 = arith.constant 0 : index
    %c0_13 = arith.constant 0 : index
    %8 = vector.load %arg2[%c0_11, %c0_12, %c0_13] : memref<27x64x32xbf16, #tpu.memory_space<vmem>>, vector<1x64x32xbf16>
    %9 = vector.shape_cast %8 : vector<1x64x32xbf16> to vector<64x32xbf16>
    %cst_14 = arith.constant dense<0.000000e+00> : vector<64x25xf32>
    %10 = tpu.matmul %9, %7, %cst_14 {dimension_numbers = #tpu.dot_dimension_numbers<[1], [0], [0], [1], [0, 0, 1, 1], [], []>} : vector<64x32xbf16>, vector<32x25xbf16>, vector<64x25xf32> -> vector<64x25xf32>
    %11 = arith.addf %6, %10 : vector<64x25xf32>
    %12 = vector.extract_strided_slice %1 {offsets = [0, 1], sizes = [32, 25], strides = [1, 1]} : vector<32x37xbf16> to vector<32x25xbf16>
    %c1 = arith.constant 1 : index
    %c0_15 = arith.constant 0 : index
    %c0_16 = arith.constant 0 : index
    %13 = vector.load %arg2[%c1, %c0_15, %c0_16] : memref<27x64x32xbf16, #tpu.memory_space<vmem>>, vector<1x64x32xbf16>
    %14 = vector.shape_cast %13 : vector<1x64x32xbf16> to vector<64x32xbf16>
    %cst_17 = arith.constant dense<0.000000e+00> : vector<64x25xf32>
    %15 = tpu.matmul %14, %12, %cst_17 {dimension_numbers = #tpu.dot_dimension_numbers<[1], [0], [0], [1], [0, 0, 1, 1], [], []>} : vector<64x32xbf16>, vector<32x25xbf16>, vector<64x25xf32> -> vector<64x25xf32>
    %16 = arith.addf %11, %15 : vector<64x25xf32>
    %17 = vector.extract_strided_slice %1 {offsets = [0, 2], sizes = [32, 25], strides = [1, 1]} : vector<32x37xbf16> to vector<32x25xbf16>
    %c2 = arith.constant 2 : index
    %c0_18 = arith.constant 0 : index
    %c0_19 = arith.constant 0 : index
    %18 = vector.load %arg2[%c2, %c0_18, %c0_19] : memref<27x64x32xbf16, #tpu.memory_space<vmem>>, vector<1x64x32xbf16>
    %19 = vector.shape_cast %18 : vector<1x64x32xbf16> to vector<64x32xbf16>
    %cst_20 = arith.constant dense<0.000000e+00> : vector<64x25xf32>
    %20 = tpu.matmul %19, %17, %cst_20 {dimension_numbers = #tpu.dot_dimension_numbers<[1], [0], [0], [1], [0, 0, 1, 1], [], []>} : vector<64x32xbf16>, vector<32x25xbf16>, vector<64x25xf32> -> vector<64x25xf32>
    %21 = arith.addf %16, %20 : vector<64x25xf32>
    %22 = vector.extract_strided_slice %1 {offsets = [0, 5], sizes = [32, 25], strides = [1, 1]} : vector<32x37xbf16> to vector<32x25xbf16>
    %c3 = arith.constant 3 : index
    %c0_21 = arith.constant 0 : index
    %c0_22 = arith.constant 0 : index
    %23 = vector.load %arg2[%c3, %c0_21, %c0_22] : memref<27x64x32xbf16, #tpu.memory_space<vmem>>, vector<1x64x32xbf16>
    %24 = vector.shape_cast %23 : vector<1x64x32xbf16> to vector<64x32xbf16>
    %cst_23 = arith.constant dense<0.000000e+00> : vector<64x25xf32>
    %25 = tpu.matmul %24, %22, %cst_23 {dimension_numbers = #tpu.dot_dimension_numbers<[1], [0], [0], [1], [0, 0, 1, 1], [], []>} : vector<64x32xbf16>, vector<32x25xbf16>, vector<64x25xf32> -> vector<64x25xf32>
    %26 = arith.addf %21, %25 : vector<64x25xf32>
    %27 = vector.extract_strided_slice %1 {offsets = [0, 6], sizes = [32, 25], strides = [1, 1]} : vector<32x37xbf16> to vector<32x25xbf16>
    %c4 = arith.constant 4 : index
    %c0_24 = arith.constant 0 : index
    %c0_25 = arith.constant 0 : index
    %28 = vector.load %arg2[%c4, %c0_24, %c0_25] : memref<27x64x32xbf16, #tpu.memory_space<vmem>>, vector<1x64x32xbf16>
    %29 = vector.shape_cast %28 : vector<1x64x32xbf16> to vector<64x32xbf16>
    %cst_26 = arith.constant dense<0.000000e+00> : vector<64x25xf32>
    %30 = tpu.matmul %29, %27, %cst_26 {dimension_numbers = #tpu.dot_dimension_numbers<[1], [0], [0], [1], [0, 0, 1, 1], [], []>} : vector<64x32xbf16>, vector<32x25xbf16>, vector<64x25xf32> -> vector<64x25xf32>
    %31 = arith.addf %26, %30 : vector<64x25xf32>
    %32 = vector.extract_strided_slice %1 {offsets = [0, 7], sizes = [32, 25], strides = [1, 1]} : vector<32x37xbf16> to vector<32x25xbf16>
    %c5 = arith.constant 5 : index
    %c0_27 = arith.constant 0 : index
    %c0_28 = arith.constant 0 : index
    %33 = vector.load %arg2[%c5, %c0_27, %c0_28] : memref<27x64x32xbf16, #tpu.memory_space<vmem>>, vector<1x64x32xbf16>
    %34 = vector.shape_cast %33 : vector<1x64x32xbf16> to vector<64x32xbf16>
    %cst_29 = arith.constant dense<0.000000e+00> : vector<64x25xf32>
    %35 = tpu.matmul %34, %32, %cst_29 {dimension_numbers = #tpu.dot_dimension_numbers<[1], [0], [0], [1], [0, 0, 1, 1], [], []>} : vector<64x32xbf16>, vector<32x25xbf16>, vector<64x25xf32> -> vector<64x25xf32>
    %36 = arith.addf %31, %35 : vector<64x25xf32>
    %37 = vector.extract_strided_slice %1 {offsets = [0, 10], sizes = [32, 25], strides = [1, 1]} : vector<32x37xbf16> to vector<32x25xbf16>
    %c6 = arith.constant 6 : index
    %c0_30 = arith.constant 0 : index
    %c0_31 = arith.constant 0 : index
    %38 = vector.load %arg2[%c6, %c0_30, %c0_31] : memref<27x64x32xbf16, #tpu.memory_space<vmem>>, vector<1x64x32xbf16>
    %39 = vector.shape_cast %38 : vector<1x64x32xbf16> to vector<64x32xbf16>
    %cst_32 = arith.constant dense<0.000000e+00> : vector<64x25xf32>
    %40 = tpu.matmul %39, %37, %cst_32 {dimension_numbers = #tpu.dot_dimension_numbers<[1], [0], [0], [1], [0, 0, 1, 1], [], []>} : vector<64x32xbf16>, vector<32x25xbf16>, vector<64x25xf32> -> vector<64x25xf32>
    %41 = arith.addf %36, %40 : vector<64x25xf32>
    %42 = vector.extract_strided_slice %1 {offsets = [0, 11], sizes = [32, 25], strides = [1, 1]} : vector<32x37xbf16> to vector<32x25xbf16>
    %c7 = arith.constant 7 : index
    %c0_33 = arith.constant 0 : index
    %c0_34 = arith.constant 0 : index
    %43 = vector.load %arg2[%c7, %c0_33, %c0_34] : memref<27x64x32xbf16, #tpu.memory_space<vmem>>, vector<1x64x32xbf16>
    %44 = vector.shape_cast %43 : vector<1x64x32xbf16> to vector<64x32xbf16>
    %cst_35 = arith.constant dense<0.000000e+00> : vector<64x25xf32>
    %45 = tpu.matmul %44, %42, %cst_35 {dimension_numbers = #tpu.dot_dimension_numbers<[1], [0], [0], [1], [0, 0, 1, 1], [], []>} : vector<64x32xbf16>, vector<32x25xbf16>, vector<64x25xf32> -> vector<64x25xf32>
    %46 = arith.addf %41, %45 : vector<64x25xf32>
    %47 = vector.extract_strided_slice %1 {offsets = [0, 12], sizes = [32, 25], strides = [1, 1]} : vector<32x37xbf16> to vector<32x25xbf16>
    %c8 = arith.constant 8 : index
    %c0_36 = arith.constant 0 : index
    %c0_37 = arith.constant 0 : index
    %48 = vector.load %arg2[%c8, %c0_36, %c0_37] : memref<27x64x32xbf16, #tpu.memory_space<vmem>>, vector<1x64x32xbf16>
    %49 = vector.shape_cast %48 : vector<1x64x32xbf16> to vector<64x32xbf16>
    %cst_38 = arith.constant dense<0.000000e+00> : vector<64x25xf32>
    %50 = tpu.matmul %49, %47, %cst_38 {dimension_numbers = #tpu.dot_dimension_numbers<[1], [0], [0], [1], [0, 0, 1, 1], [], []>} : vector<64x32xbf16>, vector<32x25xbf16>, vector<64x25xf32> -> vector<64x25xf32>
    %51 = arith.addf %46, %50 : vector<64x25xf32>
    %52 = vector.extract_strided_slice %3 {offsets = [0, 0], sizes = [32, 25], strides = [1, 1]} : vector<32x37xbf16> to vector<32x25xbf16>
    %c9 = arith.constant 9 : index
    %c0_39 = arith.constant 0 : index
    %c0_40 = arith.constant 0 : index
    %53 = vector.load %arg2[%c9, %c0_39, %c0_40] : memref<27x64x32xbf16, #tpu.memory_space<vmem>>, vector<1x64x32xbf16>
    %54 = vector.shape_cast %53 : vector<1x64x32xbf16> to vector<64x32xbf16>
    %cst_41 = arith.constant dense<0.000000e+00> : vector<64x25xf32>
    %55 = tpu.matmul %54, %52, %cst_41 {dimension_numbers = #tpu.dot_dimension_numbers<[1], [0], [0], [1], [0, 0, 1, 1], [], []>} : vector<64x32xbf16>, vector<32x25xbf16>, vector<64x25xf32> -> vector<64x25xf32>
    %56 = arith.addf %51, %55 : vector<64x25xf32>
    %57 = vector.extract_strided_slice %3 {offsets = [0, 1], sizes = [32, 25], strides = [1, 1]} : vector<32x37xbf16> to vector<32x25xbf16>
    %c10 = arith.constant 10 : index
    %c0_42 = arith.constant 0 : index
    %c0_43 = arith.constant 0 : index
    %58 = vector.load %arg2[%c10, %c0_42, %c0_43] : memref<27x64x32xbf16, #tpu.memory_space<vmem>>, vector<1x64x32xbf16>
    %59 = vector.shape_cast %58 : vector<1x64x32xbf16> to vector<64x32xbf16>
    %cst_44 = arith.constant dense<0.000000e+00> : vector<64x25xf32>
    %60 = tpu.matmul %59, %57, %cst_44 {dimension_numbers = #tpu.dot_dimension_numbers<[1], [0], [0], [1], [0, 0, 1, 1], [], []>} : vector<64x32xbf16>, vector<32x25xbf16>, vector<64x25xf32> -> vector<64x25xf32>
    %61 = arith.addf %56, %60 : vector<64x25xf32>
    %62 = vector.extract_strided_slice %3 {offsets = [0, 2], sizes = [32, 25], strides = [1, 1]} : vector<32x37xbf16> to vector<32x25xbf16>
    %c11 = arith.constant 11 : index
    %c0_45 = arith.constant 0 : index
    %c0_46 = arith.constant 0 : index
    %63 = vector.load %arg2[%c11, %c0_45, %c0_46] : memref<27x64x32xbf16, #tpu.memory_space<vmem>>, vector<1x64x32xbf16>
    %64 = vector.shape_cast %63 : vector<1x64x32xbf16> to vector<64x32xbf16>
    %cst_47 = arith.constant dense<0.000000e+00> : vector<64x25xf32>
    %65 = tpu.matmul %64, %62, %cst_47 {dimension_numbers = #tpu.dot_dimension_numbers<[1], [0], [0], [1], [0, 0, 1, 1], [], []>} : vector<64x32xbf16>, vector<32x25xbf16>, vector<64x25xf32> -> vector<64x25xf32>
    %66 = arith.addf %61, %65 : vector<64x25xf32>
    %67 = vector.extract_strided_slice %3 {offsets = [0, 5], sizes = [32, 25], strides = [1, 1]} : vector<32x37xbf16> to vector<32x25xbf16>
    %c12 = arith.constant 12 : index
    %c0_48 = arith.constant 0 : index
    %c0_49 = arith.constant 0 : index
    %68 = vector.load %arg2[%c12, %c0_48, %c0_49] : memref<27x64x32xbf16, #tpu.memory_space<vmem>>, vector<1x64x32xbf16>
    %69 = vector.shape_cast %68 : vector<1x64x32xbf16> to vector<64x32xbf16>
    %cst_50 = arith.constant dense<0.000000e+00> : vector<64x25xf32>
    %70 = tpu.matmul %69, %67, %cst_50 {dimension_numbers = #tpu.dot_dimension_numbers<[1], [0], [0], [1], [0, 0, 1, 1], [], []>} : vector<64x32xbf16>, vector<32x25xbf16>, vector<64x25xf32> -> vector<64x25xf32>
    %71 = arith.addf %66, %70 : vector<64x25xf32>
    %72 = vector.extract_strided_slice %3 {offsets = [0, 6], sizes = [32, 25], strides = [1, 1]} : vector<32x37xbf16> to vector<32x25xbf16>
    %c13 = arith.constant 13 : index
    %c0_51 = arith.constant 0 : index
    %c0_52 = arith.constant 0 : index
    %73 = vector.load %arg2[%c13, %c0_51, %c0_52] : memref<27x64x32xbf16, #tpu.memory_space<vmem>>, vector<1x64x32xbf16>
    %74 = vector.shape_cast %73 : vector<1x64x32xbf16> to vector<64x32xbf16>
    %cst_53 = arith.constant dense<0.000000e+00> : vector<64x25xf32>
    %75 = tpu.matmul %74, %72, %cst_53 {dimension_numbers = #tpu.dot_dimension_numbers<[1], [0], [0], [1], [0, 0, 1, 1], [], []>} : vector<64x32xbf16>, vector<32x25xbf16>, vector<64x25xf32> -> vector<64x25xf32>
    %76 = arith.addf %71, %75 : vector<64x25xf32>
    %77 = vector.extract_strided_slice %3 {offsets = [0, 7], sizes = [32, 25], strides = [1, 1]} : vector<32x37xbf16> to vector<32x25xbf16>
    %c14 = arith.constant 14 : index
    %c0_54 = arith.constant 0 : index
    %c0_55 = arith.constant 0 : index
    %78 = vector.load %arg2[%c14, %c0_54, %c0_55] : memref<27x64x32xbf16, #tpu.memory_space<vmem>>, vector<1x64x32xbf16>
    %79 = vector.shape_cast %78 : vector<1x64x32xbf16> to vector<64x32xbf16>
    %cst_56 = arith.constant dense<0.000000e+00> : vector<64x25xf32>
    %80 = tpu.matmul %79, %77, %cst_56 {dimension_numbers = #tpu.dot_dimension_numbers<[1], [0], [0], [1], [0, 0, 1, 1], [], []>} : vector<64x32xbf16>, vector<32x25xbf16>, vector<64x25xf32> -> vector<64x25xf32>
    %81 = arith.addf %76, %80 : vector<64x25xf32>
    %82 = vector.extract_strided_slice %3 {offsets = [0, 10], sizes = [32, 25], strides = [1, 1]} : vector<32x37xbf16> to vector<32x25xbf16>
    %c15 = arith.constant 15 : index
    %c0_57 = arith.constant 0 : index
    %c0_58 = arith.constant 0 : index
    %83 = vector.load %arg2[%c15, %c0_57, %c0_58] : memref<27x64x32xbf16, #tpu.memory_space<vmem>>, vector<1x64x32xbf16>
    %84 = vector.shape_cast %83 : vector<1x64x32xbf16> to vector<64x32xbf16>
    %cst_59 = arith.constant dense<0.000000e+00> : vector<64x25xf32>
    %85 = tpu.matmul %84, %82, %cst_59 {dimension_numbers = #tpu.dot_dimension_numbers<[1], [0], [0], [1], [0, 0, 1, 1], [], []>} : vector<64x32xbf16>, vector<32x25xbf16>, vector<64x25xf32> -> vector<64x25xf32>
    %86 = arith.addf %81, %85 : vector<64x25xf32>
    %87 = vector.extract_strided_slice %3 {offsets = [0, 11], sizes = [32, 25], strides = [1, 1]} : vector<32x37xbf16> to vector<32x25xbf16>
    %c16 = arith.constant 16 : index
    %c0_60 = arith.constant 0 : index
    %c0_61 = arith.constant 0 : index
    %88 = vector.load %arg2[%c16, %c0_60, %c0_61] : memref<27x64x32xbf16, #tpu.memory_space<vmem>>, vector<1x64x32xbf16>
    %89 = vector.shape_cast %88 : vector<1x64x32xbf16> to vector<64x32xbf16>
    %cst_62 = arith.constant dense<0.000000e+00> : vector<64x25xf32>
    %90 = tpu.matmul %89, %87, %cst_62 {dimension_numbers = #tpu.dot_dimension_numbers<[1], [0], [0], [1], [0, 0, 1, 1], [], []>} : vector<64x32xbf16>, vector<32x25xbf16>, vector<64x25xf32> -> vector<64x25xf32>
    %91 = arith.addf %86, %90 : vector<64x25xf32>
    %92 = vector.extract_strided_slice %3 {offsets = [0, 12], sizes = [32, 25], strides = [1, 1]} : vector<32x37xbf16> to vector<32x25xbf16>
    %c17 = arith.constant 17 : index
    %c0_63 = arith.constant 0 : index
    %c0_64 = arith.constant 0 : index
    %93 = vector.load %arg2[%c17, %c0_63, %c0_64] : memref<27x64x32xbf16, #tpu.memory_space<vmem>>, vector<1x64x32xbf16>
    %94 = vector.shape_cast %93 : vector<1x64x32xbf16> to vector<64x32xbf16>
    %cst_65 = arith.constant dense<0.000000e+00> : vector<64x25xf32>
    %95 = tpu.matmul %94, %92, %cst_65 {dimension_numbers = #tpu.dot_dimension_numbers<[1], [0], [0], [1], [0, 0, 1, 1], [], []>} : vector<64x32xbf16>, vector<32x25xbf16>, vector<64x25xf32> -> vector<64x25xf32>
    %96 = arith.addf %91, %95 : vector<64x25xf32>
    %97 = vector.extract_strided_slice %5 {offsets = [0, 0], sizes = [32, 25], strides = [1, 1]} : vector<32x37xbf16> to vector<32x25xbf16>
    %c18 = arith.constant 18 : index
    %c0_66 = arith.constant 0 : index
    %c0_67 = arith.constant 0 : index
    %98 = vector.load %arg2[%c18, %c0_66, %c0_67] : memref<27x64x32xbf16, #tpu.memory_space<vmem>>, vector<1x64x32xbf16>
    %99 = vector.shape_cast %98 : vector<1x64x32xbf16> to vector<64x32xbf16>
    %cst_68 = arith.constant dense<0.000000e+00> : vector<64x25xf32>
    %100 = tpu.matmul %99, %97, %cst_68 {dimension_numbers = #tpu.dot_dimension_numbers<[1], [0], [0], [1], [0, 0, 1, 1], [], []>} : vector<64x32xbf16>, vector<32x25xbf16>, vector<64x25xf32> -> vector<64x25xf32>
    %101 = arith.addf %96, %100 : vector<64x25xf32>
    %102 = vector.extract_strided_slice %5 {offsets = [0, 1], sizes = [32, 25], strides = [1, 1]} : vector<32x37xbf16> to vector<32x25xbf16>
    %c19 = arith.constant 19 : index
    %c0_69 = arith.constant 0 : index
    %c0_70 = arith.constant 0 : index
    %103 = vector.load %arg2[%c19, %c0_69, %c0_70] : memref<27x64x32xbf16, #tpu.memory_space<vmem>>, vector<1x64x32xbf16>
    %104 = vector.shape_cast %103 : vector<1x64x32xbf16> to vector<64x32xbf16>
    %cst_71 = arith.constant dense<0.000000e+00> : vector<64x25xf32>
    %105 = tpu.matmul %104, %102, %cst_71 {dimension_numbers = #tpu.dot_dimension_numbers<[1], [0], [0], [1], [0, 0, 1, 1], [], []>} : vector<64x32xbf16>, vector<32x25xbf16>, vector<64x25xf32> -> vector<64x25xf32>
    %106 = arith.addf %101, %105 : vector<64x25xf32>
    %107 = vector.extract_strided_slice %5 {offsets = [0, 2], sizes = [32, 25], strides = [1, 1]} : vector<32x37xbf16> to vector<32x25xbf16>
    %c20 = arith.constant 20 : index
    %c0_72 = arith.constant 0 : index
    %c0_73 = arith.constant 0 : index
    %108 = vector.load %arg2[%c20, %c0_72, %c0_73] : memref<27x64x32xbf16, #tpu.memory_space<vmem>>, vector<1x64x32xbf16>
    %109 = vector.shape_cast %108 : vector<1x64x32xbf16> to vector<64x32xbf16>
    %cst_74 = arith.constant dense<0.000000e+00> : vector<64x25xf32>
    %110 = tpu.matmul %109, %107, %cst_74 {dimension_numbers = #tpu.dot_dimension_numbers<[1], [0], [0], [1], [0, 0, 1, 1], [], []>} : vector<64x32xbf16>, vector<32x25xbf16>, vector<64x25xf32> -> vector<64x25xf32>
    %111 = arith.addf %106, %110 : vector<64x25xf32>
    %112 = vector.extract_strided_slice %5 {offsets = [0, 5], sizes = [32, 25], strides = [1, 1]} : vector<32x37xbf16> to vector<32x25xbf16>
    %c21 = arith.constant 21 : index
    %c0_75 = arith.constant 0 : index
    %c0_76 = arith.constant 0 : index
    %113 = vector.load %arg2[%c21, %c0_75, %c0_76] : memref<27x64x32xbf16, #tpu.memory_space<vmem>>, vector<1x64x32xbf16>
    %114 = vector.shape_cast %113 : vector<1x64x32xbf16> to vector<64x32xbf16>
    %cst_77 = arith.constant dense<0.000000e+00> : vector<64x25xf32>
    %115 = tpu.matmul %114, %112, %cst_77 {dimension_numbers = #tpu.dot_dimension_numbers<[1], [0], [0], [1], [0, 0, 1, 1], [], []>} : vector<64x32xbf16>, vector<32x25xbf16>, vector<64x25xf32> -> vector<64x25xf32>
    %116 = arith.addf %111, %115 : vector<64x25xf32>
    %117 = vector.extract_strided_slice %5 {offsets = [0, 6], sizes = [32, 25], strides = [1, 1]} : vector<32x37xbf16> to vector<32x25xbf16>
    %c22 = arith.constant 22 : index
    %c0_78 = arith.constant 0 : index
    %c0_79 = arith.constant 0 : index
    %118 = vector.load %arg2[%c22, %c0_78, %c0_79] : memref<27x64x32xbf16, #tpu.memory_space<vmem>>, vector<1x64x32xbf16>
    %119 = vector.shape_cast %118 : vector<1x64x32xbf16> to vector<64x32xbf16>
    %cst_80 = arith.constant dense<0.000000e+00> : vector<64x25xf32>
    %120 = tpu.matmul %119, %117, %cst_80 {dimension_numbers = #tpu.dot_dimension_numbers<[1], [0], [0], [1], [0, 0, 1, 1], [], []>} : vector<64x32xbf16>, vector<32x25xbf16>, vector<64x25xf32> -> vector<64x25xf32>
    %121 = arith.addf %116, %120 : vector<64x25xf32>
    %122 = vector.extract_strided_slice %5 {offsets = [0, 7], sizes = [32, 25], strides = [1, 1]} : vector<32x37xbf16> to vector<32x25xbf16>
    %c23 = arith.constant 23 : index
    %c0_81 = arith.constant 0 : index
    %c0_82 = arith.constant 0 : index
    %123 = vector.load %arg2[%c23, %c0_81, %c0_82] : memref<27x64x32xbf16, #tpu.memory_space<vmem>>, vector<1x64x32xbf16>
    %124 = vector.shape_cast %123 : vector<1x64x32xbf16> to vector<64x32xbf16>
    %cst_83 = arith.constant dense<0.000000e+00> : vector<64x25xf32>
    %125 = tpu.matmul %124, %122, %cst_83 {dimension_numbers = #tpu.dot_dimension_numbers<[1], [0], [0], [1], [0, 0, 1, 1], [], []>} : vector<64x32xbf16>, vector<32x25xbf16>, vector<64x25xf32> -> vector<64x25xf32>
    %126 = arith.addf %121, %125 : vector<64x25xf32>
    %127 = vector.extract_strided_slice %5 {offsets = [0, 10], sizes = [32, 25], strides = [1, 1]} : vector<32x37xbf16> to vector<32x25xbf16>
    %c24 = arith.constant 24 : index
    %c0_84 = arith.constant 0 : index
    %c0_85 = arith.constant 0 : index
    %128 = vector.load %arg2[%c24, %c0_84, %c0_85] : memref<27x64x32xbf16, #tpu.memory_space<vmem>>, vector<1x64x32xbf16>
    %129 = vector.shape_cast %128 : vector<1x64x32xbf16> to vector<64x32xbf16>
    %cst_86 = arith.constant dense<0.000000e+00> : vector<64x25xf32>
    %130 = tpu.matmul %129, %127, %cst_86 {dimension_numbers = #tpu.dot_dimension_numbers<[1], [0], [0], [1], [0, 0, 1, 1], [], []>} : vector<64x32xbf16>, vector<32x25xbf16>, vector<64x25xf32> -> vector<64x25xf32>
    %131 = arith.addf %126, %130 : vector<64x25xf32>
    %132 = vector.extract_strided_slice %5 {offsets = [0, 11], sizes = [32, 25], strides = [1, 1]} : vector<32x37xbf16> to vector<32x25xbf16>
    %c25 = arith.constant 25 : index
    %c0_87 = arith.constant 0 : index
    %c0_88 = arith.constant 0 : index
    %133 = vector.load %arg2[%c25, %c0_87, %c0_88] : memref<27x64x32xbf16, #tpu.memory_space<vmem>>, vector<1x64x32xbf16>
    %134 = vector.shape_cast %133 : vector<1x64x32xbf16> to vector<64x32xbf16>
    %cst_89 = arith.constant dense<0.000000e+00> : vector<64x25xf32>
    %135 = tpu.matmul %134, %132, %cst_89 {dimension_numbers = #tpu.dot_dimension_numbers<[1], [0], [0], [1], [0, 0, 1, 1], [], []>} : vector<64x32xbf16>, vector<32x25xbf16>, vector<64x25xf32> -> vector<64x25xf32>
    %136 = arith.addf %131, %135 : vector<64x25xf32>
    %137 = vector.extract_strided_slice %5 {offsets = [0, 12], sizes = [32, 25], strides = [1, 1]} : vector<32x37xbf16> to vector<32x25xbf16>
    %c26 = arith.constant 26 : index
    %c0_90 = arith.constant 0 : index
    %c0_91 = arith.constant 0 : index
    %138 = vector.load %arg2[%c26, %c0_90, %c0_91] : memref<27x64x32xbf16, #tpu.memory_space<vmem>>, vector<1x64x32xbf16>
    %139 = vector.shape_cast %138 : vector<1x64x32xbf16> to vector<64x32xbf16>
    %cst_92 = arith.constant dense<0.000000e+00> : vector<64x25xf32>
    %140 = tpu.matmul %139, %137, %cst_92 {dimension_numbers = #tpu.dot_dimension_numbers<[1], [0], [0], [1], [0, 0, 1, 1], [], []>} : vector<64x32xbf16>, vector<32x25xbf16>, vector<64x25xf32> -> vector<64x25xf32>
    %141 = arith.addf %136, %140 : vector<64x25xf32>
    %c0_93 = arith.constant 0 : index
    %c0_94 = arith.constant 0 : index
    %142 = vector.load %arg3[%c0_93, %c0_94] : memref<64x1xf32, #tpu.memory_space<vmem>>, vector<64x1xf32>
    %143 = vector.broadcast %142 : vector<64x1xf32> to vector<64x25xf32>
    %144 = arith.addf %141, %143 : vector<64x25xf32>
    %cst_95 = arith.constant 0.000000e+00 : f32
    %145 = vector.broadcast %cst_95 : f32 to vector<64x25xf32>
    %146 = arith.maximumf %144, %145 : vector<64x25xf32>
    %147 = arith.truncf %146 : vector<64x25xf32> to vector<64x25xbf16>
    %c0_96 = arith.constant 0 : index
    %c0_97 = arith.constant 0 : index
    %c0_98 = arith.constant 0 : index
    %c0_99 = arith.constant 0 : index
    %148 = vector.load %arg7[%c0_96, %c0_97, %c0_98, %c0_99] : memref<1x1x64x25xbf16, #tpu.memory_space<vmem>>, vector<1x1x64x25xbf16>
    %149 = vector.shape_cast %148 : vector<1x1x64x25xbf16> to vector<64x25xbf16>
    %150 = vector.shape_cast %147 : vector<64x25xbf16> to vector<1x1x64x25xbf16>
    tpu.vector_store %arg7[%c0_96, %c0_97, %c0_98, %c0_99], %150 {strides = array<i32>} : memref<1x1x64x25xbf16, #tpu.memory_space<vmem>>, vector<1x1x64x25xbf16>,
    return
  }
  func.func @transform_0(%arg0: i32, %arg1: i32) -> (i32, i32, i32) {
    %c0_i32 = arith.constant 0 : i32
    %c0_i32_0 = arith.constant 0 : i32
    %c0_i32_1 = arith.constant 0 : i32
    %c0_i32_2 = arith.constant 0 : i32
    return %c0_i32, %c0_i32_0, %c0_i32_1 : i32, i32, i32
  }
  func.func @transform_1(%arg0: i32, %arg1: i32) -> (i32, i32) {
    %c0_i32 = arith.constant 0 : i32
    %c0_i32_0 = arith.constant 0 : i32
    %c0_i32_1 = arith.constant 0 : i32
    return %c0_i32, %c0_i32_0 : i32, i32
  }
  func.func @transform_2(%arg0: i32, %arg1: i32) -> (i32, i32, i32, i32) {
    %c0_i32 = arith.constant 0 : i32
    %c0_i32_0 = arith.constant 0 : i32
    %c0_i32_1 = arith.constant 0 : i32
    return %arg0, %arg1, %c0_i32, %c0_i32_0 : i32, i32, i32, i32
  }
  func.func @transform_3(%arg0: i32, %arg1: i32) -> (i32, i32, i32, i32) {
    %c1_i32 = arith.constant 1 : i32
    %0 = arith.addi %arg1, %c1_i32 : i32
    %c0_i32 = arith.constant 0 : i32
    %c0_i32_0 = arith.constant 0 : i32
    %c0_i32_1 = arith.constant 0 : i32
    return %arg0, %0, %c0_i32, %c0_i32_0 : i32, i32, i32, i32
  }
  func.func @transform_4(%arg0: i32, %arg1: i32) -> (i32, i32, i32, i32) {
    %c2_i32 = arith.constant 2 : i32
    %0 = arith.addi %arg1, %c2_i32 : i32
    %c0_i32 = arith.constant 0 : i32
    %c0_i32_0 = arith.constant 0 : i32
    %c0_i32_1 = arith.constant 0 : i32
    return %arg0, %0, %c0_i32, %c0_i32_0 : i32, i32, i32, i32
  }
  func.func @transform_5(%arg0: i32, %arg1: i32) -> (i32, i32, i32, i32) {
    %c0_i32 = arith.constant 0 : i32
    %c0_i32_0 = arith.constant 0 : i32
    %c0_i32_1 = arith.constant 0 : i32
    return %arg0, %arg1, %c0_i32, %c0_i32_0 : i32, i32, i32, i32
  }
}

module attributes {stable_mosaic.version = 11 : i64} {
  func.func @_conv3_kernel(%arg0: i32, %arg1: i32, %arg2: memref<27x128x64xbf16, #tpu.memory_space<vmem>>, %arg3: memref<128x1xf32, #tpu.memory_space<vmem>>, %arg4: memref<1x1x64x22xbf16, #tpu.memory_space<vmem>>, %arg5: memref<1x1x64x22xbf16, #tpu.memory_space<vmem>>, %arg6: memref<1x1x64x22xbf16, #tpu.memory_space<vmem>>, %arg7: memref<1x1x128x12xbf16, #tpu.memory_space<vmem>>) attributes {dimension_semantics = [#tpu.dimension_semantics<parallel>, #tpu.dimension_semantics<parallel>], iteration_bounds = array<i64: 2, 2>, scalar_prefetch = 0 : i64, scratch_operands = 0 : i64, tpu.core_type = #tpu.core_type<tc>, window_params = [{pipeline_mode = #tpu.pipeline_mode<synchronous>, transform_indices = @transform_0, window_bounds = array<i64: 27, 128, 64>}, {pipeline_mode = #tpu.pipeline_mode<synchronous>, transform_indices = @transform_1, window_bounds = array<i64: 128, 1>}, {transform_indices = @transform_2, window_bounds = array<i64: 1, 1, 64, 22>}, {transform_indices = @transform_3, window_bounds = array<i64: 1, 1, 64, 22>}, {transform_indices = @transform_4, window_bounds = array<i64: 1, 1, 64, 22>}, {transform_indices = @transform_5, window_bounds = array<i64: 1, 1, 128, 12>}]} {
    %c0 = arith.constant 0 : index
    %c0_0 = arith.constant 0 : index
    %c0_1 = arith.constant 0 : index
    %c0_2 = arith.constant 0 : index
    %0 = vector.load %arg4[%c0, %c0_0, %c0_1, %c0_2] : memref<1x1x64x22xbf16, #tpu.memory_space<vmem>>, vector<1x1x64x22xbf16>
    %1 = vector.shape_cast %0 : vector<1x1x64x22xbf16> to vector<64x22xbf16>
    %c0_3 = arith.constant 0 : index
    %c0_4 = arith.constant 0 : index
    %c0_5 = arith.constant 0 : index
    %c0_6 = arith.constant 0 : index
    %2 = vector.load %arg5[%c0_3, %c0_4, %c0_5, %c0_6] : memref<1x1x64x22xbf16, #tpu.memory_space<vmem>>, vector<1x1x64x22xbf16>
    %3 = vector.shape_cast %2 : vector<1x1x64x22xbf16> to vector<64x22xbf16>
    %c0_7 = arith.constant 0 : index
    %c0_8 = arith.constant 0 : index
    %c0_9 = arith.constant 0 : index
    %c0_10 = arith.constant 0 : index
    %4 = vector.load %arg6[%c0_7, %c0_8, %c0_9, %c0_10] : memref<1x1x64x22xbf16, #tpu.memory_space<vmem>>, vector<1x1x64x22xbf16>
    %5 = vector.shape_cast %4 : vector<1x1x64x22xbf16> to vector<64x22xbf16>
    %cst = arith.constant 0.000000e+00 : f32
    %6 = vector.broadcast %cst : f32 to vector<128x12xf32>
    %7 = vector.extract_strided_slice %1 {offsets = [0, 0], sizes = [64, 12], strides = [1, 1]} : vector<64x22xbf16> to vector<64x12xbf16>
    %c0_11 = arith.constant 0 : index
    %c0_12 = arith.constant 0 : index
    %c0_13 = arith.constant 0 : index
    %8 = vector.load %arg2[%c0_11, %c0_12, %c0_13] : memref<27x128x64xbf16, #tpu.memory_space<vmem>>, vector<1x128x64xbf16>
    %9 = vector.shape_cast %8 : vector<1x128x64xbf16> to vector<128x64xbf16>
    %cst_14 = arith.constant dense<0.000000e+00> : vector<128x12xf32>
    %10 = tpu.matmul %9, %7, %cst_14 {dimension_numbers = #tpu.dot_dimension_numbers<[1], [0], [0], [1], [0, 0, 1, 1], [], []>} : vector<128x64xbf16>, vector<64x12xbf16>, vector<128x12xf32> -> vector<128x12xf32>
    %11 = arith.addf %6, %10 : vector<128x12xf32>
    %12 = vector.extract_strided_slice %1 {offsets = [0, 1], sizes = [64, 12], strides = [1, 1]} : vector<64x22xbf16> to vector<64x12xbf16>
    %c1 = arith.constant 1 : index
    %c0_15 = arith.constant 0 : index
    %c0_16 = arith.constant 0 : index
    %13 = vector.load %arg2[%c1, %c0_15, %c0_16] : memref<27x128x64xbf16, #tpu.memory_space<vmem>>, vector<1x128x64xbf16>
    %14 = vector.shape_cast %13 : vector<1x128x64xbf16> to vector<128x64xbf16>
    %cst_17 = arith.constant dense<0.000000e+00> : vector<128x12xf32>
    %15 = tpu.matmul %14, %12, %cst_17 {dimension_numbers = #tpu.dot_dimension_numbers<[1], [0], [0], [1], [0, 0, 1, 1], [], []>} : vector<128x64xbf16>, vector<64x12xbf16>, vector<128x12xf32> -> vector<128x12xf32>
    %16 = arith.addf %11, %15 : vector<128x12xf32>
    %17 = vector.extract_strided_slice %1 {offsets = [0, 2], sizes = [64, 12], strides = [1, 1]} : vector<64x22xbf16> to vector<64x12xbf16>
    %c2 = arith.constant 2 : index
    %c0_18 = arith.constant 0 : index
    %c0_19 = arith.constant 0 : index
    %18 = vector.load %arg2[%c2, %c0_18, %c0_19] : memref<27x128x64xbf16, #tpu.memory_space<vmem>>, vector<1x128x64xbf16>
    %19 = vector.shape_cast %18 : vector<1x128x64xbf16> to vector<128x64xbf16>
    %cst_20 = arith.constant dense<0.000000e+00> : vector<128x12xf32>
    %20 = tpu.matmul %19, %17, %cst_20 {dimension_numbers = #tpu.dot_dimension_numbers<[1], [0], [0], [1], [0, 0, 1, 1], [], []>} : vector<128x64xbf16>, vector<64x12xbf16>, vector<128x12xf32> -> vector<128x12xf32>
    %21 = arith.addf %16, %20 : vector<128x12xf32>
    %22 = vector.extract_strided_slice %1 {offsets = [0, 4], sizes = [64, 12], strides = [1, 1]} : vector<64x22xbf16> to vector<64x12xbf16>
    %c3 = arith.constant 3 : index
    %c0_21 = arith.constant 0 : index
    %c0_22 = arith.constant 0 : index
    %23 = vector.load %arg2[%c3, %c0_21, %c0_22] : memref<27x128x64xbf16, #tpu.memory_space<vmem>>, vector<1x128x64xbf16>
    %24 = vector.shape_cast %23 : vector<1x128x64xbf16> to vector<128x64xbf16>
    %cst_23 = arith.constant dense<0.000000e+00> : vector<128x12xf32>
    %25 = tpu.matmul %24, %22, %cst_23 {dimension_numbers = #tpu.dot_dimension_numbers<[1], [0], [0], [1], [0, 0, 1, 1], [], []>} : vector<128x64xbf16>, vector<64x12xbf16>, vector<128x12xf32> -> vector<128x12xf32>
    %26 = arith.addf %21, %25 : vector<128x12xf32>
    %27 = vector.extract_strided_slice %1 {offsets = [0, 5], sizes = [64, 12], strides = [1, 1]} : vector<64x22xbf16> to vector<64x12xbf16>
    %c4 = arith.constant 4 : index
    %c0_24 = arith.constant 0 : index
    %c0_25 = arith.constant 0 : index
    %28 = vector.load %arg2[%c4, %c0_24, %c0_25] : memref<27x128x64xbf16, #tpu.memory_space<vmem>>, vector<1x128x64xbf16>
    %29 = vector.shape_cast %28 : vector<1x128x64xbf16> to vector<128x64xbf16>
    %cst_26 = arith.constant dense<0.000000e+00> : vector<128x12xf32>
    %30 = tpu.matmul %29, %27, %cst_26 {dimension_numbers = #tpu.dot_dimension_numbers<[1], [0], [0], [1], [0, 0, 1, 1], [], []>} : vector<128x64xbf16>, vector<64x12xbf16>, vector<128x12xf32> -> vector<128x12xf32>
    %31 = arith.addf %26, %30 : vector<128x12xf32>
    %32 = vector.extract_strided_slice %1 {offsets = [0, 6], sizes = [64, 12], strides = [1, 1]} : vector<64x22xbf16> to vector<64x12xbf16>
    %c5 = arith.constant 5 : index
    %c0_27 = arith.constant 0 : index
    %c0_28 = arith.constant 0 : index
    %33 = vector.load %arg2[%c5, %c0_27, %c0_28] : memref<27x128x64xbf16, #tpu.memory_space<vmem>>, vector<1x128x64xbf16>
    %34 = vector.shape_cast %33 : vector<1x128x64xbf16> to vector<128x64xbf16>
    %cst_29 = arith.constant dense<0.000000e+00> : vector<128x12xf32>
    %35 = tpu.matmul %34, %32, %cst_29 {dimension_numbers = #tpu.dot_dimension_numbers<[1], [0], [0], [1], [0, 0, 1, 1], [], []>} : vector<128x64xbf16>, vector<64x12xbf16>, vector<128x12xf32> -> vector<128x12xf32>
    %36 = arith.addf %31, %35 : vector<128x12xf32>
    %37 = vector.extract_strided_slice %1 {offsets = [0, 8], sizes = [64, 12], strides = [1, 1]} : vector<64x22xbf16> to vector<64x12xbf16>
    %c6 = arith.constant 6 : index
    %c0_30 = arith.constant 0 : index
    %c0_31 = arith.constant 0 : index
    %38 = vector.load %arg2[%c6, %c0_30, %c0_31] : memref<27x128x64xbf16, #tpu.memory_space<vmem>>, vector<1x128x64xbf16>
    %39 = vector.shape_cast %38 : vector<1x128x64xbf16> to vector<128x64xbf16>
    %cst_32 = arith.constant dense<0.000000e+00> : vector<128x12xf32>
    %40 = tpu.matmul %39, %37, %cst_32 {dimension_numbers = #tpu.dot_dimension_numbers<[1], [0], [0], [1], [0, 0, 1, 1], [], []>} : vector<128x64xbf16>, vector<64x12xbf16>, vector<128x12xf32> -> vector<128x12xf32>
    %41 = arith.addf %36, %40 : vector<128x12xf32>
    %42 = vector.extract_strided_slice %1 {offsets = [0, 9], sizes = [64, 12], strides = [1, 1]} : vector<64x22xbf16> to vector<64x12xbf16>
    %c7 = arith.constant 7 : index
    %c0_33 = arith.constant 0 : index
    %c0_34 = arith.constant 0 : index
    %43 = vector.load %arg2[%c7, %c0_33, %c0_34] : memref<27x128x64xbf16, #tpu.memory_space<vmem>>, vector<1x128x64xbf16>
    %44 = vector.shape_cast %43 : vector<1x128x64xbf16> to vector<128x64xbf16>
    %cst_35 = arith.constant dense<0.000000e+00> : vector<128x12xf32>
    %45 = tpu.matmul %44, %42, %cst_35 {dimension_numbers = #tpu.dot_dimension_numbers<[1], [0], [0], [1], [0, 0, 1, 1], [], []>} : vector<128x64xbf16>, vector<64x12xbf16>, vector<128x12xf32> -> vector<128x12xf32>
    %46 = arith.addf %41, %45 : vector<128x12xf32>
    %47 = vector.extract_strided_slice %1 {offsets = [0, 10], sizes = [64, 12], strides = [1, 1]} : vector<64x22xbf16> to vector<64x12xbf16>
    %c8 = arith.constant 8 : index
    %c0_36 = arith.constant 0 : index
    %c0_37 = arith.constant 0 : index
    %48 = vector.load %arg2[%c8, %c0_36, %c0_37] : memref<27x128x64xbf16, #tpu.memory_space<vmem>>, vector<1x128x64xbf16>
    %49 = vector.shape_cast %48 : vector<1x128x64xbf16> to vector<128x64xbf16>
    %cst_38 = arith.constant dense<0.000000e+00> : vector<128x12xf32>
    %50 = tpu.matmul %49, %47, %cst_38 {dimension_numbers = #tpu.dot_dimension_numbers<[1], [0], [0], [1], [0, 0, 1, 1], [], []>} : vector<128x64xbf16>, vector<64x12xbf16>, vector<128x12xf32> -> vector<128x12xf32>
    %51 = arith.addf %46, %50 : vector<128x12xf32>
    %52 = vector.extract_strided_slice %3 {offsets = [0, 0], sizes = [64, 12], strides = [1, 1]} : vector<64x22xbf16> to vector<64x12xbf16>
    %c9 = arith.constant 9 : index
    %c0_39 = arith.constant 0 : index
    %c0_40 = arith.constant 0 : index
    %53 = vector.load %arg2[%c9, %c0_39, %c0_40] : memref<27x128x64xbf16, #tpu.memory_space<vmem>>, vector<1x128x64xbf16>
    %54 = vector.shape_cast %53 : vector<1x128x64xbf16> to vector<128x64xbf16>
    %cst_41 = arith.constant dense<0.000000e+00> : vector<128x12xf32>
    %55 = tpu.matmul %54, %52, %cst_41 {dimension_numbers = #tpu.dot_dimension_numbers<[1], [0], [0], [1], [0, 0, 1, 1], [], []>} : vector<128x64xbf16>, vector<64x12xbf16>, vector<128x12xf32> -> vector<128x12xf32>
    %56 = arith.addf %51, %55 : vector<128x12xf32>
    %57 = vector.extract_strided_slice %3 {offsets = [0, 1], sizes = [64, 12], strides = [1, 1]} : vector<64x22xbf16> to vector<64x12xbf16>
    %c10 = arith.constant 10 : index
    %c0_42 = arith.constant 0 : index
    %c0_43 = arith.constant 0 : index
    %58 = vector.load %arg2[%c10, %c0_42, %c0_43] : memref<27x128x64xbf16, #tpu.memory_space<vmem>>, vector<1x128x64xbf16>
    %59 = vector.shape_cast %58 : vector<1x128x64xbf16> to vector<128x64xbf16>
    %cst_44 = arith.constant dense<0.000000e+00> : vector<128x12xf32>
    %60 = tpu.matmul %59, %57, %cst_44 {dimension_numbers = #tpu.dot_dimension_numbers<[1], [0], [0], [1], [0, 0, 1, 1], [], []>} : vector<128x64xbf16>, vector<64x12xbf16>, vector<128x12xf32> -> vector<128x12xf32>
    %61 = arith.addf %56, %60 : vector<128x12xf32>
    %62 = vector.extract_strided_slice %3 {offsets = [0, 2], sizes = [64, 12], strides = [1, 1]} : vector<64x22xbf16> to vector<64x12xbf16>
    %c11 = arith.constant 11 : index
    %c0_45 = arith.constant 0 : index
    %c0_46 = arith.constant 0 : index
    %63 = vector.load %arg2[%c11, %c0_45, %c0_46] : memref<27x128x64xbf16, #tpu.memory_space<vmem>>, vector<1x128x64xbf16>
    %64 = vector.shape_cast %63 : vector<1x128x64xbf16> to vector<128x64xbf16>
    %cst_47 = arith.constant dense<0.000000e+00> : vector<128x12xf32>
    %65 = tpu.matmul %64, %62, %cst_47 {dimension_numbers = #tpu.dot_dimension_numbers<[1], [0], [0], [1], [0, 0, 1, 1], [], []>} : vector<128x64xbf16>, vector<64x12xbf16>, vector<128x12xf32> -> vector<128x12xf32>
    %66 = arith.addf %61, %65 : vector<128x12xf32>
    %67 = vector.extract_strided_slice %3 {offsets = [0, 4], sizes = [64, 12], strides = [1, 1]} : vector<64x22xbf16> to vector<64x12xbf16>
    %c12 = arith.constant 12 : index
    %c0_48 = arith.constant 0 : index
    %c0_49 = arith.constant 0 : index
    %68 = vector.load %arg2[%c12, %c0_48, %c0_49] : memref<27x128x64xbf16, #tpu.memory_space<vmem>>, vector<1x128x64xbf16>
    %69 = vector.shape_cast %68 : vector<1x128x64xbf16> to vector<128x64xbf16>
    %cst_50 = arith.constant dense<0.000000e+00> : vector<128x12xf32>
    %70 = tpu.matmul %69, %67, %cst_50 {dimension_numbers = #tpu.dot_dimension_numbers<[1], [0], [0], [1], [0, 0, 1, 1], [], []>} : vector<128x64xbf16>, vector<64x12xbf16>, vector<128x12xf32> -> vector<128x12xf32>
    %71 = arith.addf %66, %70 : vector<128x12xf32>
    %72 = vector.extract_strided_slice %3 {offsets = [0, 5], sizes = [64, 12], strides = [1, 1]} : vector<64x22xbf16> to vector<64x12xbf16>
    %c13 = arith.constant 13 : index
    %c0_51 = arith.constant 0 : index
    %c0_52 = arith.constant 0 : index
    %73 = vector.load %arg2[%c13, %c0_51, %c0_52] : memref<27x128x64xbf16, #tpu.memory_space<vmem>>, vector<1x128x64xbf16>
    %74 = vector.shape_cast %73 : vector<1x128x64xbf16> to vector<128x64xbf16>
    %cst_53 = arith.constant dense<0.000000e+00> : vector<128x12xf32>
    %75 = tpu.matmul %74, %72, %cst_53 {dimension_numbers = #tpu.dot_dimension_numbers<[1], [0], [0], [1], [0, 0, 1, 1], [], []>} : vector<128x64xbf16>, vector<64x12xbf16>, vector<128x12xf32> -> vector<128x12xf32>
    %76 = arith.addf %71, %75 : vector<128x12xf32>
    %77 = vector.extract_strided_slice %3 {offsets = [0, 6], sizes = [64, 12], strides = [1, 1]} : vector<64x22xbf16> to vector<64x12xbf16>
    %c14 = arith.constant 14 : index
    %c0_54 = arith.constant 0 : index
    %c0_55 = arith.constant 0 : index
    %78 = vector.load %arg2[%c14, %c0_54, %c0_55] : memref<27x128x64xbf16, #tpu.memory_space<vmem>>, vector<1x128x64xbf16>
    %79 = vector.shape_cast %78 : vector<1x128x64xbf16> to vector<128x64xbf16>
    %cst_56 = arith.constant dense<0.000000e+00> : vector<128x12xf32>
    %80 = tpu.matmul %79, %77, %cst_56 {dimension_numbers = #tpu.dot_dimension_numbers<[1], [0], [0], [1], [0, 0, 1, 1], [], []>} : vector<128x64xbf16>, vector<64x12xbf16>, vector<128x12xf32> -> vector<128x12xf32>
    %81 = arith.addf %76, %80 : vector<128x12xf32>
    %82 = vector.extract_strided_slice %3 {offsets = [0, 8], sizes = [64, 12], strides = [1, 1]} : vector<64x22xbf16> to vector<64x12xbf16>
    %c15 = arith.constant 15 : index
    %c0_57 = arith.constant 0 : index
    %c0_58 = arith.constant 0 : index
    %83 = vector.load %arg2[%c15, %c0_57, %c0_58] : memref<27x128x64xbf16, #tpu.memory_space<vmem>>, vector<1x128x64xbf16>
    %84 = vector.shape_cast %83 : vector<1x128x64xbf16> to vector<128x64xbf16>
    %cst_59 = arith.constant dense<0.000000e+00> : vector<128x12xf32>
    %85 = tpu.matmul %84, %82, %cst_59 {dimension_numbers = #tpu.dot_dimension_numbers<[1], [0], [0], [1], [0, 0, 1, 1], [], []>} : vector<128x64xbf16>, vector<64x12xbf16>, vector<128x12xf32> -> vector<128x12xf32>
    %86 = arith.addf %81, %85 : vector<128x12xf32>
    %87 = vector.extract_strided_slice %3 {offsets = [0, 9], sizes = [64, 12], strides = [1, 1]} : vector<64x22xbf16> to vector<64x12xbf16>
    %c16 = arith.constant 16 : index
    %c0_60 = arith.constant 0 : index
    %c0_61 = arith.constant 0 : index
    %88 = vector.load %arg2[%c16, %c0_60, %c0_61] : memref<27x128x64xbf16, #tpu.memory_space<vmem>>, vector<1x128x64xbf16>
    %89 = vector.shape_cast %88 : vector<1x128x64xbf16> to vector<128x64xbf16>
    %cst_62 = arith.constant dense<0.000000e+00> : vector<128x12xf32>
    %90 = tpu.matmul %89, %87, %cst_62 {dimension_numbers = #tpu.dot_dimension_numbers<[1], [0], [0], [1], [0, 0, 1, 1], [], []>} : vector<128x64xbf16>, vector<64x12xbf16>, vector<128x12xf32> -> vector<128x12xf32>
    %91 = arith.addf %86, %90 : vector<128x12xf32>
    %92 = vector.extract_strided_slice %3 {offsets = [0, 10], sizes = [64, 12], strides = [1, 1]} : vector<64x22xbf16> to vector<64x12xbf16>
    %c17 = arith.constant 17 : index
    %c0_63 = arith.constant 0 : index
    %c0_64 = arith.constant 0 : index
    %93 = vector.load %arg2[%c17, %c0_63, %c0_64] : memref<27x128x64xbf16, #tpu.memory_space<vmem>>, vector<1x128x64xbf16>
    %94 = vector.shape_cast %93 : vector<1x128x64xbf16> to vector<128x64xbf16>
    %cst_65 = arith.constant dense<0.000000e+00> : vector<128x12xf32>
    %95 = tpu.matmul %94, %92, %cst_65 {dimension_numbers = #tpu.dot_dimension_numbers<[1], [0], [0], [1], [0, 0, 1, 1], [], []>} : vector<128x64xbf16>, vector<64x12xbf16>, vector<128x12xf32> -> vector<128x12xf32>
    %96 = arith.addf %91, %95 : vector<128x12xf32>
    %97 = vector.extract_strided_slice %5 {offsets = [0, 0], sizes = [64, 12], strides = [1, 1]} : vector<64x22xbf16> to vector<64x12xbf16>
    %c18 = arith.constant 18 : index
    %c0_66 = arith.constant 0 : index
    %c0_67 = arith.constant 0 : index
    %98 = vector.load %arg2[%c18, %c0_66, %c0_67] : memref<27x128x64xbf16, #tpu.memory_space<vmem>>, vector<1x128x64xbf16>
    %99 = vector.shape_cast %98 : vector<1x128x64xbf16> to vector<128x64xbf16>
    %cst_68 = arith.constant dense<0.000000e+00> : vector<128x12xf32>
    %100 = tpu.matmul %99, %97, %cst_68 {dimension_numbers = #tpu.dot_dimension_numbers<[1], [0], [0], [1], [0, 0, 1, 1], [], []>} : vector<128x64xbf16>, vector<64x12xbf16>, vector<128x12xf32> -> vector<128x12xf32>
    %101 = arith.addf %96, %100 : vector<128x12xf32>
    %102 = vector.extract_strided_slice %5 {offsets = [0, 1], sizes = [64, 12], strides = [1, 1]} : vector<64x22xbf16> to vector<64x12xbf16>
    %c19 = arith.constant 19 : index
    %c0_69 = arith.constant 0 : index
    %c0_70 = arith.constant 0 : index
    %103 = vector.load %arg2[%c19, %c0_69, %c0_70] : memref<27x128x64xbf16, #tpu.memory_space<vmem>>, vector<1x128x64xbf16>
    %104 = vector.shape_cast %103 : vector<1x128x64xbf16> to vector<128x64xbf16>
    %cst_71 = arith.constant dense<0.000000e+00> : vector<128x12xf32>
    %105 = tpu.matmul %104, %102, %cst_71 {dimension_numbers = #tpu.dot_dimension_numbers<[1], [0], [0], [1], [0, 0, 1, 1], [], []>} : vector<128x64xbf16>, vector<64x12xbf16>, vector<128x12xf32> -> vector<128x12xf32>
    %106 = arith.addf %101, %105 : vector<128x12xf32>
    %107 = vector.extract_strided_slice %5 {offsets = [0, 2], sizes = [64, 12], strides = [1, 1]} : vector<64x22xbf16> to vector<64x12xbf16>
    %c20 = arith.constant 20 : index
    %c0_72 = arith.constant 0 : index
    %c0_73 = arith.constant 0 : index
    %108 = vector.load %arg2[%c20, %c0_72, %c0_73] : memref<27x128x64xbf16, #tpu.memory_space<vmem>>, vector<1x128x64xbf16>
    %109 = vector.shape_cast %108 : vector<1x128x64xbf16> to vector<128x64xbf16>
    %cst_74 = arith.constant dense<0.000000e+00> : vector<128x12xf32>
    %110 = tpu.matmul %109, %107, %cst_74 {dimension_numbers = #tpu.dot_dimension_numbers<[1], [0], [0], [1], [0, 0, 1, 1], [], []>} : vector<128x64xbf16>, vector<64x12xbf16>, vector<128x12xf32> -> vector<128x12xf32>
    %111 = arith.addf %106, %110 : vector<128x12xf32>
    %112 = vector.extract_strided_slice %5 {offsets = [0, 4], sizes = [64, 12], strides = [1, 1]} : vector<64x22xbf16> to vector<64x12xbf16>
    %c21 = arith.constant 21 : index
    %c0_75 = arith.constant 0 : index
    %c0_76 = arith.constant 0 : index
    %113 = vector.load %arg2[%c21, %c0_75, %c0_76] : memref<27x128x64xbf16, #tpu.memory_space<vmem>>, vector<1x128x64xbf16>
    %114 = vector.shape_cast %113 : vector<1x128x64xbf16> to vector<128x64xbf16>
    %cst_77 = arith.constant dense<0.000000e+00> : vector<128x12xf32>
    %115 = tpu.matmul %114, %112, %cst_77 {dimension_numbers = #tpu.dot_dimension_numbers<[1], [0], [0], [1], [0, 0, 1, 1], [], []>} : vector<128x64xbf16>, vector<64x12xbf16>, vector<128x12xf32> -> vector<128x12xf32>
    %116 = arith.addf %111, %115 : vector<128x12xf32>
    %117 = vector.extract_strided_slice %5 {offsets = [0, 5], sizes = [64, 12], strides = [1, 1]} : vector<64x22xbf16> to vector<64x12xbf16>
    %c22 = arith.constant 22 : index
    %c0_78 = arith.constant 0 : index
    %c0_79 = arith.constant 0 : index
    %118 = vector.load %arg2[%c22, %c0_78, %c0_79] : memref<27x128x64xbf16, #tpu.memory_space<vmem>>, vector<1x128x64xbf16>
    %119 = vector.shape_cast %118 : vector<1x128x64xbf16> to vector<128x64xbf16>
    %cst_80 = arith.constant dense<0.000000e+00> : vector<128x12xf32>
    %120 = tpu.matmul %119, %117, %cst_80 {dimension_numbers = #tpu.dot_dimension_numbers<[1], [0], [0], [1], [0, 0, 1, 1], [], []>} : vector<128x64xbf16>, vector<64x12xbf16>, vector<128x12xf32> -> vector<128x12xf32>
    %121 = arith.addf %116, %120 : vector<128x12xf32>
    %122 = vector.extract_strided_slice %5 {offsets = [0, 6], sizes = [64, 12], strides = [1, 1]} : vector<64x22xbf16> to vector<64x12xbf16>
    %c23 = arith.constant 23 : index
    %c0_81 = arith.constant 0 : index
    %c0_82 = arith.constant 0 : index
    %123 = vector.load %arg2[%c23, %c0_81, %c0_82] : memref<27x128x64xbf16, #tpu.memory_space<vmem>>, vector<1x128x64xbf16>
    %124 = vector.shape_cast %123 : vector<1x128x64xbf16> to vector<128x64xbf16>
    %cst_83 = arith.constant dense<0.000000e+00> : vector<128x12xf32>
    %125 = tpu.matmul %124, %122, %cst_83 {dimension_numbers = #tpu.dot_dimension_numbers<[1], [0], [0], [1], [0, 0, 1, 1], [], []>} : vector<128x64xbf16>, vector<64x12xbf16>, vector<128x12xf32> -> vector<128x12xf32>
    %126 = arith.addf %121, %125 : vector<128x12xf32>
    %127 = vector.extract_strided_slice %5 {offsets = [0, 8], sizes = [64, 12], strides = [1, 1]} : vector<64x22xbf16> to vector<64x12xbf16>
    %c24 = arith.constant 24 : index
    %c0_84 = arith.constant 0 : index
    %c0_85 = arith.constant 0 : index
    %128 = vector.load %arg2[%c24, %c0_84, %c0_85] : memref<27x128x64xbf16, #tpu.memory_space<vmem>>, vector<1x128x64xbf16>
    %129 = vector.shape_cast %128 : vector<1x128x64xbf16> to vector<128x64xbf16>
    %cst_86 = arith.constant dense<0.000000e+00> : vector<128x12xf32>
    %130 = tpu.matmul %129, %127, %cst_86 {dimension_numbers = #tpu.dot_dimension_numbers<[1], [0], [0], [1], [0, 0, 1, 1], [], []>} : vector<128x64xbf16>, vector<64x12xbf16>, vector<128x12xf32> -> vector<128x12xf32>
    %131 = arith.addf %126, %130 : vector<128x12xf32>
    %132 = vector.extract_strided_slice %5 {offsets = [0, 9], sizes = [64, 12], strides = [1, 1]} : vector<64x22xbf16> to vector<64x12xbf16>
    %c25 = arith.constant 25 : index
    %c0_87 = arith.constant 0 : index
    %c0_88 = arith.constant 0 : index
    %133 = vector.load %arg2[%c25, %c0_87, %c0_88] : memref<27x128x64xbf16, #tpu.memory_space<vmem>>, vector<1x128x64xbf16>
    %134 = vector.shape_cast %133 : vector<1x128x64xbf16> to vector<128x64xbf16>
    %cst_89 = arith.constant dense<0.000000e+00> : vector<128x12xf32>
    %135 = tpu.matmul %134, %132, %cst_89 {dimension_numbers = #tpu.dot_dimension_numbers<[1], [0], [0], [1], [0, 0, 1, 1], [], []>} : vector<128x64xbf16>, vector<64x12xbf16>, vector<128x12xf32> -> vector<128x12xf32>
    %136 = arith.addf %131, %135 : vector<128x12xf32>
    %137 = vector.extract_strided_slice %5 {offsets = [0, 10], sizes = [64, 12], strides = [1, 1]} : vector<64x22xbf16> to vector<64x12xbf16>
    %c26 = arith.constant 26 : index
    %c0_90 = arith.constant 0 : index
    %c0_91 = arith.constant 0 : index
    %138 = vector.load %arg2[%c26, %c0_90, %c0_91] : memref<27x128x64xbf16, #tpu.memory_space<vmem>>, vector<1x128x64xbf16>
    %139 = vector.shape_cast %138 : vector<1x128x64xbf16> to vector<128x64xbf16>
    %cst_92 = arith.constant dense<0.000000e+00> : vector<128x12xf32>
    %140 = tpu.matmul %139, %137, %cst_92 {dimension_numbers = #tpu.dot_dimension_numbers<[1], [0], [0], [1], [0, 0, 1, 1], [], []>} : vector<128x64xbf16>, vector<64x12xbf16>, vector<128x12xf32> -> vector<128x12xf32>
    %141 = arith.addf %136, %140 : vector<128x12xf32>
    %c0_93 = arith.constant 0 : index
    %c0_94 = arith.constant 0 : index
    %142 = vector.load %arg3[%c0_93, %c0_94] : memref<128x1xf32, #tpu.memory_space<vmem>>, vector<128x1xf32>
    %143 = vector.broadcast %142 : vector<128x1xf32> to vector<128x12xf32>
    %144 = arith.addf %141, %143 : vector<128x12xf32>
    %cst_95 = arith.constant 0.000000e+00 : f32
    %145 = vector.broadcast %cst_95 : f32 to vector<128x12xf32>
    %146 = arith.maximumf %144, %145 : vector<128x12xf32>
    %147 = arith.truncf %146 : vector<128x12xf32> to vector<128x12xbf16>
    %c0_96 = arith.constant 0 : index
    %c0_97 = arith.constant 0 : index
    %c0_98 = arith.constant 0 : index
    %c0_99 = arith.constant 0 : index
    %148 = vector.load %arg7[%c0_96, %c0_97, %c0_98, %c0_99] : memref<1x1x128x12xbf16, #tpu.memory_space<vmem>>, vector<1x1x128x12xbf16>
    %149 = vector.shape_cast %148 : vector<1x1x128x12xbf16> to vector<128x12xbf16>
    %150 = vector.shape_cast %147 : vector<128x12xbf16> to vector<1x1x128x12xbf16>
    tpu.vector_store %arg7[%c0_96, %c0_97, %c0_98, %c0_99], %150 {strides = array<i32>} : memref<1x1x128x12xbf16, #tpu.memory_space<vmem>>, vector<1x1x128x12xbf16>,
    return
  }
  func.func @transform_0(%arg0: i32, %arg1: i32) -> (i32, i32, i32) {
    %c0_i32 = arith.constant 0 : i32
    %c0_i32_0 = arith.constant 0 : i32
    %c0_i32_1 = arith.constant 0 : i32
    %c0_i32_2 = arith.constant 0 : i32
    return %c0_i32, %c0_i32_0, %c0_i32_1 : i32, i32, i32
  }
  func.func @transform_1(%arg0: i32, %arg1: i32) -> (i32, i32) {
    %c0_i32 = arith.constant 0 : i32
    %c0_i32_0 = arith.constant 0 : i32
    %c0_i32_1 = arith.constant 0 : i32
    return %c0_i32, %c0_i32_0 : i32, i32
  }
  func.func @transform_2(%arg0: i32, %arg1: i32) -> (i32, i32, i32, i32) {
    %c0_i32 = arith.constant 0 : i32
    %c0_i32_0 = arith.constant 0 : i32
    %c0_i32_1 = arith.constant 0 : i32
    return %arg0, %arg1, %c0_i32, %c0_i32_0 : i32, i32, i32, i32
  }
  func.func @transform_3(%arg0: i32, %arg1: i32) -> (i32, i32, i32, i32) {
    %c1_i32 = arith.constant 1 : i32
    %0 = arith.addi %arg1, %c1_i32 : i32
    %c0_i32 = arith.constant 0 : i32
    %c0_i32_0 = arith.constant 0 : i32
    %c0_i32_1 = arith.constant 0 : i32
    return %arg0, %0, %c0_i32, %c0_i32_0 : i32, i32, i32, i32
  }
  func.func @transform_4(%arg0: i32, %arg1: i32) -> (i32, i32, i32, i32) {
    %c2_i32 = arith.constant 2 : i32
    %0 = arith.addi %arg1, %c2_i32 : i32
    %c0_i32 = arith.constant 0 : i32
    %c0_i32_0 = arith.constant 0 : i32
    %c0_i32_1 = arith.constant 0 : i32
    return %arg0, %0, %c0_i32, %c0_i32_0 : i32, i32, i32, i32
  }
  func.func @transform_5(%arg0: i32, %arg1: i32) -> (i32, i32, i32, i32) {
    %c0_i32 = arith.constant 0 : i32
    %c0_i32_0 = arith.constant 0 : i32
    %c0_i32_1 = arith.constant 0 : i32
    return %arg0, %arg1, %c0_i32, %c0_i32_0 : i32, i32, i32, i32
  }
}

module attributes {stable_mosaic.version = 11 : i64} {
  func.func @_linear_kernel(%arg0: i32, %arg1: i32, %arg2: i32, %arg3: memref<2x256xbf16, #tpu.memory_space<vmem>>, %arg4: memref<256x1300xbf16, #tpu.memory_space<vmem>>, %arg5: memref<1x1300xf32, #tpu.memory_space<vmem>>, %arg6: memref<2x1300xf32, #tpu.memory_space<vmem>>, %arg7: memref<2x1300xf32, #tpu.memory_space<vmem>>) attributes {dimension_semantics = [#tpu.dimension_semantics<parallel>, #tpu.dimension_semantics<parallel>, #tpu.dimension_semantics<arbitrary>], iteration_bounds = array<i64: 1, 1, 1>, scalar_prefetch = 0 : i64, scratch_operands = 1 : i64, tpu.core_type = #tpu.core_type<tc>, window_params = [{transform_indices = @transform_0, window_bounds = array<i64: 2, 256>}, {transform_indices = @transform_1, window_bounds = array<i64: 256, 1300>}, {transform_indices = @transform_2, window_bounds = array<i64: 1, 1300>}, {transform_indices = @transform_3, window_bounds = array<i64: 2, 1300>}]} {
    %c0_i32 = arith.constant 0 : i32
    %0 = arith.cmpi eq, %arg2, %c0_i32 : i32
    %1 = arith.extui %0 : i1 to i32
    %c0_i32_0 = arith.constant 0 : i32
    %2 = arith.cmpi ne, %1, %c0_i32_0 : i32
    scf.if %2 {
      %cst_10 = arith.constant 0.000000e+00 : f32
      %12 = vector.broadcast %cst_10 : f32 to vector<2x1300xf32>
      %c0_11 = arith.constant 0 : index
      %c0_12 = arith.constant 0 : index
      %13 = vector.load %arg7[%c0_11, %c0_12] : memref<2x1300xf32, #tpu.memory_space<vmem>>, vector<2x1300xf32>
      tpu.vector_store %arg7[%c0_11, %c0_12], %12 {strides = array<i32>} : memref<2x1300xf32, #tpu.memory_space<vmem>>, vector<2x1300xf32>,
    } else {
    }
    %c0 = arith.constant 0 : index
    %c0_1 = arith.constant 0 : index
    %3 = vector.load %arg7[%c0, %c0_1] : memref<2x1300xf32, #tpu.memory_space<vmem>>, vector<2x1300xf32>
    %c0_2 = arith.constant 0 : index
    %c0_3 = arith.constant 0 : index
    %4 = vector.load %arg3[%c0_2, %c0_3] : memref<2x256xbf16, #tpu.memory_space<vmem>>, vector<2x256xbf16>
    %c0_4 = arith.constant 0 : index
    %c0_5 = arith.constant 0 : index
    %5 = vector.load %arg4[%c0_4, %c0_5] : memref<256x1300xbf16, #tpu.memory_space<vmem>>, vector<256x1300xbf16>
    %cst = arith.constant dense<0.000000e+00> : vector<2x1300xf32>
    %6 = tpu.matmul %4, %5, %cst {dimension_numbers = #tpu.dot_dimension_numbers<[1], [0], [0], [1], [0, 0, 1, 1], [], []>} : vector<2x256xbf16>, vector<256x1300xbf16>, vector<2x1300xf32> -> vector<2x1300xf32>
    %7 = arith.addf %3, %6 : vector<2x1300xf32>
    %c0_6 = arith.constant 0 : index
    %c0_7 = arith.constant 0 : index
    %8 = vector.load %arg7[%c0_6, %c0_7] : memref<2x1300xf32, #tpu.memory_space<vmem>>, vector<2x1300xf32>
    tpu.vector_store %arg7[%c0_6, %c0_7], %7 {strides = array<i32>} : memref<2x1300xf32, #tpu.memory_space<vmem>>, vector<2x1300xf32>,
    %c0_i32_8 = arith.constant 0 : i32
    %9 = arith.cmpi eq, %arg2, %c0_i32_8 : i32
    %10 = arith.extui %9 : i1 to i32
    %c0_i32_9 = arith.constant 0 : i32
    %11 = arith.cmpi ne, %10, %c0_i32_9 : i32
    scf.if %11 {
      %c0_10 = arith.constant 0 : index
      %c0_11 = arith.constant 0 : index
      %12 = vector.load %arg7[%c0_10, %c0_11] : memref<2x1300xf32, #tpu.memory_space<vmem>>, vector<2x1300xf32>
      %c0_12 = arith.constant 0 : index
      %c0_13 = arith.constant 0 : index
      %13 = vector.load %arg5[%c0_12, %c0_13] : memref<1x1300xf32, #tpu.memory_space<vmem>>, vector<1x1300xf32>
      %14 = vector.broadcast %13 : vector<1x1300xf32> to vector<2x1300xf32>
      %15 = arith.addf %12, %14 : vector<2x1300xf32>
      %cst_14 = arith.constant 0.000000e+00 : f32
      %16 = vector.broadcast %cst_14 : f32 to vector<2x1300xf32>
      %17 = arith.maximumf %15, %16 : vector<2x1300xf32>
      %c0_15 = arith.constant 0 : index
      %c0_16 = arith.constant 0 : index
      %18 = vector.load %arg6[%c0_15, %c0_16] : memref<2x1300xf32, #tpu.memory_space<vmem>>, vector<2x1300xf32>
      tpu.vector_store %arg6[%c0_15, %c0_16], %17 {strides = array<i32>} : memref<2x1300xf32, #tpu.memory_space<vmem>>, vector<2x1300xf32>,
    } else {
    }
    return
  }
  func.func @transform_0(%arg0: i32, %arg1: i32, %arg2: i32) -> (i32, i32) {
    %c0_i32 = arith.constant 0 : i32
    return %arg0, %arg2 : i32, i32
  }
  func.func @transform_1(%arg0: i32, %arg1: i32, %arg2: i32) -> (i32, i32) {
    %c0_i32 = arith.constant 0 : i32
    return %arg2, %arg1 : i32, i32
  }
  func.func @transform_2(%arg0: i32, %arg1: i32, %arg2: i32) -> (i32, i32) {
    %c0_i32 = arith.constant 0 : i32
    %c0_i32_0 = arith.constant 0 : i32
    return %c0_i32, %arg1 : i32, i32
  }
  func.func @transform_3(%arg0: i32, %arg1: i32, %arg2: i32) -> (i32, i32) {
    %c0_i32 = arith.constant 0 : i32
    return %arg0, %arg1 : i32, i32
  }
}

</mosaic_0001>

<bundles_post_ra>
// kernel: forward.6
= control target key start
LH: loop header
LB: loop body
LE: loop exit
PB: predicated region body
PF: predicated region fallthrough
CT: control target
= control target key end

     0   :  { %s2300_s18 = smov 0   ;;  %s2302_s19 = smov 0   ;;  %s3345_s0 = inlined_call_operand.vmem [shape: bf16[27,8,1], index: 0, kind: input, shape index: {}]   ;;  %s3346_s1 = inlined_call_operand.vmem [shape: f32[8,1], index: 1, kind: input, shape index: {}]   ;;  %s3347_s2 = inlined_call_operand.vmem [shape: bf16[2,19,1,794], index: 2, kind: input, shape index: {}, may-alias: {2,3,4}]   ;;  %s3348_s3 = inlined_call_operand.vmem [shape: bf16[2,19,1,794], index: 3, kind: input, shape index: {}, may-alias: {2,3,4}]   ;;  %s3349_s4 = inlined_call_operand.vmem [shape: bf16[2,19,1,794], index: 4, kind: input, shape index: {}, may-alias: {2,3,4}]   ;;  %s3350_s5 = inlined_call_operand.vmem [shape: bf16[2,17,8,748], index: 5, kind: output, shape index: {}]  }
   0x1   :  { %s2304_s20 = smov 0   ;;  %s2306_s21 = smov 0  }
   0x2   :  { %s2308_s22 = smov 0  }
   0x3 LB: > { %s24_s23 = sadd.s32 1, %s2251_s20  ;;  %s27_s24 = sadd.s32 1, %s2255_s21  ;;  %s2259_s22 = sphi %s2308_s22, %s15_s22   ;;  %s2255_s21 = sphi %s2306_s21, %s3444_s21   ;;  %s2251_s20 = sphi %s2304_s20, %s3443_s20   ;;  %s2247_s19 = sphi %s2302_s19, %s3442_s19   ;;  %s2243_s18 = sphi %s2300_s18, %s3441_s18  }
   0x4   : > { %p25_p0 = scmp.ge.s32.totalorder %s24_s23, 17  ;;  %p2025_p1 = scmp.ge.s32.totalorder %s2259_s22, 1 }
   0x5   : > { %p244_p2 = scmp.lt.s32.totalorder %s2259_s22, 35 }
   0x6   : > { %s3446_s23 = smov (%p25_p0, %s24_s23), 0  ;;  %s3448_s24 = smov (!%p25_p0, %s27_s24), %s2255_s21 }
   0x7   : > { %p245_p3 = pnand %p2025_p1, %p244_p2  ;;  %p29_p4 = scmp.ge.s32.totalorder %s3448_s24, 2 }
   0x9   : > { %s3450_s24 = smov (%p29_p4, %s3448_s24), 0  ;;  %248 = sbr.rel (%p245_p3) target bundleno = 1147 (0x47b), region = 40 }
  0x10   : > { %v2087_v0 = vld [vmem:[%s3345_s0 + $0x8] sm:$0xff]   ;;  %v2036_v1 = vld [vmem:[%s3345_s0] sm:$0xff]   ;;  %v2088_v2 = vld [vmem:[%s3345_s0 + $0x10] sm:$0xff]   ;;  %v2261_v3 = vmov 0   ;;  %p297_p5 = scmp.lt.s32.totalorder %s2247_s19, 1  ;;  %p299_p6 = scmp.lt.s32.totalorder %s2243_s18, 18  ;;  %v404_v25 = vlaneseq }
  0x11   : > { %2160 = vset.pattern.permute.xlu1 %v2261_v3  ;;  %2154 = vset.pattern.permute.xlu0 %v2261_v3  ;;  %v2041_v4 = vunpack.c.l.bf16 %v2087_v0  ;;  %v2042_v5 = vunpack.c.h.bf16 %v2087_v0  ;;  %v2037_v6 = vunpack.c.l.bf16 %v2036_v1  ;;  %v2038_v7 = vunpack.c.h.bf16 %v2036_v1  ;;  %v2089_v8 = vld [vmem:[%s3345_s0 + $0x18] sm:$0xff]   ;;  %v2090_v13 = vld [vmem:[%s3345_s0 + $0x20] sm:$0xff]   ;;  %v2091_v20 = vld [vmem:[%s3345_s0 + $0x28] sm:$0xff]   ;;  %s2262_s26 = smov 127   ;;  %s2263_s27 = smov 126  }
  0x12   : > { %v2045_v9 = vunpack.c.l.bf16 %v2088_v2  ;;  %v2046_v10 = vunpack.c.h.bf16 %v2088_v2  ;;  %v2049_v11 = vunpack.c.l.bf16 %v2089_v8  ;;  %v2050_v12 = vunpack.c.h.bf16 %v2089_v8  ;;  %s3452_s19 = smov (!%p297_p5, %s2247_s19), 1  ;;  %s2264_s28 = smov 106  }
  0x13   : > { %v2161_v14 = vpack.i.bf16 %v2042_v5, %v2041_v4  ;;  %v2155_v15 = vpack.i.bf16 %v2038_v7, %v2037_v6  ;;  %v2053_v18 = vunpack.c.l.bf16 %v2090_v13  ;;  %v2054_v19 = vunpack.c.h.bf16 %v2090_v13  ;;  %s300_s12 = scalar_select %p299_p6, %s2243_s18, 18 }
  0x14   : > { %v2166_v16 = vpack.i.bf16 %v2046_v10, %v2045_v9  ;;  %v2171_v17 = vpack.i.bf16 %v2050_v12, %v2049_v11  ;;  %v2057_v22 = vunpack.c.l.bf16 %v2091_v20  ;;  %v2058_v23 = vunpack.c.h.bf16 %v2091_v20  ;;  %s2359_s13 = smul.u32 133, %s3452_s19  ;;  %s2265_s29 = smov 105  }
  0x15   : > { %2162 = vperm.xlu1 %2160, %v2161_v14   ;;  %2156 = vperm.xlu0 %2154, %v2155_v15   ;;  %v2176_v21 = vpack.i.bf16 %v2054_v19, %v2053_v18  ;;  %s2099_s14 = smul.u32 7, %s300_s12  ;;  %v405_v26 = vshrl.u32 %v404_v25, 7  ;;  %s2266_s30 = smov 104   ;;  %vm499_vm0 = vcmask 1039360   ;;  %vm546_vm1 = vcmask 1031168  }
  0x16   : > { %v2181_v24 = vpack.i.bf16 %v2058_v23, %v2057_v22  ;;  %s2267_s6 = smov 84   ;;  %s305_s7 = sadd.s32 1, %s2243_s18  ;;  %vm606_vm2 = vcmask 867328   ;;  %vm658_vm3 = vcmask 859136   ;;  %vm710_vm4 = vcmask 850944  }
  0x17   : > { %s303_s15 = sadd.s32 %s2359_s13, %s2099_s14  ;;  %v2365_v29 = vsub.s32 0, %v405_v26  ;;  %v2367_v30 = vsub.s32 2, %v405_v26  ;;  %v2371_v33 = vsub.s32 4, %v405_v26  ;;  %v2373_v34 = vsub.s32 6, %v405_v26  ;;  %p308_p7 = scmp.lt.s32.totalorder %s305_s7, 18 }
  0x18   : > { %s304_s25 = scalar_lea.vmem %s3347_s2, %s303_s15  ;;  %s2268_s9 = smov 83   ;;  %vm762_vm5 = vcmask 687104   ;;  %vm814_vm6 = vcmask 678912   ;;  %vm866_vm7 = vcmask 670720   ;;  %vm1889_vm8 = vcmask 1043456  }
  0x19   : > { %2167 = vperm.xlu1 %2160, %v2166_v16   ;;  %2172 = vperm.xlu0 %2154, %v2171_v17   ;;  %v334_v27 = vld [vmem:[%s304_s25] sm:$0x7f]  ;;  %3385 = vst [vmem:[#allocation2_spill] sm:$0xff] %v2365_v29  ;;  %3386 = vst [vmem:[#allocation3_spill] sm:$0xff] %v2367_v30  ;;  %s3454_s7 = smov (!%p308_p7, %s305_s7), 18  ;;  %s2269_s15 = smov 82  }
  0x1a   : > { %v391_v28 = vunpack.c.l.bf16 %v334_v27  ;;  %3387 = vst [vmem:[#allocation4_spill] sm:$0xff] %v2371_v33  ;;  %3388 = vst [vmem:[#allocation5_spill] sm:$0xff] %v2373_v34  ;;  %v392_v35 = vunpack.c.h.bf16 %v334_v27  ;;  %s2101_s8 = smul.u32 7, %s3454_s7  ;;  %s315_s12 = sadd.s32 2, %s2243_s18  ;;  %vm1890_vm9 = vcmask 883716  }
  0x1b   : > { %p318_p8 = scmp.lt.s32.totalorder %s315_s12, 18  ;;  %p327_p9 = scmp.lt.s32.totalorder %s2243_s18, 16  ;;  %vm1891_vm10 = vmor %vm1890_vm9, %vm1889_vm8 }
  0x1c   : > { %v411_v31 = vrot.slane %v391_v28, %v2367_v30  ;;  %v407_v32 = vrot.slane %v391_v28, %v2365_v29  ;;  %v415_v38 = vrot.slane %v391_v28, %v2371_v33  ;;  %v419_v39 = vrot.slane %v391_v28, %v2373_v34  ;;  %s312_s10 = sadd.s32 %s2101_s8, %s2359_s13 }
  0x1d   : > { %2177 = vperm.xlu1 %2160, %v2176_v21   ;;  %v423_v42 = vrot.slane %v392_v35, %v2365_v29  ;;  %v427_v43 = vrot.slane %v392_v35, %v2367_v30  ;;  %v572_v3 = vrot.slane %v392_v35, %v2371_v33  ;;  %s313_s14 = scalar_lea.vmem %s3348_s3, %s312_s10  ;;  %s3456_s12 = smov (!%p318_p8, %s315_s12), 18 }
  0x1e   : > { %v2376_v36 = vrot.slane %v411_v31, %v2365_v29  ;;  %v2379_v37 = vrot.slane %v407_v32, %v2365_v29  ;;  %v2391_v46 = vrot.slane %v415_v38, %v2365_v29  ;;  %v2394_v47 = vrot.slane %v419_v39, %v2365_v29  ;;  %s3458_s18 = smov (!%p327_p9, %s2243_s18), 16 }
  0x1f   : > { %v2401_v50 = vrot.slane %v423_v42, %v2365_v29  ;;  %v2404_v51 = vrot.slane %v427_v43, %v2365_v29  ;;  %v2438_v8 = vrot.slane %v572_v3, %v2365_v29 }
  0x21   : > { %2182 = vperm.xlu1 %2160, %v2181_v24  }
  0x94   : > { %v2383_v40 = vpop.permute.xlu0 %2156  ;;  %v2163_v52 = vpop.permute.xlu1 %2162 }
  0x95   : > { %v2159_v41 = vunpack.i.h.bf16 %v2383_v40  ;;  %v2164_v53 = vunpack.i.l.bf16 %v2163_v52  ;;  %v2165_v60 = vunpack.i.h.bf16 %v2163_v52 }
  0x97   : > { %v476_v44 = vmul.f32 %v2159_v41, %v2376_v36  ;;  %v475_v45 = vmul.f32 %v2159_v41, %v2379_v37  ;;  %v477_v48 = vmul.f32 %v2159_v41, %v2391_v46  ;;  %v478_v49 = vmul.f32 %v2159_v41, %v2394_v47 }
  0x98   : > { %v479_v54 = vmul.f32 %v2159_v41, %v2401_v50  ;;  %v480_v55 = vmul.f32 %v2159_v41, %v2404_v51  ;;  %v523_v56 = vmul.f32 %v2164_v53, %v2376_v36  ;;  %v522_v57 = vmul.f32 %v2164_v53, %v2379_v37  ;;  %v2168_v4 = vpop.permute.xlu1 %2167  ;;  %v2173_v22 = vpop.permute.xlu0 %2172 }
  0x99   : > { %489 = vrot.lane.b32.xlu1 %v476_v44, %s2262_s26  ;;  %487 = vrot.lane.b32.xlu0 %v475_v45, %s2262_s26  ;;  %v525_v58 = vmul.f32 %v2164_v53, %v2394_v47  ;;  %v524_v59 = vmul.f32 %v2164_v53, %v2391_v46  ;;  %v527_v61 = vmul.f32 %v2164_v53, %v2404_v51  ;;  %v2169_v5 = vunpack.i.l.bf16 %v2168_v4 }
  0x9a   : > { %v526_v62 = vmul.f32 %v2164_v53, %v2401_v50  ;;  %v579_v63 = vmul.f32 %v2165_v60, %v2376_v36  ;;  %v578_v0 = vmul.f32 %v2165_v60, %v2379_v37  ;;  %v581_v1 = vmul.f32 %v2165_v60, %v2394_v47 }
  0x9b   : > { %v580_v2 = vmul.f32 %v2165_v60, %v2391_v46  ;;  %v583_v6 = vmul.f32 %v2165_v60, %v2404_v51  ;;  %v582_v7 = vmul.f32 %v2165_v60, %v2401_v50  ;;  %v631_v9 = vmul.f32 %v2169_v5, %v2376_v36 }
  0x9c   : > { %v584_v10 = vmul.f32 %v2165_v60, %v2438_v8  ;;  %v633_v11 = vmul.f32 %v2169_v5, %v2394_v47  ;;  %v630_v12 = vmul.f32 %v2169_v5, %v2379_v37  ;;  %v2170_v13 = vunpack.i.h.bf16 %v2168_v4 }
  0x9d   : > { %491 = vrot.lane.b32.xlu1 %v477_v48, %s2262_s26  ;;  %493 = vrot.lane.b32.xlu0 %v478_v49, %s2262_s26  ;;  %v635_v14 = vmul.f32 %v2169_v5, %v2404_v51  ;;  %v632_v15 = vmul.f32 %v2169_v5, %v2391_v46  ;;  %v634_v17 = vmul.f32 %v2169_v5, %v2401_v50  ;;  %v2174_v23 = vunpack.i.l.bf16 %v2173_v22  ;;  %v2497_v48 = vpop.permute.xlu1 %2177 }
  0x9e   : > { %v682_v16 = vmul.f32 %v2170_v13, %v2379_v37  ;;  %v684_v18 = vmul.f32 %v2170_v13, %v2391_v46  ;;  %v636_v19 = vmul.f32 %v2169_v5, %v2438_v8  ;;  %v686_v20 = vmul.f32 %v2170_v13, %v2401_v50 }
  0x9f   : > { %v683_v21 = vmul.f32 %v2170_v13, %v2376_v36  ;;  %v688_v24 = vmul.f32 %v2170_v13, %v2438_v8  ;;  %v685_v25 = vmul.f32 %v2170_v13, %v2394_v47  ;;  %v734_v26 = vmul.f32 %v2174_v23, %v2379_v37 }
  0xa0   : > { %v687_v27 = vmul.f32 %v2170_v13, %v2404_v51  ;;  %v736_v28 = vmul.f32 %v2174_v23, %v2391_v46  ;;  %v735_v31 = vmul.f32 %v2174_v23, %v2376_v36  ;;  %v738_v32 = vmul.f32 %v2174_v23, %v2401_v50 }
  0xa1   : > { %495 = vrot.lane.b32.xlu1 %v479_v54, %s2262_s26  ;;  %497 = vrot.lane.b32.xlu0 %v480_v55, %s2262_s26  ;;  %v737_v35 = vmul.f32 %v2174_v23, %v2394_v47  ;;  %v2175_v38 = vunpack.i.h.bf16 %v2173_v22  ;;  %v740_v39 = vmul.f32 %v2174_v23, %v2438_v8  ;;  %v739_v41 = vmul.f32 %v2174_v23, %v2404_v51  ;;  %v335_v54 = vld [vmem:[%s313_s14] sm:$0x7f]  ;;  %s2102_s14 = smul.u32 7, %s3456_s12 }
  0xa2   : > { %v2179_v49 = vunpack.i.l.bf16 %v2497_v48 }
  0xa3   : > { %v787_v42 = vmul.f32 %v2175_v38, %v2376_v36  ;;  %v786_v43 = vmul.f32 %v2175_v38, %v2379_v37  ;;  %v789_v44 = vmul.f32 %v2175_v38, %v2394_v47  ;;  %v788_v45 = vmul.f32 %v2175_v38, %v2391_v46  ;;  %s322_s16 = sadd.s32 %s2102_s14, %s2359_s13 }
  0xa4   : > { %v791_v52 = vmul.f32 %v2175_v38, %v2404_v51  ;;  %v790_v53 = vmul.f32 %v2175_v38, %v2401_v50  ;;  %v839_v55 = vmul.f32 %v2179_v49, %v2376_v36  ;;  %s323_s7 = scalar_lea.vmem %s3349_s4, %s322_s16 }
  0xa5   : > { %536 = vrot.lane.b32.xlu1 %v523_v56, %s2263_s27  ;;  %534 = vrot.lane.b32.xlu0 %v522_v57, %s2263_s27  ;;  %v792_v56 = vmul.f32 %v2175_v38, %v2438_v8  ;;  %v393_v57 = vunpack.c.l.bf16 %v335_v54 }
  0xa7   : > { %v899_v60 = vrot.slane %v393_v57, %v2367_v30 }
  0xa9   : > { %540 = vrot.lane.b32.xlu1 %v525_v58, %s2263_s27  ;;  %538 = vrot.lane.b32.xlu0 %v524_v59, %s2263_s27  ;;  %v841_v58 = vmul.f32 %v2179_v49, %v2394_v47  ;;  %v838_v59 = vmul.f32 %v2179_v49, %v2379_v37  ;;  %v2519_v3 = vrot.slane %v899_v60, %v2365_v29 }
  0xab   : > { %3389 = vst [vmem:[#allocation6_spill] sm:$0xff] %v2519_v3 }
  0xad   : > { %544 = vrot.lane.b32.xlu1 %v527_v61, %s2263_s27  ;;  %542 = vrot.lane.b32.xlu0 %v526_v62, %s2263_s27  ;;  %v2183_v61 = vpop.permute.xlu1 %2182  ;;  %v907_v62 = vrot.slane %v393_v57, %v2373_v34 }
  0xb1   : > { %594 = vrot.lane.b32.xlu1 %v579_v63, %s2264_s28  ;;  %592 = vrot.lane.b32.xlu0 %v578_v0, %s2264_s28  ;;  %v2514_v63 = vunpack.c.h.bf16 %v335_v54  ;;  %v2184_v0 = vunpack.i.l.bf16 %v2183_v61 }
  0xb3   : > { %v915_v4 = vrot.slane %v2514_v63, %v2367_v30  ;;  %v964_v5 = vmul.f32 %v2184_v0, %v2519_v3 }
  0xb5   : > { %598 = vrot.lane.b32.xlu1 %v581_v1, %s2264_s28  ;;  %596 = vrot.lane.b32.xlu0 %v580_v2, %s2264_s28  ;;  %v843_v1 = vmul.f32 %v2179_v49, %v2404_v51  ;;  %v840_v2 = vmul.f32 %v2179_v49, %v2391_v46 }
  0xb9   : > { %602 = vrot.lane.b32.xlu1 %v583_v6, %s2264_s28  ;;  %600 = vrot.lane.b32.xlu0 %v582_v7, %s2264_s28  ;;  %v842_v6 = vmul.f32 %v2179_v49, %v2401_v50  ;;  %v2528_v7 = vrot.slane %v907_v62, %v2365_v29 }
  0xbb   : > { %3390 = vst [vmem:[#allocation7_spill] sm:$0xff] %v2528_v7 }
  0xbd   : > { %646 = vrot.lane.b32.xlu1 %v631_v9, %s2265_s29  ;;  %604 = vrot.lane.b32.xlu0 %v584_v10, %s2264_s28  ;;  %v895_v9 = vrot.slane %v393_v57, %v2365_v29  ;;  %v2534_v10 = vrot.slane %v915_v4, %v2365_v29 }
  0xbf   : > { %3391 = vst [vmem:[#allocation8_spill] sm:$0xff] %v2534_v10  ;;  %v2539_v13 = vrot.slane %v895_v9, %v2365_v29 }
  0xc1   : > { %650 = vrot.lane.b32.xlu1 %v633_v11, %s2265_s29  ;;  %644 = vrot.lane.b32.xlu0 %v630_v12, %s2265_s29  ;;  %v966_v11 = vmul.f32 %v2184_v0, %v2528_v7  ;;  %v844_v12 = vmul.f32 %v2179_v49, %v2438_v8 }
  0xc5   : > { %654 = vrot.lane.b32.xlu1 %v635_v14, %s2265_s29  ;;  %648 = vrot.lane.b32.xlu0 %v632_v15, %s2265_s29  ;;  %v903_v14 = vrot.slane %v393_v57, %v2371_v33  ;;  %v911_v15 = vrot.slane %v2514_v63, %v2365_v29 }
  0xc7   : > { %v2558_v22 = vrot.slane %v911_v15, %v2365_v29 }
  0xc9   : > { %696 = vrot.lane.b32.xlu1 %v682_v16, %s2266_s30  ;;  %652 = vrot.lane.b32.xlu0 %v634_v17, %s2265_s29  ;;  %v2185_v16 = vunpack.i.h.bf16 %v2183_v61  ;;  %v968_v17 = vmul.f32 %v2184_v0, %v2534_v10  ;;  %3393 = vst [vmem:[#allocation10_spill] sm:$0xff] %v2558_v22 }
  0xcd   : > { %700 = vrot.lane.b32.xlu1 %v684_v18, %s2266_s30  ;;  %656 = vrot.lane.b32.xlu0 %v636_v19, %s2265_s29  ;;  %v963_v18 = vmul.f32 %v2184_v0, %v2539_v13  ;;  %v2549_v19 = vrot.slane %v903_v14, %v2365_v29 }
  0xcf   : > { %3392 = vst [vmem:[#allocation9_spill] sm:$0xff] %v2549_v19 }
  0xd1   : > { %704 = vrot.lane.b32.xlu1 %v686_v20, %s2266_s30  ;;  %698 = vrot.lane.b32.xlu0 %v683_v21, %s2266_s30  ;;  %v1010_v20 = vmul.f32 %v2185_v16, %v2519_v3  ;;  %v965_v21 = vmul.f32 %v2184_v0, %v2549_v19 }
  0xd5   : > { %708 = vrot.lane.b32.xlu1 %v688_v24, %s2266_s30  ;;  %702 = vrot.lane.b32.xlu0 %v685_v25, %s2266_s30  ;;  %v1012_v24 = vmul.f32 %v2185_v16, %v2528_v7  ;;  %v967_v25 = vmul.f32 %v2184_v0, %v2558_v22 }
  0xd9   : > { %748 = vrot.lane.b32.xlu1 %v734_v26, %s2267_s6  ;;  %706 = vrot.lane.b32.xlu0 %v687_v27, %s2266_s30  ;;  %v1014_v27 = vmul.f32 %v2185_v16, %v2534_v10 }
  0xdd   : > { %752 = vrot.lane.b32.xlu1 %v736_v28, %s2267_s6  ;;  %750 = vrot.lane.b32.xlu0 %v735_v31, %s2267_s6  ;;  %v1009_v28 = vmul.f32 %v2185_v16, %v2539_v13  ;;  %v2092_v31 = vld [vmem:[%s3345_s0 + $0x30] sm:$0xff]  }
  0xde   : > { %v2061_v38 = vunpack.c.l.bf16 %v2092_v31 }
  0xe1   : > { %756 = vrot.lane.b32.xlu1 %v738_v32, %s2267_s6  ;;  %754 = vrot.lane.b32.xlu0 %v737_v35, %s2267_s6  ;;  %v1011_v35 = vmul.f32 %v2185_v16, %v2549_v19 }
  0xe5   : > { %760 = vrot.lane.b32.xlu1 %v740_v39, %s2267_s6  ;;  %758 = vrot.lane.b32.xlu0 %v739_v41, %s2267_s6  ;;  %v2062_v39 = vunpack.c.h.bf16 %v2092_v31 }
  0xe9   : > { %802 = vrot.lane.b32.xlu1 %v787_v42, %s2268_s9  ;;  %800 = vrot.lane.b32.xlu0 %v786_v43, %s2268_s9  ;;  %v1013_v42 = vmul.f32 %v2185_v16, %v2558_v22  ;;  %v2186_v43 = vpack.i.bf16 %v2062_v39, %v2061_v38 }
  0xed   : > { %806 = vrot.lane.b32.xlu1 %v789_v44, %s2268_s9  ;;  %804 = vrot.lane.b32.xlu0 %v788_v45, %s2268_s9 }
  0xf1   : > { %810 = vrot.lane.b32.xlu1 %v791_v52, %s2268_s9  ;;  %808 = vrot.lane.b32.xlu0 %v790_v53, %s2268_s9 }
  0xf5   : > { %854 = vrot.lane.b32.xlu1 %v839_v55, %s2269_s15  ;;  %812 = vrot.lane.b32.xlu0 %v792_v56, %s2268_s9 }
  0xf9   : > { %858 = vrot.lane.b32.xlu1 %v841_v58, %s2269_s15  ;;  %852 = vrot.lane.b32.xlu0 %v838_v59, %s2269_s15 }
  0xfd   : > { %862 = vrot.lane.b32.xlu1 %v843_v1, %s2269_s15  ;;  %856 = vrot.lane.b32.xlu0 %v840_v2, %s2269_s15 }
 0x101   : > { %977 = vrot.lane.b32.xlu1 %v964_v5, %s2262_s26  ;;  %860 = vrot.lane.b32.xlu0 %v842_v6, %s2269_s15 }
 0x105   : > { %981 = vrot.lane.b32.xlu1 %v966_v11, %s2262_s26  ;;  %864 = vrot.lane.b32.xlu0 %v844_v12, %s2269_s15 }
 0x109   : > { %985 = vrot.lane.b32.xlu1 %v968_v17, %s2262_s26  ;;  %975 = vrot.lane.b32.xlu0 %v963_v18, %s2262_s26 }
 0x10b   : > { %v2553_v8 = vpop.permute.xlu0 %487  ;;  %v2615_v1 = vpop.permute.xlu1 %489 }
 0x10d   : > { %1023 = vrot.lane.b32.xlu1 %v1010_v20, %s2263_s27  ;;  %979 = vrot.lane.b32.xlu0 %v965_v21, %s2262_s26 }
 0x10f   : > { %v2562_v23 = vpop.permute.xlu0 %493  ;;  %v2619_v4 = vpop.permute.xlu1 %491 }
 0x111   : > { %1027 = vrot.lane.b32.xlu1 %v1012_v24, %s2263_s27  ;;  %983 = vrot.lane.b32.xlu0 %v967_v25, %s2262_s26 }
 0x113   : > { %v2568_v26 = vpop.permute.xlu0 %497  ;;  %v2625_v9 = vpop.permute.xlu1 %495 }
 0x115   : > { %1031 = vrot.lane.b32.xlu1 %v1014_v27, %s2263_s27  ;;  %1021 = vrot.lane.b32.xlu0 %v1009_v28, %s2263_s27 }
 0x117   : > { %v2577_v32 = vpop.permute.xlu0 %534  ;;  %v2629_v12 = vpop.permute.xlu1 %536 }
 0x119   : > { %1025 = vrot.lane.b32.xlu0 %v1011_v35, %s2263_s27 }
 0x11b   : > { %v2581_v41 = vpop.permute.xlu0 %538  ;;  %v2635_v16 = vpop.permute.xlu1 %540 }
 0x11d   : > { %1029 = vrot.lane.b32.xlu0 %v1013_v42, %s2263_s27 }
 0x11f   : > { %v2585_v44 = vpop.permute.xlu0 %542  ;;  %v2639_v18 = vpop.permute.xlu1 %544 }
 0x121   : > { %2187 = vperm.xlu0 %2154, %v2186_v43  }
 0x123   : > { %v2587_v45 = vpop.permute.xlu0 %592  ;;  %v2643_v21 = vpop.permute.xlu1 %594 }
 0x127   : > { %v2589_v49 = vpop.permute.xlu0 %596  ;;  %v2647_v25 = vpop.permute.xlu1 %598 }
 0x12b   : > { %v2591_v52 = vpop.permute.xlu0 %600  ;;  %v2651_v28 = vpop.permute.xlu1 %602 }
 0x12f   : > { %v2593_v53 = vpop.permute.xlu0 %604  ;;  %v2655_v35 = vpop.permute.xlu1 %646 }
 0x133   : > { %v2595_v54 = vpop.permute.xlu0 %644  ;;  %v2659_v39 = vpop.permute.xlu1 %650 }
 0x137   : > { %v2597_v55 = vpop.permute.xlu0 %648  ;;  %v2663_v43 = vpop.permute.xlu1 %654 }
 0x13b   : > { %v2599_v56 = vpop.permute.xlu0 %652 }
 0x13f   : > { %v2601_v57 = vpop.permute.xlu0 %656 }
 0x143   : > { %v2603_v58 = vpop.permute.xlu0 %698 }
 0x147   : > { %v2605_v59 = vpop.permute.xlu0 %702 }
 0x14b   : > { %v2607_v60 = vpop.permute.xlu0 %706 }
 0x14f   : > { %v2609_v61 = vpop.permute.xlu0 %750 }
 0x153   : > { %v2611_v62 = vpop.permute.xlu0 %754 }
 0x157   : > { %v2613_v0 = vpop.permute.xlu0 %758 }
 0x15b   : > { %v2617_v2 = vpop.permute.xlu0 %800 }
 0x15f   : > { %v2621_v5 = vpop.permute.xlu0 %804 }
 0x160   : > { %3394 = vst [vmem:[#allocation11_spill] sm:$0xff] %v2621_v5 }
 0x163   : > { %v2623_v6 = vpop.permute.xlu0 %808 }
 0x164   : > { %3395 = vst [vmem:[#allocation12_spill] sm:$0xff] %v2623_v6 }
 0x167   : > { %v2627_v11 = vpop.permute.xlu0 %812 }
 0x16b   : > { %v2631_v14 = vpop.permute.xlu0 %852 }
 0x16c   : > { %3396 = vst [vmem:[#allocation13_spill] sm:$0xff] %v2631_v14 }
 0x16f   : > { %v2633_v15 = vpop.permute.xlu0 %856 }
 0x170   : > { %3397 = vst [vmem:[#allocation14_spill] sm:$0xff] %v2633_v15 }
 0x173   : > { %v2637_v17 = vpop.permute.xlu0 %860 }
 0x174   : > { %3398 = vst [vmem:[#allocation15_spill] sm:$0xff] %v2637_v17 }
 0x177   : > { %v2641_v20 = vpop.permute.xlu0 %864 }
 0x17b   : > { %v2645_v24 = vpop.permute.xlu0 %975 }
 0x17c   : > { %3399 = vst [vmem:[#allocation16_spill] sm:$0xff] %v2645_v24  ;;  %v2667_v24 = vpop.permute.xlu1 %696 }
 0x17f   : > { %v2649_v27 = vpop.permute.xlu0 %979 }
 0x180   : > { %3400 = vst [vmem:[#allocation17_spill] sm:$0xff] %v2649_v27 }
 0x183   : > { %v2653_v31 = vpop.permute.xlu0 %983 }
 0x184   : > { %3401 = vst [vmem:[#allocation18_spill] sm:$0xff] %v2653_v31 }
 0x187   : > { %v2657_v38 = vpop.permute.xlu0 %1021 }
 0x188   : > { %3402 = vst [vmem:[#allocation19_spill] sm:$0xff] %v2657_v38  ;;  %v2673_v38 = vpop.permute.xlu1 %700 }
 0x18b   : > { %v2661_v42 = vpop.permute.xlu0 %1025 }
 0x18c   : > { %3403 = vst [vmem:[#allocation20_spill] sm:$0xff] %v2661_v42  ;;  %v2686_v5 = vpop.permute.xlu1 %704 }
 0x18f   : > { %v2665_v34 = vpop.permute.xlu0 %1029 }
 0x190   : > { %3404 = vst [vmem:[#allocation21_spill] sm:$0xff] %v2665_v34  ;;  %v1058_v34 = vrot.slane %v2514_v63, %v2371_v33 }
 0x1a0   : > { %v2188_v30 = vpop.permute.xlu0 %2187 }
 0x1a1   : > { %v2189_v27 = vunpack.i.l.bf16 %v2188_v30  ;;  %v2190_v15 = vunpack.i.h.bf16 %v2188_v30  ;;  %v2694_v30 = vpop.permute.xlu1 %708 }
 0x1a3   : > { %v1065_v17 = vmul.f32 %v2189_v27, %v2519_v3  ;;  %v1064_v31 = vmul.f32 %v2189_v27, %v2539_v13  ;;  %v1067_v42 = vmul.f32 %v2189_v27, %v2528_v7  ;;  %v1066_v6 = vmul.f32 %v2189_v27, %v2549_v19 }
 0x1a4   : > { %v1069_v14 = vmul.f32 %v2189_v27, %v2534_v10  ;;  %v1115_v63 = vmul.f32 %v2190_v15, %v2539_v13 }
 0x1a5   : > { %1080 = vrot.lane.b32.xlu0 %v1065_v17, %s2264_s28  ;;  %1078 = vrot.lane.b32.xlu1 %v1064_v31, %s2264_s28  ;;  %v1068_v17 = vmul.f32 %v2189_v27, %v2558_v22  ;;  %v2684_v31 = vrot.slane %v1058_v34, %v2365_v29  ;;  %v1116_v34 = vmul.f32 %v2190_v15, %v2519_v3  ;;  %v2739_v3 = vunpack.i.h.bf16 %v2497_v48 }
 0x1a6   : > { %v501_v48 = vsel %vm499_vm0, %v2615_v1, %v2619_v4 }
 0x1a7   : > { %3405 = vst [vmem:[#allocation22_spill] sm:$0xff] %v2684_v31 }
 0x1a9   : > { %1084 = vrot.lane.b32.xlu0 %v1067_v42, %s2264_s28  ;;  %1082 = vrot.lane.b32.xlu1 %v1066_v6, %s2264_s28  ;;  %v1070_v42 = vmul.f32 %v2189_v27, %v2684_v31  ;;  %v1117_v6 = vmul.f32 %v2190_v15, %v2549_v19  ;;  %v1119_v27 = vmul.f32 %v2190_v15, %v2558_v22 }
 0x1ad   : > { %1088 = vrot.lane.b32.xlu0 %v1069_v14, %s2264_s28  ;;  %1086 = vrot.lane.b32.xlu1 %v1068_v17, %s2264_s28  ;;  %v2093_v14 = vld [vmem:[%s3345_s0 + $0x38] sm:$0xff]   ;;  %v1118_v17 = vmul.f32 %v2190_v15, %v2528_v7 }
 0x1ae   : > { %v2066_v33 = vunpack.c.h.bf16 %v2093_v14 }
 0x1b1   : > { %1129 = vrot.lane.b32.xlu0 %v1115_v63, %s2265_s29  ;;  %1090 = vrot.lane.b32.xlu1 %v1070_v42, %s2264_s28  ;;  %v2705_v63 = vpop.permute.xlu1 %748  ;;  %v2065_v42 = vunpack.c.l.bf16 %v2093_v14 }
 0x1b3   : > { %v2191_v29 = vpack.i.bf16 %v2066_v33, %v2065_v42 }
 0x1b5   : > { %1133 = vrot.lane.b32.xlu0 %v1117_v6, %s2265_s29  ;;  %1131 = vrot.lane.b32.xlu1 %v1116_v34, %s2265_s29  ;;  %v1121_v6 = vmul.f32 %v2190_v15, %v2684_v31  ;;  %v1120_v34 = vmul.f32 %v2190_v15, %v2534_v10  ;;  %v2713_v22 = vpop.permute.xlu1 %752 }
 0x1b9   : > { %1137 = vrot.lane.b32.xlu0 %v1119_v27, %s2265_s29  ;;  %1135 = vrot.lane.b32.xlu1 %v1118_v17, %s2265_s29  ;;  %v2715_v7 = vpop.permute.xlu1 %756 }
 0x1bd   : > { %1141 = vrot.lane.b32.xlu0 %v1121_v6, %s2265_s29  ;;  %1139 = vrot.lane.b32.xlu1 %v1120_v34, %s2265_s29  ;;  %v2717_v19 = vpop.permute.xlu1 %760 }
 0x1c1   : > { %2192 = vperm.xlu1 %2160, %v2191_v29   ;;  %v2719_v27 = vpop.permute.xlu1 %802  ;;  %v2158_v29 = vunpack.i.l.bf16 %v2383_v40 }
 0x1c3   : > { %v462_v40 = vmul.f32 %v2158_v29, %v2401_v50  ;;  %v504_v50 = vsel %vm499_vm0, %v2625_v9, %v2568_v26 }
 0x1c5   : > { %v2721_v17 = vpop.permute.xlu1 %806 }
 0x1c6   : > { %3406 = vst [vmem:[#allocation23_spill] sm:$0xff] %v2721_v17  ;;  %v458_v17 = vmul.f32 %v2158_v29, %v2379_v37  ;;  %v2758_v37 = vmul.f32 %v2739_v3, %v2534_v10 }
 0x1c9   : > { %v2723_v14 = vpop.permute.xlu1 %810 }
 0x1cd   : > { %v2725_v31 = vpop.permute.xlu1 %854 }
 0x1ce   : > { %3407 = vst [vmem:[#allocation24_spill] sm:$0xff] %v2725_v31  ;;  %v459_v31 = vmul.f32 %v2158_v29, %v2376_v36  ;;  %v502_v36 = vsel %vm499_vm0, %v2619_v4, %v2562_v23 }
 0x1d0   : > { %v512_v4 = vadd.f32 %v501_v48, %v459_v31  ;;  %v612_v31 = vsel %vm606_vm2, %v2651_v28, %v2593_v53  ;;  %v610_v53 = vsel %vm606_vm2, %v2647_v25, %v2591_v52 }
 0x1d1   : > { %v2727_v15 = vpop.permute.xlu1 %858 }
 0x1d2   : > { %3408 = vst [vmem:[#allocation25_spill] sm:$0xff] %v2727_v15  ;;  %v460_v15 = vmul.f32 %v2158_v29, %v2391_v46 }
 0x1d5   : > { %v2729_v6 = vpop.permute.xlu1 %862 }
 0x1d9   : > { %v2731_v33 = vpop.permute.xlu1 %977 }
 0x1da   : > { %3409 = vst [vmem:[#allocation26_spill] sm:$0xff] %v2731_v33  ;;  %v500_v33 = vsel %vm499_vm0, %v2553_v8, %v2615_v1  ;;  %v547_v1 = vsel %vm546_vm1, %v2577_v32, %v2629_v12  ;;  %v550_v32 = vsel %vm546_vm1, %v2635_v16, %v2585_v44 }
 0x1db   : > { %v511_v8 = vadd.f32 %v500_v33, %v458_v17  ;;  %v549_v17 = vsel %vm546_vm1, %v2581_v41, %v2635_v16  ;;  %v608_v16 = vsel %vm606_vm2, %v2643_v21, %v2589_v49 }
 0x1dd   : > { %v2733_v42 = vpop.permute.xlu1 %981  ;;  %v558_v33 = vadd.f32 %v547_v1, %v511_v8  ;;  %v662_v8 = vsel %vm658_vm3, %v2659_v39, %v2599_v56 }
 0x1de   : > { %3410 = vst [vmem:[#allocation27_spill] sm:$0xff] %v2733_v42  ;;  %v461_v42 = vmul.f32 %v2158_v29, %v2394_v47  ;;  %v503_v47 = vsel %vm499_vm0, %v2562_v23, %v2625_v9  ;;  %v548_v9 = vsel %vm546_vm1, %v2629_v12, %v2581_v41  ;;  %v607_v12 = vsel %vm606_vm2, %v2587_v45, %v2643_v21 }
 0x1df   : > { %v619_v48 = vadd.f32 %v607_v12, %v558_v33  ;;  %v611_v21 = vsel %vm606_vm2, %v2591_v52, %v2651_v28  ;;  %v661_v52 = vsel %vm658_vm3, %v2597_v55, %v2659_v39  ;;  %v764_v33 = vsel %vm762_vm5, %v2609_v61, %v2713_v22 }
 0x1e0   : > { %v514_v10 = vadd.f32 %v503_v47, %v461_v42  ;;  %v609_v42 = vsel %vm606_vm2, %v2589_v49, %v2647_v25  ;;  %v716_v25 = vsel %vm710_vm4, %v2607_v60, %v2694_v30  ;;  %v768_v30 = vsel %vm762_vm5, %v2613_v0, %v2717_v19 }
 0x1e1   : > { %v2736_v34 = vpop.permute.xlu1 %985  ;;  %v820_v19 = vsel %vm814_vm6, %v2723_v14, %v2627_v11  ;;  %v714_v11 = vsel %vm710_vm4, %v2605_v59, %v2686_v5 }
 0x1e2   : > { %3411 = vst [vmem:[#allocation28_spill] sm:$0xff] %v2736_v34  ;;  %v463_v34 = vmul.f32 %v2158_v29, %v2404_v51  ;;  %v2770_v51 = vmul.f32 %v2739_v3, %v2539_v13  ;;  %v513_v29 = vadd.f32 %v502_v36, %v460_v15  ;;  %v559_v15 = vadd.f32 %v548_v9, %v512_v4 }
 0x1e3   : > { %v561_v45 = vadd.f32 %v550_v32, %v514_v10  ;;  %v659_v10 = vsel %vm658_vm3, %v2595_v54, %v2655_v35  ;;  %v663_v54 = vsel %vm658_vm3, %v2599_v56, %v2663_v43  ;;  %v713_v56 = vsel %vm710_vm4, %v2673_v38, %v2605_v59 }
 0x1e4   : > { %v516_v23 = vadd.f32 %v2568_v26, %v463_v34  ;;  %v551_v26 = vsel %vm546_vm1, %v2585_v44, %v2639_v18  ;;  %v560_v34 = vadd.f32 %v549_v17, %v513_v29  ;;  %v620_v36 = vadd.f32 %v608_v16, %v559_v15  ;;  %v3413_v16 = vld [vmem:[#allocation11_spill] sm:$0xff] }
 0x1e5   : > { %v2760_v46 = vpop.permute.xlu1 %1023  ;;  %v671_v1 = vadd.f32 %v659_v10, %v619_v48  ;;  %v816_v59 = vsel %vm814_vm6, %v2719_v27, %v3413_v16  ;;  %v3417_v48 = vld [vmem:[#allocation14_spill] sm:$0xff] }
 0x1e6   : > { %3412 = vst [vmem:[#allocation29_spill] sm:$0xff] %v2760_v46  ;;  %v515_v46 = vadd.f32 %v504_v50, %v462_v40  ;;  %v563_v41 = vadd.f32 %v2639_v18, %v516_v23  ;;  %v664_v18 = vsel %vm658_vm3, %v2663_v43, %v2601_v57  ;;  %v621_v47 = vadd.f32 %v609_v42, %v560_v34  ;;  %v3414_v34 = vld [vmem:[#allocation23_spill] sm:$0xff] }
 0x1e7   : > { %v622_v50 = vadd.f32 %v610_v53, %v561_v45  ;;  %v660_v57 = vsel %vm658_vm3, %v2655_v35, %v2597_v55  ;;  %v711_v35 = vsel %vm710_vm4, %v2667_v24, %v2603_v58  ;;  %v712_v55 = vsel %vm710_vm4, %v2603_v58, %v2673_v38 }
 0x1e8   : > { %v562_v40 = vadd.f32 %v551_v26, %v515_v46  ;;  %v624_v49 = vadd.f32 %v612_v31, %v563_v41  ;;  %v672_v39 = vadd.f32 %v660_v57, %v620_v36  ;;  %v673_v23 = vadd.f32 %v661_v52, %v621_v47  ;;  %v3418_v36 = vld [vmem:[#allocation25_spill] sm:$0xff] }
 0x1e9   : > { %v2801_v44 = vpop.permute.xlu1 %1027  ;;  %v674_v43 = vadd.f32 %v662_v8, %v622_v50  ;;  %v763_v24 = vsel %vm762_vm5, %v2705_v63, %v2609_v61  ;;  %v723_v17 = vadd.f32 %v711_v35, %v671_v1  ;;  %v872_v38 = vsel %vm866_vm7, %v2729_v6, %v2641_v20  ;;  %v3420_v35 = vld [vmem:[#allocation15_spill] sm:$0xff] }
 0x1ea   : > { %v676_v28 = vadd.f32 %v664_v18, %v624_v49  ;;  %v623_v46 = vadd.f32 %v611_v21, %v562_v40  ;;  %v724_v32 = vadd.f32 %v712_v55, %v672_v39  ;;  %v725_v26 = vadd.f32 %v713_v56, %v673_v23  ;;  %v3415_v18 = vld [vmem:[#allocation24_spill] sm:$0xff]  ;;  %v3416_v40 = vld [vmem:[#allocation13_spill] sm:$0xff] }
 0x1eb   : > { %v765_v63 = vsel %vm762_vm5, %v2713_v22, %v2611_v62  ;;  %v715_v61 = vsel %vm710_vm4, %v2686_v5, %v2607_v60  ;;  %v775_v41 = vadd.f32 %v763_v24, %v723_v17  ;;  %v815_v20 = vsel %vm814_vm6, %v2617_v2, %v2719_v27  ;;  %v3424_v17 = vld [vmem:[#allocation26_spill] sm:$0xff] }
 0x1ec   : > { %v728_v4 = vadd.f32 %v716_v25, %v676_v28  ;;  %v675_v9 = vadd.f32 %v663_v54, %v623_v46  ;;  %v776_v42 = vadd.f32 %v764_v33, %v724_v32  ;;  %v766_v22 = vsel %vm762_vm5, %v2611_v62, %v2715_v7  ;;  %v3419_v28 = vld [vmem:[#allocation12_spill] sm:$0xff] }
 0x1ed   : > { %v2839_v29 = vpop.permute.xlu1 %1031  ;;  %v817_v45 = vsel %vm814_vm6, %v3413_v16, %v3414_v34  ;;  %v726_v60 = vadd.f32 %v714_v11, %v674_v43  ;;  %v777_v5 = vadd.f32 %v765_v63, %v725_v26  ;;  %v867_v2 = vsel %vm866_vm7, %v3416_v40, %v3415_v18  ;;  %v3423_v43 = vld [vmem:[#allocation7_spill] sm:$0xff]  ;;  %v3425_v32 = vld [vmem:[#allocation16_spill] sm:$0xff]  ;;  %v3427_v26 = vld [vmem:[#allocation10_spill] sm:$0xff] }
 0x1ee   : > { %v780_v58 = vadd.f32 %v768_v30, %v728_v4  ;;  %v868_v27 = vsel %vm866_vm7, %v3415_v18, %v3417_v48  ;;  %v767_v21 = vsel %vm762_vm5, %v2715_v7, %v2613_v0  ;;  %v827_v62 = vadd.f32 %v815_v20, %v775_v41  ;;  %v3421_v4 = vld [vmem:[#allocation6_spill] sm:$0xff] }
 0x1ef   : > { %v828_v49 = vadd.f32 %v816_v59, %v776_v42  ;;  %v869_v47 = vsel %vm866_vm7, %v3417_v48, %v3418_v36  ;;  %v727_v50 = vadd.f32 %v715_v61, %v675_v9  ;;  %v778_v57 = vadd.f32 %v766_v22, %v726_v60  ;;  %v3429_v42 = vld [vmem:[#allocation29_spill] sm:$0xff]  ;;  %v3430_v22 = vld [vmem:[#allocation19_spill] sm:$0xff]  ;;  %v3433_v48 = vld [vmem:[#allocation18_spill] sm:$0xff] }
 0x1f0   : > { %v832_v12 = vadd.f32 %v820_v19, %v780_v58  ;;  %v829_v52 = vadd.f32 %v817_v45, %v777_v5  ;;  %v818_v46 = vsel %vm814_vm6, %v3414_v34, %v3419_v28  ;;  %v819_v8 = vsel %vm814_vm6, %v3419_v28, %v2723_v14  ;;  %v3422_v19 = vld [vmem:[#allocation9_spill] sm:$0xff]  ;;  %v3431_v45 = vld [vmem:[#allocation20_spill] sm:$0xff]  ;;  %v3432_v5 = vld [vmem:[#allocation27_spill] sm:$0xff] }
 0x1f1   : > { %v879_v7 = vadd.f32 %v867_v2, %v827_v62  ;;  %v880_v0 = vadd.f32 %v868_v27, %v828_v49  ;;  %v779_v30 = vadd.f32 %v767_v21, %v727_v50  ;;  %v870_v55 = vsel %vm866_vm7, %v3418_v36, %v3420_v35 }
 0x1f2   : > { %v884_v53 = vadd.f32 %v872_v38, %v832_v12  ;;  %v881_v1 = vadd.f32 %v869_v47, %v829_v52  ;;  %v947_v39 = vmul.f32 %v2739_v3, %v3421_v4  ;;  %v830_v23 = vadd.f32 %v818_v46, %v778_v57  ;;  %v3426_v38 = vld [vmem:[#allocation17_spill] sm:$0xff]  ;;  %v3428_v12 = vld [vmem:[#allocation28_spill] sm:$0xff] }
 0x1f3   : > { %v871_v56 = vsel %vm866_vm7, %v3420_v35, %v2729_v6  ;;  %v948_v14 = vmul.f32 %v2739_v3, %v3422_v19  ;;  %v831_v58 = vadd.f32 %v819_v8, %v779_v30  ;;  %v987_v33 = vsel %vm499_vm0, %v3425_v32, %v3424_v17  ;;  %v3434_v8 = vld [vmem:[#allocation21_spill] sm:$0xff] }
 0x1f4   : > { %v957_v54 = vadd.f32 %v2758_v37, %v884_v53  ;;  %v949_v37 = vmul.f32 %v2739_v3, %v3423_v43  ;;  %v988_v11 = vsel %vm499_vm0, %v3424_v17, %v3426_v38  ;;  %v950_v6 = vmul.f32 %v2739_v3, %v3427_v26 }
 0x1f5   : > { %v882_v63 = vadd.f32 %v870_v55, %v830_v23  ;;  %v952_v41 = vadd.f32 %v2770_v51, %v879_v7  ;;  %v953_v20 = vadd.f32 %v947_v39, %v880_v0  ;;  %v883_v16 = vadd.f32 %v871_v56, %v831_v58 }
 0x1f6   : > { %v1003_v61 = vadd.f32 %v3428_v12, %v957_v54  ;;  %v954_v59 = vadd.f32 %v948_v14, %v881_v1  ;;  %v1033_v34 = vsel %vm546_vm1, %v3430_v22, %v3429_v42  ;;  %v1034_v53 = vsel %vm546_vm1, %v3429_v42, %v3431_v45 }
 0x1f7   : > { %v998_v60 = vadd.f32 %v987_v33, %v952_v41  ;;  %v989_v3 = vsel %vm499_vm0, %v3426_v38, %v3432_v5  ;;  %v999_v18 = vadd.f32 %v988_v11, %v953_v20  ;;  %v990_v27 = vsel %vm499_vm0, %v3432_v5, %v3433_v48 }
 0x1f8   : > { %v1049_v40 = vadd.f32 %v2839_v29, %v1003_v61  ;;  %v955_v36 = vadd.f32 %v949_v37, %v882_v63  ;;  %v1000_v52 = vadd.f32 %v989_v3, %v954_v59  ;;  %v956_v28 = vadd.f32 %v950_v6, %v883_v16  ;;  %v3435_v3 = vld [vmem:[#allocation8_spill] sm:$0xff] }
 0x1f9   : > { %v1044_v47 = vadd.f32 %v1033_v34, %v998_v60  ;;  %v1045_v50 = vadd.f32 %v1034_v53, %v999_v18  ;;  %v1035_v46 = vsel %vm546_vm1, %v3431_v45, %v2801_v44  ;;  %v1036_v7 = vsel %vm546_vm1, %v2801_v44, %v3434_v8 }
 0x1fa   : > { %v1046_v56 = vadd.f32 %v1035_v46, %v1000_v52  ;;  %v1037_v58 = vsel %vm546_vm1, %v3434_v8, %v2839_v29 }
 0x217   : > { %v1081_v31 = vpop.permute.xlu0 %1080  ;;  %v1079_v15 = vpop.permute.xlu1 %1078 }
 0x218   : > { %v1092_v21 = vsel %vm606_vm2, %v1079_v15, %v1081_v31  ;;  %v1001_v15 = vadd.f32 %v990_v27, %v955_v36 }
 0x219   : > { %v1104_v0 = vadd.f32 %v1092_v21, %v1044_v47 }
 0x21a   : > { %v1047_v14 = vadd.f32 %v1036_v7, %v1001_v15 }
 0x21b   : > { %v1085_v10 = vpop.permute.xlu0 %1084  ;;  %v1083_v25 = vpop.permute.xlu1 %1082 }
 0x21c   : > { %v1093_v62 = vsel %vm606_vm2, %v1081_v31, %v1083_v25  ;;  %v991_v31 = vsel %vm499_vm0, %v3433_v48, %v3428_v12  ;;  %v1094_v35 = vsel %vm606_vm2, %v1083_v25, %v1085_v10 }
 0x21d   : > { %v1105_v54 = vadd.f32 %v1093_v62, %v1045_v50  ;;  %v1002_v17 = vadd.f32 %v991_v31, %v956_v28  ;;  %v1106_v32 = vadd.f32 %v1094_v35, %v1046_v56  ;;  %v2094_v62 = vld [vmem:[%s3345_s0 + $0x40] sm:$0xff]  }
 0x21e   : > { %v2069_v47 = vunpack.c.l.bf16 %v2094_v62  ;;  %v2070_v50 = vunpack.c.h.bf16 %v2094_v62 }
 0x21f   : > { %v1089_v9 = vpop.permute.xlu0 %1088  ;;  %v1087_v24 = vpop.permute.xlu1 %1086  ;;  %v1048_v63 = vadd.f32 %v1037_v58, %v1002_v17 }
 0x220   : > { %v1095_v55 = vsel %vm606_vm2, %v1085_v10, %v1087_v24  ;;  %v1096_v10 = vsel %vm606_vm2, %v1087_v24, %v1089_v9  ;;  %v2196_v28 = vpack.i.bf16 %v2070_v50, %v2069_v47  ;;  %v2095_v47 = vld [vmem:[%s3345_s0 + $0x48] sm:$0xff]  }
 0x221   : > { %v1107_v33 = vadd.f32 %v1095_v55, %v1047_v14  ;;  %v1108_v41 = vadd.f32 %v1096_v10, %v1048_v63 }
 0x223   : > { %v1130_v51 = vpop.permute.xlu0 %1129  ;;  %v1091_v2 = vpop.permute.xlu1 %1090 }
 0x224   : > { %v1097_v49 = vsel %vm606_vm2, %v1089_v9, %v1091_v2  ;;  %v3436_v2 = vld [vmem:[#allocation22_spill] sm:$0xff] }
 0x225   : > { %v1109_v57 = vadd.f32 %v1097_v49, %v1049_v40 }
 0x227   : > { %v1134_v30 = vpop.permute.xlu0 %1133  ;;  %v1132_v1 = vpop.permute.xlu1 %1131 }
 0x228   : > { %v1143_v39 = vsel %vm658_vm3, %v1130_v51, %v1132_v1  ;;  %v1144_v23 = vsel %vm658_vm3, %v1132_v1, %v1134_v30 }
 0x229   : > { %v1155_v44 = vadd.f32 %v1143_v39, %v1104_v0  ;;  %v2947_v37 = vadd.f32 %v1144_v23, %v1105_v54 }
 0x22b   : > { %v1138_v38 = vpop.permute.xlu0 %1137  ;;  %v1136_v25 = vpop.permute.xlu1 %1135 }
 0x22c   : > { %v1145_v11 = vsel %vm658_vm3, %v1134_v30, %v1136_v25  ;;  %v1146_v6 = vsel %vm658_vm3, %v1136_v25, %v1138_v38 }
 0x22d   : > { %v1157_v12 = vadd.f32 %v1145_v11, %v1106_v32  ;;  %v1158_v61 = vadd.f32 %v1146_v6, %v1107_v33 }
 0x22f   : > { %v1142_v20 = vpop.permute.xlu0 %1141  ;;  %v1140_v16 = vpop.permute.xlu1 %1139 }
 0x230   : > { %v1147_v59 = vsel %vm658_vm3, %v1138_v38, %v1140_v16  ;;  %v1148_v29 = vsel %vm658_vm3, %v1140_v16, %v1142_v20 }
 0x231   : > { %v1159_v42 = vadd.f32 %v1147_v59, %v1108_v41  ;;  %v1160_v22 = vadd.f32 %v1148_v29, %v1109_v57 }
 0x240   : > { %v2193_v34 = vpop.permute.xlu1 %2192 }
 0x241   : > { %v2194_v45 = vunpack.i.l.bf16 %v2193_v34  ;;  %v2195_v5 = vunpack.i.h.bf16 %v2193_v34 }
 0x243   : > { %v1167_v9 = vmul.f32 %v2194_v45, %v3421_v4  ;;  %v1166_v24 = vmul.f32 %v2194_v45, %v2539_v13  ;;  %v1169_v53 = vmul.f32 %v2194_v45, %v3423_v43  ;;  %v1168_v60 = vmul.f32 %v2194_v45, %v3422_v19 }
 0x244   : > { %v1171_v18 = vmul.f32 %v2194_v45, %v3435_v3  ;;  %v1170_v40 = vmul.f32 %v2194_v45, %v3427_v26  ;;  %v1217_v51 = vmul.f32 %v2195_v5, %v2539_v13  ;;  %v1172_v48 = vmul.f32 %v2194_v45, %v3436_v2 }
 0x245   : > { %1182 = vrot.lane.b32.xlu1 %v1167_v9, %s2266_s30  ;;  %1180 = vrot.lane.b32.xlu0 %v1166_v24, %s2266_s30  ;;  %v1219_v27 = vmul.f32 %v2195_v5, %v3422_v19  ;;  %v1218_v21 = vmul.f32 %v2195_v5, %v3421_v4  ;;  %v1221_v49 = vmul.f32 %v2195_v5, %v3427_v26 }
 0x246   : > { %v1220_v36 = vmul.f32 %v2195_v5, %v3423_v43  ;;  %v1223_v57 = vmul.f32 %v2195_v5, %v3436_v2  ;;  %v1222_v52 = vmul.f32 %v2195_v5, %v3435_v3 }
 0x249   : > { %1186 = vrot.lane.b32.xlu1 %v1169_v53, %s2266_s30  ;;  %1184 = vrot.lane.b32.xlu0 %v1168_v60, %s2266_s30 }
 0x24d   : > { %1190 = vrot.lane.b32.xlu1 %v1171_v18, %s2266_s30  ;;  %1188 = vrot.lane.b32.xlu0 %v1170_v40, %s2266_s30 }
 0x251   : > { %1231 = vrot.lane.b32.xlu1 %v1217_v51, %s2267_s6  ;;  %1192 = vrot.lane.b32.xlu0 %v1172_v48, %s2266_s30 }
 0x255   : > { %1235 = vrot.lane.b32.xlu1 %v1219_v27, %s2267_s6  ;;  %1233 = vrot.lane.b32.xlu0 %v1218_v21, %s2267_s6 }
 0x259   : > { %1239 = vrot.lane.b32.xlu1 %v1221_v49, %s2267_s6  ;;  %1237 = vrot.lane.b32.xlu0 %v1220_v36, %s2267_s6  ;;  %v2096_v36 = vld [vmem:[%s3345_s0 + $0x50] sm:$0xff]  }
 0x25a   : > { %v2078_v50 = vunpack.c.h.bf16 %v2096_v36 }
 0x25d   : > { %1243 = vrot.lane.b32.xlu1 %v1223_v57, %s2267_s6  ;;  %1241 = vrot.lane.b32.xlu0 %v1222_v52, %s2267_s6  ;;  %v2074_v52 = vunpack.c.h.bf16 %v2095_v47 }
 0x261   : > { %2197 = vperm.xlu0 %2154, %v2196_v28   ;;  %v2077_v28 = vunpack.c.l.bf16 %v2096_v36  ;;  %v3438_v36 = vld [vmem:[#allocation2_spill] sm:$0xff] }
 0x2b7   : > { %v1183_v46 = vpop.permute.xlu1 %1182  ;;  %v1181_v8 = vpop.permute.xlu0 %1180 }
 0x2b8   : > { %v1194_v7 = vsel %vm710_vm4, %v1181_v8, %v1183_v46  ;;  %v363_v8 = vld [vmem:[%s3345_s0 + $0x68] sm:$0xf] }
 0x2b9   : > { %v1206_v31 = vadd.f32 %v1194_v7, %v1155_v44 }
 0x2bb   : > { %v1187_v15 = vpop.permute.xlu1 %1186  ;;  %v1185_v0 = vpop.permute.xlu0 %1184 }
 0x2bc   : > { %v1195_v54 = vsel %vm710_vm4, %v1183_v46, %v1185_v0  ;;  %v1196_v30 = vsel %vm710_vm4, %v1185_v0, %v1187_v15  ;;  %v2098_v46 = vld [vmem:[%s3345_s0 + $0x60] sm:$0xff]   ;;  %v390_v0 = vunpack.c.l.bf16 %v363_v8 }
 0x2bd   : > { %v1207_v1 = vadd.f32 %v1195_v54, %v2947_v37  ;;  %v1208_v35 = vadd.f32 %v1196_v30, %v1157_v12  ;;  %v2085_v30 = vunpack.c.l.bf16 %v2098_v46 }
 0x2bf   : > { %v1191_v55 = vpop.permute.xlu1 %1190  ;;  %v1189_v39 = vpop.permute.xlu0 %1188 }
 0x2c0   : > { %v1197_v23 = vsel %vm710_vm4, %v1187_v15, %v1189_v39  ;;  %v1198_v56 = vsel %vm710_vm4, %v1189_v39, %v1191_v55  ;;  %v2201_v15 = vpack.i.bf16 %v2077_v28, %v2074_v52  ;;  %v3440_v52 = vld [vmem:[#allocation4_spill] sm:$0xff] }
 0x2c1   : > { %v1209_v14 = vadd.f32 %v1197_v23, %v1158_v61  ;;  %v1210_v58 = vadd.f32 %v1198_v56, %v1159_v42 }
 0x2c3   : > { %v1232_v17 = vpop.permute.xlu1 %1231  ;;  %v1193_v32 = vpop.permute.xlu0 %1192 }
 0x2c4   : > { %v1199_v44 = vsel %vm710_vm4, %v1191_v55, %v1193_v32 }
 0x2c5   : > { %v1211_v33 = vadd.f32 %v1199_v44, %v1160_v22 }
 0x2c7   : > { %v1236_v38 = vpop.permute.xlu1 %1235  ;;  %v1234_v25 = vpop.permute.xlu0 %1233 }
 0x2c8   : > { %v1245_v10 = vsel %vm762_vm5, %v1232_v17, %v1234_v25  ;;  %v1246_v37 = vsel %vm762_vm5, %v1234_v25, %v1236_v38 }
 0x2c9   : > { %v2997_v11 = vadd.f32 %v1245_v10, %v1206_v31  ;;  %v2999_v6 = vadd.f32 %v1246_v37, %v1207_v1  ;;  %v2086_v31 = vunpack.c.h.bf16 %v2098_v46 }
 0x2cb   : > { %v1240_v63 = vpop.permute.xlu1 %1239  ;;  %v1238_v12 = vpop.permute.xlu0 %1237  ;;  %v2216_v1 = vpack.i.bf16 %v390_v0, %v2086_v31 }
 0x2cc   : > { %v1247_v61 = vsel %vm762_vm5, %v1236_v38, %v1238_v12  ;;  %v1248_v41 = vsel %vm762_vm5, %v1238_v12, %v1240_v63 }
 0x2cd   : > { %v3003_v20 = vadd.f32 %v1247_v61, %v1208_v35  ;;  %v3005_v16 = vadd.f32 %v1248_v41, %v1209_v14 }
 0x2cf   : > { %v1244_v59 = vpop.permute.xlu1 %1243  ;;  %v1242_v29 = vpop.permute.xlu0 %1241 }
 0x2d0   : > { %v1249_v42 = vsel %vm762_vm5, %v1240_v63, %v1242_v29  ;;  %v1250_v22 = vsel %vm762_vm5, %v1242_v29, %v1244_v59 }
 0x2d1   : > { %v3009_v34 = vadd.f32 %v1249_v42, %v1210_v58  ;;  %v3011_v45 = vadd.f32 %v1250_v22, %v1211_v33 }
 0x2e0   : > { %v2198_v9 = vpop.permute.xlu0 %2197 }
 0x2e1   : > { %v2199_v24 = vunpack.i.l.bf16 %v2198_v9  ;;  %v2200_v40 = vunpack.i.h.bf16 %v2198_v9 }
 0x2e3   : > { %v1269_v53 = vmul.f32 %v2199_v24, %v3421_v4  ;;  %v1268_v60 = vmul.f32 %v2199_v24, %v2539_v13  ;;  %v1271_v5 = vmul.f32 %v2199_v24, %v3423_v43  ;;  %v1270_v18 = vmul.f32 %v2199_v24, %v3422_v19 }
 0x2e4   : > { %v1273_v51 = vmul.f32 %v2199_v24, %v3435_v3  ;;  %v1272_v48 = vmul.f32 %v2199_v24, %v3427_v26  ;;  %v1319_v27 = vmul.f32 %v2200_v40, %v2539_v13  ;;  %v1274_v21 = vmul.f32 %v2199_v24, %v3436_v2  ;;  %v2097_v13 = vld [vmem:[%s3345_s0 + $0x58] sm:$0xff]  }
 0x2e5   : > { %1284 = vrot.lane.b32.xlu0 %v1269_v53, %s2268_s9  ;;  %1282 = vrot.lane.b32.xlu1 %v1268_v60, %s2268_s9  ;;  %v1321_v62 = vmul.f32 %v2200_v40, %v3422_v19  ;;  %v1320_v49 = vmul.f32 %v2200_v40, %v3421_v4  ;;  %v1323_v19 = vmul.f32 %v2200_v40, %v3427_v26  ;;  %v2081_v57 = vunpack.c.l.bf16 %v2097_v13 }
 0x2e6   : > { %v1322_v4 = vmul.f32 %v2200_v40, %v3423_v43  ;;  %v1325_v26 = vmul.f32 %v2200_v40, %v3436_v2  ;;  %v1324_v43 = vmul.f32 %v2200_v40, %v3435_v3  ;;  %v2082_v54 = vunpack.c.h.bf16 %v2097_v13 }
 0x2e7   : > { %v2206_v7 = vpack.i.bf16 %v2081_v57, %v2078_v50  ;;  %v2073_v2 = vunpack.c.l.bf16 %v2095_v47  ;;  %v3439_v50 = vld [vmem:[#allocation5_spill] sm:$0xff] }
 0x2e8   : > { %v2211_v35 = vpack.i.bf16 %v2085_v30, %v2082_v54 }
 0x2e9   : > { %1288 = vrot.lane.b32.xlu0 %v1271_v5, %s2268_s9  ;;  %1286 = vrot.lane.b32.xlu1 %v1270_v18, %s2268_s9 }
 0x2ed   : > { %1292 = vrot.lane.b32.xlu0 %v1273_v51, %s2268_s9  ;;  %1290 = vrot.lane.b32.xlu1 %v1272_v48, %s2268_s9 }
 0x2f1   : > { %1333 = vrot.lane.b32.xlu0 %v1319_v27, %s2269_s15  ;;  %1294 = vrot.lane.b32.xlu1 %v1274_v21, %s2268_s9  ;;  %v336_v27 = vld [vmem:[%s323_s7] sm:$0x7f] }
 0x2f2   : > { %v395_v21 = vunpack.c.l.bf16 %v336_v27  ;;  %v3081_v47 = vunpack.c.h.bf16 %v336_v27 }
 0x2f4   : > { %v1375_v13 = vrot.slane %v395_v21, %v3438_v36  ;;  %v1387_v57 = vrot.slane %v395_v21, %v3439_v50  ;;  %v1383_v28 = vrot.slane %v395_v21, %v3440_v52 }
 0x2f5   : > { %1337 = vrot.lane.b32.xlu0 %v1321_v62, %s2269_s15  ;;  %1335 = vrot.lane.b32.xlu1 %v1320_v49, %s2269_s15  ;;  %v3437_v62 = vld [vmem:[#allocation3_spill] sm:$0xff] }
 0x2f6   : > { %v1379_v49 = vrot.slane %v395_v21, %v3437_v62  ;;  %v3101_v0 = vrot.slane %v1383_v28, %v3438_v36 }
 0x2f9   : > { %1341 = vrot.lane.b32.xlu0 %v1323_v19, %s2269_s15  ;;  %1339 = vrot.lane.b32.xlu1 %v1322_v4, %s2269_s15  ;;  %v3084_v19 = vrot.slane %v1379_v49, %v3438_v36  ;;  %v3087_v4 = vrot.slane %v1375_v13, %v3438_v36 }
 0x2fd   : > { %1345 = vrot.lane.b32.xlu0 %v1325_v26, %s2269_s15  ;;  %1343 = vrot.lane.b32.xlu1 %v1324_v43, %s2269_s15  ;;  %v1395_v26 = vrot.slane %v3081_v47, %v3437_v62  ;;  %v1391_v43 = vrot.slane %v3081_v47, %v3438_v36 }
 0x301   : > { %2207 = vperm.xlu0 %2154, %v2206_v7   ;;  %2202 = vperm.xlu1 %2160, %v2201_v15   ;;  %v3098_v15 = vrot.slane %v1387_v57, %v3438_v36 }
 0x305   : > { %2217 = vperm.xlu0 %2154, %v2216_v1   ;;  %2212 = vperm.xlu1 %2160, %v2211_v35   ;;  %v3108_v1 = vrot.slane %v1395_v26, %v3438_v36  ;;  %v3111_v35 = vrot.slane %v1391_v43, %v3438_v36 }
 0x309   : > { %1367 = vperm.xlu1 %2160, %v2073_v2  }
 0x357   : > { %v1285_v3 = vpop.permute.xlu0 %1284  ;;  %v1283_v55 = vpop.permute.xlu1 %1282 }
 0x358   : > { %v1296_v39 = vsel %vm814_vm6, %v1283_v55, %v1285_v3 }
 0x359   : > { %v1308_v23 = vadd.f32 %v1296_v39, %v2997_v11 }
 0x35b   : > { %v1289_v56 = vpop.permute.xlu0 %1288  ;;  %v1287_v14 = vpop.permute.xlu1 %1286 }
 0x35c   : > { %v1297_v58 = vsel %vm814_vm6, %v1285_v3, %v1287_v14  ;;  %v1298_v17 = vsel %vm814_vm6, %v1287_v14, %v1289_v56 }
 0x35d   : > { %v1309_v32 = vadd.f32 %v1297_v58, %v2999_v6  ;;  %v1310_v44 = vadd.f32 %v1298_v17, %v3003_v20 }
 0x35f   : > { %v1293_v33 = vpop.permute.xlu0 %1292  ;;  %v1291_v38 = vpop.permute.xlu1 %1290 }
 0x360   : > { %v1299_v25 = vsel %vm814_vm6, %v1289_v56, %v1291_v38  ;;  %v1300_v10 = vsel %vm814_vm6, %v1291_v38, %v1293_v33 }
 0x361   : > { %v1311_v37 = vadd.f32 %v1299_v25, %v3005_v16  ;;  %v1312_v11 = vadd.f32 %v1300_v10, %v3009_v34 }
 0x363   : > { %v1334_v63 = vpop.permute.xlu0 %1333  ;;  %v1295_v12 = vpop.permute.xlu1 %1294 }
 0x364   : > { %v1301_v61 = vsel %vm814_vm6, %v1293_v33, %v1295_v12 }
 0x365   : > { %v1313_v6 = vadd.f32 %v1301_v61, %v3011_v45 }
 0x367   : > { %v1338_v41 = vpop.permute.xlu0 %1337  ;;  %v1336_v20 = vpop.permute.xlu1 %1335 }
 0x368   : > { %v1347_v59 = vsel %vm866_vm7, %v1334_v63, %v1336_v20  ;;  %v1348_v29 = vsel %vm866_vm7, %v1336_v20, %v1338_v41 }
 0x369   : > { %v1359_v42 = vadd.f32 %v1347_v59, %v1308_v23  ;;  %v1360_v22 = vadd.f32 %v1348_v29, %v1309_v32 }
 0x36b   : > { %v1342_v16 = vpop.permute.xlu0 %1341  ;;  %v1340_v34 = vpop.permute.xlu1 %1339 }
 0x36c   : > { %v1349_v9 = vsel %vm866_vm7, %v1338_v41, %v1340_v34  ;;  %v1350_v24 = vsel %vm866_vm7, %v1340_v34, %v1342_v16 }
 0x36d   : > { %v1361_v53 = vadd.f32 %v1349_v9, %v1310_v44  ;;  %v1362_v60 = vadd.f32 %v1350_v24, %v1311_v37  ;;  %v1538_v9 = vrot.slane %v3081_v47, %v3440_v52 }
 0x36f   : > { %v1346_v45 = vpop.permute.xlu0 %1345  ;;  %v1344_v5 = vpop.permute.xlu1 %1343 }
 0x370   : > { %v1351_v18 = vsel %vm866_vm7, %v1342_v16, %v1344_v5  ;;  %v1352_v40 = vsel %vm866_vm7, %v1344_v5, %v1346_v45  ;;  %v3164_v45 = vrot.slane %v1538_v9, %v3438_v36 }
 0x371   : > { %v1363_v51 = vadd.f32 %v1351_v18, %v1312_v11  ;;  %v1364_v48 = vadd.f32 %v1352_v40, %v1313_v6 }
 0x380   : > { %v2203_v46 = vpop.permute.xlu1 %2202  ;;  %v2208_v37 = vpop.permute.xlu0 %2207 }
 0x381   : > { %v2204_v8 = vunpack.i.l.bf16 %v2203_v46  ;;  %v2205_v3 = vunpack.i.h.bf16 %v2203_v46  ;;  %v2209_v20 = vunpack.i.l.bf16 %v2208_v37  ;;  %v2210_v24 = vunpack.i.h.bf16 %v2208_v37 }
 0x383   : > { %v1444_v7 = vmul.f32 %v2204_v8, %v3084_v19  ;;  %v1443_v31 = vmul.f32 %v2204_v8, %v3087_v4  ;;  %v1446_v54 = vmul.f32 %v2204_v8, %v3098_v15  ;;  %v1445_v30 = vmul.f32 %v2204_v8, %v3101_v0 }
 0x384   : > { %v3113_v2 = vpop.permute.xlu1 %2212  ;;  %v1448_v55 = vmul.f32 %v2204_v8, %v3108_v1  ;;  %v1447_v39 = vmul.f32 %v2204_v8, %v3111_v35  ;;  %v1490_v56 = vmul.f32 %v2205_v3, %v3084_v19  ;;  %v1489_v14 = vmul.f32 %v2205_v3, %v3087_v4 }
 0x385   : > { %1457 = vrot.lane.b32.xlu1 %v1444_v7, %s2262_s26  ;;  %1455 = vrot.lane.b32.xlu0 %v1443_v31, %s2262_s26  ;;  %v1492_v58 = vmul.f32 %v2205_v3, %v3098_v15  ;;  %v1491_v33 = vmul.f32 %v2205_v3, %v3101_v0  ;;  %v1494_v59 = vmul.f32 %v2205_v3, %v3108_v1  ;;  %v2214_v21 = vunpack.i.l.bf16 %v3113_v2 }
 0x386   : > { %v1493_v29 = vmul.f32 %v2205_v3, %v3111_v35  ;;  %v1547_v16 = vmul.f32 %v2209_v20, %v3098_v15  ;;  %v1546_v34 = vmul.f32 %v2209_v20, %v3101_v0  ;;  %v1595_v5 = vmul.f32 %v2210_v24, %v3087_v4 }
 0x387   : > { %v1550_v18 = vmul.f32 %v2209_v20, %v3164_v45  ;;  %v1597_v40 = vmul.f32 %v2210_v24, %v3101_v0  ;;  %v1598_v27 = vmul.f32 %v2210_v24, %v3098_v15  ;;  %v1601_v62 = vmul.f32 %v2210_v24, %v3164_v45 }
 0x388   : > { %v1368_v23 = vpop.permute.xlu1 %1367  ;;  %v1600_v49 = vmul.f32 %v2210_v24, %v3108_v1  ;;  %v1647_v36 = vmul.f32 %v2214_v21, %v3084_v19  ;;  %v1646_v13 = vmul.f32 %v2214_v21, %v3087_v4  ;;  %v1649_v47 = vmul.f32 %v2214_v21, %v3098_v15 }
 0x389   : > { %1461 = vrot.lane.b32.xlu1 %v1446_v54, %s2262_s26  ;;  %1459 = vrot.lane.b32.xlu0 %v1445_v30, %s2262_s26  ;;  %v1426_v17 = vmul.f32 %v3087_v4, %v1368_v23  ;;  %v1427_v32 = vmul.f32 %v3084_v19, %v1368_v23  ;;  %v1428_v44 = vmul.f32 %v3101_v0, %v1368_v23  ;;  %v2215_v57 = vunpack.i.h.bf16 %v3113_v2  ;;  %v2218_v54 = vpop.permute.xlu0 %2217 }
 0x38a   : > { %v1431_v38 = vmul.f32 %v3108_v1, %v1368_v23  ;;  %v1429_v25 = vmul.f32 %v3098_v15, %v1368_v23  ;;  %v1430_v10 = vmul.f32 %v3111_v35, %v1368_v23  ;;  %v1648_v50 = vmul.f32 %v2214_v21, %v3101_v0 }
 0x38b   : > { %v3133_v11 = vadd.f32 %v1426_v17, %v1359_v42  ;;  %v3135_v63 = vadd.f32 %v1427_v32, %v1360_v22  ;;  %v3137_v12 = vadd.f32 %v1428_v44, %v1361_v53  ;;  %v1545_v42 = vmul.f32 %v2209_v20, %v3084_v19 }
 0x38c   : > { %v3141_v61 = vadd.f32 %v1431_v38, %v1364_v48  ;;  %v3143_v6 = vadd.f32 %v1429_v25, %v1362_v60  ;;  %v3145_v41 = vadd.f32 %v1430_v10, %v1363_v51  ;;  %v1544_v22 = vmul.f32 %v2209_v20, %v3087_v4 }
 0x38d   : > { %1465 = vrot.lane.b32.xlu1 %v1448_v55, %s2262_s26  ;;  %1463 = vrot.lane.b32.xlu0 %v1447_v39, %s2262_s26  ;;  %v1549_v53 = vmul.f32 %v2209_v20, %v3108_v1  ;;  %v1548_v60 = vmul.f32 %v2209_v20, %v3111_v35  ;;  %v1596_v51 = vmul.f32 %v2210_v24, %v3084_v19  ;;  %v2219_v30 = vunpack.i.l.bf16 %v2218_v54  ;;  %v1845_v55 = vld [vmem:[%s3346_s1] sm:$0xff] }
 0x38e   : > { %v1599_v48 = vmul.f32 %v2210_v24, %v3111_v35  ;;  %v1651_v52 = vmul.f32 %v2214_v21, %v3108_v1  ;;  %v1650_v28 = vmul.f32 %v2214_v21, %v3111_v35  ;;  %v1697_v46 = vmul.f32 %v2215_v57, %v3087_v4 }
 0x38f   : > { %v1652_v8 = vmul.f32 %v2214_v21, %v3164_v45  ;;  %v1699_v26 = vmul.f32 %v2215_v57, %v3101_v0  ;;  %v1698_v43 = vmul.f32 %v2215_v57, %v3084_v19  ;;  %v1701_v7 = vmul.f32 %v2215_v57, %v3111_v35 }
 0x390   : > { %v1700_v31 = vmul.f32 %v2215_v57, %v3098_v15  ;;  %v1703_v2 = vmul.f32 %v2215_v57, %v3164_v45  ;;  %v1702_v3 = vmul.f32 %v2215_v57, %v3108_v1  ;;  %v1748_v39 = vmul.f32 %v2219_v30, %v3087_v4 }
 0x391   : > { %1503 = vrot.lane.b32.xlu1 %v1490_v56, %s2263_s27  ;;  %1501 = vrot.lane.b32.xlu0 %v1489_v14, %s2263_s27  ;;  %v1750_v23 = vmul.f32 %v2219_v30, %v3101_v0  ;;  %v1749_v56 = vmul.f32 %v2219_v30, %v3084_v19  ;;  %v1752_v14 = vmul.f32 %v2219_v30, %v3111_v35  ;;  %v2220_v17 = vunpack.i.h.bf16 %v2218_v54 }
 0x392   : > { %v1754_v32 = vmul.f32 %v2219_v30, %v3164_v45  ;;  %v1753_v44 = vmul.f32 %v2219_v30, %v3108_v1 }
 0x393   : > { %v1799_v38 = vmul.f32 %v2220_v17, %v3087_v4  ;;  %v1802_v25 = vmul.f32 %v2220_v17, %v3098_v15  ;;  %v1801_v10 = vmul.f32 %v2220_v17, %v3101_v0  ;;  %v1804_v37 = vmul.f32 %v2220_v17, %v3108_v1 }
 0x394   : > { %v1803_v20 = vmul.f32 %v2220_v17, %v3111_v35 }
 0x395   : > { %1507 = vrot.lane.b32.xlu1 %v1492_v58, %s2263_s27  ;;  %1505 = vrot.lane.b32.xlu0 %v1491_v33, %s2263_s27  ;;  %v1751_v58 = vmul.f32 %v2219_v30, %v3098_v15  ;;  %v1800_v33 = vmul.f32 %v2220_v17, %v3084_v19  ;;  %v1805_v19 = vmul.f32 %v2220_v17, %v3164_v45 }
 0x399   : > { %1511 = vrot.lane.b32.xlu1 %v1494_v59, %s2263_s27  ;;  %1509 = vrot.lane.b32.xlu0 %v1493_v29, %s2263_s27  ;;  %s2104_s27 = smul.u32 102, %s3452_s19 }
 0x39d   : > { %1560 = vrot.lane.b32.xlu1 %v1545_v42, %s2264_s28  ;;  %1558 = vrot.lane.b32.xlu0 %v1544_v22, %s2264_s28 }
 0x3a1   : > { %1564 = vrot.lane.b32.xlu1 %v1547_v16, %s2264_s28  ;;  %1562 = vrot.lane.b32.xlu0 %v1546_v34, %s2264_s28 }
 0x3a5   : > { %1568 = vrot.lane.b32.xlu1 %v1549_v53, %s2264_s28  ;;  %1566 = vrot.lane.b32.xlu0 %v1548_v60, %s2264_s28 }
 0x3a9   : > { %1609 = vrot.lane.b32.xlu1 %v1595_v5, %s2265_s29  ;;  %1570 = vrot.lane.b32.xlu0 %v1550_v18, %s2264_s28  ;;  %s2103_s28 = smul.u32 6, %s3458_s18 }
 0x3ab   : > { %s331_s18 = sadd.s32 %s2104_s27, %s2103_s28 }
 0x3ac   : > { %s2026_s19 = sshll.u32 %s331_s18, 2 }
 0x3ad   : > { %1613 = vrot.lane.b32.xlu1 %v1597_v40, %s2265_s29  ;;  %1611 = vrot.lane.b32.xlu0 %v1596_v51, %s2265_s29 }
 0x3b1   : > { %1617 = vrot.lane.b32.xlu1 %v1599_v48, %s2265_s29  ;;  %1615 = vrot.lane.b32.xlu0 %v1598_v27, %s2265_s29 }
 0x3b5   : > { %1621 = vrot.lane.b32.xlu1 %v1601_v62, %s2265_s29  ;;  %1619 = vrot.lane.b32.xlu0 %v1600_v49, %s2265_s29 }
 0x3b9   : > { %1662 = vrot.lane.b32.xlu1 %v1647_v36, %s2266_s30  ;;  %1660 = vrot.lane.b32.xlu0 %v1646_v13, %s2266_s30 }
 0x3bd   : > { %1666 = vrot.lane.b32.xlu1 %v1649_v47, %s2266_s30  ;;  %1664 = vrot.lane.b32.xlu0 %v1648_v50, %s2266_s30 }
 0x3c1   : > { %1670 = vrot.lane.b32.xlu1 %v1651_v52, %s2266_s30  ;;  %1668 = vrot.lane.b32.xlu0 %v1650_v28, %s2266_s30 }
 0x3c5   : > { %1711 = vrot.lane.b32.xlu1 %v1697_v46, %s2267_s6  ;;  %1672 = vrot.lane.b32.xlu0 %v1652_v8, %s2266_s30 }
 0x3c9   : > { %1715 = vrot.lane.b32.xlu1 %v1699_v26, %s2267_s6  ;;  %1713 = vrot.lane.b32.xlu0 %v1698_v43, %s2267_s6 }
 0x3cd   : > { %1719 = vrot.lane.b32.xlu1 %v1701_v7, %s2267_s6  ;;  %1717 = vrot.lane.b32.xlu0 %v1700_v31, %s2267_s6 }
 0x3d1   : > { %1723 = vrot.lane.b32.xlu1 %v1703_v2, %s2267_s6  ;;  %1721 = vrot.lane.b32.xlu0 %v1702_v3, %s2267_s6  ;;  %s333_s6 = scalar_lea.vmem %s3350_s5, %s2026_s19 }
 0x3d5   : > { %1762 = vrot.lane.b32.xlu1 %v1748_v39, %s2268_s9  ;;  %1848 = vperm.xlu0 %2154, %v1845_v55  }
 0x3d9   : > { %1766 = vrot.lane.b32.xlu1 %v1750_v23, %s2268_s9  ;;  %1764 = vrot.lane.b32.xlu0 %v1749_v56, %s2268_s9 }
 0x3dd   : > { %1770 = vrot.lane.b32.xlu1 %v1752_v14, %s2268_s9  ;;  %1768 = vrot.lane.b32.xlu0 %v1751_v58, %s2268_s9 }
 0x3e1   : > { %1774 = vrot.lane.b32.xlu1 %v1754_v32, %s2268_s9  ;;  %1772 = vrot.lane.b32.xlu0 %v1753_v44, %s2268_s9 }
 0x3e5   : > { %1815 = vrot.lane.b32.xlu1 %v1800_v33, %s2269_s15  ;;  %1813 = vrot.lane.b32.xlu0 %v1799_v38, %s2269_s15 }
 0x3e9   : > { %1819 = vrot.lane.b32.xlu1 %v1802_v25, %s2269_s15  ;;  %1817 = vrot.lane.b32.xlu0 %v1801_v10, %s2269_s15 }
 0x3ed   : > { %1823 = vrot.lane.b32.xlu1 %v1804_v37, %s2269_s15  ;;  %1821 = vrot.lane.b32.xlu0 %v1803_v20, %s2269_s15 }
 0x3f1   : > { %1825 = vrot.lane.b32.xlu0 %v1805_v19, %s2269_s15 }
 0x3f7   : > { %v1458_v4 = vpop.permute.xlu1 %1457  ;;  %v1456_v15 = vpop.permute.xlu0 %1455 }
 0x3f8   : > { %v1467_v0 = vsel %vm499_vm0, %v1456_v15, %v1458_v4 }
 0x3f9   : > { %v1478_v59 = vadd.f32 %v1467_v0, %v3133_v11 }
 0x3fb   : > { %v1462_v29 = vpop.permute.xlu1 %1461  ;;  %v1460_v42 = vpop.permute.xlu0 %1459 }
 0x3fc   : > { %v1468_v1 = vsel %vm499_vm0, %v1458_v4, %v1460_v42  ;;  %v1469_v35 = vsel %vm499_vm0, %v1460_v42, %v1462_v29 }
 0x3fd   : > { %v1479_v22 = vadd.f32 %v1468_v1, %v3135_v63  ;;  %v1480_v16 = vadd.f32 %v1469_v35, %v3137_v12 }
 0x3ff   : > { %v1466_v34 = vpop.permute.xlu1 %1465  ;;  %v1464_v9 = vpop.permute.xlu0 %1463 }
 0x400   : > { %v1483_v24 = vadd.f32 %v1466_v34, %v3141_v61  ;;  %v1470_v53 = vsel %vm499_vm0, %v1462_v29, %v1464_v9  ;;  %v1471_v60 = vsel %vm499_vm0, %v1464_v9, %v1466_v34 }
 0x401   : > { %v1481_v11 = vadd.f32 %v1470_v53, %v3143_v6  ;;  %v1482_v45 = vadd.f32 %v1471_v60, %v3145_v41 }
 0x403   : > { %v1504_v5 = vpop.permute.xlu1 %1503  ;;  %v1502_v18 = vpop.permute.xlu0 %1501 }
 0x404   : > { %v1513_v40 = vsel %vm546_vm1, %v1502_v18, %v1504_v5 }
 0x405   : > { %v1524_v51 = vadd.f32 %v1513_v40, %v1478_v59 }
 0x407   : > { %v1508_v63 = vpop.permute.xlu1 %1507  ;;  %v1506_v48 = vpop.permute.xlu0 %1505 }
 0x408   : > { %v1514_v12 = vsel %vm546_vm1, %v1504_v5, %v1506_v48  ;;  %v1515_v27 = vsel %vm546_vm1, %v1506_v48, %v1508_v63 }
 0x409   : > { %v1525_v61 = vadd.f32 %v1514_v12, %v1479_v22  ;;  %v1526_v21 = vadd.f32 %v1515_v27, %v1480_v16 }
 0x40b   : > { %v1512_v62 = vpop.permute.xlu1 %1511  ;;  %v1510_v49 = vpop.permute.xlu0 %1509 }
 0x40c   : > { %v1529_v36 = vadd.f32 %v1512_v62, %v1483_v24  ;;  %v1516_v6 = vsel %vm546_vm1, %v1508_v63, %v1510_v49  ;;  %v1517_v41 = vsel %vm546_vm1, %v1510_v49, %v1512_v62 }
 0x40d   : > { %v1527_v13 = vadd.f32 %v1516_v6, %v1481_v11  ;;  %v1528_v47 = vadd.f32 %v1517_v41, %v1482_v45 }
 0x40f   : > { %v1561_v50 = vpop.permute.xlu1 %1560  ;;  %v1559_v57 = vpop.permute.xlu0 %1558 }
 0x410   : > { %v1572_v52 = vsel %vm606_vm2, %v1559_v57, %v1561_v50 }
 0x411   : > { %v1584_v28 = vadd.f32 %v1572_v52, %v1524_v51 }
 0x413   : > { %v1565_v46 = vpop.permute.xlu1 %1564  ;;  %v1563_v8 = vpop.permute.xlu0 %1562 }
 0x414   : > { %v1574_v26 = vsel %vm606_vm2, %v1563_v8, %v1565_v46  ;;  %v1573_v9 = vsel %vm606_vm2, %v1561_v50, %v1563_v8 }
 0x415   : > { %v1586_v43 = vadd.f32 %v1574_v26, %v1526_v21  ;;  %v1585_v40 = vadd.f32 %v1573_v9, %v1525_v61 }
 0x417   : > { %v1569_v7 = vpop.permute.xlu1 %1568  ;;  %v1567_v31 = vpop.permute.xlu0 %1566 }
 0x418   : > { %v1576_v54 = vsel %vm606_vm2, %v1567_v31, %v1569_v7  ;;  %v1575_v53 = vsel %vm606_vm2, %v1565_v46, %v1567_v31 }
 0x419   : > { %v1588_v30 = vadd.f32 %v1576_v54, %v1528_v47  ;;  %v1587_v12 = vadd.f32 %v1575_v53, %v1527_v13 }
 0x41b   : > { %v1610_v2 = vpop.permute.xlu1 %1609  ;;  %v1571_v3 = vpop.permute.xlu0 %1570 }
 0x41c   : > { %v1577_v60 = vsel %vm606_vm2, %v1569_v7, %v1571_v3 }
 0x41d   : > { %v1589_v27 = vadd.f32 %v1577_v60, %v1529_v36 }
 0x41f   : > { %v1614_v55 = vpop.permute.xlu1 %1613  ;;  %v1612_v39 = vpop.permute.xlu0 %1611 }
 0x420   : > { %v1623_v34 = vsel %vm658_vm3, %v1610_v2, %v1612_v39  ;;  %v1624_v45 = vsel %vm658_vm3, %v1612_v39, %v1614_v55 }
 0x421   : > { %v1635_v5 = vadd.f32 %v1623_v34, %v1584_v28  ;;  %v1636_v41 = vadd.f32 %v1624_v45, %v1585_v40 }
 0x423   : > { %v1618_v23 = vpop.permute.xlu1 %1617  ;;  %v1616_v56 = vpop.permute.xlu0 %1615 }
 0x424   : > { %v1625_v18 = vsel %vm658_vm3, %v1614_v55, %v1616_v56  ;;  %v1626_v51 = vsel %vm658_vm3, %v1616_v56, %v1618_v23 }
 0x425   : > { %v1637_v47 = vadd.f32 %v1625_v18, %v1586_v43  ;;  %v1638_v57 = vadd.f32 %v1626_v51, %v1587_v12 }
 0x427   : > { %v1622_v14 = vpop.permute.xlu1 %1621  ;;  %v1620_v58 = vpop.permute.xlu0 %1619 }
 0x428   : > { %v1627_v63 = vsel %vm658_vm3, %v1618_v23, %v1620_v58  ;;  %v1628_v52 = vsel %vm658_vm3, %v1620_v58, %v1622_v14 }
 0x429   : > { %v1639_v13 = vadd.f32 %v1627_v63, %v1588_v30  ;;  %v1640_v3 = vadd.f32 %v1628_v52, %v1589_v27 }
 0x42b   : > { %v1663_v17 = vpop.permute.xlu1 %1662  ;;  %v1661_v32 = vpop.permute.xlu0 %1660 }
 0x42c   : > { %v1674_v11 = vsel %vm710_vm4, %v1661_v32, %v1663_v17 }
 0x42d   : > { %v1686_v21 = vadd.f32 %v1674_v11, %v1635_v5 }
 0x42f   : > { %v1667_v44 = vpop.permute.xlu1 %1666  ;;  %v1665_v33 = vpop.permute.xlu0 %1664 }
 0x430   : > { %v1675_v62 = vsel %vm710_vm4, %v1663_v17, %v1665_v33  ;;  %v1676_v50 = vsel %vm710_vm4, %v1665_v33, %v1667_v44 }
 0x431   : > { %v1687_v28 = vadd.f32 %v1675_v62, %v1636_v41  ;;  %v1688_v43 = vadd.f32 %v1676_v50, %v1637_v47 }
 0x433   : > { %v1671_v38 = vpop.permute.xlu1 %1670  ;;  %v1669_v10 = vpop.permute.xlu0 %1668 }
 0x434   : > { %v1677_v46 = vsel %vm710_vm4, %v1667_v44, %v1669_v10  ;;  %v1678_v7 = vsel %vm710_vm4, %v1669_v10, %v1671_v38 }
 0x435   : > { %v1689_v23 = vadd.f32 %v1677_v46, %v1638_v57  ;;  %v1690_v32 = vadd.f32 %v1678_v7, %v1639_v13 }
 0x437   : > { %v1712_v25 = vpop.permute.xlu1 %1711  ;;  %v1673_v20 = vpop.permute.xlu0 %1672 }
 0x438   : > { %v1679_v31 = vsel %vm710_vm4, %v1671_v38, %v1673_v20 }
 0x439   : > { %v1691_v44 = vadd.f32 %v1679_v31, %v1640_v3 }
 0x43b   : > { %v1716_v37 = vpop.permute.xlu1 %1715  ;;  %v1714_v15 = vpop.permute.xlu0 %1713 }
 0x43c   : > { %v1725_v48 = vsel %vm762_vm5, %v1712_v25, %v1714_v15  ;;  %v1726_v8 = vsel %vm762_vm5, %v1714_v15, %v1716_v37 }
 0x43d   : > { %v1737_v36 = vadd.f32 %v1725_v48, %v1686_v21  ;;  %v1738_v56 = vadd.f32 %v1726_v8, %v1687_v28 }
 0x43f   : > { %v3264_v19 = vpop.permute.xlu1 %1719  ;;  %v1718_v59 = vpop.permute.xlu0 %1717 }
 0x440   : > { %v1727_v26 = vsel %vm762_vm5, %v1716_v37, %v1718_v59  ;;  %v1728_v33 = vsel %vm762_vm5, %v1718_v59, %v3264_v19 }
 0x441   : > { %v1739_v14 = vadd.f32 %v1727_v26, %v1688_v43 }
 0x443   : > { %v3266_v4 = vpop.permute.xlu1 %1723  ;;  %v1722_v42 = vpop.permute.xlu0 %1721 }
 0x444   : > { %v1729_v38 = vsel %vm762_vm5, %v3264_v19, %v1722_v42  ;;  %v1730_v25 = vsel %vm762_vm5, %v1722_v42, %v3266_v4  ;;  %v1740_v19 = vadd.f32 %v1728_v33, %v1689_v23 }
 0x445   : > { %v1741_v34 = vadd.f32 %v1729_v38, %v1690_v32  ;;  %v1742_v42 = vadd.f32 %v1730_v25, %v1691_v44 }
 0x447   : > { %v1763_v0 = vpop.permute.xlu1 %1762 }
 0x44b   : > { %v1767_v29 = vpop.permute.xlu1 %1766 }
 0x44f   : > { %v3268_v1 = vpop.permute.xlu1 %1770 }
 0x453   : > { %v3272_v16 = vpop.permute.xlu1 %1774 }
 0x454   : > { %v3270_v35 = vpop.permute.xlu0 %1848 }
 0x457   : > { %v1816_v49 = vpop.permute.xlu1 %1815 }
 0x458   : > { %v1765_v22 = vpop.permute.xlu0 %1764 }
 0x459   : > { %v1776_v61 = vsel %vm814_vm6, %v1763_v0, %v1765_v22  ;;  %v1777_v30 = vsel %vm814_vm6, %v1765_v22, %v1767_v29 }
 0x45a   : > { %v1788_v54 = vadd.f32 %v1776_v61, %v1737_v36  ;;  %v1789_v10 = vadd.f32 %v1777_v30, %v1738_v56 }
 0x45b   : > { %v1820_v58 = vpop.permute.xlu1 %1819 }
 0x45c   : > { %v1769_v24 = vpop.permute.xlu0 %1768 }
 0x45d   : > { %v1778_v55 = vsel %vm814_vm6, %v1767_v29, %v1769_v24  ;;  %v1779_v37 = vsel %vm814_vm6, %v1769_v24, %v3268_v1 }
 0x45e   : > { %v1790_v20 = vadd.f32 %v1778_v55, %v1739_v14  ;;  %v1791_v53 = vadd.f32 %v1779_v37, %v1740_v19 }
 0x45f   : > { %v1824_v60 = vpop.permute.xlu1 %1823 }
 0x460   : > { %v1773_v6 = vpop.permute.xlu0 %1772 }
 0x461   : > { %v1780_v0 = vsel %vm814_vm6, %v3268_v1, %v1773_v6  ;;  %v1781_v1 = vsel %vm814_vm6, %v1773_v6, %v3272_v16 }
 0x462   : > { %v1792_v24 = vadd.f32 %v1780_v0, %v1741_v34  ;;  %v1793_v27 = vadd.f32 %v1781_v1, %v1742_v42 }
 0x464   : > { %v1814_v2 = vpop.permute.xlu0 %1813 }
 0x465   : > { %v1827_v39 = vsel %vm866_vm7, %v1814_v2, %v1816_v49 }
 0x466   : > { %v1839_v17 = vadd.f32 %v1827_v39, %v1788_v54 }
 0x468   : > { %v1818_v15 = vpop.permute.xlu0 %1817  ;;  %v1851_v29 = vadd.f32 %v3270_v35, %v1839_v17 }
 0x469   : > { %v1828_v59 = vsel %vm866_vm7, %v1816_v49, %v1818_v15  ;;  %v1829_v22 = vsel %vm866_vm7, %v1818_v15, %v1820_v58 }
 0x46a   : > { %v1840_v9 = vadd.f32 %v1828_v59, %v1789_v10  ;;  %v1841_v4 = vadd.f32 %v1829_v22, %v1790_v20  ;;  %v1857_v5 = vmax.f32 %v1851_v29, 0.0 }
 0x46c   : > { %v1852_v11 = vadd.f32 %v3270_v35, %v1840_v9  ;;  %v1822_v45 = vpop.permute.xlu0 %1821  ;;  %v1853_v51 = vadd.f32 %v3270_v35, %v1841_v4 }
 0x46d   : > { %v1830_v18 = vsel %vm866_vm7, %v1820_v58, %v1822_v45  ;;  %v1831_v40 = vsel %vm866_vm7, %v1822_v45, %v1824_v60 }
 0x46e   : > { %v1858_v63 = vmax.f32 %v1852_v11, 0.0  ;;  %v1842_v48 = vadd.f32 %v1830_v18, %v1791_v53  ;;  %v1843_v12 = vadd.f32 %v1831_v40, %v1792_v24  ;;  %v1859_v6 = vmax.f32 %v1853_v51, 0.0 }
 0x470   : > { %v2032_v21 = vpack.c.bf16 %v1858_v63, %v1857_v5  ;;  %v1854_v62 = vadd.f32 %v3270_v35, %v1842_v48  ;;  %v1826_v49 = vpop.permute.xlu0 %1825  ;;  %v1855_v41 = vadd.f32 %v3270_v35, %v1843_v12 }
 0x471   : > { %v1832_v16 = vsel %vm866_vm7, %v1824_v60, %v1826_v49 }
 0x472   : > { %1887 = vst [vmem:[%s333_s6] sm:$0xff] %v2032_v21  ;;  %v1860_v47 = vmax.f32 %v1854_v62, 0.0  ;;  %v1844_v50 = vadd.f32 %v1832_v16, %v1793_v27  ;;  %v1861_v52 = vmax.f32 %v1855_v41, 0.0 }
 0x474   : > { %v2033_v61 = vpack.c.bf16 %v1860_v47, %v1859_v6  ;;  %v1856_v57 = vadd.f32 %v3270_v35, %v1844_v50 }
 0x476   : > { %1888 = vst [vmem:[%s333_s6 + $0x8] sm:$0xff] %v2033_v61  ;;  %v1862_v13 = vmax.f32 %v1856_v57, 0.0 }
 0x478   : > { %v2034_v36 = vpack.c.bf16 %v1862_v13, %v1861_v52 }
 0x47a   : > { %1892 = vst.msk [vmem:[%s333_s6 + $0x10] sm:$0xff] %vm1891_vm10, %v2034_v36 }
 0x47b PF: > { %s15_s22 = sadd.s32 1, %s2259_s22   ;;  %s3441_s18 = smov %s2251_s20 }
 0x47c   : > { %p12_p10 = scmp.ge.s32.totalorder %s15_s22, 36   ;;  %s3442_s19 = smov %s2255_s21 }
 0x47d   : > { %s3443_s20 = smov %s3446_s23  ;;  %s3444_s21 = smov %s3450_s24 }
 0x47e   :  { %14 = sbr.rel (!%p12_p10) target bundleno = 3 (0x3), region = 76 }

// kernel: forward.7
= control target key start
LH: loop header
LB: loop body
LE: loop exit
PB: predicated region body
PF: predicated region fallthrough
CT: control target
= control target key end

     0   :  { %s2811_s18 = smov 0   ;;  %s2813_s19 = smov 0   ;;  %s3221_s0 = inlined_call_operand.vmem [shape: bf16[27,16,8], index: 0, kind: input, shape index: {}]   ;;  %s3222_s1 = inlined_call_operand.vmem [shape: f32[16,1], index: 1, kind: input, shape index: {}]   ;;  %s3223_s2 = inlined_call_operand.vmem [shape: bf16[2,11,8,230], index: 2, kind: input, shape index: {}, may-alias: {2,3,4}]   ;;  %s3224_s3 = inlined_call_operand.vmem [shape: bf16[2,11,8,230], index: 3, kind: input, shape index: {}, may-alias: {2,3,4}]   ;;  %s3225_s4 = inlined_call_operand.vmem [shape: bf16[2,11,8,230], index: 4, kind: input, shape index: {}, may-alias: {2,3,4}]   ;;  %s3226_s5 = inlined_call_operand.vmem [shape: bf16[2,9,16,204], index: 5, kind: output, shape index: {}]  }
   0x1   :  { %s2815_s20 = smov 0   ;;  %s2817_s21 = smov 0  }
   0x2   :  { %s2819_s22 = smov 0  }
   0x3 LB: > { %s24_s23 = sadd.s32 1, %s2762_s20  ;;  %s27_s24 = sadd.s32 1, %s2766_s21  ;;  %s2770_s22 = sphi %s2819_s22, %s15_s22   ;;  %s2766_s21 = sphi %s2817_s21, %s3230_s21   ;;  %s2762_s20 = sphi %s2815_s20, %s3229_s20   ;;  %s2758_s19 = sphi %s2813_s19, %s3228_s19   ;;  %s2754_s18 = sphi %s2811_s18, %s3227_s18  }
   0x4   : > { %p25_p0 = scmp.ge.s32.totalorder %s24_s23, 9  ;;  %p2388_p1 = scmp.ge.s32.totalorder %s2770_s22, 1 }
   0x5   : > { %p247_p2 = scmp.lt.s32.totalorder %s2770_s22, 19 }
   0x6   : > { %s3232_s23 = smov (%p25_p0, %s24_s23), 0  ;;  %s3234_s24 = smov (!%p25_p0, %s27_s24), %s2766_s21 }
   0x7   : > { %p248_p3 = pnand %p2388_p1, %p247_p2  ;;  %p29_p4 = scmp.ge.s32.totalorder %s3234_s24, 2 }
   0x8   : > { %p303_p5 = scmp.lt.s32.totalorder (!%p248_p3), %s2758_s19, 1  ;;  %s312_s25 = sadd.s32 (!%p248_p3), 1, %s2754_s18  ;;  %v2773_v3 = vmov (!%p248_p3), 0   ;;  %vm372_vm0 = vcmask (!%p248_p3), 1043456   ;;  %vm631_vm1 = vcmask (!%p248_p3), 941056   ;;  %v2705_v15 = vld [vmem:[%s3221_s0 + $0x68] sm:$0xff] (!%p248_p3)  }
   0x9   : > { %s3236_s24 = smov (%p29_p4, %s3234_s24), 0  ;;  %251 = sbr.rel (%p248_p3) target bundleno = 529 (0x211), region = 40 }
   0xa   : > { %p315_p6 = scmp.lt.s32.totalorder (!%p248_p3), %s312_s25, 10  ;;  %p305_p7 = scmp.lt.s32.totalorder (!%p248_p3), %s2754_s18, 10  ;;  %411 = vmatprep.mubr.bf16.mxu1 (!%p248_p3), %v2773_v3  ;;  %1299 = vmatprep.mubr.bf16.mxu0 (!%p248_p3), %v2773_v3  ;;  %vm368_vm2 = vcmask (!%p248_p3), 64512   ;;  %vm366_vm3 = vcmask (!%p248_p3), 1039360   ;;  %vm701_vm4 = vcmask (!%p248_p3), 932864   ;;  %v2706_v20 = vld [vmem:[%s3221_s0 + $0x8] sm:$0xff] (!%p248_p3)  }
   0xb   : > { %s2772_s10 = smov (!%p248_p3), 115   ;;  %2697 = vset.pattern.permute.xlu0 (!%p248_p3), %v2773_v3  ;;  %2698 = vset.pattern.permute.xlu1 (!%p248_p3), %v2773_v3  ;;  %s2774_s16 = smov (!%p248_p3), 127   ;;  %vm771_vm5 = vcmask (!%p248_p3), 850944   ;;  %v2708_v27 = vld [vmem:[%s3221_s0 + $0x70] sm:$0xff] (!%p248_p3)   ;;  %vm491_vm6 = vcmask (!%p248_p3), 1031168   ;;  %v2707_v33 = vld [vmem:[%s3221_s0] sm:$0xff] (!%p248_p3)  }
   0xc   : > { %s2775_s17 = smov (!%p248_p3), 114   ;;  %s2779_s6 = smov (!%p248_p3), 116   ;;  %vm841_vm7 = vcmask (!%p248_p3), 842752   ;;  %v2710_v38 = vld [vmem:[%s3221_s0 + $0x78] sm:$0xff] (!%p248_p3)   ;;  %vm561_vm8 = vcmask (!%p248_p3), 949248   ;;  %v2709_v44 = vld [vmem:[%s3221_s0 + $0x10] sm:$0xff] (!%p248_p3)  }
   0xd   : > { %vm911_vm9 = vcmask (!%p248_p3), 834560   ;;  %v2211_v47 = vld [vmem:[%s3222_s1] sm:$0xff] (!%p248_p3)  ;;  %v2212_v48 = vld [vmem:[%s3222_s1 + $0x8] sm:$0xff] (!%p248_p3)  ;;  %v2711_v55 = vld [vmem:[%s3221_s0 + $0x18] sm:$0xff] (!%p248_p3)   ;;  %p336_p9 = scmp.lt.s32.totalorder (!%p248_p3), %s2754_s18, 8  ;;  %vm2243_vm10 = vcmask (!%p248_p3), 621572  }
   0xe   : > { %v2712_v51 = vld [vmem:[%s3221_s0 + $0x80] sm:$0xff] (!%p248_p3)   ;;  %v2714_v58 = vld [vmem:[%s3221_s0 + $0x88] sm:$0xff] (!%p248_p3)   ;;  %vm2244_vm11 = vmor (!%p248_p3), %vm2243_vm10, %vm372_vm0 }
   0xf   : > { %v2713_v63 = vld [vmem:[%s3221_s0 + $0x20] sm:$0xff] (!%p248_p3)  }
  0x10   : > { %s3238_s19 = smov (!%p303_p5, %s2758_s19), 1  ;;  %s3240_s25 = smov (!%p315_p6, %s312_s25), 10 }
  0x11   : > { %s2847_s26 = smul.u32 22, %s3238_s19  ;;  %s2391_s27 = sshll.u32 %s3240_s25, 1 }
  0x12   : > { %s306_s8 = scalar_select %p305_p7, %s2754_s18, 10 }
  0x13   : > { %s319_s28 = sadd.s32 %s2847_s26, %s2391_s27  ;;  %s323_s25 = sadd.s32 2, %s2754_s18 }
  0x14   : > { %s2392_s29 = sshll.u32 %s319_s28, 2  ;;  %s2389_s9 = sshll.u32 %s306_s8, 1 }
  0x15   : > { %s321_s7 = scalar_lea.vmem %s3224_s3, %s2392_s29  ;;  %s309_s11 = sadd.s32 %s2847_s26, %s2389_s9 }
  0x16   : > { %v345_v0 = vld [vmem:[%s321_s7] sm:$0xff]  ;;  %s2390_s12 = sshll.u32 %s309_s11, 2  ;;  %s2776_s27 = smov 104  }
  0x17   : > { %v2855_v1 = vcombine.low %v345_v0, %v345_v0  ;;  %v2860_v2 = vcombine.high %v345_v0, %v345_v0  ;;  %s311_s15 = scalar_lea.vmem %s3223_s2, %s2390_s12  ;;  %p326_p8 = scmp.lt.s32.totalorder %s323_s25, 10 }
  0x18   : > { %v344_v4 = vld [vmem:[%s311_s15] sm:$0xff]  ;;  %s2777_s28 = smov 126   ;;  %s2778_s29 = smov 103  }
  0x19   : > { %1253 = vrot.lane.b32.xlu0 %v2855_v1, %s2772_s10  ;;  %v2869_v5 = vcombine.low %v344_v4, %v344_v4  ;;  %v2875_v6 = vcombine.high %v344_v4, %v344_v4  ;;  %s3242_s25 = smov (!%p326_p8, %s323_s25), 10  ;;  %s2780_s9 = smov 102  }
  0x1a   : > { %s2393_s30 = sshll.u32 %s3242_s25, 1  ;;  %s3244_s18 = smov (!%p336_p9, %s2754_s18), 8 }
  0x1b   : > { %362 = vrot.lane.b32.xlu1 %v2869_v5, %s2774_s16  ;;  %s330_s7 = sadd.s32 %s2847_s26, %s2393_s30  ;;  %v431_v22 = vsel %vm372_vm0, %v2869_v5, 0 }
  0x1c   : > { %s2394_s8 = sshll.u32 %s330_s7, 2 }
  0x1d   : > { %1255 = vrot.lane.b32.xlu0 %v2860_v2, %s2772_s10  ;;  %s332_s13 = scalar_lea.vmem %s3225_s4, %s2394_s8 }
  0x1e   : > { %v346_v7 = vld [vmem:[%s332_s13] sm:$0xff] }
  0x1f   : > { %364 = vrot.lane.b32.xlu1 %v2875_v6, %s2774_s16  ;;  %v2912_v8 = vcombine.low %v346_v7, %v346_v7  ;;  %v2920_v9 = vcombine.high %v346_v7, %v346_v7  ;;  %v2716_v7 = vld [vmem:[%s3221_s0 + $0x90] sm:$0xff]  }
  0x21   : > { %1322 = vrot.lane.b32.xlu0 %v2855_v1, %s2775_s17  ;;  %v1607_v59 = vsel %vm372_vm0, %v2912_v8, 0 }
  0x23   : > { %1324 = vrot.lane.b32.xlu1 %v2860_v2, %s2775_s17 }
  0x25   : > { %1391 = vrot.lane.b32.xlu0 %v2855_v1, %s2776_s27 }
  0x27   : > { %1393 = vrot.lane.b32.xlu1 %v2860_v2, %s2776_s27 }
  0x29   : > { %487 = vrot.lane.b32.xlu0 %v2869_v5, %s2777_s28 }
  0x2b   : > { %489 = vrot.lane.b32.xlu1 %v2875_v6, %s2777_s28 }
  0x2d   : > { %1460 = vrot.lane.b32.xlu0 %v2855_v1, %s2778_s29 }
  0x2f   : > { %1462 = vrot.lane.b32.xlu1 %v2860_v2, %s2778_s29 }
  0x31   : > { %557 = vrot.lane.b32.xlu0 %v2869_v5, %s2779_s6 }
  0x33   : > { %559 = vrot.lane.b32.xlu1 %v2875_v6, %s2779_s6 }
  0x35   : > { %1529 = vrot.lane.b32.xlu0 %v2855_v1, %s2780_s9 }
  0x37   : > { %1531 = vrot.lane.b32.xlu1 %v2860_v2, %s2780_s9 }
  0x39   : > { %627 = vrot.lane.b32.xlu0 %v2869_v5, %s2772_s10 }
  0x3b   : > { %629 = vrot.lane.b32.xlu1 %v2875_v6, %s2772_s10 }
  0x3d   : > { %697 = vrot.lane.b32.xlu0 %v2869_v5, %s2775_s17 }
  0x3f   : > { %699 = vrot.lane.b32.xlu1 %v2875_v6, %s2775_s17 }
  0x41   : > { %1667 = vrot.lane.b32.xlu0 %v2912_v8, %s2774_s16 }
  0x43   : > { %1669 = vrot.lane.b32.xlu1 %v2920_v9, %s2774_s16 }
  0x45   : > { %767 = vrot.lane.b32.xlu0 %v2869_v5, %s2776_s27 }
  0x47   : > { %769 = vrot.lane.b32.xlu1 %v2875_v6, %s2776_s27 }
  0x49   : > { %1736 = vrot.lane.b32.xlu0 %v2912_v8, %s2777_s28 }
  0x4b   : > { %1738 = vrot.lane.b32.xlu1 %v2920_v9, %s2777_s28 }
  0x4d   : > { %837 = vrot.lane.b32.xlu0 %v2869_v5, %s2778_s29 }
  0x4f   : > { %839 = vrot.lane.b32.xlu1 %v2875_v6, %s2778_s29 }
  0x51   : > { %1805 = vrot.lane.b32.xlu0 %v2912_v8, %s2779_s6 }
  0x53   : > { %1807 = vrot.lane.b32.xlu1 %v2920_v9, %s2779_s6 }
  0x55   : > { %907 = vrot.lane.b32.xlu0 %v2869_v5, %s2780_s9 }
  0x57   : > { %909 = vrot.lane.b32.xlu1 %v2875_v6, %s2780_s9 }
  0x59   : > { %1874 = vrot.lane.b32.xlu0 %v2912_v8, %s2772_s10 }
  0x5b   : > { %1876 = vrot.lane.b32.xlu1 %v2920_v9, %s2772_s10 }
  0x5d   : > { %1943 = vrot.lane.b32.xlu0 %v2912_v8, %s2775_s17 }
  0x5f   : > { %1945 = vrot.lane.b32.xlu1 %v2920_v9, %s2775_s17  ;;  %s2395_s17 = sshll.u32 %s3244_s18, 2 }
  0x61   : > { %1046 = vrot.lane.b32.xlu0 %v2855_v1, %s2774_s16 }
  0x63   : > { %1048 = vrot.lane.b32.xlu1 %v2860_v2, %s2774_s16  ;;  %s2647_s16 = smul.u32 36, %s3238_s19 }
  0x65   : > { %2012 = vrot.lane.b32.xlu0 %v2912_v8, %s2776_s27  ;;  %s340_s25 = sadd.s32 %s2647_s16, %s2395_s17 }
  0x67   : > { %2014 = vrot.lane.b32.xlu1 %v2920_v9, %s2776_s27  ;;  %s2396_s27 = sshll.u32 %s340_s25, 2 }
  0x69   : > { %1115 = vrot.lane.b32.xlu0 %v2855_v1, %s2777_s28 }
  0x6b   : > { %1117 = vrot.lane.b32.xlu1 %v2860_v2, %s2777_s28  ;;  %s342_s28 = scalar_lea.vmem %s3226_s5, %s2396_s27 }
  0x6d   : > { %2081 = vrot.lane.b32.xlu0 %v2912_v8, %s2778_s29 }
  0x6f   : > { %2083 = vrot.lane.b32.xlu1 %v2920_v9, %s2778_s29 }
  0x71   : > { %1184 = vrot.lane.b32.xlu0 %v2855_v1, %s2779_s6 }
  0x73   : > { %1186 = vrot.lane.b32.xlu1 %v2860_v2, %s2779_s6 }
  0x75   : > { %2150 = vrot.lane.b32.xlu0 %v2912_v8, %s2780_s9 }
  0x77   : > { %2152 = vrot.lane.b32.xlu1 %v2920_v9, %s2780_s9 }
  0x79   : > { %2215 = vperm.xlu0 %2697, %v2211_v47   ;;  %v2723_v47 = vld [vmem:[%s3221_s0 + $0x48] sm:$0xff]  }
  0x7b   : > { %2220 = vperm.xlu1 %2698, %v2212_v48  }
  0x8b   : > { %v1254_v10 = vpop.permute.xlu0 %1253 }
  0x8d   : > { %v363_v13 = vpop.permute.xlu1 %362 }
  0x8f   : > { %v1256_v11 = vpop.permute.xlu0 %1255 }
  0x90   : > { %2467 = vmatprep.subr.msk.bf16.mxu0 %vm372_vm0, %v1256_v11  ;;  %v1257_v12 = vsel %vm631_vm1, %v1254_v10, %v1256_v11 }
  0x91   : > { %v1262_v14 = vsel %vm372_vm0, %v1257_v12, 0  ;;  %v365_v16 = vpop.permute.xlu1 %364  ;;  %v2715_v12 = vld [vmem:[%s3221_s0 + $0x28] sm:$0xff]  }
  0x92   : > { %1268 = vmatpush1.bf16.msra.mxu0 %v1262_v14  ;;  %2402 = vmatprep.subr.msk.bf16.mxu1 %vm372_vm0, %v365_v16  ;;  %v367_v18 = vsel %vm366_vm3, %v363_v13, %v365_v16 }
  0x93   : > { %v1323_v17 = vpop.permute.xlu0 %1322  ;;  %v374_v19 = vsel %vm372_vm0, %v367_v18, 0 }
  0x94   : > { %380 = vmatpush1.bf16.msra.mxu1 %v374_v19 }
  0x95   : > { %2468 = vmatmul.mubr.msk.bf16.vlgmr.msra.gmra.mrb[0].mxu0 %vm368_vm2, %v2705_v15  ;;  %v1325_v21 = vpop.permute.xlu1 %1324  ;;  %2405 = vmatprep.subr.msk.bf16.mxu1 %vm372_vm0, %v2875_v6 }
  0x96   : > { %1368 = vmatprep.mubr.bf16.mxu0 %v2773_v3  ;;  %v1326_v24 = vsel %vm701_vm4, %v1323_v17, %v1325_v21  ;;  %2472 = vmatprep.subr.msk.bf16.mxu0 %vm372_vm0, %v1325_v21  ;;  %v2718_v17 = vld [vmem:[%s3221_s0 + $0x98] sm:$0xff]  }
  0x97   : > { %v1392_v23 = vpop.permute.xlu0 %1391  ;;  %v1331_v25 = vsel %vm372_vm0, %v1326_v24, 0  ;;  %2403 = vmatmul.mubr.msk.bf16.vlgmr.msra.gmra.mrb[0].mxu1 %vm368_vm2, %v2706_v20 }
  0x98   : > { %1337 = vmatpush1.bf16.msra.mxu0 %v1331_v25  ;;  %437 = vmatpush1.bf16.msra.mxu1 %v431_v22  ;;  %v2717_v22 = vld [vmem:[%s3221_s0 + $0x30] sm:$0xff]  }
  0x99   : > { %v1394_v26 = vpop.permute.xlu1 %1393  ;;  %468 = vmatprep.mubr.bf16.mxu1 %v2773_v3 }
  0x9a   : > { %v1395_v28 = vsel %vm771_vm5, %v1392_v23, %v1394_v26  ;;  %2477 = vmatprep.subr.msk.bf16.mxu0 %vm372_vm0, %v1394_v26 }
  0x9b   : > { %v1400_v29 = vsel %vm372_vm0, %v1395_v28, 0  ;;  %v488_v30 = vpop.permute.xlu0 %487 }
  0x9d   : > { %v490_v31 = vpop.permute.xlu1 %489 }
  0x9e   : > { %v492_v32 = vsel %vm491_vm6, %v488_v30, %v490_v31  ;;  %2410 = vmatprep.subr.msk.bf16.mxu1 %vm372_vm0, %v490_v31 }
  0x9f   : > { %v497_v34 = vsel %vm372_vm0, %v492_v32, 0  ;;  %v1461_v35 = vpop.permute.xlu0 %1460  ;;  %v2719_v32 = vld [vmem:[%s3221_s0 + $0x38] sm:$0xff]  }
  0xa1   : > { %2473 = vmatmul.mubr.msk.bf16.vlgmr.msra.gmra.mrb[0].mxu0 %vm368_vm2, %v2708_v27  ;;  %v1463_v36 = vpop.permute.xlu1 %1462  ;;  %v2720_v27 = vld [vmem:[%s3221_s0 + $0xa0] sm:$0xff]  }
  0xa2   : > { %1406 = vmatpush1.bf16.msra.mxu0 %v1400_v29  ;;  %1437 = vmatprep.mubr.bf16.mxu0 %v2773_v3  ;;  %v1464_v37 = vsel %vm841_vm7, %v1461_v35, %v1463_v36 }
  0xa3   : > { %2482 = vmatprep.subr.msk.bf16.mxu0 %vm372_vm0, %v1463_v36  ;;  %2406 = vmatmul.mubr.msk.bf16.vlgmr.msra.gmra.mrb[0].mxu1 %vm368_vm2, %v2707_v33  ;;  %v1469_v40 = vsel %vm372_vm0, %v1464_v37, 0  ;;  %v558_v41 = vpop.permute.xlu0 %557  ;;  %v2722_v36 = vld [vmem:[%s3221_s0 + $0xa8] sm:$0xff]  }
  0xa4   : > { %503 = vmatpush1.bf16.msra.mxu1 %v497_v34  ;;  %534 = vmatprep.mubr.bf16.mxu1 %v2773_v3 }
  0xa5   : > { %v560_v39 = vpop.permute.xlu1 %559 }
  0xa6   : > { %2415 = vmatprep.subr.msk.bf16.mxu1 %vm372_vm0, %v560_v39  ;;  %v562_v43 = vsel %vm561_vm8, %v558_v41, %v560_v39  ;;  %v2721_v39 = vld [vmem:[%s3221_s0 + $0x40] sm:$0xff]  }
  0xa7   : > { %v567_v45 = vsel %vm372_vm0, %v562_v43, 0  ;;  %v1530_v46 = vpop.permute.xlu0 %1529  ;;  %v2724_v43 = vld [vmem:[%s3221_s0 + $0xb0] sm:$0xff]  }
  0xa9   : > { %v1532_v42 = vpop.permute.xlu1 %1531 }
  0xaa   : > { %v1533_v50 = vsel %vm911_vm9, %v1530_v46, %v1532_v42 }
  0xab   : > { %v1538_v52 = vsel %vm372_vm0, %v1533_v50, 0  ;;  %v628_v53 = vpop.permute.xlu0 %627 }
  0xad   : > { %2478 = vmatmul.mubr.msk.bf16.vlgmr.msra.gmra.mrb[0].mxu0 %vm368_vm2, %v2710_v38  ;;  %v630_v49 = vpop.permute.xlu1 %629 }
  0xae   : > { %1475 = vmatpush1.bf16.msra.mxu0 %v1469_v40  ;;  %1506 = vmatprep.mubr.bf16.mxu0 %v2773_v3  ;;  %v632_v54 = vsel %vm631_vm1, %v628_v53, %v630_v49  ;;  %v986_v40 = vsel %vm372_vm0, %v2855_v1, 0 }
  0xaf   : > { %2487 = vmatprep.subr.msk.bf16.mxu0 %vm372_vm0, %v1532_v42  ;;  %2411 = vmatmul.mubr.msk.bf16.vlgmr.msra.gmra.mrb[0].mxu1 %vm368_vm2, %v2709_v44  ;;  %v637_v56 = vsel %vm372_vm0, %v632_v54, 0  ;;  %v698_v60 = vpop.permute.xlu0 %697 }
  0xb0   : > { %573 = vmatpush1.bf16.msra.mxu1 %v567_v45  ;;  %604 = vmatprep.mubr.bf16.mxu1 %v2773_v3 }
  0xb1   : > { %2420 = vmatprep.subr.msk.bf16.mxu1 %vm372_vm0, %v630_v49  ;;  %v700_v57 = vpop.permute.xlu1 %699 }
  0xb2   : > { %v702_v62 = vsel %vm701_vm4, %v698_v60, %v700_v57 }
  0xb3   : > { %v707_v0 = vsel %vm372_vm0, %v702_v62, 0  ;;  %v1668_v4 = vpop.permute.xlu0 %1667  ;;  %v2728_v62 = vld [vmem:[%s3221_s0 + $0xc0] sm:$0xff]  }
  0xb5   : > { %v1670_v61 = vpop.permute.xlu1 %1669 }
  0xb6   : > { %v1671_v6 = vsel %vm366_vm3, %v1668_v4, %v1670_v61 }
  0xb7   : > { %v1676_v8 = vsel %vm372_vm0, %v1671_v6, 0  ;;  %v2727_v6 = vld [vmem:[%s3221_s0 + $0x58] sm:$0xff]  }
  0xb9   : > { %2483 = vmatmul.mubr.msk.bf16.vlgmr.msra.gmra.mrb[0].mxu0 %vm368_vm2, %v2712_v51  ;;  %v770_v5 = vpop.permute.xlu1 %769 }
  0xba   : > { %1544 = vmatpush1.bf16.msra.mxu0 %v1538_v52  ;;  %1575 = vmatprep.mubr.bf16.mxu0 %v2773_v3  ;;  %v2726_v52 = vld [vmem:[%s3221_s0 + $0xb8] sm:$0xff]  }
  0xbb   : > { %2494 = vmatprep.subr.msk.bf16.mxu0 %vm372_vm0, %v2920_v9  ;;  %2416 = vmatmul.mubr.msk.bf16.vlgmr.msra.gmra.mrb[0].mxu1 %vm368_vm2, %v2711_v55  ;;  %v768_v9 = vpop.permute.xlu0 %767 }
  0xbc   : > { %643 = vmatpush1.bf16.msra.mxu1 %v637_v56  ;;  %674 = vmatprep.mubr.bf16.mxu1 %v2773_v3  ;;  %v772_v11 = vsel %vm771_vm5, %v768_v9, %v770_v5 }
  0xbd   : > { %2425 = vmatprep.subr.msk.bf16.mxu1 %vm372_vm0, %v700_v57  ;;  %v1739_v10 = vpop.permute.xlu1 %1738  ;;  %v777_v13 = vsel %vm372_vm0, %v772_v11, 0  ;;  %v2725_v57 = vld [vmem:[%s3221_s0 + $0x50] sm:$0xff]  }
  0xbf   : > { %v1737_v14 = vpop.permute.xlu0 %1736 }
  0xc0   : > { %v1740_v16 = vsel %vm491_vm6, %v1737_v14, %v1739_v10 }
  0xc1   : > { %v840_v15 = vpop.permute.xlu1 %839  ;;  %v1745_v18 = vsel %vm372_vm0, %v1740_v16, 0 }
  0xc3   : > { %v838_v19 = vpop.permute.xlu0 %837 }
  0xc4   : > { %v842_v21 = vsel %vm841_vm7, %v838_v19, %v840_v15 }
  0xc5   : > { %2488 = vmatmul.mubr.msk.bf16.vlgmr.msra.gmra.mrb[0].mxu0 %vm368_vm2, %v2714_v58  ;;  %v1808_v20 = vpop.permute.xlu1 %1807  ;;  %v847_v23 = vsel %vm372_vm0, %v842_v21, 0 }
  0xc6   : > { %1613 = vmatpush1.bf16.msra.mxu0 %v1607_v59  ;;  %1644 = vmatprep.mubr.bf16.mxu0 %v2773_v3 }
  0xc7   : > { %2499 = vmatprep.subr.msk.bf16.mxu0 %vm372_vm0, %v1670_v61  ;;  %2421 = vmatmul.mubr.msk.bf16.vlgmr.msra.gmra.mrb[0].mxu1 %vm368_vm2, %v2713_v63  ;;  %v1806_v24 = vpop.permute.xlu0 %1805 }
  0xc8   : > { %713 = vmatpush1.bf16.msra.mxu1 %v707_v0  ;;  %744 = vmatprep.mubr.bf16.mxu1 %v2773_v3  ;;  %v1809_v26 = vsel %vm561_vm8, %v1806_v24, %v1808_v20 }
  0xc9   : > { %2430 = vmatprep.subr.msk.bf16.mxu1 %vm372_vm0, %v770_v5  ;;  %v910_v25 = vpop.permute.xlu1 %909  ;;  %v1814_v28 = vsel %vm372_vm0, %v1809_v26, 0 }
  0xcb   : > { %v908_v29 = vpop.permute.xlu0 %907 }
  0xcc   : > { %v912_v31 = vsel %vm911_vm9, %v908_v29, %v910_v25 }
  0xcd   : > { %v1877_v30 = vpop.permute.xlu1 %1876  ;;  %v917_v33 = vsel %vm372_vm0, %v912_v31, 0 }
  0xcf   : > { %v1875_v34 = vpop.permute.xlu0 %1874 }
  0xd0   : > { %v1878_v35 = vsel %vm631_vm1, %v1875_v34, %v1877_v30 }
  0xd1   : > { %2495 = vmatmul.mubr.msk.bf16.vlgmr.msra.gmra.mrb[0].mxu0 %vm368_vm2, %v2716_v7  ;;  %v1883_v37 = vsel %vm372_vm0, %v1878_v35, 0  ;;  %v1946_v38 = vpop.permute.xlu1 %1945 }
  0xd2   : > { %1682 = vmatpush1.bf16.msra.mxu0 %v1676_v8  ;;  %1713 = vmatprep.mubr.bf16.mxu0 %v2773_v3 }
  0xd3   : > { %2504 = vmatprep.subr.msk.bf16.mxu0 %vm372_vm0, %v1739_v10  ;;  %2426 = vmatmul.mubr.msk.bf16.vlgmr.msra.gmra.mrb[0].mxu1 %vm368_vm2, %v2715_v12  ;;  %v1944_v41 = vpop.permute.xlu0 %1943  ;;  %v2730_v10 = vld [vmem:[%s3221_s0 + $0xc8] sm:$0xff]   ;;  %v2729_v12 = vld [vmem:[%s3221_s0 + $0x60] sm:$0xff]  }
  0xd4   : > { %783 = vmatpush1.bf16.msra.mxu1 %v777_v13  ;;  %814 = vmatprep.mubr.bf16.mxu1 %v2773_v3  ;;  %v2731_v13 = vld [vmem:[%s3221_s0 + $0xd0] sm:$0xff]  }
  0xd5   : > { %2435 = vmatprep.subr.msk.bf16.mxu1 %vm372_vm0, %v840_v15  ;;  %v1049_v42 = vpop.permute.xlu1 %1048 }
  0xd7   : > { %v1047_v45 = vpop.permute.xlu0 %1046 }
  0xd8   : > { %v1050_v1 = vsel %vm366_vm3, %v1047_v45, %v1049_v42 }
  0xd9   : > { %v2015_v46 = vpop.permute.xlu1 %2014  ;;  %v1055_v48 = vsel %vm372_vm0, %v1050_v1, 0 }
  0xdb   : > { %v2013_v49 = vpop.permute.xlu0 %2012 }
  0xdc   : > { %v2016_v51 = vsel %vm771_vm5, %v2013_v49, %v2015_v46 }
  0xdd   : > { %2500 = vmatmul.mubr.msk.bf16.vlgmr.msra.gmra.mrb[0].mxu0 %vm368_vm2, %v2718_v17  ;;  %v1118_v50 = vpop.permute.xlu1 %1117  ;;  %v2021_v53 = vsel %vm372_vm0, %v2016_v51, 0 }
  0xde   : > { %1751 = vmatpush1.bf16.msra.mxu0 %v1745_v18  ;;  %1782 = vmatprep.mubr.bf16.mxu0 %v2773_v3 }
  0xdf   : > { %2509 = vmatprep.subr.msk.bf16.mxu0 %vm372_vm0, %v1808_v20  ;;  %2431 = vmatmul.mubr.msk.bf16.vlgmr.msra.gmra.mrb[0].mxu1 %vm368_vm2, %v2717_v22  ;;  %v1116_v54 = vpop.permute.xlu0 %1115 }
  0xe0   : > { %853 = vmatpush1.bf16.msra.mxu1 %v847_v23  ;;  %884 = vmatprep.mubr.bf16.mxu1 %v2773_v3  ;;  %v1119_v56 = vsel %vm491_vm6, %v1116_v54, %v1118_v50 }
  0xe1   : > { %2440 = vmatprep.subr.msk.bf16.mxu1 %vm372_vm0, %v910_v25  ;;  %v2084_v55 = vpop.permute.xlu1 %2083  ;;  %v1124_v58 = vsel %vm372_vm0, %v1119_v56, 0 }
  0xe3   : > { %v2082_v59 = vpop.permute.xlu0 %2081 }
  0xe4   : > { %v2085_v61 = vsel %vm841_vm7, %v2082_v59, %v2084_v55 }
  0xe5   : > { %v1187_v60 = vpop.permute.xlu1 %1186  ;;  %v2090_v63 = vsel %vm372_vm0, %v2085_v61, 0 }
  0xe7   : > { %v1185_v0 = vpop.permute.xlu0 %1184 }
  0xe8   : > { %v1188_v5 = vsel %vm561_vm8, %v1185_v0, %v1187_v60 }
  0xe9   : > { %2505 = vmatmul.mubr.msk.bf16.vlgmr.msra.gmra.mrb[0].mxu0 %vm368_vm2, %v2720_v27  ;;  %v2153_v4 = vpop.permute.xlu1 %2152  ;;  %v1193_v7 = vsel %vm372_vm0, %v1188_v5, 0 }
  0xea   : > { %1820 = vmatpush1.bf16.msra.mxu0 %v1814_v28  ;;  %1851 = vmatprep.mubr.bf16.mxu0 %v2773_v3 }
  0xeb   : > { %2514 = vmatprep.subr.msk.bf16.mxu0 %vm372_vm0, %v1877_v30  ;;  %2436 = vmatmul.mubr.msk.bf16.vlgmr.msra.gmra.mrb[0].mxu1 %vm368_vm2, %v2719_v32  ;;  %v2151_v8 = vpop.permute.xlu0 %2150 }
  0xec   : > { %923 = vmatpush1.bf16.msra.mxu1 %v917_v33  ;;  %954 = vmatprep.mubr.bf16.mxu1 %v2773_v3  ;;  %v2154_v9 = vsel %vm911_vm9, %v2151_v8, %v2153_v4 }
  0xed   : > { %2447 = vmatprep.subr.msk.bf16.mxu1 %vm372_vm0, %v2860_v2  ;;  %v1947_v2 = vsel %vm701_vm4, %v1944_v41, %v1946_v38  ;;  %v2159_v11 = vsel %vm372_vm0, %v2154_v9, 0 }
  0xee   : > { %v1952_v44 = vsel %vm372_vm0, %v1947_v2, 0 }
  0xf5   : > { %2510 = vmatmul.mubr.msk.bf16.vlgmr.msra.gmra.mrb[0].mxu0 %vm368_vm2, %v2722_v36 }
  0xf6   : > { %1889 = vmatpush1.bf16.msra.mxu0 %v1883_v37  ;;  %1920 = vmatprep.mubr.bf16.mxu0 %v2773_v3 }
  0xf7   : > { %2519 = vmatprep.subr.msk.bf16.mxu0 %vm372_vm0, %v1946_v38  ;;  %2441 = vmatmul.mubr.msk.bf16.vlgmr.msra.gmra.mrb[0].mxu1 %vm368_vm2, %v2721_v39 }
  0xf8   : > { %992 = vmatpush1.bf16.msra.mxu1 %v986_v40  ;;  %1023 = vmatprep.mubr.bf16.mxu1 %v2773_v3  ;;  %v2216_v18 = vpop.permute.xlu0 %2215 }
  0xf9   : > { %2452 = vmatprep.subr.msk.bf16.mxu1 %vm372_vm0, %v1049_v42 }
  0xfa   : > { %v2221_v23 = vpop.permute.xlu1 %2220 }
 0x101   : > { %2515 = vmatmul.mubr.msk.bf16.vlgmr.msra.gmra.mrb[0].mxu0 %vm368_vm2, %v2724_v43 }
 0x102   : > { %1958 = vmatpush1.bf16.msra.mxu0 %v1952_v44  ;;  %1989 = vmatprep.mubr.bf16.mxu0 %v2773_v3 }
 0x103   : > { %2524 = vmatprep.subr.msk.bf16.mxu0 %vm372_vm0, %v2015_v46  ;;  %2448 = vmatmul.mubr.msk.bf16.vlgmr.msra.gmra.mrb[0].mxu1 %vm368_vm2, %v2723_v47 }
 0x104   : > { %1061 = vmatpush1.bf16.msra.mxu1 %v1055_v48  ;;  %1092 = vmatprep.mubr.bf16.mxu1 %v2773_v3 }
 0x105   : > { %2457 = vmatprep.subr.msk.bf16.mxu1 %vm372_vm0, %v1118_v50 }
 0x10d   : > { %2520 = vmatmul.mubr.msk.bf16.vlgmr.msra.gmra.mrb[0].mxu0 %vm368_vm2, %v2726_v52 }
 0x10e   : > { %2027 = vmatpush1.bf16.msra.mxu0 %v2021_v53  ;;  %2058 = vmatprep.mubr.bf16.mxu0 %v2773_v3 }
 0x10f   : > { %2529 = vmatprep.subr.msk.bf16.mxu0 %vm372_vm0, %v2084_v55  ;;  %2453 = vmatmul.mubr.msk.bf16.vlgmr.msra.gmra.mrb[0].mxu1 %vm368_vm2, %v2725_v57 }
 0x110   : > { %1130 = vmatpush1.bf16.msra.mxu1 %v1124_v58  ;;  %1161 = vmatprep.mubr.bf16.mxu1 %v2773_v3 }
 0x111   : > { %2462 = vmatprep.subr.msk.bf16.mxu1 %vm372_vm0, %v1187_v60 }
 0x119   : > { %2525 = vmatmul.mubr.msk.bf16.vlgmr.msra.gmra.mrb[0].mxu0 %vm368_vm2, %v2728_v62 }
 0x11a   : > { %2096 = vmatpush1.bf16.msra.mxu0 %v2090_v63  ;;  %2127 = vmatprep.mubr.bf16.mxu0 %v2773_v3 }
 0x11b   : > { %2534 = vmatprep.subr.msk.bf16.mxu0 %vm372_vm0, %v2153_v4  ;;  %2458 = vmatmul.mubr.msk.bf16.vlgmr.msra.gmra.mrb[0].mxu1 %vm368_vm2, %v2727_v6 }
 0x11c   : > { %1199 = vmatpush1.bf16.msra.mxu1 %v1193_v7  ;;  %1230 = vmatprep.mubr.bf16.mxu1 %v2773_v3 }
 0x125   : > { %2530 = vmatmul.mubr.msk.bf16.vlgmr.msra.gmra.mrb[0].mxu0 %vm368_vm2, %v2730_v10 }
 0x126   : > { %2165 = vmatpush1.bf16.msra.mxu0 %v2159_v11  ;;  %2196 = vmatprep.mubr.bf16.mxu0 %v2773_v3 }
 0x127   : > { %2463 = vmatmul.mubr.msk.bf16.vlgmr.msra.gmra.mrb[0].mxu1 %vm368_vm2, %v2729_v12 }
 0x131   : > { %2535 = vmatmul.mubr.msk.bf16.vlgmr.msra.gmra.mrb[0].mxu0 %vm368_vm2, %v2731_v13 }
 0x1fa   : > { %v1232_v14 = vpop.f32.mrb[0].mxu1 }
 0x1fb   : > { %v1234_v15 = vpop.f32.mrb[1].mxu1 }
 0x1fc   : > { %v1236_v16 = vpop.f32.mrb[2].mxu1 }
 0x1fd   : > { %v1238_v17 = vpop.f32.mrb[3].mxu1 }
 0x204   : > { %v2198_v3 = vpop.f32.mrb[0].mxu0 }
 0x205   : > { %v2542_v19 = vadd.f32 %v2198_v3, %v1232_v14  ;;  %v2200_v20 = vpop.f32.mrb[1].mxu0 }
 0x206   : > { %v2543_v21 = vadd.f32 %v2200_v20, %v1234_v15  ;;  %v2202_v22 = vpop.f32.mrb[2].mxu0 }
 0x207   : > { %v2223_v24 = vadd.f32 %v2542_v19, %v2216_v18  ;;  %v2544_v25 = vadd.f32 %v2202_v22, %v1236_v16  ;;  %v2204_v26 = vpop.f32.mrb[3].mxu0 }
 0x208   : > { %v2224_v27 = vadd.f32 %v2543_v21, %v2216_v18  ;;  %v2545_v28 = vadd.f32 %v2204_v26, %v1238_v17 }
 0x209   : > { %v2227_v29 = vmax.f32 %v2223_v24, 0.0  ;;  %v2225_v30 = vadd.f32 %v2544_v25, %v2221_v23 }
 0x20a   : > { %v2228_v31 = vmax.f32 %v2224_v27, 0.0  ;;  %v2226_v32 = vadd.f32 %v2545_v28, %v2221_v23 }
 0x20b   : > { %v2229_v33 = vmax.f32 %v2225_v30, 0.0 }
 0x20c   : > { %v2540_v34 = vpack.c.bf16 %v2228_v31, %v2227_v29  ;;  %v2230_v35 = vmax.f32 %v2226_v32, 0.0 }
 0x20e   : > { %2245 = vst.msk [vmem:[%s342_s28] sm:$0xff] %vm2244_vm11, %v2540_v34  ;;  %v2541_v36 = vpack.c.bf16 %v2230_v35, %v2229_v33 }
 0x210   : > { %2246 = vst.msk [vmem:[%s342_s28 + $0x8] sm:$0xff] %vm2244_vm11, %v2541_v36 }
 0x211 PF: > { %s15_s22 = sadd.s32 1, %s2770_s22   ;;  %s3227_s18 = smov %s2762_s20 }
 0x212   : > { %p12_p10 = scmp.ge.s32.totalorder %s15_s22, 20   ;;  %s3228_s19 = smov %s2766_s21 }
 0x213   : > { %s3229_s20 = smov %s3232_s23  ;;  %s3230_s21 = smov %s3236_s24 }
 0x214   :  { %14 = sbr.rel (!%p12_p10) target bundleno = 3 (0x3), region = 102 }

// kernel: forward.8
= control target key start
LH: loop header
LB: loop body
LE: loop exit
PB: predicated region body
PF: predicated region fallthrough
CT: control target
= control target key end

     0   :  { %s3394_s18 = smov 0   ;;  %s3396_s19 = smov 0   ;;  %s3721_s0 = inlined_call_operand.vmem [shape: bf16[27,32,16], index: 0, kind: input, shape index: {}]   ;;  %s3722_s1 = inlined_call_operand.vmem [shape: f32[32,1], index: 1, kind: input, shape index: {}]   ;;  %s3723_s2 = inlined_call_operand.vmem [shape: bf16[2,7,16,79], index: 2, kind: input, shape index: {}, may-alias: {2,3,4}]   ;;  %s3724_s3 = inlined_call_operand.vmem [shape: bf16[2,7,16,79], index: 3, kind: input, shape index: {}, may-alias: {2,3,4}]   ;;  %s3725_s4 = inlined_call_operand.vmem [shape: bf16[2,7,16,79], index: 4, kind: input, shape index: {}, may-alias: {2,3,4}]   ;;  %s3726_s5 = inlined_call_operand.vmem [shape: bf16[2,5,32,63], index: 5, kind: output, shape index: {}]  }
   0x1   :  { %s3398_s20 = smov 0   ;;  %s3400_s21 = smov 0  }
   0x2   :  { %s3402_s22 = smov 0  }
   0x3 LB: > { %s24_s23 = sadd.s32 1, %s3345_s20  ;;  %s27_s24 = sadd.s32 1, %s3349_s21  ;;  %s3353_s22 = sphi %s3402_s22, %s15_s22   ;;  %s3349_s21 = sphi %s3400_s21, %s3730_s21   ;;  %s3345_s20 = sphi %s3398_s20, %s3729_s20   ;;  %s3341_s19 = sphi %s3396_s19, %s3728_s19   ;;  %s3337_s18 = sphi %s3394_s18, %s3727_s18  }
   0x4   : > { %p25_p0 = scmp.ge.s32.totalorder %s24_s23, 5  ;;  %p2624_p1 = scmp.ge.s32.totalorder %s3353_s22, 1 }
   0x5   : > { %p247_p2 = scmp.lt.s32.totalorder %s3353_s22, 11 }
   0x6   : > { %s3732_s23 = smov (%p25_p0, %s24_s23), 0  ;;  %s3734_s24 = smov (!%p25_p0, %s27_s24), %s3349_s21 }
   0x7   : > { %p248_p3 = pnand %p2624_p1, %p247_p2  ;;  %p29_p4 = scmp.ge.s32.totalorder %s3734_s24, 2 }
   0x8   : > { %p303_p5 = scmp.lt.s32.totalorder (!%p248_p3), %s3341_s19, 1  ;;  %s312_s25 = sadd.s32 (!%p248_p3), 1, %s3337_s18  ;;  %vm377_vm0 = vcmask (!%p248_p3), 130048   ;;  %v3261_v0 = vld [vmem:[%s3721_s0 + $0xd0] sm:$0xff] (!%p248_p3)   ;;  %v3262_v7 = vld [vmem:[%s3721_s0 + $0xd8] sm:$0xff] (!%p248_p3)   ;;  %v3265_v8 = vld [vmem:[%s3721_s0 + $0xe0] sm:$0xff] (!%p248_p3)  }
   0x9   : > { %s3736_s24 = smov (%p29_p4, %s3734_s24), 0  ;;  %251 = sbr.rel (%p248_p3) target bundleno = 522 (0x20a), region = 40 }
   0xa   : > { %p315_p6 = scmp.lt.s32.totalorder (!%p248_p3), %s312_s25, 6  ;;  %3019 = vmatprep.mubr.msk.bf16.mxu0 (!%p248_p3), %vm377_vm0, %v3261_v0  ;;  %p305_p7 = scmp.lt.s32.totalorder (!%p248_p3), %s3337_s18, 6  ;;  %v3263_v1 = vld [vmem:[%s3721_s0 + $0x10] sm:$0xff] (!%p248_p3)   ;;  %v3264_v11 = vld [vmem:[%s3721_s0 + $0x18] sm:$0xff] (!%p248_p3)   ;;  %v3267_v12 = vld [vmem:[%s3721_s0] sm:$0xff] (!%p248_p3)   ;;  %v3363_v27 = vmov (!%p248_p3), 0  }
   0xb   : > { %2941 = vmatprep.mubr.msk.bf16.mxu1 (!%p248_p3), %vm377_vm0, %v3263_v1  ;;  %s3355_s13 = smov (!%p248_p3), 120   ;;  %s3356_s14 = smov (!%p248_p3), 119   ;;  %v3266_v14 = vld [vmem:[%s3721_s0 + $0xe8] sm:$0xff] (!%p248_p3)   ;;  %v3269_v15 = vld [vmem:[%s3721_s0 + $0xf0] sm:$0xff] (!%p248_p3)   ;;  %v3271_v18 = vld [vmem:[%s3721_s0 + $0x20] sm:$0xff] (!%p248_p3)   ;;  %3257 = vset.pattern.permute.xlu1 (!%p248_p3), %v3363_v27  ;;  %vm2478_vm1 = vcmask (!%p248_p3), 510976  }
   0xc   : > { %s323_s17 = sadd.s32 (!%p248_p3), 2, %s3337_s18  ;;  %s3357_s30 = smov (!%p248_p3), 114   ;;  %v3268_v17 = vld [vmem:[%s3721_s0 + $0x8] sm:$0xff] (!%p248_p3)   ;;  %v3270_v20 = vld [vmem:[%s3721_s0 + $0xf8] sm:$0xff] (!%p248_p3)   ;;  %v3273_v21 = vld [vmem:[%s3721_s0 + $0x100] sm:$0xff] (!%p248_p3)   ;;  %3256 = vset.pattern.permute.xlu0 (!%p248_p3), %v3363_v27 }
   0xd   : > { %p326_p8 = scmp.lt.s32.totalorder (!%p248_p3), %s323_s17, 6  ;;  %s3358_s6 = smov (!%p248_p3), 127   ;;  %v3272_v23 = vld [vmem:[%s3721_s0 + $0x28] sm:$0xff] (!%p248_p3)   ;;  %v3275_v24 = vld [vmem:[%s3721_s0 + $0x30] sm:$0xff] (!%p248_p3)   ;;  %v2430_v28 = vld [vmem:[%s3722_s1] sm:$0xff] (!%p248_p3) }
   0xe   : > { %s3359_s9 = smov (!%p248_p3), 113   ;;  %s3362_s26 = smov (!%p248_p3), 121   ;;  %v2431_v25 = vld [vmem:[%s3722_s1 + $0x8] sm:$0xff] (!%p248_p3)  ;;  %v2432_v29 = vld [vmem:[%s3722_s1 + $0x10] sm:$0xff] (!%p248_p3)  ;;  %v2433_v32 = vld [vmem:[%s3722_s1 + $0x18] sm:$0xff] (!%p248_p3) }
   0xf   : > { %v3274_v30 = vld [vmem:[%s3721_s0 + $0x108] sm:$0xff] (!%p248_p3)   ;;  %v3277_v31 = vld [vmem:[%s3721_s0 + $0x110] sm:$0xff] (!%p248_p3)   ;;  %v3276_v33 = vld [vmem:[%s3721_s0 + $0x38] sm:$0xff] (!%p248_p3)   ;;  %p336_p9 = scmp.lt.s32.totalorder (!%p248_p3), %s3337_s18, 4 }
  0x10   : > { %s3738_s19 = smov (!%p303_p5, %s3341_s19), 1  ;;  %s3740_s25 = smov (!%p315_p6, %s312_s25), 6  ;;  %v3279_v34 = vld [vmem:[%s3721_s0 + $0x40] sm:$0xff]   ;;  %v3278_v36 = vld [vmem:[%s3721_s0 + $0x118] sm:$0xff]   ;;  %v3280_v39 = vld [vmem:[%s3721_s0 + $0x48] sm:$0xff]  }
  0x11   : > { %s3205_s28 = smul.u32 14, %s3738_s19  ;;  %s2627_s29 = sshll.u32 %s3740_s25, 1  ;;  %v3281_v37 = vld [vmem:[%s3721_s0 + $0x120] sm:$0xff]   ;;  %v3283_v40 = vld [vmem:[%s3721_s0 + $0x50] sm:$0xff]   ;;  %v3282_v42 = vld [vmem:[%s3721_s0 + $0x128] sm:$0xff]  }
  0x12   : > { %s306_s12 = scalar_select %p305_p7, %s3337_s18, 6  ;;  %v3285_v43 = vld [vmem:[%s3721_s0 + $0x130] sm:$0xff]   ;;  %v3284_v45 = vld [vmem:[%s3721_s0 + $0x58] sm:$0xff]   ;;  %v3287_v46 = vld [vmem:[%s3721_s0 + $0x60] sm:$0xff]  }
  0x13   : > { %s319_s7 = sadd.s32 %s3205_s28, %s2627_s29  ;;  %s3742_s17 = smov (!%p326_p8, %s323_s17), 6  ;;  %v3286_v48 = vld [vmem:[%s3721_s0 + $0x138] sm:$0xff]   ;;  %v3289_v49 = vld [vmem:[%s3721_s0 + $0x140] sm:$0xff]   ;;  %v3288_v51 = vld [vmem:[%s3721_s0 + $0x68] sm:$0xff]  }
  0x14   : > { %s2628_s8 = sshll.u32 %s319_s7, 2  ;;  %s2625_s15 = sshll.u32 %s306_s12, 1  ;;  %v3291_v52 = vld [vmem:[%s3721_s0 + $0x70] sm:$0xff]   ;;  %v3290_v54 = vld [vmem:[%s3721_s0 + $0x148] sm:$0xff]   ;;  %v3292_v57 = vld [vmem:[%s3721_s0 + $0x78] sm:$0xff]  }
  0x15   : > { %s321_s11 = scalar_lea.vmem %s3724_s3, %s2628_s8  ;;  %s309_s16 = sadd.s32 %s3205_s28, %s2625_s15  ;;  %v3293_v55 = vld [vmem:[%s3721_s0 + $0x150] sm:$0xff]   ;;  %v3295_v58 = vld [vmem:[%s3721_s0 + $0x80] sm:$0xff]   ;;  %v3294_v59 = vld [vmem:[%s3721_s0 + $0x158] sm:$0xff]  }
  0x16   : > { %v3442_v2 = vld [vmem:[%s321_s11] sm:$0xff]   ;;  %s2626_s25 = sshll.u32 %s309_s16, 2  ;;  %s2629_s7 = sshll.u32 %s3742_s17, 1  ;;  %v3296_v62 = vld [vmem:[%s3721_s0 + $0x88] sm:$0xff]   ;;  %v3299_v63 = vld [vmem:[%s3721_s0 + $0x90] sm:$0xff]  }
  0x17   : > { %1364 = vrot.lane.b32.xlu0 %v3442_v2, %s3355_s13  ;;  %1441 = vrot.lane.b32.xlu1 %v3442_v2, %s3356_s14  ;;  %s311_s29 = scalar_lea.vmem %s3723_s2, %s2626_s25  ;;  %s330_s8 = sadd.s32 %s3205_s28, %s2629_s7  ;;  %v3297_v60 = vld [vmem:[%s3721_s0 + $0x160] sm:$0xff]   ;;  %v3298_v1 = vld [vmem:[%s3721_s0 + $0x168] sm:$0xff]  }
  0x18   : > { %v3259_v3 = vld [vmem:[%s311_s29] sm:$0xff]   ;;  %s2630_s10 = sshll.u32 %s330_s8, 2  ;;  %s3360_s16 = smov 126  }
  0x19   : > { %s332_s15 = scalar_lea.vmem %s3725_s4, %s2630_s10  ;;  %s3361_s25 = smov 112  }
  0x1a   : > { %v3460_v4 = vld [vmem:[%s332_s15] sm:$0xff]   ;;  %s3744_s18 = smov (!%p336_p9, %s3337_s18), 4  ;;  %s3206_s27 = smul.u32 20, %s3738_s19 }
  0x1b   : > { %1518 = vrot.lane.b32.xlu1 %v3442_v2, %s3357_s30  ;;  %374 = vrot.lane.b32.xlu0 %v3259_v3, %s3358_s6  ;;  %s2631_s29 = sshll.u32 %s3744_s18, 2 }
  0x1f   : > { %1595 = vrot.lane.b32.xlu1 %v3442_v2, %s3359_s9  ;;  %514 = vrot.lane.b32.xlu0 %v3259_v3, %s3360_s16 }
  0x23   : > { %1672 = vrot.lane.b32.xlu1 %v3442_v2, %s3361_s25  ;;  %591 = vrot.lane.b32.xlu0 %v3259_v3, %s3362_s26 }
  0x27   : > { %745 = vrot.lane.b32.xlu1 %v3259_v3, %s3356_s14  ;;  %668 = vrot.lane.b32.xlu0 %v3259_v3, %s3355_s13 }
  0x2b   : > { %822 = vrot.lane.b32.xlu1 %v3259_v3, %s3357_s30  ;;  %1829 = vrot.lane.b32.xlu0 %v3460_v4, %s3358_s6 }
  0x2f   : > { %899 = vrot.lane.b32.xlu1 %v3259_v3, %s3359_s9  ;;  %1906 = vrot.lane.b32.xlu0 %v3460_v4, %s3360_s16 }
  0x33   : > { %976 = vrot.lane.b32.xlu1 %v3259_v3, %s3361_s25  ;;  %1983 = vrot.lane.b32.xlu0 %v3460_v4, %s3362_s26 }
  0x37   : > { %2137 = vrot.lane.b32.xlu1 %v3460_v4, %s3356_s14  ;;  %2060 = vrot.lane.b32.xlu0 %v3460_v4, %s3355_s13 }
  0x3b   : > { %2214 = vrot.lane.b32.xlu1 %v3460_v4, %s3357_s30  ;;  %1133 = vrot.lane.b32.xlu0 %v3442_v2, %s3358_s6  ;;  %s340_s30 = sadd.s32 %s3206_s27, %s2631_s29 }
  0x3c   : > { %s2632_s6 = sshll.u32 %s340_s30, 2 }
  0x3d   : > { %s342_s18 = scalar_lea.vmem %s3726_s5, %s2632_s6 }
  0x3f   : > { %2291 = vrot.lane.b32.xlu1 %v3460_v4, %s3359_s9  ;;  %1210 = vrot.lane.b32.xlu0 %v3442_v2, %s3360_s16 }
  0x43   : > { %2368 = vrot.lane.b32.xlu1 %v3460_v4, %s3361_s25  ;;  %1287 = vrot.lane.b32.xlu0 %v3442_v2, %s3362_s26 }
  0x47   : > { %2441 = vperm.xlu1 %3257, %v2431_v25   ;;  %2436 = vperm.xlu0 %3256, %v2430_v28  }
  0x4b   : > { %2446 = vperm.xlu1 %3257, %v2432_v29   ;;  %2451 = vperm.xlu0 %3256, %v2433_v32  }
  0x89   : > { %v1365_v5 = vpop.permute.xlu0 %1364  ;;  %v1442_v6 = vpop.permute.xlu1 %1441 }
  0x8a   : > { %3017 = vmatprep.subr.bf16.mxu0 %v1365_v5 }
  0x8b   : > { %3018 = vmatpush3.bf16.msra.mxu0 %v1365_v5  ;;  %v3303_v5 = vld [vmem:[%s3721_s0 + $0xa0] sm:$0xff]  }
  0x8c   : > { %3023 = vmatprep.subr.bf16.mxu0 %v1442_v6 }
  0x8d   : > { %v1519_v9 = vpop.permute.xlu1 %1518  ;;  %v375_v10 = vpop.permute.xlu0 %374 }
  0x8e   : > { %3020 = vmatmul.mubr.msk.bf16.vlgmr.msra.gmra.mrb[0].mxu0 %vm377_vm0, %v3262_v7  ;;  %2939 = vmatprep.subr.bf16.mxu1 %v375_v10  ;;  %v3302_v7 = vld [vmem:[%s3721_s0 + $0x178] sm:$0xff]  }
  0x8f   : > { %3024 = vmatpush3.bf16.msra.mxu0 %v1442_v6  ;;  %3025 = vmatprep.mubr.msk.bf16.mxu0 %vm377_vm0, %v3265_v8  ;;  %v3305_v8 = vld [vmem:[%s3721_s0 + $0x180] sm:$0xff]  }
  0x90   : > { %3029 = vmatprep.subr.bf16.mxu0 %v1519_v9  ;;  %2940 = vmatpush3.bf16.msra.mxu1 %v375_v10  ;;  %v3304_v10 = vld [vmem:[%s3721_s0 + $0xa8] sm:$0xff]  }
  0x91   : > { %2945 = vmatprep.subr.bf16.mxu1 %v3259_v3  ;;  %v515_v13 = vpop.permute.xlu0 %514  ;;  %v1596_v16 = vpop.permute.xlu1 %1595 }
  0x93   : > { %2942 = vmatmul.mubr.msk.bf16.vlgmr.msra.gmra.mrb[0].mxu1 %vm377_vm0, %v3264_v11  ;;  %v3307_v11 = vld [vmem:[%s3721_s0 + $0xb0] sm:$0xff]  }
  0x94   : > { %2946 = vmatpush3.bf16.msra.mxu1 %v3259_v3  ;;  %2947 = vmatprep.mubr.msk.bf16.mxu1 %vm377_vm0, %v3267_v12  ;;  %v3301_v3 = vld [vmem:[%s3721_s0 + $0x170] sm:$0xff]  }
  0x95   : > { %2951 = vmatprep.subr.bf16.mxu1 %v515_v13  ;;  %v592_v19 = vpop.permute.xlu0 %591  ;;  %v1673_v22 = vpop.permute.xlu1 %1672 }
  0x99   : > { %v669_v26 = vpop.permute.xlu0 %668  ;;  %v746_v35 = vpop.permute.xlu1 %745 }
  0x9a   : > { %3026 = vmatmul.mubr.msk.bf16.vlgmr.msra.gmra.mrb[0].mxu0 %vm377_vm0, %v3266_v14  ;;  %v3309_v14 = vld [vmem:[%s3721_s0 + $0x190] sm:$0xff]  }
  0x9b   : > { %3030 = vmatpush3.bf16.msra.mxu0 %v1519_v9  ;;  %3031 = vmatprep.mubr.msk.bf16.mxu0 %vm377_vm0, %v3269_v15 }
  0x9c   : > { %3035 = vmatprep.subr.bf16.mxu0 %v1596_v16 }
  0x9d   : > { %v1830_v38 = vpop.permute.xlu0 %1829  ;;  %v823_v41 = vpop.permute.xlu1 %822 }
  0x9f   : > { %2948 = vmatmul.mubr.msk.bf16.vlgmr.msra.gmra.mrb[0].mxu1 %vm377_vm0, %v3268_v17  ;;  %v3311_v17 = vld [vmem:[%s3721_s0 + $0xc0] sm:$0xff]  }
  0xa0   : > { %2952 = vmatpush3.bf16.msra.mxu1 %v515_v13  ;;  %2953 = vmatprep.mubr.msk.bf16.mxu1 %vm377_vm0, %v3271_v18  ;;  %v3306_v13 = vld [vmem:[%s3721_s0 + $0x188] sm:$0xff]   ;;  %v3310_v18 = vld [vmem:[%s3721_s0 + $0x198] sm:$0xff]  }
  0xa1   : > { %2957 = vmatprep.subr.bf16.mxu1 %v592_v19  ;;  %v1907_v44 = vpop.permute.xlu0 %1906  ;;  %v900_v47 = vpop.permute.xlu1 %899 }
  0xa5   : > { %v1984_v50 = vpop.permute.xlu0 %1983  ;;  %v977_v53 = vpop.permute.xlu1 %976 }
  0xa6   : > { %3032 = vmatmul.mubr.msk.bf16.vlgmr.msra.gmra.mrb[0].mxu0 %vm377_vm0, %v3270_v20  ;;  %v3312_v20 = vld [vmem:[%s3721_s0 + $0xc8] sm:$0xff]  }
  0xa7   : > { %3036 = vmatpush3.bf16.msra.mxu0 %v1596_v16  ;;  %3037 = vmatprep.mubr.msk.bf16.mxu0 %vm377_vm0, %v3273_v21  ;;  %v3308_v16 = vld [vmem:[%s3721_s0 + $0xb8] sm:$0xff]   ;;  %v3314_v21 = vld [vmem:[%s3721_s0 + $0x1a8] sm:$0xff]  }
  0xa8   : > { %3041 = vmatprep.subr.bf16.mxu0 %v1673_v22 }
  0xa9   : > { %v2061_v56 = vpop.permute.xlu0 %2060  ;;  %v2138_v61 = vpop.permute.xlu1 %2137 }
  0xab   : > { %2954 = vmatmul.mubr.msk.bf16.vlgmr.msra.gmra.mrb[0].mxu1 %vm377_vm0, %v3272_v23 }
  0xac   : > { %2958 = vmatpush3.bf16.msra.mxu1 %v592_v19  ;;  %2959 = vmatprep.mubr.msk.bf16.mxu1 %vm377_vm0, %v3275_v24  ;;  %v3313_v19 = vld [vmem:[%s3721_s0 + $0x1a0] sm:$0xff]  }
  0xad   : > { %2963 = vmatprep.subr.bf16.mxu1 %v669_v26  ;;  %v1134_v0 = vpop.permute.xlu0 %1133 }
  0xb1   : > { %v1211_v6 = vpop.permute.xlu0 %1210 }
  0xb2   : > { %3038 = vmatmul.mubr.msk.bf16.vlgmr.msra.gmra.mrb[0].mxu0 %vm377_vm0, %v3274_v30 }
  0xb3   : > { %3042 = vmatpush3.bf16.msra.mxu0 %v1673_v22  ;;  %3043 = vmatprep.mubr.msk.bf16.mxu0 %vm377_vm0, %v3277_v31 }
  0xb4   : > { %3047 = vmatprep.subr.bf16.mxu0 %v3460_v4 }
  0xb5   : > { %v1288_v12 = vpop.permute.xlu0 %1287 }
  0xb7   : > { %2960 = vmatmul.mubr.msk.bf16.vlgmr.msra.gmra.mrb[0].mxu1 %vm377_vm0, %v3276_v33 }
  0xb8   : > { %2964 = vmatpush3.bf16.msra.mxu1 %v669_v26  ;;  %2965 = vmatprep.mubr.msk.bf16.mxu1 %vm377_vm0, %v3279_v34 }
  0xb9   : > { %2969 = vmatprep.subr.bf16.mxu1 %v746_v35 }
  0xbe   : > { %3044 = vmatmul.mubr.msk.bf16.vlgmr.msra.gmra.mrb[0].mxu0 %vm377_vm0, %v3278_v36 }
  0xbf   : > { %3048 = vmatpush3.bf16.msra.mxu0 %v3460_v4  ;;  %3049 = vmatprep.mubr.msk.bf16.mxu0 %vm377_vm0, %v3281_v37  ;;  %v2215_v4 = vpop.permute.xlu1 %2214 }
  0xc0   : > { %3053 = vmatprep.subr.bf16.mxu0 %v1830_v38 }
  0xc3   : > { %2966 = vmatmul.mubr.msk.bf16.vlgmr.msra.gmra.mrb[0].mxu1 %vm377_vm0, %v3280_v39  ;;  %v2292_v9 = vpop.permute.xlu1 %2291 }
  0xc4   : > { %2970 = vmatpush3.bf16.msra.mxu1 %v746_v35  ;;  %2971 = vmatprep.mubr.msk.bf16.mxu1 %vm377_vm0, %v3283_v40 }
  0xc5   : > { %2975 = vmatprep.subr.bf16.mxu1 %v823_v41 }
  0xc6   : > { %v2437_v27 = vpop.permute.xlu0 %2436 }
  0xc7   : > { %v2369_v15 = vpop.permute.xlu1 %2368 }
  0xca   : > { %3050 = vmatmul.mubr.msk.bf16.vlgmr.msra.gmra.mrb[0].mxu0 %vm377_vm0, %v3282_v42 }
  0xcb   : > { %3054 = vmatpush3.bf16.msra.mxu0 %v1830_v38  ;;  %3055 = vmatprep.mubr.msk.bf16.mxu0 %vm377_vm0, %v3285_v43  ;;  %v2442_v23 = vpop.permute.xlu1 %2441  ;;  %v2452_v38 = vpop.permute.xlu0 %2451 }
  0xcc   : > { %3059 = vmatprep.subr.bf16.mxu0 %v1907_v44 }
  0xcf   : > { %2972 = vmatmul.mubr.msk.bf16.vlgmr.msra.gmra.mrb[0].mxu1 %vm377_vm0, %v3284_v45  ;;  %v2447_v29 = vpop.permute.xlu1 %2446 }
  0xd0   : > { %2976 = vmatpush3.bf16.msra.mxu1 %v823_v41  ;;  %2977 = vmatprep.mubr.msk.bf16.mxu1 %vm377_vm0, %v3287_v46 }
  0xd1   : > { %2981 = vmatprep.subr.bf16.mxu1 %v900_v47 }
  0xd6   : > { %3056 = vmatmul.mubr.msk.bf16.vlgmr.msra.gmra.mrb[0].mxu0 %vm377_vm0, %v3286_v48 }
  0xd7   : > { %3060 = vmatpush3.bf16.msra.mxu0 %v1907_v44  ;;  %3061 = vmatprep.mubr.msk.bf16.mxu0 %vm377_vm0, %v3289_v49 }
  0xd8   : > { %3065 = vmatprep.subr.bf16.mxu0 %v1984_v50 }
  0xdb   : > { %2978 = vmatmul.mubr.msk.bf16.vlgmr.msra.gmra.mrb[0].mxu1 %vm377_vm0, %v3288_v51 }
  0xdc   : > { %2982 = vmatpush3.bf16.msra.mxu1 %v900_v47  ;;  %2983 = vmatprep.mubr.msk.bf16.mxu1 %vm377_vm0, %v3291_v52 }
  0xdd   : > { %2987 = vmatprep.subr.bf16.mxu1 %v977_v53 }
  0xe2   : > { %3062 = vmatmul.mubr.msk.bf16.vlgmr.msra.gmra.mrb[0].mxu0 %vm377_vm0, %v3290_v54 }
  0xe3   : > { %3066 = vmatpush3.bf16.msra.mxu0 %v1984_v50  ;;  %3067 = vmatprep.mubr.msk.bf16.mxu0 %vm377_vm0, %v3293_v55 }
  0xe4   : > { %3071 = vmatprep.subr.bf16.mxu0 %v2061_v56 }
  0xe7   : > { %2984 = vmatmul.mubr.msk.bf16.vlgmr.msra.gmra.mrb[0].mxu1 %vm377_vm0, %v3292_v57 }
  0xe8   : > { %2988 = vmatpush3.bf16.msra.mxu1 %v977_v53  ;;  %2989 = vmatprep.mubr.msk.bf16.mxu1 %vm377_vm0, %v3295_v58 }
  0xe9   : > { %2993 = vmatprep.subr.bf16.mxu1 %v3442_v2 }
  0xee   : > { %3068 = vmatmul.mubr.msk.bf16.vlgmr.msra.gmra.mrb[0].mxu0 %vm377_vm0, %v3294_v59 }
  0xef   : > { %3072 = vmatpush3.bf16.msra.mxu0 %v2061_v56  ;;  %3073 = vmatprep.mubr.msk.bf16.mxu0 %vm377_vm0, %v3297_v60 }
  0xf0   : > { %3077 = vmatprep.subr.bf16.mxu0 %v2138_v61 }
  0xf3   : > { %2990 = vmatmul.mubr.msk.bf16.vlgmr.msra.gmra.mrb[0].mxu1 %vm377_vm0, %v3296_v62 }
  0xf4   : > { %2994 = vmatpush3.bf16.msra.mxu1 %v3442_v2  ;;  %2995 = vmatprep.mubr.msk.bf16.mxu1 %vm377_vm0, %v3299_v63  ;;  %v3300_v2 = vld [vmem:[%s3721_s0 + $0x98] sm:$0xff]  }
  0xf5   : > { %2999 = vmatprep.subr.bf16.mxu1 %v1134_v0 }
  0xfa   : > { %3074 = vmatmul.mubr.msk.bf16.vlgmr.msra.gmra.mrb[0].mxu0 %vm377_vm0, %v3298_v1 }
  0xfb   : > { %3078 = vmatpush3.bf16.msra.mxu0 %v2138_v61  ;;  %3079 = vmatprep.mubr.msk.bf16.mxu0 %vm377_vm0, %v3301_v3 }
  0xfc   : > { %3083 = vmatprep.subr.bf16.mxu0 %v2215_v4 }
  0xff   : > { %2996 = vmatmul.mubr.msk.bf16.vlgmr.msra.gmra.mrb[0].mxu1 %vm377_vm0, %v3300_v2 }
 0x100   : > { %3000 = vmatpush3.bf16.msra.mxu1 %v1134_v0  ;;  %3001 = vmatprep.mubr.msk.bf16.mxu1 %vm377_vm0, %v3303_v5 }
 0x101   : > { %3005 = vmatprep.subr.bf16.mxu1 %v1211_v6 }
 0x106   : > { %3080 = vmatmul.mubr.msk.bf16.vlgmr.msra.gmra.mrb[0].mxu0 %vm377_vm0, %v3302_v7 }
 0x107   : > { %3084 = vmatpush3.bf16.msra.mxu0 %v2215_v4  ;;  %3085 = vmatprep.mubr.msk.bf16.mxu0 %vm377_vm0, %v3305_v8 }
 0x108   : > { %3089 = vmatprep.subr.bf16.mxu0 %v2292_v9 }
 0x10b   : > { %3002 = vmatmul.mubr.msk.bf16.vlgmr.msra.gmra.mrb[0].mxu1 %vm377_vm0, %v3304_v10 }
 0x10c   : > { %3006 = vmatpush3.bf16.msra.mxu1 %v1211_v6  ;;  %3007 = vmatprep.mubr.msk.bf16.mxu1 %vm377_vm0, %v3307_v11 }
 0x10d   : > { %3011 = vmatprep.subr.bf16.mxu1 %v1288_v12 }
 0x112   : > { %3086 = vmatmul.mubr.msk.bf16.vlgmr.msra.gmra.mrb[0].mxu0 %vm377_vm0, %v3306_v13 }
 0x113   : > { %3090 = vmatpush3.bf16.msra.mxu0 %v2292_v9  ;;  %3091 = vmatprep.mubr.msk.bf16.mxu0 %vm377_vm0, %v3309_v14 }
 0x114   : > { %3095 = vmatprep.subr.bf16.mxu0 %v2369_v15 }
 0x117   : > { %3008 = vmatmul.mubr.msk.bf16.vlgmr.msra.gmra.mrb[0].mxu1 %vm377_vm0, %v3308_v16 }
 0x118   : > { %3012 = vmatpush3.bf16.msra.mxu1 %v1288_v12  ;;  %3013 = vmatprep.mubr.msk.bf16.mxu1 %vm377_vm0, %v3311_v17 }
 0x11e   : > { %3092 = vmatmul.mubr.msk.bf16.vlgmr.msra.gmra.mrb[0].mxu0 %vm377_vm0, %v3310_v18 }
 0x11f   : > { %3096 = vmatpush3.bf16.msra.mxu0 %v2369_v15  ;;  %3097 = vmatprep.mubr.msk.bf16.mxu0 %vm377_vm0, %v3313_v19 }
 0x123   : > { %3014 = vmatmul.mubr.msk.bf16.vlgmr.msra.gmra.mrb[0].mxu1 %vm377_vm0, %v3312_v20 }
 0x12a   : > { %3098 = vmatmul.mubr.msk.bf16.vlgmr.msra.gmra.mrb[0].mxu0 %vm377_vm0, %v3314_v21 }
 0x1f6   : > { %v3015_v22 = vpop.f32.mrb[0].mxu1 }
 0x1f7   : > { %v1330_v24 = vpop.f32.mrb[1].mxu1 }
 0x1f8   : > { %v3016_v25 = vpop.f32.mrb[2].mxu1 }
 0x1f9   : > { %v1333_v26 = vpop.f32.mrb[3].mxu1 }
 0x1fd   : > { %v3099_v28 = vpop.f32.mrb[0].mxu0 }
 0x1fe   : > { %v3101_v30 = vadd.f32 %v3099_v28, %v3015_v22  ;;  %v2411_v31 = vpop.f32.mrb[1].mxu0 }
 0x1ff   : > { %v3102_v32 = vadd.f32 %v2411_v31, %v1330_v24  ;;  %v3100_v33 = vpop.f32.mrb[2].mxu0 }
 0x200   : > { %v2456_v34 = vadd.f32 %v3101_v30, %v2447_v29  ;;  %v3103_v35 = vadd.f32 %v3100_v33, %v3016_v25  ;;  %v2414_v36 = vpop.f32.mrb[3].mxu0 }
 0x201   : > { %v2454_v37 = vadd.f32 %v3102_v32, %v2437_v27  ;;  %v3104_v39 = vadd.f32 %v2414_v36, %v1333_v26 }
 0x202   : > { %v2460_v40 = vmax.f32 %v2456_v34, 0.0  ;;  %v2457_v41 = vadd.f32 %v3103_v35, %v2452_v38 }
 0x203   : > { %v2458_v42 = vmax.f32 %v2454_v37, 0.0  ;;  %v2455_v43 = vadd.f32 %v3104_v39, %v2442_v23 }
 0x204   : > { %v2856_v44 = vpack.c.bf16 %v2460_v40, %v2460_v40  ;;  %v2461_v45 = vmax.f32 %v2457_v41, 0.0 }
 0x205   : > { %v2854_v46 = vpack.c.bf16 %v2458_v42, %v2458_v42  ;;  %v2459_v47 = vmax.f32 %v2455_v43, 0.0 }
 0x206   : > { %2481 = vst.msk [vmem:[%s342_s18 + $0x8] sm:$0xf] %vm2478_vm1, %v2856_v44  ;;  %v2857_v48 = vpack.c.bf16 %v2461_v45, %v2461_v45 }
 0x207   : > { %2479 = vst.msk [vmem:[%s342_s18] sm:$0xf] %vm2478_vm1, %v2854_v46  ;;  %v2855_v49 = vpack.c.bf16 %v2459_v47, %v2459_v47 }
 0x208   : > { %2482 = vst.msk [vmem:[%s342_s18 + $0xc] sm:$0xf] %vm2478_vm1, %v2857_v48 }
 0x209   : > { %2480 = vst.msk [vmem:[%s342_s18 + $0x4] sm:$0xf] %vm2478_vm1, %v2855_v49 }
 0x20a PF: > { %s15_s22 = sadd.s32 1, %s3353_s22   ;;  %s3727_s18 = smov %s3345_s20 }
 0x20b   : > { %p12_p10 = scmp.ge.s32.totalorder %s15_s22, 12   ;;  %s3728_s19 = smov %s3349_s21 }
 0x20c   : > { %s3729_s20 = smov %s3732_s23  ;;  %s3730_s21 = smov %s3736_s24 }
 0x20d   :  { %14 = sbr.rel (!%p12_p10) target bundleno = 3 (0x3), region = 102 }

// kernel: forward.9
= control target key start
LH: loop header
LB: loop body
LE: loop exit
PB: predicated region body
PF: predicated region fallthrough
CT: control target
= control target key end

     0   :  { %s5247_s18 = smov 0   ;;  %s5249_s19 = smov 0   ;;  %s5920_s0 = inlined_call_operand.vmem [shape: bf16[27,64,32], index: 0, kind: input, shape index: {}]   ;;  %s5921_s1 = inlined_call_operand.vmem [shape: f32[64,1], index: 1, kind: input, shape index: {}]   ;;  %s5922_s2 = inlined_call_operand.vmem [shape: bf16[2,5,32,37], index: 2, kind: input, shape index: {}, may-alias: {2,3,4}]   ;;  %s5923_s3 = inlined_call_operand.vmem [shape: bf16[2,5,32,37], index: 3, kind: input, shape index: {}, may-alias: {2,3,4}]   ;;  %s5924_s4 = inlined_call_operand.vmem [shape: bf16[2,5,32,37], index: 4, kind: input, shape index: {}, may-alias: {2,3,4}]   ;;  %s5925_s5 = inlined_call_operand.vmem [shape: bf16[2,3,64,25], index: 5, kind: output, shape index: {}]  }
   0x1   :  { %s5251_s20 = smov 0   ;;  %s5253_s21 = smov 0  }
   0x2   :  { %s5255_s22 = smov 0  }
   0x3 LB: > { %s24_s23 = sadd.s32 1, %s5198_s20  ;;  %s27_s24 = sadd.s32 1, %s5202_s21  ;;  %s5206_s22 = sphi %s5255_s22, %s15_s22   ;;  %s5202_s21 = sphi %s5253_s21, %s5929_s21   ;;  %s5198_s20 = sphi %s5251_s20, %s5928_s20   ;;  %s5194_s19 = sphi %s5249_s19, %s5927_s19   ;;  %s5190_s18 = sphi %s5247_s18, %s5926_s18  }
   0x4   : > { %p25_p0 = scmp.ge.s32.totalorder %s24_s23, 3  ;;  %p3844_p1 = scmp.ge.s32.totalorder %s5206_s22, 1 }
   0x5   : > { %p247_p2 = scmp.lt.s32.totalorder %s5206_s22, 7 }
   0x6   : > { %s5931_s23 = smov (%p25_p0, %s24_s23), 0  ;;  %s5933_s24 = smov (!%p25_p0, %s27_s24), %s5202_s21 }
   0x7   : > { %p248_p3 = pnand %p3844_p1, %p247_p2  ;;  %p29_p4 = scmp.ge.s32.totalorder %s5933_s24, 2 }
   0x8   : > { %p303_p5 = scmp.lt.s32.totalorder (!%p248_p3), %s5194_s19, 1  ;;  %p305_p6 = scmp.lt.s32.totalorder (!%p248_p3), %s5190_s18, 4  ;;  %v5058_v0 = vld [vmem:[%s5920_s0 + $0x20] sm:$0xff] (!%p248_p3)   ;;  %vm409_vm0 = vcmask (!%p248_p3), 261120   ;;  %v5059_v10 = vld [vmem:[%s5920_s0 + $0x28] sm:$0xff] (!%p248_p3)   ;;  %v5062_v12 = vld [vmem:[%s5920_s0 + $0x30] sm:$0xff] (!%p248_p3)  }
   0x9   : > { %s5935_s24 = smov (%p29_p4, %s5933_s24), 0  ;;  %251 = sbr.rel (%p248_p3) target bundleno = 589 (0x24d), region = 40 }
   0xa   : > { %s312_s25 = sadd.s32 (!%p248_p3), 1, %s5190_s18  ;;  %4467 = vmatprep.mubr.msk.bf16.mxu1 (!%p248_p3), %vm409_vm0, %v5058_v0  ;;  %s5208_s11 = smov (!%p248_p3), 127   ;;  %v5060_v3 = vld [vmem:[%s5920_s0 + $0x1a0] sm:$0xff] (!%p248_p3)   ;;  %v5061_v15 = vld [vmem:[%s5920_s0 + $0x1a8] sm:$0xff] (!%p248_p3)   ;;  %v5063_v18 = vld [vmem:[%s5920_s0 + $0x38] sm:$0xff] (!%p248_p3)   ;;  %vm3694_vm1 = vcmask (!%p248_p3), 199680  }
   0xb   : > { %p315_p7 = scmp.lt.s32.totalorder (!%p248_p3), %s312_s25, 4  ;;  %s323_s17 = sadd.s32 (!%p248_p3), 2, %s5190_s18  ;;  %4623 = vmatprep.mubr.msk.bf16.mxu0 (!%p248_p3), %vm409_vm0, %v5060_v3  ;;  %v5065_v17 = vld [vmem:[%s5920_s0 + $0x1c0] sm:$0xff] (!%p248_p3)   ;;  %v5066_v22 = vld [vmem:[%s5920_s0 + $0x8] sm:$0xff] (!%p248_p3)   ;;  %v5068_v23 = vld [vmem:[%s5920_s0 + $0x10] sm:$0xff] (!%p248_p3)  }
   0xc   : > { %p326_p8 = scmp.lt.s32.totalorder (!%p248_p3), %s323_s17, 4  ;;  %s5210_s8 = smov (!%p248_p3), 121   ;;  %v5064_v19 = vld [vmem:[%s5920_s0] sm:$0xff] (!%p248_p3)   ;;  %v5067_v24 = vld [vmem:[%s5920_s0 + $0x1c8] sm:$0xff] (!%p248_p3)   ;;  %v5069_v25 = vld [vmem:[%s5920_s0 + $0x1d0] sm:$0xff] (!%p248_p3)  }
   0xd   : > { %s5211_s13 = smov (!%p248_p3), 118   ;;  %s5212_s14 = smov (!%p248_p3), 126   ;;  %v5070_v29 = vld [vmem:[%s5920_s0 + $0x18] sm:$0xff] (!%p248_p3)   ;;  %v5072_v31 = vld [vmem:[%s5920_s0 + $0x40] sm:$0xff] (!%p248_p3)   ;;  %v5074_v34 = vld [vmem:[%s5920_s0 + $0x48] sm:$0xff] (!%p248_p3)  }
   0xe   : > { %v5071_v32 = vld [vmem:[%s5920_s0 + $0x1d8] sm:$0xff] (!%p248_p3)   ;;  %v5073_v33 = vld [vmem:[%s5920_s0 + $0x1e0] sm:$0xff] (!%p248_p3)   ;;  %v5076_v35 = vld [vmem:[%s5920_s0 + $0x50] sm:$0xff] (!%p248_p3)   ;;  %p336_p9 = scmp.lt.s32.totalorder (!%p248_p3), %s5190_s18, 2 }
   0xf   : > { %v5075_v36 = vld [vmem:[%s5920_s0 + $0x1e8] sm:$0xff] (!%p248_p3)   ;;  %v5077_v37 = vld [vmem:[%s5920_s0 + $0x1f0] sm:$0xff] (!%p248_p3)   ;;  %v5078_v41 = vld [vmem:[%s5920_s0 + $0x58] sm:$0xff] (!%p248_p3)  }
  0x10   : > { %s5937_s19 = smov (!%p303_p5, %s5194_s19), 1  ;;  %s5939_s25 = smov (!%p315_p7, %s312_s25), 4  ;;  %v5080_v43 = vld [vmem:[%s5920_s0 + $0x60] sm:$0xff]   ;;  %v5079_v44 = vld [vmem:[%s5920_s0 + $0x1f8] sm:$0xff]   ;;  %v5082_v46 = vld [vmem:[%s5920_s0 + $0x68] sm:$0xff]  }
  0x11   : > { %s306_s26 = scalar_select %p305_p6, %s5190_s18, 4  ;;  %v5081_v45 = vld [vmem:[%s5920_s0 + $0x200] sm:$0xff]   ;;  %v5084_v47 = vld [vmem:[%s5920_s0 + $0x70] sm:$0xff]   ;;  %v5083_v48 = vld [vmem:[%s5920_s0 + $0x208] sm:$0xff]  }
  0x12   : > { %s5285_s27 = smul.u32 20, %s5937_s19  ;;  %s3847_s12 = sshll.u32 %s5939_s25, 2  ;;  %v5085_v50 = vld [vmem:[%s5920_s0 + $0x210] sm:$0xff]   ;;  %v5086_v53 = vld [vmem:[%s5920_s0 + $0x78] sm:$0xff]   ;;  %v5088_v54 = vld [vmem:[%s5920_s0 + $0x80] sm:$0xff]  }
  0x13   : > { %s3845_s28 = sshll.u32 %s306_s26, 2  ;;  %s5941_s17 = smov (!%p326_p8, %s323_s17), 4  ;;  %v5087_v55 = vld [vmem:[%s5920_s0 + $0x218] sm:$0xff]   ;;  %v5089_v56 = vld [vmem:[%s5920_s0 + $0x220] sm:$0xff]   ;;  %v5090_v57 = vld [vmem:[%s5920_s0 + $0x88] sm:$0xff]  }
  0x14   : > { %s309_s6 = sadd.s32 %s5285_s27, %s3845_s28  ;;  %s319_s15 = sadd.s32 %s5285_s27, %s3847_s12  ;;  %v5092_v58 = vld [vmem:[%s5920_s0 + $0x90] sm:$0xff]   ;;  %v5091_v59 = vld [vmem:[%s5920_s0 + $0x228] sm:$0xff]   ;;  %v5094_v63 = vld [vmem:[%s5920_s0 + $0x98] sm:$0xff]  }
  0x15   : > { %s3846_s7 = sshll.u32 %s309_s6, 2  ;;  %s3848_s16 = sshll.u32 %s319_s15, 2  ;;  %v5093_v60 = vld [vmem:[%s5920_s0 + $0x230] sm:$0xff]   ;;  %v5097_v3 = vld [vmem:[%s5920_s0 + $0x240] sm:$0xff]  }
  0x16   : > { %s311_s10 = scalar_lea.vmem %s5922_s2, %s3846_s7  ;;  %s5312_s29 = scalar_lea.vmem %s5923_s3, %s3848_s16 }
  0x17   : > { %v5295_v1 = vld [vmem:[%s311_s10] sm:$0xff]   ;;  %v5297_v2 = vld [vmem:[%s311_s10 + $0x8] sm:$0xff]   ;;  %s5209_s25 = smov 122   ;;  %s3849_s30 = sshll.u32 %s5941_s17, 2 }
  0x18   : > { %403 = vrot.lane.b32.xlu0 %v5295_v1, %s5208_s11  ;;  %405 = vrot.lane.b32.xlu1 %v5297_v2, %s5208_s11  ;;  %v5315_v4 = vld [vmem:[%s5312_s29] sm:$0xff]   ;;  %v5055_v5 = vld [vmem:[%s5312_s29 + $0x8] sm:$0xff]   ;;  %s330_s6 = sadd.s32 %s5285_s27, %s3849_s30  ;;  %s5213_s27 = smov 117  }
  0x19   : > { %s3850_s7 = sshll.u32 %s330_s6, 2  ;;  %s5214_s15 = smov 123  }
  0x1a   : > { %s332_s12 = scalar_lea.vmem %s5924_s4, %s3850_s7  ;;  %s5215_s16 = smov 116  }
  0x1b   : > { %v5351_v6 = vld [vmem:[%s332_s12] sm:$0xff]   ;;  %v5355_v7 = vld [vmem:[%s332_s12 + $0x8] sm:$0xff]   ;;  %s5943_s18 = smov (!%p336_p9, %s5190_s18), 2  ;;  %s5000_s26 = smul.u32 24, %s5937_s19 }
  0x1c   : > { %1941 = vrot.lane.b32.xlu0 %v5315_v4, %s5209_s25  ;;  %1943 = vrot.lane.b32.xlu1 %v5055_v5, %s5209_s25  ;;  %s3851_s28 = sshll.u32 %s5943_s18, 3 }
  0x20   : > { %2061 = vrot.lane.b32.xlu0 %v5315_v4, %s5210_s8  ;;  %2063 = vrot.lane.b32.xlu1 %v5055_v5, %s5210_s8 }
  0x24   : > { %2181 = vrot.lane.b32.xlu0 %v5315_v4, %s5211_s13  ;;  %615 = vrot.lane.b32.xlu1 %v5295_v1, %s5212_s14 }
  0x28   : > { %2183 = vrot.lane.b32.xlu0 %v5055_v5, %s5211_s13  ;;  %617 = vrot.lane.b32.xlu1 %v5297_v2, %s5212_s14 }
  0x2c   : > { %2301 = vrot.lane.b32.xlu0 %v5315_v4, %s5213_s27  ;;  %735 = vrot.lane.b32.xlu1 %v5295_v1, %s5214_s15 }
  0x30   : > { %2303 = vrot.lane.b32.xlu0 %v5055_v5, %s5213_s27  ;;  %737 = vrot.lane.b32.xlu1 %v5297_v2, %s5214_s15 }
  0x34   : > { %2421 = vrot.lane.b32.xlu0 %v5315_v4, %s5215_s16  ;;  %855 = vrot.lane.b32.xlu1 %v5295_v1, %s5209_s25 }
  0x38   : > { %2423 = vrot.lane.b32.xlu0 %v5055_v5, %s5215_s16  ;;  %857 = vrot.lane.b32.xlu1 %v5297_v2, %s5209_s25 }
  0x3c   : > { %975 = vrot.lane.b32.xlu0 %v5295_v1, %s5210_s8  ;;  %977 = vrot.lane.b32.xlu1 %v5297_v2, %s5210_s8 }
  0x40   : > { %2667 = vrot.lane.b32.xlu0 %v5351_v6, %s5208_s11  ;;  %1095 = vrot.lane.b32.xlu1 %v5295_v1, %s5211_s13 }
  0x44   : > { %2669 = vrot.lane.b32.xlu0 %v5355_v7, %s5208_s11  ;;  %1097 = vrot.lane.b32.xlu1 %v5297_v2, %s5211_s13 }
  0x48   : > { %2787 = vrot.lane.b32.xlu0 %v5351_v6, %s5212_s14  ;;  %1215 = vrot.lane.b32.xlu1 %v5295_v1, %s5213_s27 }
  0x4c   : > { %2789 = vrot.lane.b32.xlu0 %v5355_v7, %s5212_s14  ;;  %1217 = vrot.lane.b32.xlu1 %v5297_v2, %s5213_s27 }
  0x50   : > { %2907 = vrot.lane.b32.xlu0 %v5351_v6, %s5214_s15  ;;  %1335 = vrot.lane.b32.xlu1 %v5295_v1, %s5215_s16 }
  0x54   : > { %2909 = vrot.lane.b32.xlu0 %v5355_v7, %s5214_s15  ;;  %1337 = vrot.lane.b32.xlu1 %v5297_v2, %s5215_s16 }
  0x58   : > { %3027 = vrot.lane.b32.xlu0 %v5351_v6, %s5209_s25  ;;  %3029 = vrot.lane.b32.xlu1 %v5355_v7, %s5209_s25  ;;  %s340_s25 = sadd.s32 %s5000_s26, %s3851_s28 }
  0x59   : > { %s3852_s30 = sshll.u32 %s340_s25, 2 }
  0x5a   : > { %s5887_s6 = scalar_lea.vmem %s5925_s5, %s3852_s30 }
  0x5c   : > { %3147 = vrot.lane.b32.xlu0 %v5351_v6, %s5210_s8  ;;  %1581 = vrot.lane.b32.xlu1 %v5315_v4, %s5208_s11 }
  0x60   : > { %3149 = vrot.lane.b32.xlu0 %v5355_v7, %s5210_s8  ;;  %1583 = vrot.lane.b32.xlu1 %v5055_v5, %s5208_s11 }
  0x64   : > { %3267 = vrot.lane.b32.xlu0 %v5351_v6, %s5211_s13  ;;  %1701 = vrot.lane.b32.xlu1 %v5315_v4, %s5212_s14 }
  0x68   : > { %3269 = vrot.lane.b32.xlu0 %v5355_v7, %s5211_s13  ;;  %1703 = vrot.lane.b32.xlu1 %v5055_v5, %s5212_s14 }
  0x6c   : > { %3387 = vrot.lane.b32.xlu0 %v5351_v6, %s5213_s27  ;;  %1821 = vrot.lane.b32.xlu1 %v5315_v4, %s5214_s15 }
  0x70   : > { %3389 = vrot.lane.b32.xlu0 %v5355_v7, %s5213_s27  ;;  %1823 = vrot.lane.b32.xlu1 %v5055_v5, %s5214_s15  ;;  %v5098_v5 = vld [vmem:[%s5920_s0 + $0xa8] sm:$0xff]  }
  0x74   : > { %3507 = vrot.lane.b32.xlu0 %v5351_v6, %s5215_s16  ;;  %3509 = vrot.lane.b32.xlu1 %v5355_v7, %s5215_s16 }
  0x8a   : > { %v404_v8 = vpop.permute.xlu0 %403  ;;  %v406_v9 = vpop.permute.xlu1 %405 }
  0x8b   : > { %4463 = vmatprep.subr.bf16.mxu1 %v404_v8 }
  0x8c   : > { %4464 = vmatpush3.bf16.msra.mxu1 %v404_v8  ;;  %v5101_v8 = vld [vmem:[%s5920_s0 + $0x250] sm:$0xff]  }
  0x8d   : > { %4465 = vmatprep.subr.bf16.mxu1 %v406_v9 }
  0x8e   : > { %v5413_v11 = vpop.permute.xlu0 %1941  ;;  %v5419_v13 = vpop.permute.xlu1 %1943 }
  0x8f   : > { %4619 = vmatprep.subr.bf16.mxu0 %v5413_v11 }
  0x90   : > { %4466 = vmatpush3.bf16.msra.mxu1 %v406_v9  ;;  %4620 = vmatpush3.bf16.msra.mxu0 %v5413_v11 }
  0x91   : > { %4475 = vmatprep.subr.bf16.mxu1 %v5295_v1  ;;  %4621 = vmatprep.subr.bf16.mxu0 %v5419_v13 }
  0x92   : > { %v2062_v14 = vpop.permute.xlu0 %2061  ;;  %v2064_v16 = vpop.permute.xlu1 %2063 }
  0x93   : > { %4468 = vmatmul.mubr.msk.bf16.vlgmr.msra.gmra.mrb[0].mxu1 %vm409_vm0, %v5059_v10 }
  0x94   : > { %4476 = vmatpush3.bf16.msra.mxu1 %v5295_v1  ;;  %4471 = vmatprep.mubr.msk.bf16.mxu1 %vm409_vm0, %v5062_v12  ;;  %v5096_v1 = vld [vmem:[%s5920_s0 + $0xa0] sm:$0xff]  }
  0x95   : > { %4477 = vmatprep.subr.bf16.mxu1 %v5297_v2  ;;  %4622 = vmatpush3.bf16.msra.mxu0 %v5419_v13 }
  0x96   : > { %4631 = vmatprep.subr.bf16.mxu0 %v2062_v14  ;;  %v616_v20 = vpop.permute.xlu1 %615  ;;  %v2182_v21 = vpop.permute.xlu0 %2181 }
  0x98   : > { %4478 = vmatpush3.bf16.msra.mxu1 %v5297_v2  ;;  %4624 = vmatmul.mubr.msk.bf16.vlgmr.msra.gmra.mrb[0].mxu0 %vm409_vm0, %v5061_v15  ;;  %v5095_v2 = vld [vmem:[%s5920_s0 + $0x238] sm:$0xff]  }
  0x99   : > { %4632 = vmatpush3.bf16.msra.mxu0 %v2062_v14  ;;  %4635 = vmatprep.mubr.msk.bf16.mxu0 %vm409_vm0, %v5065_v17  ;;  %v5102_v14 = vld [vmem:[%s5920_s0 + $0xb8] sm:$0xff]  }
  0x9a   : > { %4633 = vmatprep.subr.bf16.mxu0 %v2064_v16  ;;  %4487 = vmatprep.subr.bf16.mxu1 %v616_v20  ;;  %v618_v26 = vpop.permute.xlu1 %617  ;;  %v2184_v27 = vpop.permute.xlu0 %2183  ;;  %v5103_v17 = vld [vmem:[%s5920_s0 + $0x258] sm:$0xff]  }
  0x9b   : > { %4472 = vmatmul.mubr.msk.bf16.gmra.mrb[4].mxu1 %vm409_vm0, %v5063_v18  ;;  %v5105_v18 = vld [vmem:[%s5920_s0 + $0x260] sm:$0xff]  }
  0x9c   : > { %4479 = vmatprep.mubr.msk.bf16.mxu1 %vm409_vm0, %v5064_v19  ;;  %v3599_v19 = vld [vmem:[%s5921_s1 + $0x8] sm:$0xff] }
  0x9d   : > { %4634 = vmatpush3.bf16.msra.mxu0 %v2064_v16  ;;  %v5104_v16 = vld [vmem:[%s5920_s0 + $0xc0] sm:$0xff]  }
  0x9e   : > { %4643 = vmatprep.subr.bf16.mxu0 %v2182_v21  ;;  %v736_v28 = vpop.permute.xlu1 %735  ;;  %v2302_v30 = vpop.permute.xlu0 %2301 }
  0xa2   : > { %v738_v38 = vpop.permute.xlu1 %737  ;;  %v2304_v39 = vpop.permute.xlu0 %2303 }
  0xa3   : > { %4480 = vmatmul.mubr.msk.bf16.vlgmr.msra.gmra.mrb[0].mxu1 %vm409_vm0, %v5066_v22  ;;  %v5106_v22 = vld [vmem:[%s5920_s0 + $0xc8] sm:$0xff]  }
  0xa4   : > { %4488 = vmatpush3.bf16.msra.mxu1 %v616_v20  ;;  %4483 = vmatprep.mubr.msk.bf16.mxu1 %vm409_vm0, %v5068_v23  ;;  %v3598_v20 = vld [vmem:[%s5921_s1] sm:$0xff]  ;;  %v5108_v23 = vld [vmem:[%s5920_s0 + $0xd0] sm:$0xff]  }
  0xa5   : > { %4636 = vmatmul.mubr.msk.bf16.vlgmr.msra.gmra.mrb[0].mxu0 %vm409_vm0, %v5067_v24  ;;  %4489 = vmatprep.subr.bf16.mxu1 %v618_v26  ;;  %v3600_v24 = vld [vmem:[%s5921_s1 + $0x10] sm:$0xff] }
  0xa6   : > { %4644 = vmatpush3.bf16.msra.mxu0 %v2182_v21  ;;  %4639 = vmatprep.mubr.msk.bf16.mxu0 %vm409_vm0, %v5069_v25  ;;  %v856_v40 = vpop.permute.xlu1 %855  ;;  %v2422_v42 = vpop.permute.xlu0 %2421  ;;  %v5216_v21 = vmov 0   ;;  %v5107_v25 = vld [vmem:[%s5920_s0 + $0x268] sm:$0xff]  }
  0xa7   : > { %4645 = vmatprep.subr.bf16.mxu0 %v2184_v27  ;;  %5051 = vset.pattern.permute.xlu1 %v5216_v21 }
  0xa8   : > { %4490 = vmatpush3.bf16.msra.mxu1 %v618_v26  ;;  %5050 = vset.pattern.permute.xlu0 %v5216_v21  ;;  %v5109_v26 = vld [vmem:[%s5920_s0 + $0x270] sm:$0xff]   ;;  %v5142_v21 = vld [vmem:[%s5920_s0 + $0x158] sm:$0xff]  }
  0xa9   : > { %4499 = vmatprep.subr.bf16.mxu1 %v736_v28  ;;  %3613 = vperm.xlu1 %5051, %v3599_v19  }
  0xaa   : > { %4646 = vmatpush3.bf16.msra.mxu0 %v2184_v27  ;;  %v2424_v49 = vpop.permute.xlu0 %2423  ;;  %v858_v51 = vpop.permute.xlu1 %857  ;;  %3608 = vperm.xlu0 %5050, %v3598_v20  }
  0xab   : > { %4484 = vmatmul.mubr.msk.bf16.gmra.mrb[4].mxu1 %vm409_vm0, %v5070_v29  ;;  %4655 = vmatprep.subr.bf16.mxu0 %v2302_v30  ;;  %v3601_v29 = vld [vmem:[%s5921_s1 + $0x18] sm:$0xff] }
  0xac   : > { %4491 = vmatprep.mubr.msk.bf16.mxu1 %vm409_vm0, %v5072_v31 }
  0xad   : > { %4640 = vmatmul.mubr.msk.bf16.gmra.mrb[4].mxu0 %vm409_vm0, %v5071_v32  ;;  %3618 = vperm.xlu1 %5051, %v3600_v24   ;;  %v5110_v32 = vld [vmem:[%s5920_s0 + $0xd8] sm:$0xff]  }
  0xae   : > { %4647 = vmatprep.mubr.msk.bf16.mxu0 %vm409_vm0, %v5073_v33  ;;  %v976_v52 = vpop.permute.xlu0 %975  ;;  %v978_v61 = vpop.permute.xlu1 %977  ;;  %3623 = vperm.xlu0 %5050, %v3601_v29   ;;  %v5143_v24 = vld [vmem:[%s5920_s0 + $0x2f8] sm:$0xff]  }
  0xb2   : > { %v1096_v62 = vpop.permute.xlu1 %1095  ;;  %v2668_v0 = vpop.permute.xlu0 %2667 }
  0xb3   : > { %4492 = vmatmul.mubr.msk.bf16.vlgmr.msra.gmra.mrb[0].mxu1 %vm409_vm0, %v5074_v34  ;;  %v5112_v34 = vld [vmem:[%s5920_s0 + $0xe0] sm:$0xff]  }
  0xb4   : > { %4500 = vmatpush3.bf16.msra.mxu1 %v736_v28  ;;  %4495 = vmatprep.mubr.msk.bf16.mxu1 %vm409_vm0, %v5076_v35  ;;  %v5111_v35 = vld [vmem:[%s5920_s0 + $0x278] sm:$0xff]  }
  0xb5   : > { %4648 = vmatmul.mubr.msk.bf16.vlgmr.msra.gmra.mrb[0].mxu0 %vm409_vm0, %v5075_v36  ;;  %4501 = vmatprep.subr.bf16.mxu1 %v738_v38  ;;  %v3603_v36 = vld [vmem:[%s5921_s1 + $0x28] sm:$0xff] }
  0xb6   : > { %4656 = vmatpush3.bf16.msra.mxu0 %v2302_v30  ;;  %4651 = vmatprep.mubr.msk.bf16.mxu0 %vm409_vm0, %v5077_v37  ;;  %v1098_v9 = vpop.permute.xlu1 %1097  ;;  %v2670_v10 = vpop.permute.xlu0 %2669  ;;  %v3602_v30 = vld [vmem:[%s5921_s1 + $0x20] sm:$0xff] }
  0xb7   : > { %4657 = vmatprep.subr.bf16.mxu0 %v2304_v39  ;;  %3628 = vperm.xlu1 %5051, %v3602_v30   ;;  %v5113_v37 = vld [vmem:[%s5920_s0 + $0x280] sm:$0xff]   ;;  %v5149_v30 = vld [vmem:[%s5920_s0 + $0x310] sm:$0xff]  }
  0xb8   : > { %4502 = vmatpush3.bf16.msra.mxu1 %v738_v38  ;;  %v3604_v38 = vld [vmem:[%s5921_s1 + $0x30] sm:$0xff]  ;;  %3633 = vperm.xlu0 %5050, %v3603_v36   ;;  %v5153_v36 = vld [vmem:[%s5920_s0 + $0x320] sm:$0xff]  }
  0xb9   : > { %4511 = vmatprep.subr.bf16.mxu1 %v856_v40 }
  0xba   : > { %4658 = vmatpush3.bf16.msra.mxu0 %v2304_v39  ;;  %v1216_v12 = vpop.permute.xlu1 %1215  ;;  %v2788_v15 = vpop.permute.xlu0 %2787  ;;  %v3605_v39 = vld [vmem:[%s5921_s1 + $0x38] sm:$0xff] }
  0xbb   : > { %4496 = vmatmul.mubr.msk.bf16.gmra.mrb[4].mxu1 %vm409_vm0, %v5078_v41  ;;  %4667 = vmatprep.subr.bf16.mxu0 %v2422_v42  ;;  %v5116_v41 = vld [vmem:[%s5920_s0 + $0xf0] sm:$0xff]  }
  0xbc   : > { %4503 = vmatprep.mubr.msk.bf16.mxu1 %vm409_vm0, %v5080_v43  ;;  %3638 = vperm.xlu1 %5051, %v3604_v38   ;;  %v5117_v43 = vld [vmem:[%s5920_s0 + $0x290] sm:$0xff]  }
  0xbd   : > { %4652 = vmatmul.mubr.msk.bf16.gmra.mrb[4].mxu0 %vm409_vm0, %v5079_v44  ;;  %3643 = vperm.xlu0 %5050, %v3605_v39   ;;  %v5156_v38 = vld [vmem:[%s5920_s0 + $0x190] sm:$0xff]   ;;  %v5155_v39 = vld [vmem:[%s5920_s0 + $0x328] sm:$0xff]  }
  0xbe   : > { %4659 = vmatprep.mubr.msk.bf16.mxu0 %vm409_vm0, %v5081_v45  ;;  %v1218_v27 = vpop.permute.xlu1 %1217  ;;  %v2790_v28 = vpop.permute.xlu0 %2789 }
  0xc2   : > { %v1336_v31 = vpop.permute.xlu1 %1335  ;;  %v2908_v33 = vpop.permute.xlu0 %2907 }
  0xc3   : > { %4504 = vmatmul.mubr.msk.bf16.vlgmr.msra.gmra.mrb[0].mxu1 %vm409_vm0, %v5082_v46  ;;  %v5118_v46 = vld [vmem:[%s5920_s0 + $0xf8] sm:$0xff]  }
  0xc4   : > { %4512 = vmatpush3.bf16.msra.mxu1 %v856_v40  ;;  %4507 = vmatprep.mubr.msk.bf16.mxu1 %vm409_vm0, %v5084_v47  ;;  %v5114_v40 = vld [vmem:[%s5920_s0 + $0xe8] sm:$0xff]  }
  0xc5   : > { %4660 = vmatmul.mubr.msk.bf16.vlgmr.msra.gmra.mrb[0].mxu0 %vm409_vm0, %v5083_v48  ;;  %4513 = vmatprep.subr.bf16.mxu1 %v858_v51  ;;  %v5120_v48 = vld [vmem:[%s5920_s0 + $0x100] sm:$0xff]  }
  0xc6   : > { %4668 = vmatpush3.bf16.msra.mxu0 %v2422_v42  ;;  %4663 = vmatprep.mubr.msk.bf16.mxu0 %vm409_vm0, %v5085_v50  ;;  %v5115_v42 = vld [vmem:[%s5920_s0 + $0x288] sm:$0xff]   ;;  %v1338_v44 = vpop.permute.xlu1 %1337  ;;  %v2910_v45 = vpop.permute.xlu0 %2909  ;;  %v5121_v50 = vld [vmem:[%s5920_s0 + $0x2a0] sm:$0xff]  }
  0xc7   : > { %4669 = vmatprep.subr.bf16.mxu0 %v2424_v49 }
  0xc8   : > { %4514 = vmatpush3.bf16.msra.mxu1 %v858_v51  ;;  %v5122_v51 = vld [vmem:[%s5920_s0 + $0x108] sm:$0xff]  }
  0xc9   : > { %4523 = vmatprep.subr.bf16.mxu1 %v976_v52 }
  0xca   : > { %4670 = vmatpush3.bf16.msra.mxu0 %v2424_v49  ;;  %v3028_v47 = vpop.permute.xlu0 %3027  ;;  %v5119_v49 = vld [vmem:[%s5920_s0 + $0x298] sm:$0xff]  }
  0xcb   : > { %4508 = vmatmul.mubr.msk.bf16.gmra.mrb[4].mxu1 %vm409_vm0, %v5086_v53  ;;  %4679 = vmatprep.subr.bf16.mxu0 %v5351_v6  ;;  %v3030_v53 = vpop.permute.xlu1 %3029 }
  0xcc   : > { %4515 = vmatprep.mubr.msk.bf16.mxu1 %vm409_vm0, %v5088_v54  ;;  %v5125_v54 = vld [vmem:[%s5920_s0 + $0x2b0] sm:$0xff]  }
  0xcd   : > { %4664 = vmatmul.mubr.msk.bf16.gmra.mrb[4].mxu0 %vm409_vm0, %v5087_v55  ;;  %v5166_v55 = vld [vmem:[%s5312_s29] sm:$0xff]  }
  0xce   : > { %4671 = vmatprep.mubr.msk.bf16.mxu0 %vm409_vm0, %v5089_v56  ;;  %v5167_v56 = vld [vmem:[%s5312_s29 + $0x8] sm:$0xff]  }
  0xd3   : > { %4516 = vmatmul.mubr.msk.bf16.vlgmr.msra.gmra.mrb[0].mxu1 %vm409_vm0, %v5090_v57  ;;  %v1582_v57 = vpop.permute.xlu1 %1581 }
  0xd4   : > { %4524 = vmatpush3.bf16.msra.mxu1 %v976_v52  ;;  %4519 = vmatprep.mubr.msk.bf16.mxu1 %vm409_vm0, %v5092_v58  ;;  %v5123_v52 = vld [vmem:[%s5920_s0 + $0x2a8] sm:$0xff]   ;;  %v5126_v58 = vld [vmem:[%s5920_s0 + $0x118] sm:$0xff]  }
  0xd5   : > { %4672 = vmatmul.mubr.msk.bf16.vlgmr.msra.gmra.mrb[0].mxu0 %vm409_vm0, %v5091_v59  ;;  %4525 = vmatprep.subr.bf16.mxu1 %v978_v61  ;;  %v3148_v59 = vpop.permute.xlu0 %3147 }
  0xd6   : > { %4680 = vmatpush3.bf16.msra.mxu0 %v5351_v6  ;;  %4675 = vmatprep.mubr.msk.bf16.mxu0 %vm409_vm0, %v5093_v60  ;;  %v5100_v6 = vld [vmem:[%s5920_s0 + $0xb0] sm:$0xff]   ;;  %v5128_v60 = vld [vmem:[%s5920_s0 + $0x120] sm:$0xff]  }
  0xd7   : > { %4681 = vmatprep.subr.bf16.mxu0 %v5355_v7 }
  0xd8   : > { %4526 = vmatpush3.bf16.msra.mxu1 %v978_v61  ;;  %v5127_v61 = vld [vmem:[%s5920_s0 + $0x2b8] sm:$0xff]  }
  0xd9   : > { %4535 = vmatprep.subr.bf16.mxu1 %v1096_v62 }
  0xda   : > { %4682 = vmatpush3.bf16.msra.mxu0 %v5355_v7  ;;  %v5099_v7 = vld [vmem:[%s5920_s0 + $0x248] sm:$0xff]  }
  0xdb   : > { %4520 = vmatmul.mubr.msk.bf16.gmra.mrb[4].mxu1 %vm409_vm0, %v5094_v63  ;;  %4691 = vmatprep.subr.bf16.mxu0 %v2668_v0  ;;  %v5130_v63 = vld [vmem:[%s5920_s0 + $0x128] sm:$0xff]  }
  0xdc   : > { %4527 = vmatprep.mubr.msk.bf16.mxu1 %vm409_vm0, %v5096_v1  ;;  %v5131_v1 = vld [vmem:[%s5920_s0 + $0x2c8] sm:$0xff]  }
  0xdd   : > { %4676 = vmatmul.mubr.msk.bf16.gmra.mrb[4].mxu0 %vm409_vm0, %v5095_v2  ;;  %v5133_v2 = vld [vmem:[%s5920_s0 + $0x2d0] sm:$0xff]  }
  0xde   : > { %4683 = vmatprep.mubr.msk.bf16.mxu0 %vm409_vm0, %v5097_v3  ;;  %v1584_v3 = vpop.permute.xlu1 %1583 }
  0xe3   : > { %4528 = vmatmul.mubr.msk.bf16.vlgmr.msra.gmra.mrb[0].mxu1 %vm409_vm0, %v5098_v5  ;;  %v3150_v5 = vpop.permute.xlu0 %3149 }
  0xe4   : > { %4536 = vmatpush3.bf16.msra.mxu1 %v1096_v62  ;;  %4531 = vmatprep.mubr.msk.bf16.mxu1 %vm409_vm0, %v5100_v6  ;;  %v5129_v62 = vld [vmem:[%s5920_s0 + $0x2c0] sm:$0xff]   ;;  %v1702_v6 = vpop.permute.xlu1 %1701 }
  0xe5   : > { %4684 = vmatmul.mubr.msk.bf16.vlgmr.msra.gmra.mrb[0].mxu0 %vm409_vm0, %v5099_v7  ;;  %4537 = vmatprep.subr.bf16.mxu1 %v1098_v9  ;;  %v5134_v7 = vld [vmem:[%s5920_s0 + $0x138] sm:$0xff]  }
  0xe6   : > { %4692 = vmatpush3.bf16.msra.mxu0 %v2668_v0  ;;  %4687 = vmatprep.mubr.msk.bf16.mxu0 %vm409_vm0, %v5101_v8  ;;  %v5132_v0 = vld [vmem:[%s5920_s0 + $0x130] sm:$0xff]  }
  0xe7   : > { %4693 = vmatprep.subr.bf16.mxu0 %v2670_v10  ;;  %v3268_v8 = vpop.permute.xlu0 %3267 }
  0xe8   : > { %4538 = vmatpush3.bf16.msra.mxu1 %v1098_v9  ;;  %v5136_v9 = vld [vmem:[%s5920_s0 + $0x140] sm:$0xff]  }
  0xe9   : > { %4547 = vmatprep.subr.bf16.mxu1 %v1216_v12 }
  0xea   : > { %4694 = vmatpush3.bf16.msra.mxu0 %v2670_v10  ;;  %v5135_v10 = vld [vmem:[%s5920_s0 + $0x2d8] sm:$0xff]  }
  0xeb   : > { %4532 = vmatmul.mubr.msk.bf16.gmra.mrb[4].mxu1 %vm409_vm0, %v5102_v14  ;;  %4703 = vmatprep.subr.bf16.mxu0 %v2788_v15  ;;  %v5138_v14 = vld [vmem:[%s5920_s0 + $0x148] sm:$0xff]   ;;  %v3270_v19 = vpop.permute.xlu0 %3269 }
  0xec   : > { %4539 = vmatprep.mubr.msk.bf16.mxu1 %vm409_vm0, %v5104_v16  ;;  %v1704_v16 = vpop.permute.xlu1 %1703 }
  0xed   : > { %4688 = vmatmul.mubr.msk.bf16.gmra.mrb[4].mxu0 %vm409_vm0, %v5103_v17  ;;  %v5139_v17 = vld [vmem:[%s5920_s0 + $0x2e8] sm:$0xff]  }
  0xee   : > { %4695 = vmatprep.mubr.msk.bf16.mxu0 %vm409_vm0, %v5105_v18  ;;  %v5141_v18 = vld [vmem:[%s5920_s0 + $0x2f0] sm:$0xff]  }
  0xf0   : > { %v1822_v20 = vpop.permute.xlu1 %1821 }
  0xf3   : > { %4540 = vmatmul.mubr.msk.bf16.vlgmr.msra.gmra.mrb[0].mxu1 %vm409_vm0, %v5106_v22  ;;  %v3388_v22 = vpop.permute.xlu0 %3387 }
  0xf4   : > { %4548 = vmatpush3.bf16.msra.mxu1 %v1216_v12  ;;  %4543 = vmatprep.mubr.msk.bf16.mxu1 %vm409_vm0, %v5108_v23  ;;  %v5137_v12 = vld [vmem:[%s5920_s0 + $0x2e0] sm:$0xff]   ;;  %v1824_v29 = vpop.permute.xlu1 %1823 }
  0xf5   : > { %4696 = vmatmul.mubr.msk.bf16.vlgmr.msra.gmra.mrb[0].mxu0 %vm409_vm0, %v5107_v25  ;;  %4549 = vmatprep.subr.bf16.mxu1 %v1218_v27  ;;  %v5144_v23 = vld [vmem:[%s5920_s0 + $0x160] sm:$0xff]  }
  0xf6   : > { %4704 = vmatpush3.bf16.msra.mxu0 %v2788_v15  ;;  %4699 = vmatprep.mubr.msk.bf16.mxu0 %vm409_vm0, %v5109_v26  ;;  %v5140_v15 = vld [vmem:[%s5920_s0 + $0x150] sm:$0xff]   ;;  %v5145_v25 = vld [vmem:[%s5920_s0 + $0x300] sm:$0xff]   ;;  %v5146_v26 = vld [vmem:[%s5920_s0 + $0x168] sm:$0xff]  }
  0xf7   : > { %4705 = vmatprep.subr.bf16.mxu0 %v2790_v28 }
  0xf8   : > { %4550 = vmatpush3.bf16.msra.mxu1 %v1218_v27  ;;  %v5148_v27 = vld [vmem:[%s5920_s0 + $0x170] sm:$0xff]  }
  0xf9   : > { %4559 = vmatprep.subr.bf16.mxu1 %v1336_v31 }
  0xfa   : > { %4706 = vmatpush3.bf16.msra.mxu0 %v2790_v28  ;;  %v5147_v28 = vld [vmem:[%s5920_s0 + $0x308] sm:$0xff]  }
  0xfb   : > { %4544 = vmatmul.mubr.msk.bf16.gmra.mrb[4].mxu1 %vm409_vm0, %v5110_v32  ;;  %4715 = vmatprep.subr.bf16.mxu0 %v2908_v33  ;;  %v5150_v32 = vld [vmem:[%s5920_s0 + $0x178] sm:$0xff]  }
  0xfc   : > { %4551 = vmatprep.mubr.msk.bf16.mxu1 %vm409_vm0, %v5112_v34  ;;  %v5152_v34 = vld [vmem:[%s5920_s0 + $0x180] sm:$0xff]  }
  0xfd   : > { %4700 = vmatmul.mubr.msk.bf16.gmra.mrb[4].mxu0 %vm409_vm0, %v5111_v35  ;;  %v5151_v35 = vld [vmem:[%s5920_s0 + $0x318] sm:$0xff]  }
  0xfe   : > { %4707 = vmatprep.mubr.msk.bf16.mxu0 %vm409_vm0, %v5113_v37  ;;  %v5154_v37 = vld [vmem:[%s5920_s0 + $0x188] sm:$0xff]  }
 0x103   : > { %4552 = vmatmul.mubr.msk.bf16.vlgmr.msra.gmra.mrb[0].mxu1 %vm409_vm0, %v5114_v40  ;;  %v5157_v40 = vld [vmem:[%s5920_s0 + $0x330] sm:$0xff]  }
 0x104   : > { %4560 = vmatpush3.bf16.msra.mxu1 %v1336_v31  ;;  %4555 = vmatprep.mubr.msk.bf16.mxu1 %vm409_vm0, %v5116_v41  ;;  %v3390_v31 = vpop.permute.xlu0 %3389  ;;  %v3510_v41 = vpop.permute.xlu1 %3509 }
 0x105   : > { %4708 = vmatmul.mubr.msk.bf16.vlgmr.msra.gmra.mrb[0].mxu0 %vm409_vm0, %v5115_v42  ;;  %4561 = vmatprep.subr.bf16.mxu1 %v1338_v44  ;;  %v5158_v42 = vld [vmem:[%s5920_s0 + $0x198] sm:$0xff]  }
 0x106   : > { %4716 = vmatpush3.bf16.msra.mxu0 %v2908_v33  ;;  %4711 = vmatprep.mubr.msk.bf16.mxu0 %vm409_vm0, %v5117_v43  ;;  %v5159_v43 = vld [vmem:[%s5920_s0 + $0x338] sm:$0xff]  }
 0x107   : > { %4717 = vmatprep.subr.bf16.mxu0 %v2910_v45 }
 0x108   : > { %4562 = vmatpush3.bf16.msra.mxu1 %v1338_v44  ;;  %v3508_v33 = vpop.permute.xlu0 %3507  ;;  %v5160_v44 = vld [vmem:[%s5920_s0 + $0x340] sm:$0xff]  }
 0x109   : > { %4571 = vmatprep.subr.bf16.mxu1 %v5315_v4  ;;  %v5124_v4 = vld [vmem:[%s5920_s0 + $0x110] sm:$0xff]  }
 0x10a   : > { %4718 = vmatpush3.bf16.msra.mxu0 %v2910_v45  ;;  %v5164_v45 = vld [vmem:[%s5920_s0 + $0x350] sm:$0xff]  }
 0x10b   : > { %4556 = vmatmul.mubr.msk.bf16.gmra.mrb[4].mxu1 %vm409_vm0, %v5118_v46  ;;  %4727 = vmatprep.subr.bf16.mxu0 %v3028_v47  ;;  %v5163_v46 = vld [vmem:[%s5920_s0 + $0x1b8] sm:$0xff]  }
 0x10c   : > { %4563 = vmatprep.mubr.msk.bf16.mxu1 %vm409_vm0, %v5120_v48 }
 0x10d   : > { %4712 = vmatmul.mubr.msk.bf16.gmra.mrb[4].mxu0 %vm409_vm0, %v5119_v49 }
 0x10e   : > { %4719 = vmatprep.mubr.msk.bf16.mxu0 %vm409_vm0, %v5121_v50 }
 0x113   : > { %4564 = vmatmul.mubr.msk.bf16.vlgmr.msra.gmra.mrb[0].mxu1 %vm409_vm0, %v5122_v51 }
 0x114   : > { %4572 = vmatpush3.bf16.msra.mxu1 %v5166_v55  ;;  %4567 = vmatprep.mubr.msk.bf16.mxu1 %vm409_vm0, %v5124_v4 }
 0x115   : > { %4720 = vmatmul.mubr.msk.bf16.vlgmr.msra.gmra.mrb[0].mxu0 %vm409_vm0, %v5123_v52  ;;  %4573 = vmatprep.subr.bf16.mxu1 %v5167_v56 }
 0x116   : > { %4728 = vmatpush3.bf16.msra.mxu0 %v3028_v47  ;;  %4723 = vmatprep.mubr.msk.bf16.mxu0 %vm409_vm0, %v5125_v54  ;;  %v5165_v47 = vld [vmem:[%s5920_s0 + $0x358] sm:$0xff]  }
 0x117   : > { %4729 = vmatprep.subr.bf16.mxu0 %v3030_v53 }
 0x118   : > { %4574 = vmatpush3.bf16.msra.mxu1 %v5167_v56 }
 0x119   : > { %4583 = vmatprep.subr.bf16.mxu1 %v1582_v57 }
 0x11a   : > { %4730 = vmatpush3.bf16.msra.mxu0 %v3030_v53 }
 0x11b   : > { %4568 = vmatmul.mubr.msk.bf16.gmra.mrb[4].mxu1 %vm409_vm0, %v5126_v58  ;;  %4739 = vmatprep.subr.bf16.mxu0 %v3148_v59 }
 0x11c   : > { %4575 = vmatprep.mubr.msk.bf16.mxu1 %vm409_vm0, %v5128_v60 }
 0x11d   : > { %4724 = vmatmul.mubr.msk.bf16.gmra.mrb[4].mxu0 %vm409_vm0, %v5127_v61 }
 0x11e   : > { %4731 = vmatprep.mubr.msk.bf16.mxu0 %vm409_vm0, %v5129_v62 }
 0x123   : > { %4576 = vmatmul.mubr.msk.bf16.vlgmr.msra.gmra.mrb[0].mxu1 %vm409_vm0, %v5130_v63 }
 0x124   : > { %4584 = vmatpush3.bf16.msra.mxu1 %v1582_v57  ;;  %4579 = vmatprep.mubr.msk.bf16.mxu1 %vm409_vm0, %v5132_v0 }
 0x125   : > { %4732 = vmatmul.mubr.msk.bf16.vlgmr.msra.gmra.mrb[0].mxu0 %vm409_vm0, %v5131_v1  ;;  %4585 = vmatprep.subr.bf16.mxu1 %v1584_v3 }
 0x126   : > { %4740 = vmatpush3.bf16.msra.mxu0 %v3148_v59  ;;  %4735 = vmatprep.mubr.msk.bf16.mxu0 %vm409_vm0, %v5133_v2 }
 0x127   : > { %4741 = vmatprep.subr.bf16.mxu0 %v3150_v5 }
 0x128   : > { %4586 = vmatpush3.bf16.msra.mxu1 %v1584_v3  ;;  %v3614_v4 = vpop.permute.xlu1 %3613 }
 0x129   : > { %4595 = vmatprep.subr.bf16.mxu1 %v1702_v6  ;;  %v3609_v52 = vpop.permute.xlu0 %3608 }
 0x12a   : > { %4742 = vmatpush3.bf16.msra.mxu0 %v3150_v5 }
 0x12b   : > { %4580 = vmatmul.mubr.msk.bf16.gmra.mrb[4].mxu1 %vm409_vm0, %v5134_v7  ;;  %4751 = vmatprep.subr.bf16.mxu0 %v3268_v8 }
 0x12c   : > { %4587 = vmatprep.mubr.msk.bf16.mxu1 %vm409_vm0, %v5136_v9  ;;  %v3619_v53 = vpop.permute.xlu1 %3618 }
 0x12d   : > { %4736 = vmatmul.mubr.msk.bf16.gmra.mrb[4].mxu0 %vm409_vm0, %v5135_v10  ;;  %v3624_v54 = vpop.permute.xlu0 %3623 }
 0x12e   : > { %4743 = vmatprep.mubr.msk.bf16.mxu0 %vm409_vm0, %v5137_v12 }
 0x133   : > { %4588 = vmatmul.mubr.msk.bf16.vlgmr.msra.gmra.mrb[0].mxu1 %vm409_vm0, %v5138_v14 }
 0x134   : > { %4596 = vmatpush3.bf16.msra.mxu1 %v1702_v6  ;;  %4591 = vmatprep.mubr.msk.bf16.mxu1 %vm409_vm0, %v5140_v15 }
 0x135   : > { %4744 = vmatmul.mubr.msk.bf16.vlgmr.msra.gmra.mrb[0].mxu0 %vm409_vm0, %v5139_v17  ;;  %4597 = vmatprep.subr.bf16.mxu1 %v1704_v16 }
 0x136   : > { %4752 = vmatpush3.bf16.msra.mxu0 %v3268_v8  ;;  %4747 = vmatprep.mubr.msk.bf16.mxu0 %vm409_vm0, %v5141_v18  ;;  %v3629_v1 = vpop.permute.xlu1 %3628 }
 0x137   : > { %4753 = vmatprep.subr.bf16.mxu0 %v3270_v19  ;;  %v3634_v9 = vpop.permute.xlu0 %3633 }
 0x138   : > { %4598 = vmatpush3.bf16.msra.mxu1 %v1704_v16 }
 0x139   : > { %4607 = vmatprep.subr.bf16.mxu1 %v1822_v20 }
 0x13a   : > { %4754 = vmatpush3.bf16.msra.mxu0 %v3270_v19 }
 0x13b   : > { %4592 = vmatmul.mubr.msk.bf16.gmra.mrb[4].mxu1 %vm409_vm0, %v5142_v21  ;;  %4763 = vmatprep.subr.bf16.mxu0 %v3388_v22 }
 0x13c   : > { %4599 = vmatprep.mubr.msk.bf16.mxu1 %vm409_vm0, %v5144_v23 }
 0x13d   : > { %4748 = vmatmul.mubr.msk.bf16.gmra.mrb[4].mxu0 %vm409_vm0, %v5143_v24 }
 0x13e   : > { %4755 = vmatprep.mubr.msk.bf16.mxu0 %vm409_vm0, %v5145_v25 }
 0x143   : > { %4600 = vmatmul.mubr.msk.bf16.vlgmr.msra.gmra.mrb[0].mxu1 %vm409_vm0, %v5146_v26 }
 0x144   : > { %4608 = vmatpush3.bf16.msra.mxu1 %v1822_v20  ;;  %4603 = vmatprep.mubr.msk.bf16.mxu1 %vm409_vm0, %v5148_v27 }
 0x145   : > { %4756 = vmatmul.mubr.msk.bf16.vlgmr.msra.gmra.mrb[0].mxu0 %vm409_vm0, %v5147_v28  ;;  %4609 = vmatprep.subr.bf16.mxu1 %v1824_v29 }
 0x146   : > { %4764 = vmatpush3.bf16.msra.mxu0 %v3388_v22  ;;  %4759 = vmatprep.mubr.msk.bf16.mxu0 %vm409_vm0, %v5149_v30  ;;  %v3639_v22 = vpop.permute.xlu1 %3638 }
 0x147   : > { %4765 = vmatprep.subr.bf16.mxu0 %v3390_v31 }
 0x148   : > { %4610 = vmatpush3.bf16.msra.mxu1 %v1824_v29  ;;  %v3644_v29 = vpop.permute.xlu0 %3643 }
 0x149   : > { %4787 = vmatprep.subr.bf16.mxu1 %v5413_v11 }
 0x14a   : > { %4766 = vmatpush3.bf16.msra.mxu0 %v3390_v31 }
 0x14b   : > { %4604 = vmatmul.mubr.msk.bf16.gmra.mrb[4].mxu1 %vm409_vm0, %v5150_v32  ;;  %4775 = vmatprep.subr.bf16.mxu0 %v3508_v33 }
 0x14c   : > { %4611 = vmatprep.mubr.msk.bf16.mxu1 %vm409_vm0, %v5152_v34 }
 0x14d   : > { %4760 = vmatmul.mubr.msk.bf16.gmra.mrb[4].mxu0 %vm409_vm0, %v5151_v35 }
 0x14e   : > { %4767 = vmatprep.mubr.msk.bf16.mxu0 %vm409_vm0, %v5153_v36 }
 0x153   : > { %4612 = vmatmul.mubr.msk.bf16.vlgmr.msra.gmra.mrb[0].mxu1 %vm409_vm0, %v5154_v37 }
 0x154   : > { %4789 = vmatpush3.bf16.msra.mxu1 %v5413_v11  ;;  %4615 = vmatprep.mubr.msk.bf16.mxu1 %vm409_vm0, %v5156_v38  ;;  %v5162_v11 = vld [vmem:[%s5920_s0 + $0x1b0] sm:$0xff]  }
 0x155   : > { %4768 = vmatmul.mubr.msk.bf16.vlgmr.msra.gmra.mrb[0].mxu0 %vm409_vm0, %v5155_v39  ;;  %4788 = vmatprep.subr.bf16.mxu1 %v5419_v13 }
 0x156   : > { %4776 = vmatpush3.bf16.msra.mxu0 %v3508_v33  ;;  %4771 = vmatprep.mubr.msk.bf16.mxu0 %vm409_vm0, %v5157_v40 }
 0x157   : > { %4777 = vmatprep.subr.bf16.mxu0 %v3510_v41 }
 0x158   : > { %4790 = vmatpush3.bf16.msra.mxu1 %v5419_v13  ;;  %v5161_v13 = vld [vmem:[%s5920_s0 + $0x348] sm:$0xff]  }
 0x15a   : > { %4778 = vmatpush3.bf16.msra.mxu0 %v3510_v41 }
 0x15b   : > { %4616 = vmatmul.mubr.msk.bf16.gmra.mrb[4].mxu1 %vm409_vm0, %v5158_v42 }
 0x15c   : > { %4627 = vmatprep.mubr.msk.bf16.mxu1 %vm409_vm0, %v5162_v11 }
 0x15d   : > { %4772 = vmatmul.mubr.msk.bf16.gmra.mrb[4].mxu0 %vm409_vm0, %v5159_v43 }
 0x15e   : > { %4779 = vmatprep.mubr.msk.bf16.mxu0 %vm409_vm0, %v5160_v44 }
 0x165   : > { %4780 = vmatmul.mubr.msk.bf16.vlgmr.msra.gmra.mrb[0].mxu0 %vm409_vm0, %v5161_v13 }
 0x166   : > { %4783 = vmatprep.mubr.msk.bf16.mxu0 %vm409_vm0, %v5164_v45 }
 0x167   : > { %4628 = vmatmul.mubr.msk.bf16.vlgmr.msra.gmra.mrb[4].mxu1 %vm409_vm0, %v5163_v46 }
 0x16d   : > { %4784 = vmatmul.mubr.msk.bf16.gmra.mrb[4].mxu0 %vm409_vm0, %v5165_v47 }
 0x226   : > { %v4613_v48 = vpop.f32.mrb[0].mxu1 }
 0x227   : > { %v1873_v49 = vpop.f32.mrb[1].mxu1 }
 0x228   : > { %v4614_v50 = vpop.f32.mrb[2].mxu1 }
 0x229   : > { %v1876_v51 = vpop.f32.mrb[3].mxu1 }
 0x238   : > { %v4781_v55 = vpop.f32.mrb[0].mxu0 }
 0x239   : > { %v4791_v56 = vadd.f32 %v4781_v55, %v4613_v48  ;;  %v3559_v57 = vpop.f32.mrb[1].mxu0 }
 0x23a   : > { %v4792_v58 = vadd.f32 %v3559_v57, %v1873_v49  ;;  %v4782_v59 = vpop.f32.mrb[2].mxu0  ;;  %v4629_v60 = vpop.f32.mrb[4].mxu1 }
 0x23b   : > { %v3648_v61 = vadd.f32 %v4791_v56, %v3619_v53  ;;  %v4793_v62 = vadd.f32 %v4782_v59, %v4614_v50  ;;  %v3562_v63 = vpop.f32.mrb[3].mxu0  ;;  %v2009_v0 = vpop.f32.mrb[5].mxu1 }
 0x23c   : > { %v3646_v2 = vadd.f32 %v4792_v58, %v3609_v52  ;;  %v4794_v3 = vadd.f32 %v3562_v63, %v1876_v51  ;;  %v4630_v5 = vpop.f32.mrb[6].mxu1 }
 0x23d   : > { %v3656_v6 = vmax.f32 %v3648_v61, 0.0  ;;  %v3649_v7 = vadd.f32 %v4793_v62, %v3624_v54  ;;  %v2012_v8 = vpop.f32.mrb[7].mxu1 }
 0x23e   : > { %v3654_v10 = vmax.f32 %v3646_v2, 0.0  ;;  %v3647_v12 = vadd.f32 %v4794_v3, %v3614_v4 }
 0x23f   : > { %v4295_v14 = vpack.c.bf16 %v3656_v6, %v3656_v6  ;;  %v3657_v15 = vmax.f32 %v3649_v7, 0.0 }
 0x240   : > { %v4293_v16 = vpack.c.bf16 %v3654_v10, %v3654_v10  ;;  %v3655_v17 = vmax.f32 %v3647_v12, 0.0  ;;  %v4785_v18 = vpop.f32.mrb[4].mxu0 }
 0x241   : > { %3697 = vst.msk [vmem:[%s5887_s6 + $0x8] sm:$0xf] %vm3694_vm1, %v4295_v14  ;;  %v4296_v19 = vpack.c.bf16 %v3657_v15, %v3657_v15  ;;  %v4795_v20 = vadd.f32 %v4785_v18, %v4629_v60  ;;  %v3575_v21 = vpop.f32.mrb[5].mxu0 }
 0x242   : > { %3695 = vst.msk [vmem:[%s5887_s6] sm:$0xf] %vm3694_vm1, %v4293_v16  ;;  %v4294_v23 = vpack.c.bf16 %v3655_v17, %v3655_v17  ;;  %v4796_v24 = vadd.f32 %v3575_v21, %v2009_v0  ;;  %v4786_v25 = vpop.f32.mrb[6].mxu0 }
 0x243   : > { %3698 = vst.msk [vmem:[%s5887_s6 + $0xc] sm:$0xf] %vm3694_vm1, %v4296_v19  ;;  %v3652_v26 = vadd.f32 %v4795_v20, %v3639_v22  ;;  %v4797_v27 = vadd.f32 %v4786_v25, %v4630_v5  ;;  %v3578_v28 = vpop.f32.mrb[7].mxu0 }
 0x244   : > { %3696 = vst.msk [vmem:[%s5887_s6 + $0x4] sm:$0xf] %vm3694_vm1, %v4294_v23  ;;  %v3650_v30 = vadd.f32 %v4796_v24, %v3629_v1  ;;  %v4798_v31 = vadd.f32 %v3578_v28, %v2012_v8 }
 0x245   : > { %v3660_v32 = vmax.f32 %v3652_v26, 0.0  ;;  %v3653_v33 = vadd.f32 %v4797_v27, %v3644_v29 }
 0x246   : > { %v3658_v34 = vmax.f32 %v3650_v30, 0.0  ;;  %v3651_v35 = vadd.f32 %v4798_v31, %v3634_v9 }
 0x247   : > { %v4299_v36 = vpack.c.bf16 %v3660_v32, %v3660_v32  ;;  %v3661_v37 = vmax.f32 %v3653_v33, 0.0 }
 0x248   : > { %v4297_v38 = vpack.c.bf16 %v3658_v34, %v3658_v34  ;;  %v3659_v39 = vmax.f32 %v3651_v35, 0.0 }
 0x249   : > { %3701 = vst.msk [vmem:[%s5887_s6 + $0x18] sm:$0xf] %vm3694_vm1, %v4299_v36  ;;  %v4300_v40 = vpack.c.bf16 %v3661_v37, %v3661_v37 }
 0x24a   : > { %3699 = vst.msk [vmem:[%s5887_s6 + $0x10] sm:$0xf] %vm3694_vm1, %v4297_v38  ;;  %v4298_v41 = vpack.c.bf16 %v3659_v39, %v3659_v39 }
 0x24b   : > { %3702 = vst.msk [vmem:[%s5887_s6 + $0x1c] sm:$0xf] %vm3694_vm1, %v4300_v40 }
 0x24c   : > { %3700 = vst.msk [vmem:[%s5887_s6 + $0x14] sm:$0xf] %vm3694_vm1, %v4298_v41 }
 0x24d PF: > { %s15_s22 = sadd.s32 1, %s5206_s22   ;;  %s5926_s18 = smov %s5198_s20 }
 0x24e   : > { %p12_p10 = scmp.ge.s32.totalorder %s15_s22, 8   ;;  %s5927_s19 = smov %s5202_s21 }
 0x24f   : > { %s5928_s20 = smov %s5931_s23  ;;  %s5929_s21 = smov %s5935_s24 }
 0x250   :  { %14 = sbr.rel (!%p12_p10) target bundleno = 3 (0x3), region = 102 }

// kernel: forward.10
= control target key start
LH: loop header
LB: loop body
LE: loop exit
PB: predicated region body
PF: predicated region fallthrough
CT: control target
= control target key end

     0   :  { %s8955_s18 = smov 0   ;;  %s8957_s19 = smov 0   ;;  %s10235_s0 = inlined_call_operand.vmem [shape: bf16[27,128,64], index: 0, kind: input, shape index: {}]   ;;  %s10236_s1 = inlined_call_operand.vmem [shape: f32[128,1], index: 1, kind: input, shape index: {}]   ;;  %s10237_s2 = inlined_call_operand.vmem [shape: bf16[2,4,64,22], index: 2, kind: input, shape index: {}, may-alias: {2,3,4}]   ;;  %s10238_s3 = inlined_call_operand.vmem [shape: bf16[2,4,64,22], index: 3, kind: input, shape index: {}, may-alias: {2,3,4}]   ;;  %s10239_s4 = inlined_call_operand.vmem [shape: bf16[2,4,64,22], index: 4, kind: input, shape index: {}, may-alias: {2,3,4}]   ;;  %s10240_s5 = inlined_call_operand.vmem [shape: bf16[2,2,128,12], index: 5, kind: output, shape index: {}]  }
   0x1   :  { %s8959_s20 = smov 0   ;;  %s8961_s21 = smov 0  }
   0x2   :  { %s8963_s22 = smov 0  }
   0x3 LB: > { %s24_s23 = sadd.s32 1, %s8906_s20  ;;  %s27_s24 = sadd.s32 1, %s8910_s21  ;;  %s8914_s22 = sphi %s8963_s22, %s15_s22   ;;  %s8910_s21 = sphi %s8961_s21, %s10244_s21   ;;  %s8906_s20 = sphi %s8959_s20, %s10243_s20   ;;  %s8902_s19 = sphi %s8957_s19, %s10242_s19   ;;  %s8898_s18 = sphi %s8955_s18, %s10241_s18  }
   0x4   : > { %p25_p0 = scmp.ge.s32.totalorder %s24_s23, 2  ;;  %p6284_p1 = scmp.ge.s32.totalorder %s8914_s22, 1 }
   0x5   : > { %p247_p2 = scmp.lt.s32.totalorder %s8914_s22, 5 }
   0x6   : > { %s10246_s23 = smov (%p25_p0, %s24_s23), 0  ;;  %s10248_s24 = smov (!%p25_p0, %s27_s24), %s8910_s21 }
   0x7   : > { %p248_p3 = pnand %p6284_p1, %p247_p2  ;;  %p29_p4 = scmp.ge.s32.totalorder %s10248_s24, 2 }
   0x8   : > { %p303_p5 = scmp.lt.s32.totalorder (!%p248_p3), %s8902_s19, 1  ;;  %p305_p6 = scmp.lt.s32.totalorder (!%p248_p3), %s8898_s18, 3  ;;  %v8646_v2 = vld [vmem:[%s10235_s0 + $0x40] sm:$0xff] (!%p248_p3)   ;;  %vm473_vm0 = vcmask (!%p248_p3), 523264   ;;  %v8647_v22 = vld [vmem:[%s10235_s0 + $0x48] sm:$0xff] (!%p248_p3)   ;;  %v8650_v23 = vld [vmem:[%s10235_s0 + $0x50] sm:$0xff] (!%p248_p3)  }
   0x9   : > { %s10250_s24 = smov (%p29_p4, %s10248_s24), 0  ;;  %251 = sbr.rel (%p248_p3) target bundleno = 807 (0x327), region = 40 }
   0xa   : > { %s312_s25 = sadd.s32 (!%p248_p3), 1, %s8898_s18  ;;  %s8916_s9 = smov (!%p248_p3), 127   ;;  %7523 = vmatprep.mubr.msk.bf16.mxu1 (!%p248_p3), %vm473_vm0, %v8646_v2  ;;  %v8648_v7 = vld [vmem:[%s10235_s0 + $0x340] sm:$0xff] (!%p248_p3)   ;;  %v8649_v25 = vld [vmem:[%s10235_s0 + $0x348] sm:$0xff] (!%p248_p3)   ;;  %v8652_v26 = vld [vmem:[%s10235_s0 + $0x350] sm:$0xff] (!%p248_p3)   ;;  %vm6126_vm1 = vcmask (!%p248_p3), 93184  }
   0xb   : > { %p315_p7 = scmp.lt.s32.totalorder (!%p248_p3), %s312_s25, 3  ;;  %7835 = vmatprep.mubr.msk.bf16.mxu0 (!%p248_p3), %vm473_vm0, %v8648_v7  ;;  %s8920_s6 = smov (!%p248_p3), 126   ;;  %v8651_v29 = vld [vmem:[%s10235_s0 + $0x58] sm:$0xff] (!%p248_p3)   ;;  %v8654_v30 = vld [vmem:[%s10235_s0 + $0x60] sm:$0xff] (!%p248_p3)   ;;  %v8655_v36 = vld [vmem:[%s10235_s0 + $0x68] sm:$0xff] (!%p248_p3)  }
   0xc   : > { %s8921_s14 = smov (!%p248_p3), 119   ;;  %s8922_s15 = smov (!%p248_p3), 124   ;;  %v8653_v32 = vld [vmem:[%s10235_s0 + $0x358] sm:$0xff] (!%p248_p3)   ;;  %v8656_v33 = vld [vmem:[%s10235_s0 + $0x380] sm:$0xff] (!%p248_p3)   ;;  %v8658_v37 = vld [vmem:[%s10235_s0 + $0x70] sm:$0xff] (!%p248_p3)  }
   0xd   : > { %s8923_s16 = smov (!%p248_p3), 118   ;;  %v8657_v39 = vld [vmem:[%s10235_s0 + $0x388] sm:$0xff] (!%p248_p3)   ;;  %v8660_v40 = vld [vmem:[%s10235_s0 + $0x390] sm:$0xff] (!%p248_p3)   ;;  %v8659_v41 = vld [vmem:[%s10235_s0 + $0x78] sm:$0xff] (!%p248_p3)   ;;  %p336_p9 = scmp.lt.s32.totalorder (!%p248_p3), %s8898_s18, 1 }
   0xe   : > { %v8662_v45 = vld [vmem:[%s10235_s0] sm:$0xff] (!%p248_p3)   ;;  %v8661_v47 = vld [vmem:[%s10235_s0 + $0x398] sm:$0xff] (!%p248_p3)   ;;  %v8664_v50 = vld [vmem:[%s10235_s0 + $0x8] sm:$0xff] (!%p248_p3)  }
   0xf   : > { %v8665_v48 = vld [vmem:[%s10235_s0 + $0x3a0] sm:$0xff] (!%p248_p3)   ;;  %v8667_v51 = vld [vmem:[%s10235_s0 + $0x10] sm:$0xff] (!%p248_p3)   ;;  %v8666_v55 = vld [vmem:[%s10235_s0 + $0x3a8] sm:$0xff] (!%p248_p3)  }
  0x10   : > { %s10252_s19 = smov (!%p303_p5, %s8902_s19), 1  ;;  %s10254_s25 = smov (!%p315_p7, %s312_s25), 3  ;;  %v8670_v57 = vld [vmem:[%s10235_s0 + $0x3b0] sm:$0xff]   ;;  %v8669_v58 = vld [vmem:[%s10235_s0 + $0x18] sm:$0xff]   ;;  %v8673_v59 = vld [vmem:[%s10235_s0 + $0x20] sm:$0xff]  }
  0x11   : > { %s306_s26 = scalar_select %p305_p6, %s8898_s18, 3  ;;  %v8672_v62 = vld [vmem:[%s10235_s0 + $0x3b8] sm:$0xff]   ;;  %v8675_v63 = vld [vmem:[%s10235_s0 + $0x3c0] sm:$0xff]   ;;  %v8678_v2 = vld [vmem:[%s10235_s0 + $0x30] sm:$0xff]  }
  0x12   : > { %s8990_s27 = sshll.u32 %s10252_s19, 5  ;;  %s6288_s10 = sshll.u32 %s10254_s25, 3  ;;  %v8682_v7 = vld [vmem:[%s10235_s0 + $0x80] sm:$0xff]  }
  0x13   : > { %s6285_s28 = sshll.u32 %s306_s26, 3  ;;  %s319_s11 = sadd.s32 %s6288_s10, %s8990_s27 }
  0x14   : > { %s309_s29 = sadd.s32 %s8990_s27, %s6285_s28  ;;  %s6290_s12 = sshll.u32 %s319_s11, 2 }
  0x15   : > { %s6287_s30 = sshll.u32 %s309_s29, 2  ;;  %s9011_s17 = scalar_lea.vmem %s10238_s3, %s6290_s12 }
  0x16   : > { %s311_s8 = scalar_lea.vmem %s10237_s2, %s6287_s30  ;;  %v9014_v3 = vld [vmem:[%s9011_s17] sm:$0xff]   ;;  %v8641_v4 = vld [vmem:[%s9011_s17 + $0x8] sm:$0xff]   ;;  %s8917_s19 = smov 123   ;;  %v8643_v6 = vld [vmem:[%s9011_s17 + $0x10] sm:$0xff]  }
  0x17   : > { %v8996_v0 = vld [vmem:[%s311_s8] sm:$0xff]   ;;  %v8998_v1 = vld [vmem:[%s311_s8 + $0x8] sm:$0xff]   ;;  %v9020_v5 = vld [vmem:[%s311_s8 + $0x10] sm:$0xff]   ;;  %s8918_s28 = smov 122   ;;  %s8919_s29 = smov 120  }
  0x18   : > { %461 = vrot.lane.b32.xlu0 %v8996_v0, %s8916_s9  ;;  %463 = vrot.lane.b32.xlu1 %v8998_v1, %s8916_s9  ;;  %v9029_v8 = vld [vmem:[%s311_s8 + $0x18] sm:$0xff]   ;;  %s323_s30 = sadd.s32 2, %s8898_s18  ;;  %v9248_v42 = vld [vmem:[%s9011_s17 + $0x8] sm:$0xff]   ;;  %s10258_s18 = smov (!%p336_p9, %s8898_s18), 1 }
  0x19   : > { %v8645_v9 = vld [vmem:[%s9011_s17 + $0x18] sm:$0xff]   ;;  %p326_p8 = scmp.lt.s32.totalorder %s323_s30, 3  ;;  %v9253_v44 = vld [vmem:[%s9011_s17 + $0x10] sm:$0xff]   ;;  %v9292_v54 = vld [vmem:[%s9011_s17] sm:$0xff]  }
  0x1a   : > { %v9263_v46 = vld [vmem:[%s9011_s17 + $0x18] sm:$0xff]  }
  0x1b   : > { %s10256_s30 = smov (!%p326_p8, %s323_s30), 3 }
  0x1c   : > { %3095 = vrot.lane.b32.xlu0 %v9014_v3, %s8917_s19  ;;  %3097 = vrot.lane.b32.xlu1 %v8641_v4, %s8917_s19  ;;  %s6291_s7 = sshll.u32 %s10256_s30, 3 }
  0x1d   : > { %s330_s8 = sadd.s32 %s6291_s7, %s8990_s27 }
  0x1e   : > { %s6293_s10 = sshll.u32 %s330_s8, 2 }
  0x1f   : > { %s9060_s13 = scalar_lea.vmem %s10239_s4, %s6293_s10 }
  0x20   : > { %465 = vrot.lane.b32.xlu0 %v9020_v5, %s8916_s9  ;;  %3099 = vrot.lane.b32.xlu1 %v8643_v6, %s8917_s19  ;;  %v9093_v10 = vld [vmem:[%s9060_s13] sm:$0xff]   ;;  %v9096_v11 = vld [vmem:[%s9060_s13 + $0x8] sm:$0xff]  }
  0x21   : > { %v9103_v12 = vld [vmem:[%s9060_s13 + $0x10] sm:$0xff]   ;;  %v9106_v13 = vld [vmem:[%s9060_s13 + $0x18] sm:$0xff]  }
  0x24   : > { %467 = vrot.lane.b32.xlu0 %v9029_v8, %s8916_s9  ;;  %3101 = vrot.lane.b32.xlu1 %v8645_v9, %s8917_s19 }
  0x28   : > { %3301 = vrot.lane.b32.xlu0 %v9014_v3, %s8918_s28  ;;  %3303 = vrot.lane.b32.xlu1 %v8641_v4, %s8918_s28 }
  0x2c   : > { %3305 = vrot.lane.b32.xlu0 %v8643_v6, %s8918_s28  ;;  %3307 = vrot.lane.b32.xlu1 %v8645_v9, %s8918_s28 }
  0x30   : > { %3507 = vrot.lane.b32.xlu0 %v9014_v3, %s8919_s29  ;;  %3509 = vrot.lane.b32.xlu1 %v8641_v4, %s8919_s29 }
  0x34   : > { %3511 = vrot.lane.b32.xlu0 %v8643_v6, %s8919_s29  ;;  %3513 = vrot.lane.b32.xlu1 %v8645_v9, %s8919_s29 }
  0x38   : > { %817 = vrot.lane.b32.xlu0 %v8996_v0, %s8920_s6  ;;  %819 = vrot.lane.b32.xlu1 %v8998_v1, %s8920_s6 }
  0x3c   : > { %821 = vrot.lane.b32.xlu0 %v9020_v5, %s8920_s6  ;;  %823 = vrot.lane.b32.xlu1 %v9029_v8, %s8920_s6 }
  0x40   : > { %3713 = vrot.lane.b32.xlu0 %v9014_v3, %s8921_s14  ;;  %3715 = vrot.lane.b32.xlu1 %v8641_v4, %s8921_s14 }
  0x44   : > { %3717 = vrot.lane.b32.xlu0 %v8643_v6, %s8921_s14  ;;  %3719 = vrot.lane.b32.xlu1 %v8645_v9, %s8921_s14 }
  0x48   : > { %1023 = vrot.lane.b32.xlu0 %v8996_v0, %s8922_s15  ;;  %1025 = vrot.lane.b32.xlu1 %v8998_v1, %s8922_s15 }
  0x4c   : > { %1027 = vrot.lane.b32.xlu0 %v9020_v5, %s8922_s15  ;;  %1029 = vrot.lane.b32.xlu1 %v9029_v8, %s8922_s15 }
  0x50   : > { %3919 = vrot.lane.b32.xlu0 %v9014_v3, %s8923_s16  ;;  %3921 = vrot.lane.b32.xlu1 %v8641_v4, %s8923_s16  ;;  %v8680_v4 = vld [vmem:[%s10235_s0 + $0x3d0] sm:$0xff]  }
  0x54   : > { %3923 = vrot.lane.b32.xlu0 %v8643_v6, %s8923_s16  ;;  %3925 = vrot.lane.b32.xlu1 %v8645_v9, %s8923_s16  ;;  %v8679_v6 = vld [vmem:[%s10235_s0 + $0x38] sm:$0xff]   ;;  %v8684_v9 = vld [vmem:[%s10235_s0 + $0x3e0] sm:$0xff]  }
  0x58   : > { %1229 = vrot.lane.b32.xlu0 %v8996_v0, %s8917_s19  ;;  %1231 = vrot.lane.b32.xlu1 %v8998_v1, %s8917_s19 }
  0x5c   : > { %1233 = vrot.lane.b32.xlu0 %v9020_v5, %s8917_s19  ;;  %1235 = vrot.lane.b32.xlu1 %v9029_v8, %s8917_s19 }
  0x60   : > { %1435 = vrot.lane.b32.xlu0 %v8996_v0, %s8918_s28  ;;  %1437 = vrot.lane.b32.xlu1 %v8998_v1, %s8918_s28 }
  0x64   : > { %1439 = vrot.lane.b32.xlu0 %v9020_v5, %s8918_s28  ;;  %1441 = vrot.lane.b32.xlu1 %v9029_v8, %s8918_s28 }
  0x68   : > { %4343 = vrot.lane.b32.xlu0 %v9093_v10, %s8916_s9  ;;  %4345 = vrot.lane.b32.xlu1 %v9096_v11, %s8916_s9 }
  0x6c   : > { %4347 = vrot.lane.b32.xlu0 %v9103_v12, %s8916_s9  ;;  %4349 = vrot.lane.b32.xlu1 %v9106_v13, %s8916_s9 }
  0x70   : > { %1641 = vrot.lane.b32.xlu0 %v8996_v0, %s8919_s29  ;;  %1643 = vrot.lane.b32.xlu1 %v8998_v1, %s8919_s29 }
  0x74   : > { %1645 = vrot.lane.b32.xlu0 %v9020_v5, %s8919_s29  ;;  %1647 = vrot.lane.b32.xlu1 %v9029_v8, %s8919_s29 }
  0x78   : > { %4549 = vrot.lane.b32.xlu0 %v9093_v10, %s8920_s6  ;;  %4551 = vrot.lane.b32.xlu1 %v9096_v11, %s8920_s6 }
  0x7c   : > { %4553 = vrot.lane.b32.xlu0 %v9103_v12, %s8920_s6  ;;  %4555 = vrot.lane.b32.xlu1 %v9106_v13, %s8920_s6 }
  0x80   : > { %1847 = vrot.lane.b32.xlu0 %v8996_v0, %s8921_s14  ;;  %1849 = vrot.lane.b32.xlu1 %v8998_v1, %s8921_s14 }
  0x84   : > { %1851 = vrot.lane.b32.xlu0 %v9020_v5, %s8921_s14  ;;  %1853 = vrot.lane.b32.xlu1 %v9029_v8, %s8921_s14 }
  0x88   : > { %4755 = vrot.lane.b32.xlu0 %v9093_v10, %s8922_s15  ;;  %4757 = vrot.lane.b32.xlu1 %v9096_v11, %s8922_s15 }
  0x8a   : > { %v462_v14 = vpop.permute.xlu0 %461  ;;  %v464_v15 = vpop.permute.xlu1 %463 }
  0x8b   : > { %7515 = vmatprep.subr.bf16.mxu1 %v462_v14 }
  0x8c   : > { %7516 = vmatpush3.bf16.msra.mxu1 %v462_v14  ;;  %4759 = vrot.lane.b32.xlu0 %v9103_v12, %s8922_s15 }
  0x8d   : > { %7517 = vmatprep.subr.bf16.mxu1 %v464_v15  ;;  %4761 = vrot.lane.b32.xlu1 %v9106_v13, %s8922_s15 }
  0x8e   : > { %v9148_v16 = vpop.permute.xlu0 %3095  ;;  %v9151_v17 = vpop.permute.xlu1 %3097 }
  0x8f   : > { %7827 = vmatprep.subr.bf16.mxu0 %v9148_v16 }
  0x90   : > { %7518 = vmatpush3.bf16.msra.mxu1 %v464_v15  ;;  %7828 = vmatpush3.bf16.msra.mxu0 %v9148_v16  ;;  %v8683_v15 = vld [vmem:[%s10235_s0 + $0x88] sm:$0xff]  }
  0x91   : > { %2053 = vrot.lane.b32.xlu0 %v8996_v0, %s8923_s16  ;;  %7829 = vmatprep.subr.bf16.mxu0 %v9151_v17 }
  0x92   : > { %2055 = vrot.lane.b32.xlu1 %v8998_v1, %s8923_s16  ;;  %v466_v18 = vpop.permute.xlu0 %465  ;;  %v9159_v19 = vpop.permute.xlu1 %3099 }
  0x93   : > { %7519 = vmatprep.subr.bf16.mxu1 %v466_v18 }
  0x94   : > { %7520 = vmatpush3.bf16.msra.mxu1 %v466_v18  ;;  %7830 = vmatpush3.bf16.msra.mxu0 %v9151_v17 }
  0x95   : > { %7831 = vmatprep.subr.bf16.mxu0 %v9159_v19  ;;  %2057 = vrot.lane.b32.xlu0 %v9020_v5, %s8923_s16 }
  0x96   : > { %v468_v20 = vpop.permute.xlu0 %467  ;;  %2059 = vrot.lane.b32.xlu1 %v9029_v8, %s8923_s16  ;;  %v9167_v21 = vpop.permute.xlu1 %3101 }
  0x97   : > { %7521 = vmatprep.subr.bf16.mxu1 %v468_v20 }
  0x98   : > { %7522 = vmatpush3.bf16.msra.mxu1 %v468_v20  ;;  %7832 = vmatpush3.bf16.msra.mxu0 %v9159_v19 }
  0x99   : > { %7833 = vmatprep.subr.bf16.mxu0 %v9167_v21  ;;  %7539 = vmatprep.subr.bf16.mxu1 %v8996_v0 }
  0x9a   : > { %v3302_v24 = vpop.permute.xlu0 %3301  ;;  %4961 = vrot.lane.b32.xlu0 %v9093_v10, %s8917_s19  ;;  %4963 = vrot.lane.b32.xlu1 %v9096_v11, %s8917_s19  ;;  %v3304_v27 = vpop.permute.xlu1 %3303 }
  0x9b   : > { %7524 = vmatmul.mubr.msk.bf16.vlgmr.msra.gmra.mrb[0].mxu1 %vm473_vm0, %v8647_v22 }
  0x9c   : > { %7834 = vmatpush3.bf16.msra.mxu0 %v9167_v21  ;;  %7540 = vmatpush3.bf16.msra.mxu1 %v8996_v0 }
  0x9d   : > { %7851 = vmatprep.subr.bf16.mxu0 %v3302_v24  ;;  %7527 = vmatprep.mubr.msk.bf16.mxu1 %vm473_vm0, %v8650_v23  ;;  %v8690_v23 = vld [vmem:[%s10235_s0 + $0xa0] sm:$0xff]  }
  0x9e   : > { %v3306_v28 = vpop.permute.xlu0 %3305  ;;  %7541 = vmatprep.subr.bf16.mxu1 %v8998_v1  ;;  %4965 = vrot.lane.b32.xlu0 %v9103_v12, %s8917_s19  ;;  %v3308_v34 = vpop.permute.xlu1 %3307 }
  0x9f   : > { %7836 = vmatmul.mubr.msk.bf16.vlgmr.msra.gmra.mrb[0].mxu0 %vm473_vm0, %v8649_v25  ;;  %4967 = vrot.lane.b32.xlu1 %v9106_v13, %s8917_s19 }
  0xa0   : > { %7852 = vmatpush3.bf16.msra.mxu0 %v3302_v24  ;;  %7839 = vmatprep.mubr.msk.bf16.mxu0 %vm473_vm0, %v8652_v26  ;;  %v8689_v26 = vld [vmem:[%s10235_s0 + $0x3f8] sm:$0xff]  }
  0xa1   : > { %7853 = vmatprep.subr.bf16.mxu0 %v3304_v27  ;;  %7542 = vmatpush3.bf16.msra.mxu1 %v8998_v1  ;;  %v8674_v1 = vld [vmem:[%s10235_s0 + $0x28] sm:$0xff]  }
  0xa2   : > { %v3508_v31 = vpop.permute.xlu0 %3507  ;;  %7543 = vmatprep.subr.bf16.mxu1 %v9020_v5  ;;  %5167 = vrot.lane.b32.xlu0 %v9093_v10, %s8918_s28  ;;  %v3510_v43 = vpop.permute.xlu1 %3509 }
  0xa3   : > { %7528 = vmatmul.mubr.msk.bf16.gmra.mrb[4].mxu1 %vm473_vm0, %v8651_v29  ;;  %5169 = vrot.lane.b32.xlu1 %v9096_v11, %s8918_s28  ;;  %v8691_v29 = vld [vmem:[%s10235_s0 + $0xa8] sm:$0xff]  }
  0xa4   : > { %7854 = vmatpush3.bf16.msra.mxu0 %v3304_v27  ;;  %7531 = vmatprep.mubr.msk.bf16.mxu1 %vm473_vm0, %v8654_v30  ;;  %v8692_v27 = vld [vmem:[%s10235_s0 + $0x400] sm:$0xff]   ;;  %v8694_v30 = vld [vmem:[%s10235_s0 + $0xb0] sm:$0xff]  }
  0xa5   : > { %7855 = vmatprep.subr.bf16.mxu0 %v3306_v28  ;;  %7544 = vmatpush3.bf16.msra.mxu1 %v9020_v5 }
  0xa6   : > { %7545 = vmatprep.subr.bf16.mxu1 %v9029_v8  ;;  %v3512_v35 = vpop.permute.xlu0 %3511  ;;  %5171 = vrot.lane.b32.xlu0 %v9103_v12, %s8918_s28  ;;  %v3514_v49 = vpop.permute.xlu1 %3513 }
  0xa7   : > { %7840 = vmatmul.mubr.msk.bf16.gmra.mrb[4].mxu0 %vm473_vm0, %v8653_v32  ;;  %5173 = vrot.lane.b32.xlu1 %v9106_v13, %s8918_s28  ;;  %v8696_v32 = vld [vmem:[%s10235_s0 + $0x410] sm:$0xff]  }
  0xa8   : > { %7856 = vmatpush3.bf16.msra.mxu0 %v3306_v28  ;;  %7859 = vmatprep.mubr.msk.bf16.mxu0 %vm473_vm0, %v8656_v33 }
  0xa9   : > { %7857 = vmatprep.subr.bf16.mxu0 %v3308_v34  ;;  %7546 = vmatpush3.bf16.msra.mxu1 %v9029_v8  ;;  %v8681_v8 = vld [vmem:[%s10235_s0 + $0x3d8] sm:$0xff]  }
  0xaa   : > { %v818_v38 = vpop.permute.xlu0 %817  ;;  %2477 = vrot.lane.b32.xlu0 %v9014_v3, %s8916_s9  ;;  %v820_v53 = vpop.permute.xlu1 %819  ;;  %v8677_v3 = vld [vmem:[%s10235_s0 + $0x3c8] sm:$0xff]  }
  0xab   : > { %7532 = vmatmul.mubr.msk.bf16.gmra.mrb[8].mxu1 %vm473_vm0, %v8655_v36  ;;  %7563 = vmatprep.subr.bf16.mxu1 %v818_v38  ;;  %v8697_v36 = vld [vmem:[%s10235_s0 + $0x418] sm:$0xff]  }
  0xac   : > { %7858 = vmatpush3.bf16.msra.mxu0 %v3308_v34  ;;  %7535 = vmatprep.mubr.msk.bf16.mxu1 %vm473_vm0, %v8658_v37  ;;  %v8695_v34 = vld [vmem:[%s10235_s0 + $0xb8] sm:$0xff]   ;;  %v8700_v37 = vld [vmem:[%s10235_s0 + $0x420] sm:$0xff]  }
  0xad   : > { %7875 = vmatprep.subr.bf16.mxu0 %v3508_v31  ;;  %2479 = vrot.lane.b32.xlu1 %v9248_v42, %s8916_s9 }
  0xae   : > { %2481 = vrot.lane.b32.xlu0 %v9253_v44, %s8916_s9  ;;  %v822_v52 = vpop.permute.xlu0 %821  ;;  %v824_v61 = vpop.permute.xlu1 %823 }
  0xaf   : > { %7860 = vmatmul.mubr.msk.bf16.vlgmr.msra.gmra.mrb[0].mxu0 %vm473_vm0, %v8657_v39  ;;  %v8699_v39 = vld [vmem:[%s10235_s0 + $0xc8] sm:$0xff]  }
  0xb0   : > { %7876 = vmatpush3.bf16.msra.mxu0 %v3508_v31  ;;  %7863 = vmatprep.mubr.msk.bf16.mxu0 %vm473_vm0, %v8660_v40  ;;  %v8693_v31 = vld [vmem:[%s10235_s0 + $0x408] sm:$0xff]   ;;  %v8702_v40 = vld [vmem:[%s10235_s0 + $0xd0] sm:$0xff]  }
  0xb1   : > { %7877 = vmatprep.subr.bf16.mxu0 %v3510_v43  ;;  %2483 = vrot.lane.b32.xlu1 %v9263_v46, %s8916_s9 }
  0xb2   : > { %5373 = vrot.lane.b32.xlu0 %v9093_v10, %s8919_s29  ;;  %v3714_v56 = vpop.permute.xlu0 %3713  ;;  %v3716_v5 = vpop.permute.xlu1 %3715 }
  0xb3   : > { %7536 = vmatmul.mubr.msk.bf16.gmra.mrb[12].mxu1 %vm473_vm0, %v8659_v41 }
  0xb4   : > { %7878 = vmatpush3.bf16.msra.mxu0 %v3510_v43  ;;  %7547 = vmatprep.mubr.msk.bf16.mxu1 %vm473_vm0, %v8662_v45  ;;  %v8701_v43 = vld [vmem:[%s10235_s0 + $0x428] sm:$0xff]   ;;  %v8704_v45 = vld [vmem:[%s10235_s0 + $0x430] sm:$0xff]  }
  0xb5   : > { %7879 = vmatprep.subr.bf16.mxu0 %v3512_v35  ;;  %5375 = vrot.lane.b32.xlu1 %v9096_v11, %s8919_s29 }
  0xb6   : > { %5377 = vrot.lane.b32.xlu0 %v9103_v12, %s8919_s29  ;;  %v3718_v60 = vpop.permute.xlu0 %3717  ;;  %v3720_v14 = vpop.permute.xlu1 %3719 }
  0xb7   : > { %7864 = vmatmul.mubr.msk.bf16.gmra.mrb[4].mxu0 %vm473_vm0, %v8661_v47 }
  0xb8   : > { %7880 = vmatpush3.bf16.msra.mxu0 %v3512_v35  ;;  %7867 = vmatprep.mubr.msk.bf16.mxu0 %vm473_vm0, %v8665_v48  ;;  %v8698_v35 = vld [vmem:[%s10235_s0 + $0xc0] sm:$0xff]  }
  0xb9   : > { %7881 = vmatprep.subr.bf16.mxu0 %v3514_v49  ;;  %5379 = vrot.lane.b32.xlu1 %v9106_v13, %s8919_s29  ;;  %v8870_v48 = vld [vmem:[%s9060_s13] sm:$0xff]  }
  0xba   : > { %2683 = vrot.lane.b32.xlu0 %v9292_v54, %s8920_s6  ;;  %v1024_v0 = vpop.permute.xlu0 %1023  ;;  %v1026_v20 = vpop.permute.xlu1 %1025 }
  0xbb   : > { %7548 = vmatmul.mubr.msk.bf16.vlgmr.msra.gmra.mrb[0].mxu1 %vm473_vm0, %v8664_v50  ;;  %v8706_v50 = vld [vmem:[%s10235_s0 + $0xe0] sm:$0xff]  }
  0xbc   : > { %7564 = vmatpush3.bf16.msra.mxu1 %v818_v38  ;;  %7551 = vmatprep.mubr.msk.bf16.mxu1 %vm473_vm0, %v8667_v51 }
  0xbd   : > { %7882 = vmatpush3.bf16.msra.mxu0 %v3514_v49  ;;  %7565 = vmatprep.subr.bf16.mxu1 %v820_v53  ;;  %v8703_v49 = vld [vmem:[%s10235_s0 + $0xd8] sm:$0xff]  }
  0xbe   : > { %7899 = vmatprep.subr.bf16.mxu0 %v3714_v56  ;;  %2685 = vrot.lane.b32.xlu1 %v9248_v42, %s8920_s6  ;;  %v1028_v18 = vpop.permute.xlu0 %1027  ;;  %v1030_v25 = vpop.permute.xlu1 %1029 }
  0xbf   : > { %7868 = vmatmul.mubr.msk.bf16.gmra.mrb[8].mxu0 %vm473_vm0, %v8666_v55  ;;  %2687 = vrot.lane.b32.xlu0 %v9253_v44, %s8920_s6 }
  0xc0   : > { %7871 = vmatprep.mubr.msk.bf16.mxu0 %vm473_vm0, %v8670_v57  ;;  %7566 = vmatpush3.bf16.msra.mxu1 %v820_v53  ;;  %v8708_v53 = vld [vmem:[%s10235_s0 + $0x440] sm:$0xff]   ;;  %v8710_v57 = vld [vmem:[%s10235_s0 + $0xf0] sm:$0xff]  }
  0xc1   : > { %7567 = vmatprep.subr.bf16.mxu1 %v822_v52 }
  0xc2   : > { %2689 = vrot.lane.b32.xlu1 %v9263_v46, %s8920_s6  ;;  %v3920_v22 = vpop.permute.xlu0 %3919  ;;  %v3922_v33 = vpop.permute.xlu1 %3921  ;;  %s6294_s6 = sshll.u32 %s10258_s18, 4 }
  0xc3   : > { %7552 = vmatmul.mubr.msk.bf16.gmra.mrb[4].mxu1 %vm473_vm0, %v8669_v58  ;;  %5579 = vrot.lane.b32.xlu0 %v9093_v10, %s8921_s14  ;;  %v8709_v58 = vld [vmem:[%s10235_s0 + $0x448] sm:$0xff]   ;;  %s340_s19 = sadd.s32 %s6294_s6, %s8990_s27 }
  0xc4   : > { %7555 = vmatprep.mubr.msk.bf16.mxu1 %vm473_vm0, %v8673_v59  ;;  %7568 = vmatpush3.bf16.msra.mxu1 %v822_v52  ;;  %v8705_v52 = vld [vmem:[%s10235_s0 + $0x438] sm:$0xff]   ;;  %v8712_v59 = vld [vmem:[%s10235_s0 + $0x450] sm:$0xff]  }
  0xc5   : > { %7569 = vmatprep.subr.bf16.mxu1 %v824_v61 }
  0xc6   : > { %5581 = vrot.lane.b32.xlu1 %v9096_v11, %s8921_s14  ;;  %v3924_v24 = vpop.permute.xlu0 %3923  ;;  %v3926_v38 = vpop.permute.xlu1 %3925 }
  0xc7   : > { %7872 = vmatmul.mubr.msk.bf16.gmra.mrb[12].mxu0 %vm473_vm0, %v8672_v62  ;;  %5583 = vrot.lane.b32.xlu0 %v9103_v12, %s8921_s14  ;;  %v8871_v62 = vld [vmem:[%s9060_s13 + $0x8] sm:$0xff]  }
  0xc8   : > { %7883 = vmatprep.mubr.msk.bf16.mxu0 %vm473_vm0, %v8675_v63  ;;  %7570 = vmatpush3.bf16.msra.mxu1 %v824_v61  ;;  %v8714_v61 = vld [vmem:[%s10235_s0 + $0x100] sm:$0xff]   ;;  %v8713_v63 = vld [vmem:[%s10235_s0 + $0x458] sm:$0xff]  }
  0xc9   : > { %7587 = vmatprep.subr.bf16.mxu1 %v1024_v0 }
  0xca   : > { %5585 = vrot.lane.b32.xlu1 %v9106_v13, %s8921_s14  ;;  %v1230_v28 = vpop.permute.xlu0 %1229  ;;  %v1232_v41 = vpop.permute.xlu1 %1231 }
  0xcb   : > { %7556 = vmatmul.mubr.msk.bf16.gmra.mrb[8].mxu1 %vm473_vm0, %v8674_v1  ;;  %2889 = vrot.lane.b32.xlu0 %v9292_v54, %s8922_s15  ;;  %v8872_v1 = vld [vmem:[%s9060_s13 + $0x10] sm:$0xff]  }
  0xcc   : > { %7559 = vmatprep.mubr.msk.bf16.mxu1 %vm473_vm0, %v8678_v2  ;;  %v8715_v2 = vld [vmem:[%s10235_s0 + $0x108] sm:$0xff]  }
  0xce   : > { %2891 = vrot.lane.b32.xlu1 %v9248_v42, %s8922_s15  ;;  %v1234_v47 = vpop.permute.xlu0 %1233  ;;  %v1236_v51 = vpop.permute.xlu1 %1235 }
  0xcf   : > { %7884 = vmatmul.mubr.msk.bf16.vlgmr.msra.gmra.mrb[0].mxu0 %vm473_vm0, %v8677_v3  ;;  %2893 = vrot.lane.b32.xlu0 %v9253_v44, %s8922_s15 }
  0xd0   : > { %7900 = vmatpush3.bf16.msra.mxu0 %v3714_v56  ;;  %7887 = vmatprep.mubr.msk.bf16.mxu0 %vm473_vm0, %v8680_v4  ;;  %v8707_v56 = vld [vmem:[%s10235_s0 + $0xe8] sm:$0xff]   ;;  %v8718_v4 = vld [vmem:[%s10235_s0 + $0x110] sm:$0xff]  }
  0xd1   : > { %7901 = vmatprep.subr.bf16.mxu0 %v3716_v5 }
  0xd2   : > { %2895 = vrot.lane.b32.xlu1 %v9263_v46, %s8922_s15  ;;  %v1436_v55 = vpop.permute.xlu0 %1435  ;;  %s6296_s15 = sshll.u32 %s340_s19, 2 }
  0xd3   : > { %7560 = vmatmul.mubr.msk.bf16.gmra.mrb[12].mxu1 %vm473_vm0, %v8679_v6  ;;  %5785 = vrot.lane.b32.xlu0 %v9093_v10, %s8923_s16  ;;  %v8686_v10 = vld [vmem:[%s10235_s0 + $0x90] sm:$0xff]   ;;  %v1438_v6 = vpop.permute.xlu1 %1437  ;;  %s10186_s18 = scalar_lea.vmem %s10240_s5, %s6296_s15 }
  0xd4   : > { %7902 = vmatpush3.bf16.msra.mxu0 %v3716_v5  ;;  %7571 = vmatprep.mubr.msk.bf16.mxu1 %vm473_vm0, %v8682_v7  ;;  %v8873_v5 = vld [vmem:[%s9060_s13 + $0x18] sm:$0xff]   ;;  %v8717_v7 = vld [vmem:[%s10235_s0 + $0x468] sm:$0xff]  }
  0xd5   : > { %7903 = vmatprep.subr.bf16.mxu0 %v3718_v60 }
  0xd6   : > { %5787 = vrot.lane.b32.xlu1 %v9096_v11, %s8923_s16  ;;  %v8685_v11 = vld [vmem:[%s10235_s0 + $0x3e8] sm:$0xff]   ;;  %v1440_v3 = vpop.permute.xlu0 %1439 }
  0xd7   : > { %7888 = vmatmul.mubr.msk.bf16.gmra.mrb[4].mxu0 %vm473_vm0, %v8681_v8  ;;  %5789 = vrot.lane.b32.xlu0 %v9103_v12, %s8923_s16  ;;  %v8688_v12 = vld [vmem:[%s10235_s0 + $0x3f0] sm:$0xff]  }
  0xd8   : > { %7904 = vmatpush3.bf16.msra.mxu0 %v3718_v60  ;;  %7891 = vmatprep.mubr.msk.bf16.mxu0 %vm473_vm0, %v8684_v9  ;;  %v8711_v60 = vld [vmem:[%s10235_s0 + $0xf8] sm:$0xff]   ;;  %v8720_v9 = vld [vmem:[%s10235_s0 + $0x470] sm:$0xff]  }
  0xd9   : > { %7905 = vmatprep.subr.bf16.mxu0 %v3720_v14 }
  0xda   : > { %5791 = vrot.lane.b32.xlu1 %v9106_v13, %s8923_s16  ;;  %v8687_v13 = vld [vmem:[%s10235_s0 + $0x98] sm:$0xff]   ;;  %v4344_v8 = vpop.permute.xlu0 %4343 }
  0xdb   : > { %7572 = vmatmul.mubr.msk.bf16.vlgmr.msra.gmra.mrb[0].mxu1 %vm473_vm0, %v8683_v15  ;;  %v8722_v15 = vld [vmem:[%s10235_s0 + $0x120] sm:$0xff]  }
  0xdc   : > { %7588 = vmatpush3.bf16.msra.mxu1 %v1024_v0  ;;  %7575 = vmatprep.mubr.msk.bf16.mxu1 %vm473_vm0, %v8686_v10  ;;  %v8716_v0 = vld [vmem:[%s10235_s0 + $0x460] sm:$0xff]   ;;  %v1442_v10 = vpop.permute.xlu1 %1441 }
  0xdd   : > { %7906 = vmatpush3.bf16.msra.mxu0 %v3720_v14  ;;  %7589 = vmatprep.subr.bf16.mxu1 %v1026_v20  ;;  %v8719_v14 = vld [vmem:[%s10235_s0 + $0x118] sm:$0xff]  }
  0xde   : > { %7923 = vmatprep.subr.bf16.mxu0 %v3920_v22 }
  0xdf   : > { %7892 = vmatmul.mubr.msk.bf16.gmra.mrb[8].mxu0 %vm473_vm0, %v8685_v11  ;;  %v8724_v11 = vld [vmem:[%s10235_s0 + $0x480] sm:$0xff]  }
  0xe0   : > { %7895 = vmatprep.mubr.msk.bf16.mxu0 %vm473_vm0, %v8688_v12  ;;  %7590 = vmatpush3.bf16.msra.mxu1 %v1026_v20  ;;  %v8721_v20 = vld [vmem:[%s10235_s0 + $0x478] sm:$0xff]   ;;  %v8723_v12 = vld [vmem:[%s10235_s0 + $0x128] sm:$0xff]  }
  0xe1   : > { %7591 = vmatprep.subr.bf16.mxu1 %v1028_v18 }
  0xe3   : > { %7576 = vmatmul.mubr.msk.bf16.gmra.mrb[4].mxu1 %vm473_vm0, %v8687_v13  ;;  %v8726_v13 = vld [vmem:[%s10235_s0 + $0x130] sm:$0xff]  }
  0xe4   : > { %7579 = vmatprep.mubr.msk.bf16.mxu1 %vm473_vm0, %v8690_v23  ;;  %7592 = vmatpush3.bf16.msra.mxu1 %v1028_v18  ;;  %v4348_v18 = vpop.permute.xlu0 %4347  ;;  %v8725_v23 = vld [vmem:[%s10235_s0 + $0x488] sm:$0xff]  }
  0xe5   : > { %7593 = vmatprep.subr.bf16.mxu1 %v1030_v25 }
  0xe7   : > { %7896 = vmatmul.mubr.msk.bf16.gmra.mrb[12].mxu0 %vm473_vm0, %v8689_v26  ;;  %v8727_v26 = vld [vmem:[%s10235_s0 + $0x138] sm:$0xff]  }
  0xe8   : > { %7907 = vmatprep.mubr.msk.bf16.mxu0 %vm473_vm0, %v8692_v27  ;;  %7594 = vmatpush3.bf16.msra.mxu1 %v1030_v25  ;;  %v4346_v25 = vpop.permute.xlu1 %4345  ;;  %v8730_v27 = vld [vmem:[%s10235_s0 + $0x140] sm:$0xff]  }
  0xe9   : > { %7611 = vmatprep.subr.bf16.mxu1 %v1230_v28 }
  0xeb   : > { %7580 = vmatmul.mubr.msk.bf16.gmra.mrb[8].mxu1 %vm473_vm0, %v8691_v29  ;;  %v8732_v29 = vld [vmem:[%s10235_s0 + $0x4a0] sm:$0xff]  }
  0xec   : > { %7583 = vmatprep.mubr.msk.bf16.mxu1 %vm473_vm0, %v8694_v30  ;;  %v4350_v30 = vpop.permute.xlu1 %4349 }
  0xef   : > { %7908 = vmatmul.mubr.msk.bf16.vlgmr.msra.gmra.mrb[0].mxu0 %vm473_vm0, %v8693_v31  ;;  %v8731_v31 = vld [vmem:[%s10235_s0 + $0x148] sm:$0xff]  }
  0xf0   : > { %7924 = vmatpush3.bf16.msra.mxu0 %v3920_v22  ;;  %7911 = vmatprep.mubr.msk.bf16.mxu0 %vm473_vm0, %v8696_v32  ;;  %v1642_v22 = vpop.permute.xlu0 %1641 }
  0xf1   : > { %7925 = vmatprep.subr.bf16.mxu0 %v3922_v33 }
  0xf3   : > { %7584 = vmatmul.mubr.msk.bf16.gmra.mrb[12].mxu1 %vm473_vm0, %v8695_v34  ;;  %v1644_v34 = vpop.permute.xlu1 %1643 }
  0xf4   : > { %7926 = vmatpush3.bf16.msra.mxu0 %v3922_v33  ;;  %7595 = vmatprep.mubr.msk.bf16.mxu1 %vm473_vm0, %v8698_v35  ;;  %v1646_v32 = vpop.permute.xlu0 %1645  ;;  %v8734_v33 = vld [vmem:[%s10235_s0 + $0x150] sm:$0xff]   ;;  %v8733_v35 = vld [vmem:[%s10235_s0 + $0x4a8] sm:$0xff]  }
  0xf5   : > { %7927 = vmatprep.subr.bf16.mxu0 %v3924_v24 }
  0xf7   : > { %7912 = vmatmul.mubr.msk.bf16.gmra.mrb[4].mxu0 %vm473_vm0, %v8697_v36 }
  0xf8   : > { %7928 = vmatpush3.bf16.msra.mxu0 %v3924_v24  ;;  %7915 = vmatprep.mubr.msk.bf16.mxu0 %vm473_vm0, %v8700_v37  ;;  %v8728_v24 = vld [vmem:[%s10235_s0 + $0x490] sm:$0xff]   ;;  %v4550_v36 = vpop.permute.xlu0 %4549 }
  0xf9   : > { %7929 = vmatprep.subr.bf16.mxu0 %v3926_v38  ;;  %v8736_v37 = vld [vmem:[%s10235_s0 + $0x4b0] sm:$0xff]  }
  0xfb   : > { %7596 = vmatmul.mubr.msk.bf16.vlgmr.msra.gmra.mrb[0].mxu1 %vm473_vm0, %v8699_v39  ;;  %v8738_v39 = vld [vmem:[%s10235_s0 + $0x160] sm:$0xff]  }
  0xfc   : > { %7612 = vmatpush3.bf16.msra.mxu1 %v1230_v28  ;;  %7599 = vmatprep.mubr.msk.bf16.mxu1 %vm473_vm0, %v8702_v40  ;;  %v8729_v28 = vld [vmem:[%s10235_s0 + $0x498] sm:$0xff]   ;;  %v4554_v40 = vpop.permute.xlu0 %4553 }
  0xfd   : > { %7930 = vmatpush3.bf16.msra.mxu0 %v3926_v38  ;;  %7613 = vmatprep.subr.bf16.mxu1 %v1232_v41  ;;  %v8735_v38 = vld [vmem:[%s10235_s0 + $0x158] sm:$0xff]  }
  0xfe   : > { %7947 = vmatprep.subr.bf16.mxu0 %v8870_v48 }
  0xff   : > { %7916 = vmatmul.mubr.msk.bf16.gmra.mrb[8].mxu0 %vm473_vm0, %v8701_v43  ;;  %v8737_v43 = vld [vmem:[%s10235_s0 + $0x4b8] sm:$0xff]  }
 0x100   : > { %7919 = vmatprep.mubr.msk.bf16.mxu0 %vm473_vm0, %v8704_v45  ;;  %7614 = vmatpush3.bf16.msra.mxu1 %v1232_v41  ;;  %v1648_v41 = vpop.permute.xlu1 %1647  ;;  %v8740_v45 = vld [vmem:[%s10235_s0 + $0x4c0] sm:$0xff]  }
 0x101   : > { %7615 = vmatprep.subr.bf16.mxu1 %v1234_v47 }
 0x103   : > { %7600 = vmatmul.mubr.msk.bf16.gmra.mrb[4].mxu1 %vm473_vm0, %v8703_v49  ;;  %v8742_v49 = vld [vmem:[%s10235_s0 + $0x170] sm:$0xff]  }
 0x104   : > { %7603 = vmatprep.mubr.msk.bf16.mxu1 %vm473_vm0, %v8706_v50  ;;  %7616 = vmatpush3.bf16.msra.mxu1 %v1234_v47  ;;  %v1848_v47 = vpop.permute.xlu0 %1847  ;;  %v8741_v50 = vld [vmem:[%s10235_s0 + $0x4c8] sm:$0xff]  }
 0x105   : > { %7617 = vmatprep.subr.bf16.mxu1 %v1236_v51 }
 0x107   : > { %7920 = vmatmul.mubr.msk.bf16.gmra.mrb[12].mxu0 %vm473_vm0, %v8705_v52  ;;  %v4552_v52 = vpop.permute.xlu1 %4551 }
 0x108   : > { %7931 = vmatprep.mubr.msk.bf16.mxu0 %vm473_vm0, %v8708_v53  ;;  %7618 = vmatpush3.bf16.msra.mxu1 %v1236_v51  ;;  %v8744_v51 = vld [vmem:[%s10235_s0 + $0x4d0] sm:$0xff]   ;;  %v8743_v53 = vld [vmem:[%s10235_s0 + $0x178] sm:$0xff]  }
 0x109   : > { %7635 = vmatprep.subr.bf16.mxu1 %v1436_v55 }
 0x10b   : > { %7604 = vmatmul.mubr.msk.bf16.gmra.mrb[8].mxu1 %vm473_vm0, %v8707_v56  ;;  %v8745_v56 = vld [vmem:[%s10235_s0 + $0x4d8] sm:$0xff]  }
 0x10c   : > { %7607 = vmatprep.mubr.msk.bf16.mxu1 %vm473_vm0, %v8710_v57  ;;  %v8748_v57 = vld [vmem:[%s10235_s0 + $0x4e0] sm:$0xff]  }
 0x10f   : > { %7932 = vmatmul.mubr.msk.bf16.vlgmr.msra.gmra.mrb[0].mxu0 %vm473_vm0, %v8709_v58  ;;  %v4556_v58 = vpop.permute.xlu1 %4555 }
 0x110   : > { %7948 = vmatpush3.bf16.msra.mxu0 %v8870_v48  ;;  %7935 = vmatprep.mubr.msk.bf16.mxu0 %vm473_vm0, %v8712_v59  ;;  %v8739_v48 = vld [vmem:[%s10235_s0 + $0x168] sm:$0xff]  }
 0x111   : > { %7949 = vmatprep.subr.bf16.mxu0 %v8871_v62  ;;  %v8747_v59 = vld [vmem:[%s10235_s0 + $0x188] sm:$0xff]  }
 0x113   : > { %7608 = vmatmul.mubr.msk.bf16.gmra.mrb[12].mxu1 %vm473_vm0, %v8711_v60  ;;  %v1852_v60 = vpop.permute.xlu0 %1851 }
 0x114   : > { %7950 = vmatpush3.bf16.msra.mxu0 %v8871_v62  ;;  %7619 = vmatprep.mubr.msk.bf16.mxu1 %vm473_vm0, %v8714_v61  ;;  %v8750_v61 = vld [vmem:[%s10235_s0 + $0x190] sm:$0xff]   ;;  %v1850_v62 = vpop.permute.xlu1 %1849 }
 0x115   : > { %7951 = vmatprep.subr.bf16.mxu0 %v8872_v1 }
 0x117   : > { %7936 = vmatmul.mubr.msk.bf16.gmra.mrb[4].mxu0 %vm473_vm0, %v8713_v63  ;;  %v8749_v63 = vld [vmem:[%s10235_s0 + $0x4e8] sm:$0xff]  }
 0x118   : > { %7939 = vmatprep.mubr.msk.bf16.mxu0 %vm473_vm0, %v8716_v0  ;;  %7952 = vmatpush3.bf16.msra.mxu0 %v8872_v1  ;;  %v4756_v0 = vpop.permute.xlu0 %4755  ;;  %v8752_v1 = vld [vmem:[%s10235_s0 + $0x4f0] sm:$0xff]  }
 0x119   : > { %7953 = vmatprep.subr.bf16.mxu0 %v8873_v5 }
 0x11b   : > { %7620 = vmatmul.mubr.msk.bf16.vlgmr.msra.gmra.mrb[0].mxu1 %vm473_vm0, %v8715_v2  ;;  %v8751_v2 = vld [vmem:[%s10235_s0 + $0x198] sm:$0xff]  }
 0x11c   : > { %7636 = vmatpush3.bf16.msra.mxu1 %v1436_v55  ;;  %7623 = vmatprep.mubr.msk.bf16.mxu1 %vm473_vm0, %v8718_v4  ;;  %v8746_v55 = vld [vmem:[%s10235_s0 + $0x180] sm:$0xff]   ;;  %v4760_v4 = vpop.permute.xlu0 %4759 }
 0x11d   : > { %7637 = vmatprep.subr.bf16.mxu1 %v1438_v6  ;;  %7954 = vmatpush3.bf16.msra.mxu0 %v8873_v5  ;;  %v1854_v5 = vpop.permute.xlu1 %1853 }
 0x11e   : > { %7971 = vmatprep.subr.bf16.mxu0 %v4344_v8 }
 0x11f   : > { %7940 = vmatmul.mubr.msk.bf16.gmra.mrb[8].mxu0 %vm473_vm0, %v8717_v7  ;;  %v8756_v7 = vld [vmem:[%s10235_s0 + $0x500] sm:$0xff]  }
 0x120   : > { %7943 = vmatprep.mubr.msk.bf16.mxu0 %vm473_vm0, %v8720_v9  ;;  %7638 = vmatpush3.bf16.msra.mxu1 %v1438_v6  ;;  %v8753_v6 = vld [vmem:[%s10235_s0 + $0x4f8] sm:$0xff]   ;;  %v8755_v9 = vld [vmem:[%s10235_s0 + $0x1a8] sm:$0xff]  }
 0x121   : > { %7639 = vmatprep.subr.bf16.mxu1 %v1440_v3 }
 0x123   : > { %7624 = vmatmul.mubr.msk.bf16.gmra.mrb[4].mxu1 %vm473_vm0, %v8719_v14  ;;  %v8758_v14 = vld [vmem:[%s10235_s0 + $0x1b0] sm:$0xff]  }
 0x124   : > { %7627 = vmatprep.mubr.msk.bf16.mxu1 %vm473_vm0, %v8722_v15  ;;  %7640 = vmatpush3.bf16.msra.mxu1 %v1440_v3  ;;  %v8754_v3 = vld [vmem:[%s10235_s0 + $0x1a0] sm:$0xff]   ;;  %v8757_v15 = vld [vmem:[%s10235_s0 + $0x508] sm:$0xff]  }
 0x125   : > { %7641 = vmatprep.subr.bf16.mxu1 %v1442_v10 }
 0x127   : > { %7944 = vmatmul.mubr.msk.bf16.gmra.mrb[12].mxu0 %vm473_vm0, %v8721_v20  ;;  %v8759_v20 = vld [vmem:[%s10235_s0 + $0x1b8] sm:$0xff]  }
 0x128   : > { %7955 = vmatprep.mubr.msk.bf16.mxu0 %vm473_vm0, %v8724_v11  ;;  %7642 = vmatpush3.bf16.msra.mxu1 %v1442_v10  ;;  %v4758_v10 = vpop.permute.xlu1 %4757  ;;  %v8762_v11 = vld [vmem:[%s10235_s0 + $0x1c0] sm:$0xff]  }
 0x129   : > { %7659 = vmatprep.subr.bf16.mxu1 %v1642_v22 }
 0x12b   : > { %7628 = vmatmul.mubr.msk.bf16.gmra.mrb[8].mxu1 %vm473_vm0, %v8723_v12  ;;  %v8764_v12 = vld [vmem:[%s10235_s0 + $0x520] sm:$0xff]  }
 0x12c   : > { %7631 = vmatprep.mubr.msk.bf16.mxu1 %vm473_vm0, %v8726_v13  ;;  %v4762_v13 = vpop.permute.xlu1 %4761 }
 0x12f   : > { %7956 = vmatmul.mubr.msk.bf16.vlgmr.msra.gmra.mrb[0].mxu0 %vm473_vm0, %v8725_v23  ;;  %v8763_v23 = vld [vmem:[%s10235_s0 + $0x1c8] sm:$0xff]  }
 0x130   : > { %7972 = vmatpush3.bf16.msra.mxu0 %v4344_v8  ;;  %7959 = vmatprep.mubr.msk.bf16.mxu0 %vm473_vm0, %v8728_v24  ;;  %v2054_v8 = vpop.permute.xlu0 %2053 }
 0x131   : > { %7973 = vmatprep.subr.bf16.mxu0 %v4346_v25 }
 0x133   : > { %7632 = vmatmul.mubr.msk.bf16.gmra.mrb[12].mxu1 %vm473_vm0, %v8727_v26  ;;  %v2056_v26 = vpop.permute.xlu1 %2055 }
 0x134   : > { %7974 = vmatpush3.bf16.msra.mxu0 %v4346_v25  ;;  %7643 = vmatprep.mubr.msk.bf16.mxu1 %vm473_vm0, %v8730_v27  ;;  %v2058_v24 = vpop.permute.xlu0 %2057  ;;  %v8766_v25 = vld [vmem:[%s10235_s0 + $0x1d0] sm:$0xff]   ;;  %v8765_v27 = vld [vmem:[%s10235_s0 + $0x528] sm:$0xff]  }
 0x135   : > { %7975 = vmatprep.subr.bf16.mxu0 %v4348_v18 }
 0x137   : > { %7960 = vmatmul.mubr.msk.bf16.gmra.mrb[4].mxu0 %vm473_vm0, %v8729_v28 }
 0x138   : > { %7976 = vmatpush3.bf16.msra.mxu0 %v4348_v18  ;;  %7963 = vmatprep.mubr.msk.bf16.mxu0 %vm473_vm0, %v8732_v29  ;;  %v8760_v18 = vld [vmem:[%s10235_s0 + $0x510] sm:$0xff]   ;;  %v4962_v28 = vpop.permute.xlu0 %4961 }
 0x139   : > { %7977 = vmatprep.subr.bf16.mxu0 %v4350_v30  ;;  %v8768_v29 = vld [vmem:[%s10235_s0 + $0x530] sm:$0xff]  }
 0x13b   : > { %7644 = vmatmul.mubr.msk.bf16.vlgmr.msra.gmra.mrb[0].mxu1 %vm473_vm0, %v8731_v31  ;;  %v8770_v31 = vld [vmem:[%s10235_s0 + $0x1e0] sm:$0xff]  }
 0x13c   : > { %7660 = vmatpush3.bf16.msra.mxu1 %v1642_v22  ;;  %7647 = vmatprep.mubr.msk.bf16.mxu1 %vm473_vm0, %v8734_v33  ;;  %v8761_v22 = vld [vmem:[%s10235_s0 + $0x518] sm:$0xff]  }
 0x13d   : > { %7978 = vmatpush3.bf16.msra.mxu0 %v4350_v30  ;;  %7661 = vmatprep.subr.bf16.mxu1 %v1644_v34  ;;  %v8767_v30 = vld [vmem:[%s10235_s0 + $0x1d8] sm:$0xff]  }
 0x13e   : > { %7995 = vmatprep.subr.bf16.mxu0 %v4550_v36  ;;  %v8769_v33 = vld [vmem:[%s10235_s0 + $0x538] sm:$0xff]  }
 0x13f   : > { %7964 = vmatmul.mubr.msk.bf16.gmra.mrb[8].mxu0 %vm473_vm0, %v8733_v35  ;;  %v8771_v35 = vld [vmem:[%s10235_s0 + $0x1e8] sm:$0xff]  }
 0x140   : > { %7967 = vmatprep.mubr.msk.bf16.mxu0 %vm473_vm0, %v8736_v37  ;;  %7662 = vmatpush3.bf16.msra.mxu1 %v1644_v34  ;;  %v8772_v34 = vld [vmem:[%s10235_s0 + $0x540] sm:$0xff]   ;;  %v8773_v37 = vld [vmem:[%s10235_s0 + $0x548] sm:$0xff]  }
 0x141   : > { %7663 = vmatprep.subr.bf16.mxu1 %v1646_v32 }
 0x143   : > { %7648 = vmatmul.mubr.msk.bf16.gmra.mrb[4].mxu1 %vm473_vm0, %v8735_v38  ;;  %v8776_v38 = vld [vmem:[%s10235_s0 + $0x550] sm:$0xff]  }
 0x144   : > { %7651 = vmatprep.mubr.msk.bf16.mxu1 %vm473_vm0, %v8738_v39  ;;  %7664 = vmatpush3.bf16.msra.mxu1 %v1646_v32  ;;  %v2060_v32 = vpop.permute.xlu1 %2059 }
 0x145   : > { %7665 = vmatprep.subr.bf16.mxu1 %v1648_v41 }
 0x147   : > { %7968 = vmatmul.mubr.msk.bf16.gmra.mrb[12].mxu0 %vm473_vm0, %v8737_v43  ;;  %v4966_v43 = vpop.permute.xlu0 %4965 }
 0x148   : > { %7979 = vmatprep.mubr.msk.bf16.mxu0 %vm473_vm0, %v8740_v45  ;;  %7666 = vmatpush3.bf16.msra.mxu1 %v1648_v41  ;;  %v4964_v39 = vpop.permute.xlu1 %4963  ;;  %v8778_v41 = vld [vmem:[%s10235_s0 + $0x200] sm:$0xff]   ;;  %v8777_v45 = vld [vmem:[%s10235_s0 + $0x558] sm:$0xff]  }
 0x149   : > { %7683 = vmatprep.subr.bf16.mxu1 %v1848_v47 }
 0x14b   : > { %7652 = vmatmul.mubr.msk.bf16.gmra.mrb[8].mxu1 %vm473_vm0, %v8739_v48 }
 0x14c   : > { %7655 = vmatprep.mubr.msk.bf16.mxu1 %vm473_vm0, %v8742_v49  ;;  %v4968_v48 = vpop.permute.xlu1 %4967  ;;  %v8779_v49 = vld [vmem:[%s10235_s0 + $0x208] sm:$0xff]  }
 0x14f   : > { %7980 = vmatmul.mubr.msk.bf16.vlgmr.msra.gmra.mrb[0].mxu0 %vm473_vm0, %v8741_v50  ;;  %v8782_v50 = vld [vmem:[%s10235_s0 + $0x210] sm:$0xff]  }
 0x150   : > { %7996 = vmatpush3.bf16.msra.mxu0 %v4550_v36  ;;  %7983 = vmatprep.mubr.msk.bf16.mxu0 %vm473_vm0, %v8744_v51  ;;  %v8774_v36 = vld [vmem:[%s10235_s0 + $0x1f0] sm:$0xff]   ;;  %v8781_v51 = vld [vmem:[%s10235_s0 + $0x568] sm:$0xff]  }
 0x151   : > { %7997 = vmatprep.subr.bf16.mxu0 %v4552_v52 }
 0x153   : > { %7656 = vmatmul.mubr.msk.bf16.gmra.mrb[12].mxu1 %vm473_vm0, %v8743_v53  ;;  %v8784_v53 = vld [vmem:[%s10235_s0 + $0x570] sm:$0xff]  }
 0x154   : > { %7998 = vmatpush3.bf16.msra.mxu0 %v4552_v52  ;;  %7667 = vmatprep.mubr.msk.bf16.mxu1 %vm473_vm0, %v8746_v55  ;;  %v5168_v52 = vpop.permute.xlu0 %5167  ;;  %v8783_v55 = vld [vmem:[%s10235_s0 + $0x218] sm:$0xff]  }
 0x155   : > { %7999 = vmatprep.subr.bf16.mxu0 %v4554_v40 }
 0x157   : > { %7984 = vmatmul.mubr.msk.bf16.gmra.mrb[4].mxu0 %vm473_vm0, %v8745_v56  ;;  %v8786_v56 = vld [vmem:[%s10235_s0 + $0x220] sm:$0xff]  }
 0x158   : > { %8000 = vmatpush3.bf16.msra.mxu0 %v4554_v40  ;;  %7987 = vmatprep.mubr.msk.bf16.mxu0 %vm473_vm0, %v8748_v57  ;;  %v8775_v40 = vld [vmem:[%s10235_s0 + $0x1f8] sm:$0xff]   ;;  %v5172_v57 = vpop.permute.xlu0 %5171 }
 0x159   : > { %8001 = vmatprep.subr.bf16.mxu0 %v4556_v58 }
 0x15b   : > { %7668 = vmatmul.mubr.msk.bf16.vlgmr.msra.gmra.mrb[0].mxu1 %vm473_vm0, %v8747_v59  ;;  %v8875_v59 = vld [vmem:[%s9011_s17 + $0x10] sm:$0xff]  }
 0x15c   : > { %7684 = vmatpush3.bf16.msra.mxu1 %v1848_v47  ;;  %7671 = vmatprep.mubr.msk.bf16.mxu1 %vm473_vm0, %v8750_v61  ;;  %v8780_v47 = vld [vmem:[%s10235_s0 + $0x560] sm:$0xff]   ;;  %v8790_v61 = vld [vmem:[%s10235_s0 + $0x230] sm:$0xff]  }
 0x15d   : > { %8002 = vmatpush3.bf16.msra.mxu0 %v4556_v58  ;;  %7685 = vmatprep.subr.bf16.mxu1 %v1850_v62  ;;  %v8788_v58 = vld [vmem:[%s10235_s0 + $0x580] sm:$0xff]  }
 0x15e   : > { %8019 = vmatprep.subr.bf16.mxu0 %v4756_v0 }
 0x15f   : > { %7988 = vmatmul.mubr.msk.bf16.gmra.mrb[8].mxu0 %vm473_vm0, %v8749_v63  ;;  %v8792_v63 = vld [vmem:[%s10235_s0 + $0x590] sm:$0xff]  }
 0x160   : > { %7991 = vmatprep.mubr.msk.bf16.mxu0 %vm473_vm0, %v8752_v1  ;;  %7686 = vmatpush3.bf16.msra.mxu1 %v1850_v62  ;;  %v8789_v62 = vld [vmem:[%s10235_s0 + $0x588] sm:$0xff]   ;;  %v8794_v1 = vld [vmem:[%s10235_s0 + $0x240] sm:$0xff]  }
 0x161   : > { %7687 = vmatprep.subr.bf16.mxu1 %v1852_v60 }
 0x163   : > { %7672 = vmatmul.mubr.msk.bf16.gmra.mrb[4].mxu1 %vm473_vm0, %v8751_v2  ;;  %v8793_v2 = vld [vmem:[%s10235_s0 + $0x598] sm:$0xff]  }
 0x164   : > { %7675 = vmatprep.mubr.msk.bf16.mxu1 %vm473_vm0, %v8754_v3  ;;  %7688 = vmatpush3.bf16.msra.mxu1 %v1852_v60  ;;  %v2478_v60 = vpop.permute.xlu0 %2477  ;;  %v8796_v3 = vld [vmem:[%s10235_s0 + $0x5a0] sm:$0xff]  }
 0x165   : > { %7689 = vmatprep.subr.bf16.mxu1 %v1854_v5 }
 0x167   : > { %7992 = vmatmul.mubr.msk.bf16.gmra.mrb[12].mxu0 %vm473_vm0, %v8753_v6 }
 0x168   : > { %8003 = vmatprep.mubr.msk.bf16.mxu0 %vm473_vm0, %v8756_v7  ;;  %7690 = vmatpush3.bf16.msra.mxu1 %v1854_v5  ;;  %v8795_v5 = vld [vmem:[%s10235_s0 + $0x248] sm:$0xff]   ;;  %v2482_v6 = vpop.permute.xlu0 %2481  ;;  %v8798_v7 = vld [vmem:[%s10235_s0 + $0x250] sm:$0xff]  }
 0x169   : > { %7707 = vmatprep.subr.bf16.mxu1 %v2054_v8 }
 0x16b   : > { %7676 = vmatmul.mubr.msk.bf16.gmra.mrb[8].mxu1 %vm473_vm0, %v8755_v9  ;;  %v8797_v9 = vld [vmem:[%s10235_s0 + $0x5a8] sm:$0xff]  }
 0x16c   : > { %7679 = vmatprep.mubr.msk.bf16.mxu1 %vm473_vm0, %v8758_v14  ;;  %v5374_v14 = vpop.permute.xlu0 %5373 }
 0x16f   : > { %8004 = vmatmul.mubr.msk.bf16.vlgmr.msra.gmra.mrb[0].mxu0 %vm473_vm0, %v8757_v15  ;;  %v8800_v15 = vld [vmem:[%s10235_s0 + $0x5b0] sm:$0xff]  }
 0x170   : > { %8020 = vmatpush3.bf16.msra.mxu0 %v4756_v0  ;;  %8007 = vmatprep.mubr.msk.bf16.mxu0 %vm473_vm0, %v8760_v18  ;;  %v5170_v0 = vpop.permute.xlu1 %5169  ;;  %v8799_v18 = vld [vmem:[%s10235_s0 + $0x258] sm:$0xff]  }
 0x171   : > { %8021 = vmatprep.subr.bf16.mxu0 %v4758_v10 }
 0x173   : > { %7680 = vmatmul.mubr.msk.bf16.gmra.mrb[12].mxu1 %vm473_vm0, %v8759_v20  ;;  %v5378_v20 = vpop.permute.xlu0 %5377 }
 0x174   : > { %8022 = vmatpush3.bf16.msra.mxu0 %v4758_v10  ;;  %7691 = vmatprep.mubr.msk.bf16.mxu1 %vm473_vm0, %v8762_v11  ;;  %v8802_v10 = vld [vmem:[%s10235_s0 + $0x260] sm:$0xff]  }
 0x175   : > { %8023 = vmatprep.subr.bf16.mxu0 %v4760_v4 }
 0x177   : > { %8008 = vmatmul.mubr.msk.bf16.gmra.mrb[4].mxu0 %vm473_vm0, %v8761_v22  ;;  %v8801_v22 = vld [vmem:[%s10235_s0 + $0x5b8] sm:$0xff]  }
 0x178   : > { %8024 = vmatpush3.bf16.msra.mxu0 %v4760_v4  ;;  %8011 = vmatprep.mubr.msk.bf16.mxu0 %vm473_vm0, %v8764_v12  ;;  %v5174_v4 = vpop.permute.xlu1 %5173  ;;  %v8804_v12 = vld [vmem:[%s10235_s0 + $0x5c0] sm:$0xff]  }
 0x179   : > { %8025 = vmatprep.subr.bf16.mxu0 %v4762_v13 }
 0x17b   : > { %7692 = vmatmul.mubr.msk.bf16.vlgmr.msra.gmra.mrb[0].mxu1 %vm473_vm0, %v8763_v23  ;;  %v8803_v23 = vld [vmem:[%s10235_s0 + $0x268] sm:$0xff]  }
 0x17c   : > { %7708 = vmatpush3.bf16.msra.mxu1 %v2054_v8  ;;  %7695 = vmatprep.mubr.msk.bf16.mxu1 %vm473_vm0, %v8766_v25  ;;  %v2480_v8 = vpop.permute.xlu1 %2479  ;;  %v8806_v25 = vld [vmem:[%s10235_s0 + $0x270] sm:$0xff]  }
 0x17d   : > { %8026 = vmatpush3.bf16.msra.mxu0 %v4762_v13  ;;  %7709 = vmatprep.subr.bf16.mxu1 %v2056_v26  ;;  %v2684_v13 = vpop.permute.xlu0 %2683 }
 0x17e   : > { %8043 = vmatprep.subr.bf16.mxu0 %v4962_v28 }
 0x17f   : > { %8012 = vmatmul.mubr.msk.bf16.gmra.mrb[8].mxu0 %vm473_vm0, %v8765_v27  ;;  %v8924_v27 = vmov 0  }
 0x180   : > { %8015 = vmatprep.mubr.msk.bf16.mxu0 %vm473_vm0, %v8768_v29  ;;  %7710 = vmatpush3.bf16.msra.mxu1 %v2056_v26  ;;  %v2484_v11 = vpop.permute.xlu1 %2483  ;;  %v5934_v26 = vld [vmem:[%s10236_s1] sm:$0xff]  ;;  %v5936_v29 = vld [vmem:[%s10236_s1 + $0x10] sm:$0xff] }
 0x181   : > { %7711 = vmatprep.subr.bf16.mxu1 %v2058_v24  ;;  %8637 = vset.pattern.permute.xlu1 %v8924_v27 }
 0x182   : > { %8636 = vset.pattern.permute.xlu0 %v8924_v27  ;;  %v8838_v27 = vld [vmem:[%s10235_s0 + $0x2f0] sm:$0xff]  }
 0x183   : > { %7696 = vmatmul.mubr.msk.bf16.gmra.mrb[4].mxu1 %vm473_vm0, %v8767_v30  ;;  %5952 = vperm.xlu0 %8636, %v5934_v26   ;;  %v8808_v30 = vld [vmem:[%s10235_s0 + $0x5d0] sm:$0xff]   ;;  %v8835_v26 = vld [vmem:[%s10235_s0 + $0x2e8] sm:$0xff]  }
 0x184   : > { %7699 = vmatprep.mubr.msk.bf16.mxu1 %vm473_vm0, %v8770_v31  ;;  %7712 = vmatpush3.bf16.msra.mxu1 %v2058_v24  ;;  %v5935_v24 = vld [vmem:[%s10236_s1 + $0x8] sm:$0xff]  ;;  %v5937_v31 = vld [vmem:[%s10236_s1 + $0x18] sm:$0xff] }
 0x185   : > { %7713 = vmatprep.subr.bf16.mxu1 %v2060_v32  ;;  %5957 = vperm.xlu1 %8637, %v5935_v24   ;;  %v8833_v24 = vld [vmem:[%s10235_s0 + $0x638] sm:$0xff]  }
 0x187   : > { %8016 = vmatmul.mubr.msk.bf16.gmra.mrb[12].mxu0 %vm473_vm0, %v8769_v33  ;;  %v8807_v33 = vld [vmem:[%s10235_s0 + $0x278] sm:$0xff]   ;;  %5967 = vperm.xlu0 %8636, %v5937_v31  }
 0x188   : > { %8027 = vmatprep.mubr.msk.bf16.mxu0 %vm473_vm0, %v8772_v34  ;;  %7714 = vmatpush3.bf16.msra.mxu1 %v2060_v32  ;;  %v5376_v32 = vpop.permute.xlu1 %5375  ;;  %v5938_v34 = vld [vmem:[%s10236_s1 + $0x20] sm:$0xff]  ;;  %v8839_v31 = vld [vmem:[%s10235_s0 + $0x2f8] sm:$0xff]  }
 0x189   : > { %7731 = vmatprep.subr.bf16.mxu1 %v9292_v54  ;;  %5962 = vperm.xlu1 %8637, %v5936_v29   ;;  %v8840_v29 = vld [vmem:[%s10235_s0 + $0x650] sm:$0xff]  }
 0x18b   : > { %7700 = vmatmul.mubr.msk.bf16.gmra.mrb[8].mxu1 %vm473_vm0, %v8771_v35  ;;  %v8810_v35 = vld [vmem:[%s10235_s0 + $0x280] sm:$0xff]  }
 0x18c   : > { %7703 = vmatprep.mubr.msk.bf16.mxu1 %vm473_vm0, %v8774_v36  ;;  %v5939_v36 = vld [vmem:[%s10236_s1 + $0x28] sm:$0xff] }
 0x18d   : > { %5972 = vperm.xlu1 %8637, %v5938_v34   ;;  %5977 = vperm.xlu0 %8636, %v5939_v36   ;;  %v8841_v34 = vld [vmem:[%s10235_s0 + $0x658] sm:$0xff]  }
 0x18f   : > { %8028 = vmatmul.mubr.msk.bf16.vlgmr.msra.gmra.mrb[0].mxu0 %vm473_vm0, %v8773_v37  ;;  %v8809_v37 = vld [vmem:[%s10235_s0 + $0x5d8] sm:$0xff]  }
 0x190   : > { %8044 = vmatpush3.bf16.msra.mxu0 %v4962_v28  ;;  %8031 = vmatprep.mubr.msk.bf16.mxu0 %vm473_vm0, %v8776_v38  ;;  %v8805_v28 = vld [vmem:[%s10235_s0 + $0x5c8] sm:$0xff]   ;;  %v5940_v38 = vld [vmem:[%s10236_s1 + $0x30] sm:$0xff] }
 0x191   : > { %8045 = vmatprep.subr.bf16.mxu0 %v4964_v39  ;;  %5982 = vperm.xlu1 %8637, %v5940_v38   ;;  %v8846_v38 = vld [vmem:[%s10235_s0 + $0x310] sm:$0xff]  }
 0x193   : > { %7704 = vmatmul.mubr.msk.bf16.gmra.mrb[12].mxu1 %vm473_vm0, %v8775_v40  ;;  %v5380_v40 = vpop.permute.xlu1 %5379 }
 0x194   : > { %8046 = vmatpush3.bf16.msra.mxu0 %v4964_v39  ;;  %7715 = vmatprep.mubr.msk.bf16.mxu1 %vm473_vm0, %v8778_v41  ;;  %v8812_v39 = vld [vmem:[%s10235_s0 + $0x5e0] sm:$0xff]   ;;  %v2688_v41 = vpop.permute.xlu0 %2687 }
 0x195   : > { %8047 = vmatprep.subr.bf16.mxu0 %v4966_v43 }
 0x197   : > { %8032 = vmatmul.mubr.msk.bf16.gmra.mrb[4].mxu0 %vm473_vm0, %v8777_v45  ;;  %v8811_v45 = vld [vmem:[%s10235_s0 + $0x288] sm:$0xff]  }
 0x198   : > { %8035 = vmatprep.mubr.msk.bf16.mxu0 %vm473_vm0, %v8780_v47  ;;  %8048 = vmatpush3.bf16.msra.mxu0 %v4966_v43  ;;  %v5941_v43 = vld [vmem:[%s10236_s1 + $0x38] sm:$0xff]  ;;  %v5942_v47 = vld [vmem:[%s10236_s1 + $0x40] sm:$0xff] }
 0x199   : > { %8049 = vmatprep.subr.bf16.mxu0 %v4968_v48  ;;  %5987 = vperm.xlu0 %8636, %v5941_v43   ;;  %v8849_v43 = vld [vmem:[%s10235_s0 + $0x678] sm:$0xff]  }
 0x19a   : > { %5992 = vperm.xlu1 %8637, %v5942_v47   ;;  %v8853_v47 = vld [vmem:[%s10235_s0 + $0x688] sm:$0xff]  }
 0x19b   : > { %7716 = vmatmul.mubr.msk.bf16.vlgmr.msra.gmra.mrb[0].mxu1 %vm473_vm0, %v8779_v49  ;;  %v5943_v49 = vld [vmem:[%s10236_s1 + $0x48] sm:$0xff] }
 0x19c   : > { %7732 = vmatpush3.bf16.msra.mxu1 %v9292_v54  ;;  %7719 = vmatprep.mubr.msk.bf16.mxu1 %vm473_vm0, %v8782_v50  ;;  %v8874_v54 = vld [vmem:[%s9011_s17 + $0x8] sm:$0xff]   ;;  %v2686_v50 = vpop.permute.xlu1 %2685 }
 0x19d   : > { %7733 = vmatprep.subr.bf16.mxu1 %v9248_v42  ;;  %8050 = vmatpush3.bf16.msra.mxu0 %v4968_v48  ;;  %v8785_v42 = vld [vmem:[%s10235_s0 + $0x578] sm:$0xff]   ;;  %v8814_v48 = vld [vmem:[%s10235_s0 + $0x290] sm:$0xff]  }
 0x19e   : > { %8067 = vmatprep.subr.bf16.mxu0 %v5168_v52  ;;  %5997 = vperm.xlu0 %8636, %v5943_v49   ;;  %v8858_v49 = vld [vmem:[%s10235_s0 + $0x360] sm:$0xff]  }
 0x19f   : > { %8036 = vmatmul.mubr.msk.bf16.gmra.mrb[8].mxu0 %vm473_vm0, %v8781_v51  ;;  %v5580_v51 = vpop.permute.xlu0 %5579 }
 0x1a0   : > { %8039 = vmatprep.mubr.msk.bf16.mxu0 %vm473_vm0, %v8784_v53  ;;  %7734 = vmatpush3.bf16.msra.mxu1 %v8874_v54  ;;  %v5944_v53 = vld [vmem:[%s10236_s1 + $0x50] sm:$0xff]  ;;  %v5945_v54 = vld [vmem:[%s10236_s1 + $0x58] sm:$0xff] }
 0x1a1   : > { %7735 = vmatprep.subr.bf16.mxu1 %v9253_v44  ;;  %v8787_v44 = vld [vmem:[%s10235_s0 + $0x228] sm:$0xff]   ;;  %6002 = vperm.xlu1 %8637, %v5944_v53   ;;  %v8862_v53 = vld [vmem:[%s10235_s0 + $0x370] sm:$0xff]  }
 0x1a2   : > { %6007 = vperm.xlu0 %8636, %v5945_v54   ;;  %v8864_v54 = vld [vmem:[%s10235_s0 + $0x6b0] sm:$0xff]  }
 0x1a3   : > { %7720 = vmatmul.mubr.msk.bf16.gmra.mrb[4].mxu1 %vm473_vm0, %v8783_v55  ;;  %v8816_v55 = vld [vmem:[%s10235_s0 + $0x5f0] sm:$0xff]  }
 0x1a4   : > { %7723 = vmatprep.mubr.msk.bf16.mxu1 %vm473_vm0, %v8786_v56  ;;  %7736 = vmatpush3.bf16.msra.mxu1 %v8875_v59  ;;  %v8815_v56 = vld [vmem:[%s10235_s0 + $0x298] sm:$0xff]   ;;  %v5947_v59 = vld [vmem:[%s10236_s1 + $0x68] sm:$0xff] }
 0x1a5   : > { %7737 = vmatprep.subr.bf16.mxu1 %v9263_v46 }
 0x1a6   : > { %6017 = vperm.xlu0 %8636, %v5947_v59  }
 0x1a7   : > { %8040 = vmatmul.mubr.msk.bf16.gmra.mrb[12].mxu0 %vm473_vm0, %v8785_v42  ;;  %v8818_v42 = vld [vmem:[%s10235_s0 + $0x2a0] sm:$0xff]  }
 0x1a8   : > { %8051 = vmatprep.mubr.msk.bf16.mxu0 %vm473_vm0, %v8788_v58  ;;  %7738 = vmatpush3.bf16.msra.mxu1 %v9263_v46  ;;  %v8791_v46 = vld [vmem:[%s10235_s0 + $0x238] sm:$0xff]   ;;  %v5584_v58 = vpop.permute.xlu0 %5583 }
 0x1a9   : > { %7755 = vmatprep.subr.bf16.mxu1 %v2478_v60 }
 0x1ab   : > { %7724 = vmatmul.mubr.msk.bf16.gmra.mrb[8].mxu1 %vm473_vm0, %v8787_v44  ;;  %v5948_v44 = vld [vmem:[%s10236_s1 + $0x70] sm:$0xff] }
 0x1ac   : > { %7727 = vmatprep.mubr.msk.bf16.mxu1 %vm473_vm0, %v8790_v61  ;;  %v8820_v61 = vld [vmem:[%s10235_s0 + $0x600] sm:$0xff]  }
 0x1af   : > { %8052 = vmatmul.mubr.msk.bf16.vlgmr.msra.gmra.mrb[0].mxu0 %vm473_vm0, %v8789_v62  ;;  %v2690_v62 = vpop.permute.xlu1 %2689 }
 0x1b0   : > { %8068 = vmatpush3.bf16.msra.mxu0 %v5168_v52  ;;  %8055 = vmatprep.mubr.msk.bf16.mxu0 %vm473_vm0, %v8792_v63  ;;  %v8813_v52 = vld [vmem:[%s10235_s0 + $0x5e8] sm:$0xff]   ;;  %v5949_v63 = vld [vmem:[%s10236_s1 + $0x78] sm:$0xff] }
 0x1b1   : > { %8069 = vmatprep.subr.bf16.mxu0 %v5170_v0  ;;  %6027 = vperm.xlu0 %8636, %v5949_v63  }
 0x1b3   : > { %7728 = vmatmul.mubr.msk.bf16.gmra.mrb[12].mxu1 %vm473_vm0, %v8791_v46  ;;  %v8819_v46 = vld [vmem:[%s10235_s0 + $0x2a8] sm:$0xff]  }
 0x1b4   : > { %8070 = vmatpush3.bf16.msra.mxu0 %v5170_v0  ;;  %7739 = vmatprep.mubr.msk.bf16.mxu1 %vm473_vm0, %v8794_v1  ;;  %v2890_v0 = vpop.permute.xlu0 %2889  ;;  %v8822_v1 = vld [vmem:[%s10235_s0 + $0x2b0] sm:$0xff]  }
 0x1b5   : > { %8071 = vmatprep.subr.bf16.mxu0 %v5172_v57 }
 0x1b7   : > { %8056 = vmatmul.mubr.msk.bf16.gmra.mrb[4].mxu0 %vm473_vm0, %v8793_v2  ;;  %v8821_v2 = vld [vmem:[%s10235_s0 + $0x608] sm:$0xff]  }
 0x1b8   : > { %8072 = vmatpush3.bf16.msra.mxu0 %v5172_v57  ;;  %8059 = vmatprep.mubr.msk.bf16.mxu0 %vm473_vm0, %v8796_v3  ;;  %v5946_v57 = vld [vmem:[%s10236_s1 + $0x60] sm:$0xff]  ;;  %v8824_v3 = vld [vmem:[%s10235_s0 + $0x610] sm:$0xff]  }
 0x1b9   : > { %8073 = vmatprep.subr.bf16.mxu0 %v5174_v4  ;;  %6012 = vperm.xlu1 %8637, %v5946_v57   ;;  %v8865_v57 = vld [vmem:[%s10235_s0 + $0x6b8] sm:$0xff]  }
 0x1bb   : > { %7740 = vmatmul.mubr.msk.bf16.vlgmr.msra.gmra.mrb[0].mxu1 %vm473_vm0, %v8795_v5  ;;  %v8823_v5 = vld [vmem:[%s10235_s0 + $0x2b8] sm:$0xff]  }
 0x1bc   : > { %7756 = vmatpush3.bf16.msra.mxu1 %v2478_v60  ;;  %7743 = vmatprep.mubr.msk.bf16.mxu1 %vm473_vm0, %v8798_v7  ;;  %v8817_v60 = vld [vmem:[%s10235_s0 + $0x5f8] sm:$0xff]  }
 0x1bd   : > { %8074 = vmatpush3.bf16.msra.mxu0 %v5174_v4  ;;  %7757 = vmatprep.subr.bf16.mxu1 %v2480_v8  ;;  %v5582_v4 = vpop.permute.xlu1 %5581  ;;  %v8825_v7 = vld [vmem:[%s10235_s0 + $0x618] sm:$0xff]  }
 0x1be   : > { %8091 = vmatprep.subr.bf16.mxu0 %v5374_v14  ;;  %6022 = vperm.xlu1 %8637, %v5948_v44  }
 0x1bf   : > { %8060 = vmatmul.mubr.msk.bf16.gmra.mrb[8].mxu0 %vm473_vm0, %v8797_v9  ;;  %v8828_v9 = vld [vmem:[%s10235_s0 + $0x620] sm:$0xff]  }
 0x1c0   : > { %8063 = vmatprep.mubr.msk.bf16.mxu0 %vm473_vm0, %v8800_v15  ;;  %7758 = vmatpush3.bf16.msra.mxu1 %v2480_v8  ;;  %v2894_v15 = vpop.permute.xlu0 %2893 }
 0x1c1   : > { %7759 = vmatprep.subr.bf16.mxu1 %v2482_v6  ;;  %v5586_v8 = vpop.permute.xlu1 %5585 }
 0x1c3   : > { %7744 = vmatmul.mubr.msk.bf16.gmra.mrb[4].mxu1 %vm473_vm0, %v8799_v18  ;;  %v8830_v18 = vld [vmem:[%s10235_s0 + $0x2d0] sm:$0xff]  }
 0x1c4   : > { %7747 = vmatprep.mubr.msk.bf16.mxu1 %vm473_vm0, %v8802_v10  ;;  %7760 = vmatpush3.bf16.msra.mxu1 %v2482_v6  ;;  %v8826_v6 = vld [vmem:[%s10235_s0 + $0x2c0] sm:$0xff]  }
 0x1c5   : > { %7761 = vmatprep.subr.bf16.mxu1 %v2484_v11  ;;  %v2892_v10 = vpop.permute.xlu1 %2891 }
 0x1c7   : > { %8064 = vmatmul.mubr.msk.bf16.gmra.mrb[12].mxu0 %vm473_vm0, %v8801_v22  ;;  %v8832_v22 = vld [vmem:[%s10235_s0 + $0x630] sm:$0xff]  }
 0x1c8   : > { %8075 = vmatprep.mubr.msk.bf16.mxu0 %vm473_vm0, %v8804_v12  ;;  %7762 = vmatpush3.bf16.msra.mxu1 %v2484_v11  ;;  %v5786_v11 = vpop.permute.xlu0 %5785  ;;  %v8831_v12 = vld [vmem:[%s10235_s0 + $0x2d8] sm:$0xff]  }
 0x1c9   : > { %7779 = vmatprep.subr.bf16.mxu1 %v2684_v13 }
 0x1cb   : > { %7748 = vmatmul.mubr.msk.bf16.gmra.mrb[8].mxu1 %vm473_vm0, %v8803_v23  ;;  %v2896_v23 = vpop.permute.xlu1 %2895 }
 0x1cc   : > { %7751 = vmatprep.mubr.msk.bf16.mxu1 %vm473_vm0, %v8806_v25  ;;  %v8836_v25 = vld [vmem:[%s10235_s0 + $0x640] sm:$0xff]  }
 0x1cf   : > { %8076 = vmatmul.mubr.msk.bf16.vlgmr.msra.gmra.mrb[0].mxu0 %vm473_vm0, %v8805_v28  ;;  %v8837_v28 = vld [vmem:[%s10235_s0 + $0x648] sm:$0xff]  }
 0x1d0   : > { %8092 = vmatpush3.bf16.msra.mxu0 %v5374_v14  ;;  %8079 = vmatprep.mubr.msk.bf16.mxu0 %vm473_vm0, %v8808_v30  ;;  %v8827_v14 = vld [vmem:[%s10235_s0 + $0x2c8] sm:$0xff]   ;;  %v5788_v30 = vpop.permute.xlu1 %5787 }
 0x1d1   : > { %8093 = vmatprep.subr.bf16.mxu0 %v5376_v32 }
 0x1d3   : > { %7752 = vmatmul.mubr.msk.bf16.gmra.mrb[12].mxu1 %vm473_vm0, %v8807_v33  ;;  %v5790_v33 = vpop.permute.xlu0 %5789 }
 0x1d4   : > { %8094 = vmatpush3.bf16.msra.mxu0 %v5376_v32  ;;  %7763 = vmatprep.mubr.msk.bf16.mxu1 %vm473_vm0, %v8810_v35  ;;  %v8842_v32 = vld [vmem:[%s10235_s0 + $0x300] sm:$0xff]   ;;  %v5792_v36 = vpop.permute.xlu1 %5791 }
 0x1d5   : > { %8095 = vmatprep.subr.bf16.mxu0 %v5378_v20  ;;  %v8844_v35 = vld [vmem:[%s10235_s0 + $0x660] sm:$0xff]  }
 0x1d7   : > { %8080 = vmatmul.mubr.msk.bf16.gmra.mrb[4].mxu0 %vm473_vm0, %v8809_v37  ;;  %v8843_v37 = vld [vmem:[%s10235_s0 + $0x308] sm:$0xff]  }
 0x1d8   : > { %8096 = vmatpush3.bf16.msra.mxu0 %v5378_v20  ;;  %8083 = vmatprep.mubr.msk.bf16.mxu0 %vm473_vm0, %v8812_v39  ;;  %v8829_v20 = vld [vmem:[%s10235_s0 + $0x628] sm:$0xff]  }
 0x1d9   : > { %8097 = vmatprep.subr.bf16.mxu0 %v5380_v40  ;;  %v8845_v39 = vld [vmem:[%s10235_s0 + $0x668] sm:$0xff]  }
 0x1db   : > { %7764 = vmatmul.mubr.msk.bf16.vlgmr.msra.gmra.mrb[0].mxu1 %vm473_vm0, %v8811_v45  ;;  %v8851_v45 = vld [vmem:[%s10235_s0 + $0x328] sm:$0xff]  }
 0x1dc   : > { %7780 = vmatpush3.bf16.msra.mxu1 %v2684_v13  ;;  %7767 = vmatprep.mubr.msk.bf16.mxu1 %vm473_vm0, %v8814_v48  ;;  %v8834_v13 = vld [vmem:[%s10235_s0 + $0x2e0] sm:$0xff]   ;;  %v8856_v48 = vld [vmem:[%s10235_s0 + $0x690] sm:$0xff]  }
 0x1dd   : > { %8098 = vmatpush3.bf16.msra.mxu0 %v5380_v40  ;;  %7781 = vmatprep.subr.bf16.mxu1 %v2686_v50  ;;  %v8848_v40 = vld [vmem:[%s10235_s0 + $0x670] sm:$0xff]  }
 0x1de   : > { %8115 = vmatprep.subr.bf16.mxu0 %v5580_v51 }
 0x1df   : > { %8084 = vmatmul.mubr.msk.bf16.gmra.mrb[8].mxu0 %vm473_vm0, %v8813_v52  ;;  %v8859_v52 = vld [vmem:[%s10235_s0 + $0x368] sm:$0xff]  }
 0x1e0   : > { %8087 = vmatprep.mubr.msk.bf16.mxu0 %vm473_vm0, %v8816_v55  ;;  %7782 = vmatpush3.bf16.msra.mxu1 %v2686_v50  ;;  %v8857_v50 = vld [vmem:[%s10235_s0 + $0x698] sm:$0xff]   ;;  %v8861_v55 = vld [vmem:[%s10235_s0 + $0x6a8] sm:$0xff]  }
 0x1e1   : > { %7783 = vmatprep.subr.bf16.mxu1 %v2688_v41 }
 0x1e3   : > { %7768 = vmatmul.mubr.msk.bf16.gmra.mrb[4].mxu1 %vm473_vm0, %v8815_v56  ;;  %v8863_v56 = vld [vmem:[%s10235_s0 + $0x378] sm:$0xff]  }
 0x1e4   : > { %7771 = vmatprep.mubr.msk.bf16.mxu1 %vm473_vm0, %v8818_v42  ;;  %7784 = vmatpush3.bf16.msra.mxu1 %v2688_v41  ;;  %v8847_v41 = vld [vmem:[%s10235_s0 + $0x318] sm:$0xff]  }
 0x1e5   : > { %7785 = vmatprep.subr.bf16.mxu1 %v2690_v62 }
 0x1e7   : > { %8088 = vmatmul.mubr.msk.bf16.gmra.mrb[12].mxu0 %vm473_vm0, %v8817_v60 }
 0x1e8   : > { %8099 = vmatprep.mubr.msk.bf16.mxu0 %vm473_vm0, %v8820_v61  ;;  %7786 = vmatpush3.bf16.msra.mxu1 %v2690_v62 }
 0x1e9   : > { %7803 = vmatprep.subr.bf16.mxu1 %v2890_v0 }
 0x1eb   : > { %7772 = vmatmul.mubr.msk.bf16.gmra.mrb[8].mxu1 %vm473_vm0, %v8819_v46 }
 0x1ec   : > { %7775 = vmatprep.mubr.msk.bf16.mxu1 %vm473_vm0, %v8822_v1 }
 0x1ef   : > { %8100 = vmatmul.mubr.msk.bf16.vlgmr.msra.gmra.mrb[0].mxu0 %vm473_vm0, %v8821_v2 }
 0x1f0   : > { %8116 = vmatpush3.bf16.msra.mxu0 %v5580_v51  ;;  %8103 = vmatprep.mubr.msk.bf16.mxu0 %vm473_vm0, %v8824_v3  ;;  %v8860_v51 = vld [vmem:[%s10235_s0 + $0x6a0] sm:$0xff]  }
 0x1f1   : > { %8117 = vmatprep.subr.bf16.mxu0 %v5582_v4 }
 0x1f3   : > { %7776 = vmatmul.mubr.msk.bf16.gmra.mrb[12].mxu1 %vm473_vm0, %v8823_v5 }
 0x1f4   : > { %8118 = vmatpush3.bf16.msra.mxu0 %v5582_v4  ;;  %7787 = vmatprep.mubr.msk.bf16.mxu1 %vm473_vm0, %v8826_v6 }
 0x1f5   : > { %8119 = vmatprep.subr.bf16.mxu0 %v5584_v58 }
 0x1f7   : > { %8104 = vmatmul.mubr.msk.bf16.gmra.mrb[4].mxu0 %vm473_vm0, %v8825_v7 }
 0x1f8   : > { %8120 = vmatpush3.bf16.msra.mxu0 %v5584_v58  ;;  %8107 = vmatprep.mubr.msk.bf16.mxu0 %vm473_vm0, %v8828_v9 }
 0x1f9   : > { %8121 = vmatprep.subr.bf16.mxu0 %v5586_v8 }
 0x1fb   : > { %7788 = vmatmul.mubr.msk.bf16.vlgmr.msra.gmra.mrb[0].mxu1 %vm473_vm0, %v8827_v14 }
 0x1fc   : > { %7804 = vmatpush3.bf16.msra.mxu1 %v2890_v0  ;;  %7791 = vmatprep.mubr.msk.bf16.mxu1 %vm473_vm0, %v8830_v18 }
 0x1fd   : > { %7805 = vmatprep.subr.bf16.mxu1 %v2892_v10  ;;  %8122 = vmatpush3.bf16.msra.mxu0 %v5586_v8 }
 0x1fe   : > { %8139 = vmatprep.subr.bf16.mxu0 %v5786_v11 }
 0x1ff   : > { %8108 = vmatmul.mubr.msk.bf16.gmra.mrb[8].mxu0 %vm473_vm0, %v8829_v20 }
 0x200   : > { %7806 = vmatpush3.bf16.msra.mxu1 %v2892_v10  ;;  %8111 = vmatprep.mubr.msk.bf16.mxu0 %vm473_vm0, %v8832_v22 }
 0x201   : > { %7807 = vmatprep.subr.bf16.mxu1 %v2894_v15 }
 0x202   : > { %v5953_v61 = vpop.permute.xlu0 %5952 }
 0x203   : > { %7792 = vmatmul.mubr.msk.bf16.gmra.mrb[4].mxu1 %vm473_vm0, %v8831_v12 }
 0x204   : > { %7808 = vmatpush3.bf16.msra.mxu1 %v2894_v15  ;;  %7795 = vmatprep.mubr.msk.bf16.mxu1 %vm473_vm0, %v8834_v13  ;;  %v5958_v44 = vpop.permute.xlu1 %5957 }
 0x205   : > { %7809 = vmatprep.subr.bf16.mxu1 %v2896_v23 }
 0x206   : > { %v5968_v2 = vpop.permute.xlu0 %5967 }
 0x207   : > { %8112 = vmatmul.mubr.msk.bf16.gmra.mrb[12].mxu0 %vm473_vm0, %v8833_v24 }
 0x208   : > { %7810 = vmatpush3.bf16.msra.mxu1 %v2896_v23  ;;  %8123 = vmatprep.mubr.msk.bf16.mxu0 %vm473_vm0, %v8836_v25  ;;  %v5963_v0 = vpop.permute.xlu1 %5962 }
 0x209   : > { %8163 = vmatprep.subr.bf16.mxu1 %v9148_v16 }
 0x20b   : > { %7796 = vmatmul.mubr.msk.bf16.gmra.mrb[8].mxu1 %vm473_vm0, %v8835_v26 }
 0x20c   : > { %7799 = vmatprep.mubr.msk.bf16.mxu1 %vm473_vm0, %v8838_v27  ;;  %v5973_v3 = vpop.permute.xlu1 %5972  ;;  %v5978_v4 = vpop.permute.xlu0 %5977 }
 0x20f   : > { %8124 = vmatmul.mubr.msk.bf16.vlgmr.msra.gmra.mrb[0].mxu0 %vm473_vm0, %v8837_v28 }
 0x210   : > { %8140 = vmatpush3.bf16.msra.mxu0 %v5786_v11  ;;  %8127 = vmatprep.mubr.msk.bf16.mxu0 %vm473_vm0, %v8840_v29  ;;  %v5983_v8 = vpop.permute.xlu1 %5982 }
 0x211   : > { %8141 = vmatprep.subr.bf16.mxu0 %v5788_v30 }
 0x213   : > { %7800 = vmatmul.mubr.msk.bf16.gmra.mrb[12].mxu1 %vm473_vm0, %v8839_v31 }
 0x214   : > { %8142 = vmatpush3.bf16.msra.mxu0 %v5788_v30  ;;  %7811 = vmatprep.mubr.msk.bf16.mxu1 %vm473_vm0, %v8842_v32 }
 0x215   : > { %8143 = vmatprep.subr.bf16.mxu0 %v5790_v33 }
 0x217   : > { %8128 = vmatmul.mubr.msk.bf16.gmra.mrb[4].mxu0 %vm473_vm0, %v8841_v34 }
 0x218   : > { %8131 = vmatprep.mubr.msk.bf16.mxu0 %vm473_vm0, %v8844_v35  ;;  %8144 = vmatpush3.bf16.msra.mxu0 %v5790_v33  ;;  %v5988_v20 = vpop.permute.xlu0 %5987 }
 0x219   : > { %8145 = vmatprep.subr.bf16.mxu0 %v5792_v36  ;;  %v5993_v27 = vpop.permute.xlu1 %5992 }
 0x21b   : > { %7812 = vmatmul.mubr.msk.bf16.vlgmr.msra.gmra.mrb[0].mxu1 %vm473_vm0, %v8843_v37 }
 0x21c   : > { %8167 = vmatpush3.bf16.msra.mxu1 %v9148_v16  ;;  %7815 = vmatprep.mubr.msk.bf16.mxu1 %vm473_vm0, %v8846_v38  ;;  %v8850_v16 = vld [vmem:[%s10235_s0 + $0x320] sm:$0xff]  }
 0x21d   : > { %8164 = vmatprep.subr.bf16.mxu1 %v9151_v17  ;;  %8146 = vmatpush3.bf16.msra.mxu0 %v5792_v36  ;;  %v5998_v34 = vpop.permute.xlu0 %5997 }
 0x21f   : > { %8132 = vmatmul.mubr.msk.bf16.gmra.mrb[8].mxu0 %vm473_vm0, %v8845_v39 }
 0x220   : > { %8168 = vmatpush3.bf16.msra.mxu1 %v9151_v17  ;;  %8135 = vmatprep.mubr.msk.bf16.mxu0 %vm473_vm0, %v8848_v40  ;;  %v8852_v17 = vld [vmem:[%s10235_s0 + $0x680] sm:$0xff]  }
 0x221   : > { %8165 = vmatprep.subr.bf16.mxu1 %v9159_v19 }
 0x223   : > { %7816 = vmatmul.mubr.msk.bf16.gmra.mrb[4].mxu1 %vm473_vm0, %v8847_v41 }
 0x224   : > { %8169 = vmatpush3.bf16.msra.mxu1 %v9159_v19  ;;  %7819 = vmatprep.mubr.msk.bf16.mxu1 %vm473_vm0, %v8850_v16  ;;  %v8854_v19 = vld [vmem:[%s10235_s0 + $0x330] sm:$0xff]  }
 0x225   : > { %8166 = vmatprep.subr.bf16.mxu1 %v9167_v21 }
 0x227   : > { %8136 = vmatmul.mubr.msk.bf16.gmra.mrb[12].mxu0 %vm473_vm0, %v8849_v43 }
 0x228   : > { %8170 = vmatpush3.bf16.msra.mxu1 %v9167_v21  ;;  %8147 = vmatprep.mubr.msk.bf16.mxu0 %vm473_vm0, %v8852_v17  ;;  %v8855_v21 = vld [vmem:[%s10235_s0 + $0x338] sm:$0xff]  }
 0x22b   : > { %7820 = vmatmul.mubr.msk.bf16.gmra.mrb[8].mxu1 %vm473_vm0, %v8851_v45 }
 0x22c   : > { %7823 = vmatprep.mubr.msk.bf16.mxu1 %vm473_vm0, %v8854_v19 }
 0x22f   : > { %8148 = vmatmul.mubr.msk.bf16.vlgmr.msra.gmra.mrb[0].mxu0 %vm473_vm0, %v8853_v47  ;;  %v6003_v47 = vpop.permute.xlu1 %6002 }
 0x230   : > { %8151 = vmatprep.mubr.msk.bf16.mxu0 %vm473_vm0, %v8856_v48 }
 0x233   : > { %7824 = vmatmul.mubr.msk.bf16.gmra.mrb[12].mxu1 %vm473_vm0, %v8855_v21 }
 0x234   : > { %7843 = vmatprep.mubr.msk.bf16.mxu1 %vm473_vm0, %v8858_v49 }
 0x237   : > { %8152 = vmatmul.mubr.msk.bf16.gmra.mrb[4].mxu0 %vm473_vm0, %v8857_v50 }
 0x238   : > { %8155 = vmatprep.mubr.msk.bf16.mxu0 %vm473_vm0, %v8860_v51 }
 0x23b   : > { %7844 = vmatmul.mubr.msk.bf16.vlgmr.msra.gmra.mrb[8].mxu1 %vm473_vm0, %v8859_v52 }
 0x23c   : > { %7847 = vmatprep.mubr.msk.bf16.mxu1 %vm473_vm0, %v8862_v53  ;;  %v6008_v53 = vpop.permute.xlu0 %6007 }
 0x23f   : > { %8156 = vmatmul.mubr.msk.bf16.gmra.mrb[8].mxu0 %vm473_vm0, %v8861_v55 }
 0x240   : > { %8159 = vmatprep.mubr.msk.bf16.mxu0 %vm473_vm0, %v8864_v54 }
 0x243   : > { %7848 = vmatmul.mubr.msk.bf16.gmra.mrb[12].mxu1 %vm473_vm0, %v8863_v56 }
 0x247   : > { %8160 = vmatmul.mubr.msk.bf16.gmra.mrb[12].mxu0 %vm473_vm0, %v8865_v57 }
 0x2ee   : > { %v7813_v42 = vpop.f32.mrb[0].mxu1 }
 0x2ef   : > { %v2959_v58 = vpop.f32.mrb[1].mxu1 }
 0x2f0   : > { %v7814_v59 = vpop.f32.mrb[2].mxu1 }
 0x2f1   : > { %v2962_v60 = vpop.f32.mrb[3].mxu1 }
 0x2f6   : > { %v7817_v62 = vpop.f32.mrb[4].mxu1 }
 0x2f7   : > { %v2975_v63 = vpop.f32.mrb[5].mxu1 }
 0x2f8   : > { %v7818_v46 = vpop.f32.mrb[6].mxu1 }
 0x2f9   : > { %v2978_v1 = vpop.f32.mrb[7].mxu1 }
 0x302   : > { %v8149_v5 = vpop.f32.mrb[0].mxu0 }
 0x303   : > { %v8171_v6 = vadd.f32 %v8149_v5, %v7813_v42  ;;  %v5855_v7 = vpop.f32.mrb[1].mxu0 }
 0x304   : > { %v8172_v9 = vadd.f32 %v5855_v7, %v2959_v58  ;;  %v8150_v14 = vpop.f32.mrb[2].mxu0 }
 0x305   : > { %v6032_v15 = vadd.f32 %v8171_v6, %v5963_v0  ;;  %v8173_v18 = vadd.f32 %v8150_v14, %v7814_v59  ;;  %v5858_v10 = vpop.f32.mrb[3].mxu0  ;;  %v6013_v0 = vpop.permute.xlu1 %6012 }
 0x306   : > { %v6030_v11 = vadd.f32 %v8172_v9, %v5953_v61  ;;  %v8174_v22 = vadd.f32 %v5858_v10, %v2962_v60  ;;  %v6018_v6 = vpop.permute.xlu0 %6017 }
 0x307   : > { %v6048_v12 = vmax.f32 %v6032_v15, 0.0  ;;  %v6033_v13 = vadd.f32 %v8173_v18, %v5968_v2 }
 0x308   : > { %v6046_v23 = vmax.f32 %v6030_v11, 0.0  ;;  %v6031_v24 = vadd.f32 %v8174_v22, %v5958_v44 }
 0x309   : > { %v7177_v25 = vpack.c.bf16 %v6048_v12, %v6048_v12  ;;  %v6049_v26 = vmax.f32 %v6033_v13, 0.0 }
 0x30a   : > { %v7175_v28 = vpack.c.bf16 %v6046_v23, %v6046_v23  ;;  %v6047_v29 = vmax.f32 %v6031_v24, 0.0  ;;  %v8153_v30 = vpop.f32.mrb[4].mxu0  ;;  %v6023_v23 = vpop.permute.xlu1 %6022 }
 0x30b   : > { %6129 = vst.msk [vmem:[%s10186_s18 + $0x8] sm:$0xf] %vm6126_vm1, %v7177_v25  ;;  %v7178_v31 = vpack.c.bf16 %v6049_v26, %v6049_v26  ;;  %v8175_v32 = vadd.f32 %v8153_v30, %v7817_v62  ;;  %v5871_v33 = vpop.f32.mrb[5].mxu0  ;;  %v6028_v30 = vpop.permute.xlu0 %6027 }
 0x30c   : > { %6127 = vst.msk [vmem:[%s10186_s18] sm:$0xf] %vm6126_vm1, %v7175_v28  ;;  %v7176_v35 = vpack.c.bf16 %v6047_v29, %v6047_v29  ;;  %v8176_v36 = vadd.f32 %v5871_v33, %v2975_v63  ;;  %v8154_v37 = vpop.f32.mrb[6].mxu0 }
 0x30d   : > { %6130 = vst.msk [vmem:[%s10186_s18 + $0xc] sm:$0xf] %vm6126_vm1, %v7178_v31  ;;  %v6036_v38 = vadd.f32 %v8175_v32, %v5983_v8  ;;  %v8177_v39 = vadd.f32 %v8154_v37, %v7818_v46  ;;  %v5874_v40 = vpop.f32.mrb[7].mxu0 }
 0x30e   : > { %6128 = vst.msk [vmem:[%s10186_s18 + $0x4] sm:$0xf] %vm6126_vm1, %v7176_v35  ;;  %v6034_v41 = vadd.f32 %v8176_v36, %v5973_v3  ;;  %v8178_v16 = vadd.f32 %v5874_v40, %v2978_v1  ;;  %v7845_v43 = vpop.f32.mrb[8].mxu1 }
 0x30f   : > { %v6052_v17 = vmax.f32 %v6036_v38, 0.0  ;;  %v6037_v45 = vadd.f32 %v8177_v39, %v5988_v20  ;;  %v3197_v19 = vpop.f32.mrb[9].mxu1 }
 0x310   : > { %v6050_v48 = vmax.f32 %v6034_v41, 0.0  ;;  %v6035_v21 = vadd.f32 %v8178_v16, %v5978_v4  ;;  %v7846_v49 = vpop.f32.mrb[10].mxu1 }
 0x311   : > { %v7181_v50 = vpack.c.bf16 %v6052_v17, %v6052_v17  ;;  %v6053_v51 = vmax.f32 %v6037_v45, 0.0  ;;  %v3200_v52 = vpop.f32.mrb[11].mxu1 }
 0x312   : > { %v7179_v55 = vpack.c.bf16 %v6050_v48, %v6050_v48  ;;  %v6051_v54 = vmax.f32 %v6035_v21, 0.0  ;;  %v8157_v56 = vpop.f32.mrb[8].mxu0 }
 0x313   : > { %6133 = vst.msk [vmem:[%s10186_s18 + $0x18] sm:$0xf] %vm6126_vm1, %v7181_v50  ;;  %v7182_v57 = vpack.c.bf16 %v6053_v51, %v6053_v51  ;;  %v8179_v42 = vadd.f32 %v8157_v56, %v7845_v43  ;;  %v5887_v58 = vpop.f32.mrb[9].mxu0 }
 0x314   : > { %6131 = vst.msk [vmem:[%s10186_s18 + $0x10] sm:$0xf] %vm6126_vm1, %v7179_v55  ;;  %v7180_v59 = vpack.c.bf16 %v6051_v54, %v6051_v54  ;;  %v8180_v60 = vadd.f32 %v5887_v58, %v3197_v19  ;;  %v8158_v44 = vpop.f32.mrb[10].mxu0 }
 0x315   : > { %6134 = vst.msk [vmem:[%s10186_s18 + $0x1c] sm:$0xf] %vm6126_vm1, %v7182_v57  ;;  %v6040_v61 = vadd.f32 %v8179_v42, %v6003_v47  ;;  %v8181_v62 = vadd.f32 %v8158_v44, %v7846_v49  ;;  %v5890_v63 = vpop.f32.mrb[11].mxu0 }
 0x316   : > { %6132 = vst.msk [vmem:[%s10186_s18 + $0x14] sm:$0xf] %vm6126_vm1, %v7180_v59  ;;  %v6038_v46 = vadd.f32 %v8180_v60, %v5993_v27  ;;  %v8182_v1 = vadd.f32 %v5890_v63, %v3200_v52  ;;  %v7849_v2 = vpop.f32.mrb[12].mxu1 }
 0x317   : > { %v6056_v3 = vmax.f32 %v6040_v61, 0.0  ;;  %v6041_v4 = vadd.f32 %v8181_v62, %v6008_v53  ;;  %v3213_v5 = vpop.f32.mrb[13].mxu1 }
 0x318   : > { %v6054_v7 = vmax.f32 %v6038_v46, 0.0  ;;  %v6039_v8 = vadd.f32 %v8182_v1, %v5998_v34  ;;  %v7850_v9 = vpop.f32.mrb[14].mxu1 }
 0x319   : > { %v7185_v14 = vpack.c.bf16 %v6056_v3, %v6056_v3  ;;  %v6057_v15 = vmax.f32 %v6041_v4, 0.0  ;;  %v3216_v18 = vpop.f32.mrb[15].mxu1 }
 0x31a   : > { %v7183_v10 = vpack.c.bf16 %v6054_v7, %v6054_v7  ;;  %v6055_v20 = vmax.f32 %v6039_v8, 0.0  ;;  %v8161_v11 = vpop.f32.mrb[12].mxu0 }
 0x31b   : > { %6137 = vst.msk [vmem:[%s10186_s18 + $0x28] sm:$0xf] %vm6126_vm1, %v7185_v14  ;;  %v7186_v22 = vpack.c.bf16 %v6057_v15, %v6057_v15  ;;  %v8183_v12 = vadd.f32 %v8161_v11, %v7849_v2  ;;  %v5903_v13 = vpop.f32.mrb[13].mxu0 }
 0x31c   : > { %6135 = vst.msk [vmem:[%s10186_s18 + $0x20] sm:$0xf] %vm6126_vm1, %v7183_v10  ;;  %v7184_v24 = vpack.c.bf16 %v6055_v20, %v6055_v20  ;;  %v8184_v25 = vadd.f32 %v5903_v13, %v3213_v5  ;;  %v8162_v26 = vpop.f32.mrb[14].mxu0 }
 0x31d   : > { %6138 = vst.msk [vmem:[%s10186_s18 + $0x2c] sm:$0xf] %vm6126_vm1, %v7186_v22  ;;  %v6044_v27 = vadd.f32 %v8183_v12, %v6023_v23  ;;  %v8185_v28 = vadd.f32 %v8162_v26, %v7850_v9  ;;  %v5906_v29 = vpop.f32.mrb[15].mxu0 }
 0x31e   : > { %6136 = vst.msk [vmem:[%s10186_s18 + $0x24] sm:$0xf] %vm6126_vm1, %v7184_v24  ;;  %v6042_v31 = vadd.f32 %v8184_v25, %v6013_v0  ;;  %v8186_v32 = vadd.f32 %v5906_v29, %v3216_v18 }
 0x31f   : > { %v6060_v33 = vmax.f32 %v6044_v27, 0.0  ;;  %v6045_v34 = vadd.f32 %v8185_v28, %v6028_v30 }
 0x320   : > { %v6058_v35 = vmax.f32 %v6042_v31, 0.0  ;;  %v6043_v36 = vadd.f32 %v8186_v32, %v6018_v6 }
 0x321   : > { %v7189_v37 = vpack.c.bf16 %v6060_v33, %v6060_v33  ;;  %v6061_v38 = vmax.f32 %v6045_v34, 0.0 }
 0x322   : > { %v7187_v39 = vpack.c.bf16 %v6058_v35, %v6058_v35  ;;  %v6059_v40 = vmax.f32 %v6043_v36, 0.0 }
 0x323   : > { %6141 = vst.msk [vmem:[%s10186_s18 + $0x38] sm:$0xf] %vm6126_vm1, %v7189_v37  ;;  %v7190_v41 = vpack.c.bf16 %v6061_v38, %v6061_v38 }
 0x324   : > { %6139 = vst.msk [vmem:[%s10186_s18 + $0x30] sm:$0xf] %vm6126_vm1, %v7187_v39  ;;  %v7188_v16 = vpack.c.bf16 %v6059_v40, %v6059_v40 }
 0x325   : > { %6142 = vst.msk [vmem:[%s10186_s18 + $0x3c] sm:$0xf] %vm6126_vm1, %v7190_v41 }
 0x326   : > { %6140 = vst.msk [vmem:[%s10186_s18 + $0x34] sm:$0xf] %vm6126_vm1, %v7188_v16 }
 0x327 PF: > { %s15_s22 = sadd.s32 1, %s8914_s22   ;;  %s10241_s18 = smov %s8906_s20 }
 0x328   : > { %p12_p10 = scmp.ge.s32.totalorder %s15_s22, 6   ;;  %s10242_s19 = smov %s8910_s21 }
 0x329   : > { %s10243_s20 = smov %s10246_s23  ;;  %s10244_s21 = smov %s10250_s24 }
 0x32a   :  { %14 = sbr.rel (!%p12_p10) target bundleno = 3 (0x3), region = 102 }

// kernel: forward.11
= control target key start
LH: loop header
LB: loop body
LE: loop exit
PB: predicated region body
PF: predicated region fallthrough
CT: control target
= control target key end

     0   :  { %v2042_v38 = vmov 1966171168   ;;  %v235_v40 = vlaneseq  ;;  %vm21_vm0 = vcmask 1041408   ;;  %vm22_vm1 = vcmask 1043458   ;;  %s2675_s1 = inlined_call_operand.vmem [shape: bf16[256,1300], index: 1, kind: input, shape index: {}]   ;;  %s2676_s0 = inlined_call_operand.vmem [shape: bf16[2,256], index: 0, kind: input, shape index: {}]   ;;  %s2677_s2 = inlined_call_operand.vmem [shape: f32[1,1300], index: 2, kind: input, shape index: {}]   ;;  %s2678_s3 = inlined_call_operand.vmem [shape: f32[2,1300], index: 3, kind: output, shape index: {}]  }
   0x1   :  { %v1786_v0 = vld [vmem:[%s2675_s1 + $0x4] ss:$44 sps:$4 sm:$0xff]   ;;  %v1788_v1 = vld [vmem:[%s2675_s1 + $0xc] ss:$44 sps:$4 sm:$0xff]   ;;  %v1791_v3 = vld [vmem:[%s2675_s1 + $0x8] ss:$44 sps:$4 sm:$0xff]   ;;  %v233_v39 = vunpack.c.l.s4 %v2042_v38 }
   0x2   :  { %1144 = vmatprep.subr.bf16.mxu0 %v1786_v0  ;;  %v1790_v2 = vld [vmem:[%s2675_s1] ss:$44 sps:$4 sm:$0xff]   ;;  %1185 = vmatprep.subr.bf16.mxu1 %v1788_v1  ;;  %v1792_v4 = vld [vmem:[%s2675_s1 + $0x5c] ss:$44 sps:$4 sm:$0xff]   ;;  %v1794_v5 = vld [vmem:[%s2675_s1 + $0x64] ss:$44 sps:$4 sm:$0xff]  }
   0x3   :  { %1145 = vmatpush1.bf16.msra.mxu0 %v1790_v2  ;;  %1186 = vmatpush1.bf16.msra.mxu1 %v1791_v3  ;;  %v1796_v6 = vld [vmem:[%s2675_s1 + $0x58] ss:$44 sps:$4 sm:$0xff]   ;;  %v1797_v7 = vld [vmem:[%s2675_s1 + $0x60] ss:$44 sps:$4 sm:$0xff]   ;;  %v1800_v9 = vld [vmem:[%s2675_s1 + $0xbc] ss:$44 sps:$4 sm:$0xff]   ;;  %v234_v45 = vunpack.c.0.s8 %v233_v39 }
   0x4   :  { %1146 = vmatprep.subr.bf16.mxu0 %v1792_v4  ;;  %1187 = vmatprep.subr.bf16.mxu1 %v1794_v5  ;;  %v1798_v8 = vld [vmem:[%s2675_s1 + $0xb4] ss:$44 sps:$4 sm:$0xff]   ;;  %v1802_v10 = vld [vmem:[%s2675_s1 + $0xb0] ss:$44 sps:$4 sm:$0xff]   ;;  %v1803_v11 = vld [vmem:[%s2675_s1 + $0xb8] ss:$44 sps:$4 sm:$0xff]  }
   0x5   :  { %v1804_v12 = vld [vmem:[%s2675_s1 + $0x10c] ss:$44 sps:$4 sm:$0xff]   ;;  %v1806_v13 = vld [vmem:[%s2675_s1 + $0x114] ss:$44 sps:$4 sm:$0xff]   ;;  %v1809_v15 = vld [vmem:[%s2675_s1 + $0x110] ss:$44 sps:$4 sm:$0xff]  }
   0x6   :  { %v1808_v14 = vld [vmem:[%s2675_s1 + $0x108] ss:$44 sps:$4 sm:$0xff]   ;;  %v1810_v16 = vld [vmem:[%s2675_s1 + $0x164] ss:$44 sps:$4 sm:$0xff]   ;;  %v1812_v17 = vld [vmem:[%s2675_s1 + $0x16c] ss:$44 sps:$4 sm:$0xff]  }
   0x7   :  { %1147 = vmatpush1.bf16.msra.mxu0 %v1796_v6  ;;  %1188 = vmatpush1.bf16.msra.mxu1 %v1797_v7  ;;  %v1814_v18 = vld [vmem:[%s2675_s1 + $0x160] ss:$44 sps:$4 sm:$0xff]   ;;  %v1815_v19 = vld [vmem:[%s2675_s1 + $0x168] ss:$44 sps:$4 sm:$0xff]   ;;  %v1818_v21 = vld [vmem:[%s2675_s1 + $0x1c4] ss:$44 sps:$4 sm:$0xff]  }
   0x8   :  { %1148 = vmatprep.subr.bf16.mxu0 %v1798_v8  ;;  %1189 = vmatprep.subr.bf16.mxu1 %v1800_v9  ;;  %v1816_v20 = vld [vmem:[%s2675_s1 + $0x1bc] ss:$44 sps:$4 sm:$0xff]   ;;  %v1820_v22 = vld [vmem:[%s2675_s1 + $0x1b8] ss:$44 sps:$4 sm:$0xff]   ;;  %v1821_v23 = vld [vmem:[%s2675_s1 + $0x1c0] ss:$44 sps:$4 sm:$0xff]  }
   0x9   :  { %v1822_v24 = vld [vmem:[%s2675_s1 + $0x214] ss:$44 sps:$4 sm:$0xff]   ;;  %v1824_v25 = vld [vmem:[%s2675_s1 + $0x21c] ss:$44 sps:$4 sm:$0xff]   ;;  %v1827_v27 = vld [vmem:[%s2675_s1 + $0x218] ss:$44 sps:$4 sm:$0xff]  }
   0xa   :  { %v1826_v26 = vld [vmem:[%s2675_s1 + $0x210] ss:$44 sps:$4 sm:$0xff]   ;;  %v1828_v28 = vld [vmem:[%s2675_s1 + $0x26c] ss:$44 sps:$4 sm:$0xff]   ;;  %v1830_v29 = vld [vmem:[%s2675_s1 + $0x274] ss:$44 sps:$4 sm:$0xff]  }
   0xb   :  { %1149 = vmatpush1.bf16.msra.mxu0 %v1802_v10  ;;  %1190 = vmatpush1.bf16.msra.mxu1 %v1803_v11  ;;  %v1832_v30 = vld [vmem:[%s2675_s1 + $0x268] ss:$44 sps:$4 sm:$0xff]   ;;  %v1833_v31 = vld [vmem:[%s2675_s1 + $0x270] ss:$44 sps:$4 sm:$0xff]   ;;  %v1836_v33 = vld [vmem:[%s2675_s1 + $0x2cc] ss:$44 sps:$4 sm:$0xff]  }
   0xc   :  { %1150 = vmatprep.subr.bf16.mxu0 %v1804_v12  ;;  %1191 = vmatprep.subr.bf16.mxu1 %v1806_v13  ;;  %v1834_v32 = vld [vmem:[%s2675_s1 + $0x2c4] ss:$44 sps:$4 sm:$0xff]   ;;  %v1838_v34 = vld [vmem:[%s2675_s1 + $0x2c0] ss:$44 sps:$4 sm:$0xff]   ;;  %v1839_v35 = vld [vmem:[%s2675_s1 + $0x2c8] ss:$44 sps:$4 sm:$0xff]  }
   0xd   :  { %v1840_v36 = vld [vmem:[%s2675_s1 + $0x31c] ss:$44 sps:$4 sm:$0xff]   ;;  %v1842_v37 = vld [vmem:[%s2675_s1 + $0x324] ss:$44 sps:$4 sm:$0xff]   ;;  %v1845_v42 = vld [vmem:[%s2675_s1 + $0x320] ss:$44 sps:$4 sm:$0xff]  }
   0xe   :  { %v1844_v41 = vld [vmem:[%s2675_s1 + $0x318] ss:$44 sps:$4 sm:$0xff]   ;;  %v1846_v43 = vld [vmem:[%s2675_s1 + $0x374] ss:$44 sps:$4 sm:$0xff]   ;;  %v1848_v44 = vld [vmem:[%s2675_s1 + $0x37c] ss:$44 sps:$4 sm:$0xff]  }
   0xf   :  { %1151 = vmatpush1.bf16.msra.mxu0 %v1808_v14  ;;  %1192 = vmatpush1.bf16.msra.mxu1 %v1809_v15  ;;  %v2191_v46 = vshrl.u32 %v235_v40, 7  ;;  %v1850_v47 = vld [vmem:[%s2675_s1 + $0x370] ss:$44 sps:$4 sm:$0xff]   ;;  %v1851_v48 = vld [vmem:[%s2675_s1 + $0x378] ss:$44 sps:$4 sm:$0xff]   ;;  %vm23_vm2 = vmor %vm22_vm1, %vm21_vm0  ;;  %vm24_vm3 = vcmask 160772  }
  0x10   :  { %1152 = vmatprep.subr.bf16.mxu0 %v1810_v16  ;;  %1193 = vmatprep.subr.bf16.mxu1 %v1812_v17  ;;  %v1852_v49 = vld [vmem:[%s2675_s1 + $0x3cc] ss:$44 sps:$4 sm:$0xff]   ;;  %v1854_v50 = vld [vmem:[%s2675_s1 + $0x3d4] ss:$44 sps:$4 sm:$0xff]   ;;  %v1857_v54 = vld [vmem:[%s2675_s1 + $0x3d0] ss:$44 sps:$4 sm:$0xff]  }
  0x11   :  { %v237_v51 = vsub.s32 %v234_v45, %v2191_v46  ;;  %v1584_v52 = vld.sshfl [vmem:[%s2676_s0] sm:$0x11 pattern:$0x75316420]  ;;  %v1856_v53 = vld [vmem:[%s2675_s1 + $0x3c8] ss:$44 sps:$4 sm:$0xff]   ;;  %vm2628_vm4 = vmor %vm24_vm3, %vm23_vm2 }
  0x12   :  { %v231_v55 = vcombine.high %v1584_v52, %v1584_v52  ;;  %v1858_v56 = vld [vmem:[%s2675_s1 + $0x424] ss:$44 sps:$4 sm:$0xff]   ;;  %v1860_v57 = vld [vmem:[%s2675_s1 + $0x42c] ss:$44 sps:$4 sm:$0xff]   ;;  %v1863_v60 = vld [vmem:[%s2675_s1 + $0x428] ss:$44 sps:$4 sm:$0xff]  }
  0x13   :  { %1153 = vmatpush1.bf16.msra.mxu0 %v1814_v18  ;;  %1194 = vmatpush1.bf16.msra.mxu1 %v1815_v19  ;;  %v1862_v59 = vld [vmem:[%s2675_s1 + $0x420] ss:$44 sps:$4 sm:$0xff]   ;;  %v1864_v61 = vld [vmem:[%s2675_s1 + $0x47c] ss:$44 sps:$4 sm:$0xff]   ;;  %v1866_v62 = vld [vmem:[%s2675_s1 + $0x484] ss:$44 sps:$4 sm:$0xff]   ;;  %v2273_v11 = vrot.slane %v1584_v52, %v237_v51 }
  0x14   :  { %1154 = vmatprep.subr.bf16.mxu0 %v1816_v20  ;;  %1195 = vmatprep.subr.bf16.mxu1 %v1818_v21  ;;  %v2221_v58 = vrot.slane %v231_v55, %v237_v51  ;;  %v1868_v63 = vld [vmem:[%s2675_s1 + $0x478] ss:$44 sps:$4 sm:$0xff]   ;;  %v1869_v0 = vld [vmem:[%s2675_s1 + $0x480] ss:$44 sps:$4 sm:$0xff]   ;;  %v1872_v2 = vld [vmem:[%s2675_s1 + $0x4dc] ss:$44 sps:$4 sm:$0xff]  }
  0x15   :  { %v1870_v1 = vld [vmem:[%s2675_s1 + $0x4d4] ss:$44 sps:$4 sm:$0xff]   ;;  %v1874_v3 = vld [vmem:[%s2675_s1 + $0x4d0] ss:$44 sps:$4 sm:$0xff]   ;;  %v1875_v4 = vld [vmem:[%s2675_s1 + $0x4d8] ss:$44 sps:$4 sm:$0xff]  }
  0x16   :  { %1176 = vmatprep.mubr.bf16.mxu0 %v2221_v58  ;;  %1217 = vmatprep.mubr.bf16.mxu1 %v2221_v58  ;;  %v1876_v5 = vld [vmem:[%s2675_s1 + $0x52c] ss:$44 sps:$4 sm:$0xff]   ;;  %v1878_v6 = vld [vmem:[%s2675_s1 + $0x534] ss:$44 sps:$4 sm:$0xff]   ;;  %v1881_v8 = vld [vmem:[%s2675_s1 + $0x530] ss:$44 sps:$4 sm:$0xff]  }
  0x17   :  { %1155 = vmatpush1.bf16.msra.mxu0 %v1820_v22  ;;  %1196 = vmatpush1.bf16.msra.mxu1 %v1821_v23  ;;  %v1880_v7 = vld [vmem:[%s2675_s1 + $0x528] ss:$44 sps:$4 sm:$0xff]   ;;  %v1882_v12 = vld [vmem:[%s2675_s1 + $0x10] ss:$44 sps:$4 sm:$0xff]   ;;  %v1885_v13 = vld [vmem:[%s2675_s1 + $0x18] ss:$44 sps:$4 sm:$0xff]  }
  0x18   :  { %1156 = vmatprep.subr.bf16.mxu0 %v1822_v24  ;;  %1197 = vmatprep.subr.bf16.mxu1 %v1824_v25  ;;  %v1884_v9 = vld [vmem:[%s2675_s1 + $0x14] ss:$44 sps:$4 sm:$0xff]   ;;  %v1887_v10 = vld [vmem:[%s2675_s1 + $0x1c] ss:$44 sps:$4 sm:$0xff]   ;;  %v1890_v14 = vld [vmem:[%s2675_s1 + $0x6c] ss:$44 sps:$4 sm:$0xff]  }
  0x19   :  { %v1893_v15 = vld [vmem:[%s2675_s1 + $0x74] ss:$44 sps:$4 sm:$0xff]   ;;  %v1891_v17 = vld [vmem:[%s2675_s1 + $0x70] ss:$44 sps:$4 sm:$0xff]   ;;  %v1899_v19 = vld [vmem:[%s2675_s1 + $0xcc] ss:$44 sps:$4 sm:$0xff]  }
  0x1a   :  { %v1888_v16 = vld [vmem:[%s2675_s1 + $0x68] ss:$44 sps:$4 sm:$0xff]   ;;  %v1896_v18 = vld [vmem:[%s2675_s1 + $0xc4] ss:$44 sps:$4 sm:$0xff]   ;;  %v1894_v20 = vld [vmem:[%s2675_s1 + $0xc0] ss:$44 sps:$4 sm:$0xff]  }
  0x1b   :  { %1157 = vmatpush1.bf16.msra.mxu0 %v1826_v26  ;;  %1198 = vmatpush1.bf16.msra.mxu1 %v1827_v27  ;;  %v1897_v21 = vld [vmem:[%s2675_s1 + $0xc8] ss:$44 sps:$4 sm:$0xff]   ;;  %v1905_v23 = vld [vmem:[%s2675_s1 + $0x124] ss:$44 sps:$4 sm:$0xff]   ;;  %v1903_v25 = vld [vmem:[%s2675_s1 + $0x120] ss:$44 sps:$4 sm:$0xff]  }
  0x1c   :  { %1158 = vmatprep.subr.bf16.mxu0 %v1828_v28  ;;  %1199 = vmatprep.subr.bf16.mxu1 %v1830_v29  ;;  %v1902_v22 = vld [vmem:[%s2675_s1 + $0x11c] ss:$44 sps:$4 sm:$0xff]   ;;  %v1900_v24 = vld [vmem:[%s2675_s1 + $0x118] ss:$44 sps:$4 sm:$0xff]   ;;  %v1908_v26 = vld [vmem:[%s2675_s1 + $0x174] ss:$44 sps:$4 sm:$0xff]  }
  0x1d   :  { %v1911_v27 = vld [vmem:[%s2675_s1 + $0x17c] ss:$44 sps:$4 sm:$0xff]   ;;  %v1909_v29 = vld [vmem:[%s2675_s1 + $0x178] ss:$44 sps:$4 sm:$0xff]  }
  0x1e   :  { %v1906_v28 = vld [vmem:[%s2675_s1 + $0x170] ss:$44 sps:$4 sm:$0xff]   ;;  %v1924_v40 = vld [vmem:[%s2675_s1 + $0x278] ss:$44 sps:$4 sm:$0xff]  }
  0x1f   :  { %1159 = vmatpush1.bf16.msra.mxu0 %v1832_v30  ;;  %1200 = vmatpush1.bf16.msra.mxu1 %v1833_v31  ;;  %v1914_v30 = vld [vmem:[%s2675_s1 + $0x1cc] ss:$44 sps:$4 sm:$0xff]   ;;  %v1917_v31 = vld [vmem:[%s2675_s1 + $0x1d4] ss:$44 sps:$4 sm:$0xff]   ;;  %v1926_v38 = vld [vmem:[%s2675_s1 + $0x27c] ss:$44 sps:$4 sm:$0xff]  }
  0x20   :  { %1160 = vmatprep.subr.bf16.mxu0 %v1834_v32  ;;  %1201 = vmatprep.subr.bf16.mxu1 %v1836_v33  ;;  %v1912_v32 = vld [vmem:[%s2675_s1 + $0x1c8] ss:$44 sps:$4 sm:$0xff]   ;;  %v1915_v33 = vld [vmem:[%s2675_s1 + $0x1d0] ss:$44 sps:$4 sm:$0xff]   ;;  %v1933_v45 = vld [vmem:[%s2675_s1 + $0x2d8] ss:$44 sps:$4 sm:$0xff]  }
  0x21   :  { %v1929_v39 = vld [vmem:[%s2675_s1 + $0x284] ss:$44 sps:$4 sm:$0xff]   ;;  %v1947_v52 = vld [vmem:[%s2675_s1 + $0x38c] ss:$44 sps:$4 sm:$0xff]   ;;  %v1950_v55 = vld [vmem:[%s2675_s1 + $0x3dc] ss:$44 sps:$4 sm:$0xff]  }
  0x22   :  { %v1944_v51 = vld [vmem:[%s2675_s1 + $0x384] ss:$44 sps:$4 sm:$0xff]  }
  0x23   :  { %1161 = vmatpush1.bf16.msra.mxu0 %v1838_v34  ;;  %1202 = vmatpush1.bf16.msra.mxu1 %v1839_v35  ;;  %v1920_v34 = vld [vmem:[%s2675_s1 + $0x224] ss:$44 sps:$4 sm:$0xff]   ;;  %v1923_v35 = vld [vmem:[%s2675_s1 + $0x22c] ss:$44 sps:$4 sm:$0xff]  }
  0x24   :  { %1162 = vmatprep.subr.bf16.mxu0 %v1840_v36  ;;  %1203 = vmatprep.subr.bf16.mxu1 %v1842_v37  ;;  %v1918_v36 = vld [vmem:[%s2675_s1 + $0x220] ss:$44 sps:$4 sm:$0xff]   ;;  %v1921_v37 = vld [vmem:[%s2675_s1 + $0x228] ss:$44 sps:$4 sm:$0xff]  }
  0x27   :  { %1163 = vmatpush1.bf16.msra.mxu0 %v1844_v41  ;;  %1204 = vmatpush1.bf16.msra.mxu1 %v1845_v42  ;;  %v1927_v41 = vld [vmem:[%s2675_s1 + $0x280] ss:$44 sps:$4 sm:$0xff]  }
  0x28   :  { %1164 = vmatprep.subr.bf16.mxu0 %v1846_v43  ;;  %1205 = vmatprep.subr.bf16.mxu1 %v1848_v44  ;;  %v1932_v42 = vld [vmem:[%s2675_s1 + $0x2d4] ss:$44 sps:$4 sm:$0xff]   ;;  %v1935_v43 = vld [vmem:[%s2675_s1 + $0x2dc] ss:$44 sps:$4 sm:$0xff]  }
  0x29   :  { %v1930_v44 = vld [vmem:[%s2675_s1 + $0x2d0] ss:$44 sps:$4 sm:$0xff]  }
  0x2b   :  { %1165 = vmatpush1.bf16.msra.mxu0 %v1850_v47  ;;  %1206 = vmatpush1.bf16.msra.mxu1 %v1851_v48  ;;  %v1938_v47 = vld [vmem:[%s2675_s1 + $0x32c] ss:$44 sps:$4 sm:$0xff]   ;;  %v1941_v48 = vld [vmem:[%s2675_s1 + $0x334] ss:$44 sps:$4 sm:$0xff]  }
  0x2c   :  { %1166 = vmatprep.subr.bf16.mxu0 %v1852_v49  ;;  %1207 = vmatprep.subr.bf16.mxu1 %v1854_v50  ;;  %v1936_v49 = vld [vmem:[%s2675_s1 + $0x328] ss:$44 sps:$4 sm:$0xff]   ;;  %v1939_v50 = vld [vmem:[%s2675_s1 + $0x330] ss:$44 sps:$4 sm:$0xff]  }
  0x2f   :  { %1167 = vmatpush1.bf16.msra.mxu0 %v1856_v53  ;;  %1208 = vmatpush1.bf16.msra.mxu1 %v1857_v54  ;;  %v1942_v53 = vld [vmem:[%s2675_s1 + $0x380] ss:$44 sps:$4 sm:$0xff]   ;;  %v1945_v54 = vld [vmem:[%s2675_s1 + $0x388] ss:$44 sps:$4 sm:$0xff]  }
  0x30   :  { %1168 = vmatprep.subr.bf16.mxu0 %v1858_v56  ;;  %1209 = vmatprep.subr.bf16.mxu1 %v1860_v57  ;;  %v1953_v56 = vld [vmem:[%s2675_s1 + $0x3e4] ss:$44 sps:$4 sm:$0xff]  }
  0x31   :  { %v1948_v57 = vld [vmem:[%s2675_s1 + $0x3d8] ss:$44 sps:$4 sm:$0xff]  }
  0x33   :  { %1169 = vmatpush1.bf16.msra.mxu0 %v1862_v59  ;;  %1210 = vmatpush1.bf16.msra.mxu1 %v1863_v60  ;;  %v1951_v59 = vld [vmem:[%s2675_s1 + $0x3e0] ss:$44 sps:$4 sm:$0xff]  }
  0x34   :  { %1170 = vmatprep.subr.bf16.mxu0 %v1864_v61  ;;  %1211 = vmatprep.subr.bf16.mxu1 %v1866_v62  ;;  %v1956_v60 = vld [vmem:[%s2675_s1 + $0x434] ss:$44 sps:$4 sm:$0xff]   ;;  %v1959_v61 = vld [vmem:[%s2675_s1 + $0x43c] ss:$44 sps:$4 sm:$0xff]  }
  0x35   :  { %v1954_v62 = vld [vmem:[%s2675_s1 + $0x430] ss:$44 sps:$4 sm:$0xff]  }
  0x37   :  { %1171 = vmatpush1.bf16.msra.mxu0 %v1868_v63  ;;  %1212 = vmatpush1.bf16.msra.mxu1 %v1869_v0  ;;  %v1957_v63 = vld [vmem:[%s2675_s1 + $0x438] ss:$44 sps:$4 sm:$0xff]  }
  0x38   :  { %1172 = vmatprep.subr.bf16.mxu0 %v1870_v1  ;;  %1213 = vmatprep.subr.bf16.mxu1 %v1872_v2  ;;  %v1962_v0 = vld [vmem:[%s2675_s1 + $0x48c] ss:$44 sps:$4 sm:$0xff]   ;;  %v1965_v1 = vld [vmem:[%s2675_s1 + $0x494] ss:$44 sps:$4 sm:$0xff]  }
  0x39   :  { %v1960_v2 = vld [vmem:[%s2675_s1 + $0x488] ss:$44 sps:$4 sm:$0xff]  }
  0x3b   :  { %1173 = vmatpush1.bf16.msra.mxu0 %v1874_v3  ;;  %1214 = vmatpush1.bf16.msra.mxu1 %v1875_v4  ;;  %v1963_v3 = vld [vmem:[%s2675_s1 + $0x490] ss:$44 sps:$4 sm:$0xff]  }
  0x3c   :  { %1174 = vmatprep.subr.bf16.mxu0 %v1876_v5  ;;  %1215 = vmatprep.subr.bf16.mxu1 %v1878_v6  ;;  %v1968_v4 = vld [vmem:[%s2675_s1 + $0x4e4] ss:$44 sps:$4 sm:$0xff]   ;;  %v1971_v5 = vld [vmem:[%s2675_s1 + $0x4ec] ss:$44 sps:$4 sm:$0xff]  }
  0x3d   :  { %v1966_v6 = vld [vmem:[%s2675_s1 + $0x4e0] ss:$44 sps:$4 sm:$0xff]  }
  0x3f   :  { %1175 = vmatpush1.bf16.msra.mxu0 %v1880_v7  ;;  %1216 = vmatpush1.bf16.msra.mxu1 %v1881_v8  ;;  %v1969_v7 = vld [vmem:[%s2675_s1 + $0x4e8] ss:$44 sps:$4 sm:$0xff]  }
  0x40   :  { %1226 = vmatprep.subr.bf16.mxu0 %v1884_v9  ;;  %1267 = vmatprep.subr.bf16.mxu1 %v1887_v10  ;;  %v1974_v8 = vld [vmem:[%s2675_s1 + $0x53c] ss:$44 sps:$4 sm:$0xff]   ;;  %v1977_v9 = vld [vmem:[%s2675_s1 + $0x544] ss:$44 sps:$4 sm:$0xff]  }
  0x41   :  { %v1972_v10 = vld [vmem:[%s2675_s1 + $0x538] ss:$44 sps:$4 sm:$0xff]  }
  0x42   :  { %1177 = vmatmul.mubr.bf16.vlgmr.msra.gmra.mrb[0].mxu0 %v2273_v11  ;;  %1218 = vmatmul.mubr.bf16.vlgmr.msra.gmra.mrb[0].mxu1 %v2273_v11 }
  0x43   :  { %1227 = vmatpush1.bf16.msra.mxu0 %v1882_v12  ;;  %1268 = vmatpush1.bf16.msra.mxu1 %v1885_v13  ;;  %v1975_v12 = vld [vmem:[%s2675_s1 + $0x540] ss:$44 sps:$4 sm:$0xff]   ;;  %v1980_v13 = vld [vmem:[%s2675_s1 + $0x24] ss:$44 sps:$4 sm:$0xff]  }
  0x44   :  { %1228 = vmatprep.subr.bf16.mxu0 %v1890_v14  ;;  %1269 = vmatprep.subr.bf16.mxu1 %v1893_v15  ;;  %v2002_v14 = vld [vmem:[%s2675_s1 + $0x2e8] ss:$44 sps:$4 sm:$0xff]   ;;  %v1978_v15 = vld [vmem:[%s2675_s1 + $0x20] ss:$44 sps:$4 sm:$0xff]  }
  0x45   :  { %1258 = vmatprep.mubr.bf16.mxu0 %v2221_v58  ;;  %1299 = vmatprep.mubr.bf16.mxu1 %v2221_v58 }
  0x47   :  { %1229 = vmatpush1.bf16.msra.mxu0 %v1888_v16  ;;  %1270 = vmatpush1.bf16.msra.mxu1 %v1891_v17  ;;  %v2003_v16 = vld [vmem:[%s2675_s1 + $0x28] ss:$44 sps:$4 sm:$0xff]  }
  0x48   :  { %1230 = vmatprep.subr.bf16.mxu0 %v1896_v18  ;;  %1271 = vmatprep.subr.bf16.mxu1 %v1899_v19  ;;  %v1983_v17 = vld [vmem:[%s2675_s1 + $0x7c] ss:$44 sps:$4 sm:$0xff]   ;;  %v2007_v18 = vld [vmem:[%s2675_s1 + $0x340] ss:$44 sps:$4 sm:$0xff]   ;;  %v1981_v19 = vld [vmem:[%s2675_s1 + $0x78] ss:$44 sps:$4 sm:$0xff]  }
  0x4b   :  { %1231 = vmatpush1.bf16.msra.mxu0 %v1894_v20  ;;  %1272 = vmatpush1.bf16.msra.mxu1 %v1897_v21  ;;  %v2008_v20 = vld [vmem:[%s2675_s1 + $0x80] ss:$44 sps:$4 sm:$0xff]  }
  0x4c   :  { %1232 = vmatprep.subr.bf16.mxu0 %v1902_v22  ;;  %1273 = vmatprep.subr.bf16.mxu1 %v1905_v23  ;;  %v1986_v21 = vld [vmem:[%s2675_s1 + $0xd4] ss:$44 sps:$4 sm:$0xff]   ;;  %v2012_v22 = vld [vmem:[%s2675_s1 + $0x398] ss:$44 sps:$4 sm:$0xff]   ;;  %v1984_v23 = vld [vmem:[%s2675_s1 + $0xd0] ss:$44 sps:$4 sm:$0xff]  }
  0x4f   :  { %1233 = vmatpush1.bf16.msra.mxu0 %v1900_v24  ;;  %1274 = vmatpush1.bf16.msra.mxu1 %v1903_v25  ;;  %v2013_v24 = vld [vmem:[%s2675_s1 + $0xd8] ss:$44 sps:$4 sm:$0xff]  }
  0x50   :  { %1234 = vmatprep.subr.bf16.mxu0 %v1908_v26  ;;  %1275 = vmatprep.subr.bf16.mxu1 %v1911_v27  ;;  %v1989_v25 = vld [vmem:[%s2675_s1 + $0x12c] ss:$44 sps:$4 sm:$0xff]   ;;  %v1987_v26 = vld [vmem:[%s2675_s1 + $0x128] ss:$44 sps:$4 sm:$0xff]   ;;  %v2018_v27 = vld [vmem:[%s2675_s1 + $0x130] ss:$44 sps:$4 sm:$0xff]  }
  0x53   :  { %1235 = vmatpush1.bf16.msra.mxu0 %v1906_v28  ;;  %1276 = vmatpush1.bf16.msra.mxu1 %v1909_v29  ;;  %v1992_v28 = vld [vmem:[%s2675_s1 + $0x184] ss:$44 sps:$4 sm:$0xff]   ;;  %v2022_v29 = vld [vmem:[%s2675_s1 + $0x448] ss:$44 sps:$4 sm:$0xff]  }
  0x54   :  { %1236 = vmatprep.subr.bf16.mxu0 %v1914_v30  ;;  %1277 = vmatprep.subr.bf16.mxu1 %v1917_v31  ;;  %v1990_v30 = vld [vmem:[%s2675_s1 + $0x180] ss:$44 sps:$4 sm:$0xff]   ;;  %v2023_v31 = vld [vmem:[%s2675_s1 + $0x188] ss:$44 sps:$4 sm:$0xff]  }
  0x57   :  { %1237 = vmatpush1.bf16.msra.mxu0 %v1912_v32  ;;  %1278 = vmatpush1.bf16.msra.mxu1 %v1915_v33  ;;  %v1995_v32 = vld [vmem:[%s2675_s1 + $0x1dc] ss:$44 sps:$4 sm:$0xff]   ;;  %v2027_v33 = vld [vmem:[%s2675_s1 + $0x4a0] ss:$44 sps:$4 sm:$0xff]  }
  0x58   :  { %1238 = vmatprep.subr.bf16.mxu0 %v1920_v34  ;;  %1279 = vmatprep.subr.bf16.mxu1 %v1923_v35  ;;  %v1993_v34 = vld [vmem:[%s2675_s1 + $0x1d8] ss:$44 sps:$4 sm:$0xff]   ;;  %v2028_v35 = vld [vmem:[%s2675_s1 + $0x1e0] ss:$44 sps:$4 sm:$0xff]  }
  0x5b   :  { %1239 = vmatpush1.bf16.msra.mxu0 %v1918_v36  ;;  %1280 = vmatpush1.bf16.msra.mxu1 %v1921_v37  ;;  %v1998_v36 = vld [vmem:[%s2675_s1 + $0x234] ss:$44 sps:$4 sm:$0xff]   ;;  %v2032_v37 = vld [vmem:[%s2675_s1 + $0x4f8] ss:$44 sps:$4 sm:$0xff]  }
  0x5c   :  { %1240 = vmatprep.subr.bf16.mxu0 %v1926_v38  ;;  %1281 = vmatprep.subr.bf16.mxu1 %v1929_v39  ;;  %v1996_v38 = vld [vmem:[%s2675_s1 + $0x230] ss:$44 sps:$4 sm:$0xff]   ;;  %v2033_v39 = vld [vmem:[%s2675_s1 + $0x238] ss:$44 sps:$4 sm:$0xff]  }
  0x5f   :  { %1241 = vmatpush1.bf16.msra.mxu0 %v1924_v40  ;;  %1282 = vmatpush1.bf16.msra.mxu1 %v1927_v41  ;;  %v2001_v40 = vld [vmem:[%s2675_s1 + $0x28c] ss:$44 sps:$4 sm:$0xff]   ;;  %v2037_v41 = vld [vmem:[%s2675_s1 + $0x550] ss:$44 sps:$4 sm:$0xff]  }
  0x60   :  { %1242 = vmatprep.subr.bf16.mxu0 %v1932_v42  ;;  %1283 = vmatprep.subr.bf16.mxu1 %v1935_v43  ;;  %v1999_v42 = vld [vmem:[%s2675_s1 + $0x288] ss:$44 sps:$4 sm:$0xff]   ;;  %v2038_v43 = vld [vmem:[%s2675_s1 + $0x290] ss:$44 sps:$4 sm:$0xff]  }
  0x63   :  { %1243 = vmatpush1.bf16.msra.mxu0 %v1930_v44  ;;  %1284 = vmatpush1.bf16.msra.mxu1 %v1933_v45  ;;  %v2006_v44 = vld [vmem:[%s2675_s1 + $0x2e4] ss:$44 sps:$4 sm:$0xff]   ;;  %v2004_v45 = vld [vmem:[%s2675_s1 + $0x2e0] ss:$44 sps:$4 sm:$0xff]  }
  0x64   :  { %1244 = vmatprep.subr.bf16.mxu0 %v1938_v47  ;;  %1285 = vmatprep.subr.bf16.mxu1 %v1941_v48  ;;  %v2011_v47 = vld [vmem:[%s2675_s1 + $0x33c] ss:$44 sps:$4 sm:$0xff]   ;;  %v2009_v48 = vld [vmem:[%s2675_s1 + $0x338] ss:$44 sps:$4 sm:$0xff]  }
  0x67   :  { %1245 = vmatpush1.bf16.msra.mxu0 %v1936_v49  ;;  %1286 = vmatpush1.bf16.msra.mxu1 %v1939_v50  ;;  %v2016_v49 = vld [vmem:[%s2675_s1 + $0x394] ss:$44 sps:$4 sm:$0xff]   ;;  %v2014_v50 = vld [vmem:[%s2675_s1 + $0x390] ss:$44 sps:$4 sm:$0xff]  }
  0x68   :  { %1246 = vmatprep.subr.bf16.mxu0 %v1944_v51  ;;  %1287 = vmatprep.subr.bf16.mxu1 %v1947_v52  ;;  %v2021_v51 = vld [vmem:[%s2675_s1 + $0x3ec] ss:$44 sps:$4 sm:$0xff]   ;;  %v2019_v52 = vld [vmem:[%s2675_s1 + $0x3e8] ss:$44 sps:$4 sm:$0xff]  }
  0x6b   :  { %1247 = vmatpush1.bf16.msra.mxu0 %v1942_v53  ;;  %1288 = vmatpush1.bf16.msra.mxu1 %v1945_v54  ;;  %v2026_v53 = vld [vmem:[%s2675_s1 + $0x444] ss:$44 sps:$4 sm:$0xff]   ;;  %v2024_v54 = vld [vmem:[%s2675_s1 + $0x440] ss:$44 sps:$4 sm:$0xff]  }
  0x6c   :  { %1248 = vmatprep.subr.bf16.mxu0 %v1950_v55  ;;  %1289 = vmatprep.subr.bf16.mxu1 %v1953_v56  ;;  %v2031_v55 = vld [vmem:[%s2675_s1 + $0x49c] ss:$44 sps:$4 sm:$0xff]   ;;  %v2029_v56 = vld [vmem:[%s2675_s1 + $0x498] ss:$44 sps:$4 sm:$0xff]  }
  0x6f   :  { %1249 = vmatpush1.bf16.msra.mxu0 %v1948_v57  ;;  %1290 = vmatpush1.bf16.msra.mxu1 %v1951_v59  ;;  %v2036_v57 = vld [vmem:[%s2675_s1 + $0x4f4] ss:$44 sps:$4 sm:$0xff]   ;;  %v2034_v59 = vld [vmem:[%s2675_s1 + $0x4f0] ss:$44 sps:$4 sm:$0xff]  }
  0x70   :  { %1250 = vmatprep.subr.bf16.mxu0 %v1956_v60  ;;  %1291 = vmatprep.subr.bf16.mxu1 %v1959_v61  ;;  %v2041_v60 = vld [vmem:[%s2675_s1 + $0x54c] ss:$44 sps:$4 sm:$0xff]   ;;  %v2039_v61 = vld [vmem:[%s2675_s1 + $0x548] ss:$44 sps:$4 sm:$0xff]  }
  0x73   :  { %1251 = vmatpush1.bf16.msra.mxu0 %v1954_v62  ;;  %1292 = vmatpush1.bf16.msra.mxu1 %v1957_v63  ;;  %v1476_v62 = vsub.s32 0, %v2191_v46  ;;  %v1480_v63 = vsub.s32 1, %v2191_v46 }
  0x74   :  { %1252 = vmatprep.subr.bf16.mxu0 %v1962_v0  ;;  %1293 = vmatprep.subr.bf16.mxu1 %v1965_v1  ;;  %v1484_v0 = vsub.s32 2, %v2191_v46  ;;  %v1488_v1 = vsub.s32 3, %v2191_v46 }
  0x77   :  { %1253 = vmatpush1.bf16.msra.mxu0 %v1960_v2  ;;  %1294 = vmatpush1.bf16.msra.mxu1 %v1963_v3  ;;  %v1470_v2 = vld [vmem:[%s2677_s2] sm:$0xff]  ;;  %v2043_v3 = vmov 1983009808  }
  0x78   :  { %1254 = vmatprep.subr.bf16.mxu0 %v1968_v4  ;;  %1295 = vmatprep.subr.bf16.mxu1 %v1971_v5  ;;  %v1403_v4 = vunpack.c.l.s4 %v2043_v3  ;;  %v1477_v5 = vrot.slane %v1470_v2, %v1476_v62 }
  0x7b   :  { %1255 = vmatpush1.bf16.msra.mxu0 %v1966_v6  ;;  %1296 = vmatpush1.bf16.msra.mxu1 %v1969_v7  ;;  %v1485_v6 = vrot.slane %v1470_v2, %v1484_v0  ;;  %v1489_v7 = vrot.slane %v1470_v2, %v1488_v1 }
  0x7c   :  { %1256 = vmatprep.subr.bf16.mxu0 %v1974_v8  ;;  %1297 = vmatprep.subr.bf16.mxu1 %v1977_v9  ;;  %v1404_v8 = vunpack.c.0.s8 %v1403_v4 }
  0x7f   :  { %1257 = vmatpush1.bf16.msra.mxu0 %v1972_v10  ;;  %1298 = vmatpush1.bf16.msra.mxu1 %v1975_v12  ;;  %v1519_v10 = vcombine.low %v1485_v6, %v1489_v7 }
  0x80   :  { %1308 = vmatprep.subr.bf16.mxu0 %v1980_v13  ;;  %1761 = vmatprep.subr.bf16.mxu1 %v2002_v14 }
  0x82   :  { %1259 = vmatmul.mubr.bf16.vlgmr.msra.gmra.mrb[4].mxu0 %v2273_v11  ;;  %1300 = vmatmul.mubr.bf16.vlgmr.msra.gmra.mrb[4].mxu1 %v2273_v11 }
  0x83   :  { %1309 = vmatpush1.bf16.msra.mxu0 %v1978_v15  ;;  %1762 = vmatpush3.bf16.msra.mxu1 %v2003_v16  ;;  %v2633_v15 = vsub.s32 %v1404_v8, %v2191_v46  ;;  %v2044_v16 = vmov 0.0  }
  0x84   :  { %1310 = vmatprep.subr.bf16.mxu0 %v1983_v17  ;;  %1763 = vmatprep.subr.bf16.mxu1 %v2007_v18  ;;  %26 = vst.msk [vmem:[#allocation2 + $0x10] sm:$0x3f] %vm2628_vm4, %v2044_v16 }
  0x85   :  { %1381 = vmatprep.mubr.bf16.mxu1 %v2221_v58  ;;  %1340 = vmatprep.mubr.bf16.mxu0 %v2221_v58  ;;  %v2017_v58 = vld [vmem:[%s2675_s1 + $0x3f0] ss:$44 sps:$4 sm:$0xff]  }
  0x87   :  { %1311 = vmatpush1.bf16.msra.mxu0 %v1981_v19  ;;  %1764 = vmatpush3.bf16.msra.mxu1 %v2008_v20 }
  0x88   :  { %1312 = vmatprep.subr.bf16.mxu0 %v1986_v21  ;;  %1765 = vmatprep.subr.bf16.mxu1 %v2012_v22 }
  0x8b   :  { %1313 = vmatpush1.bf16.msra.mxu0 %v1984_v23  ;;  %1766 = vmatpush3.bf16.msra.mxu1 %v2013_v24  ;;  %v1533_v24 = vrot.slane %v1519_v10, %v2633_v15 }
  0x8c   :  { %1314 = vmatprep.subr.bf16.mxu0 %v1989_v25  ;;  %1767 = vmatprep.subr.bf16.mxu1 %v2017_v58 }
  0x8f   :  { %1315 = vmatpush1.bf16.msra.mxu0 %v1987_v26  ;;  %1768 = vmatpush3.bf16.msra.mxu1 %v2018_v27 }
  0x90   :  { %1316 = vmatprep.subr.bf16.mxu0 %v1992_v28  ;;  %1769 = vmatprep.subr.bf16.mxu1 %v2022_v29 }
  0x93   :  { %1317 = vmatpush1.bf16.msra.mxu0 %v1990_v30  ;;  %1770 = vmatpush3.bf16.msra.mxu1 %v2023_v31 }
  0x94   :  { %1318 = vmatprep.subr.bf16.mxu0 %v1995_v32  ;;  %1771 = vmatprep.subr.bf16.mxu1 %v2027_v33  ;;  %v1492_v32 = vsub.s32 4, %v2191_v46  ;;  %v1496_v33 = vsub.s32 5, %v2191_v46 }
  0x97   :  { %1319 = vmatpush1.bf16.msra.mxu0 %v1993_v34  ;;  %1772 = vmatpush3.bf16.msra.mxu1 %v2028_v35  ;;  %v1500_v34 = vsub.s32 6, %v2191_v46  ;;  %v1504_v35 = vsub.s32 7, %v2191_v46 }
  0x98   :  { %1320 = vmatprep.subr.bf16.mxu0 %v1998_v36  ;;  %1773 = vmatprep.subr.bf16.mxu1 %v2032_v37  ;;  %v1493_v36 = vrot.slane %v1470_v2, %v1492_v32  ;;  %v1497_v37 = vrot.slane %v1470_v2, %v1496_v33 }
  0x9b   :  { %1321 = vmatpush1.bf16.msra.mxu0 %v1996_v38  ;;  %1774 = vmatpush3.bf16.msra.mxu1 %v2033_v39  ;;  %v1501_v38 = vrot.slane %v1470_v2, %v1500_v34  ;;  %v1505_v39 = vrot.slane %v1470_v2, %v1504_v35 }
  0x9c   :  { %1322 = vmatprep.subr.bf16.mxu0 %v2001_v40  ;;  %1775 = vmatprep.subr.bf16.mxu1 %v2037_v41  ;;  %v1535_v40 = vcombine.low %v1493_v36, %v1497_v37 }
  0x9d   :  { %v1536_v41 = vcombine.low %v1501_v38, %v1505_v39 }
  0x9f   :  { %1323 = vmatpush1.bf16.msra.mxu0 %v1999_v42  ;;  %1776 = vmatpush3.bf16.msra.mxu1 %v2038_v43 }
  0xa0   :  { %1324 = vmatprep.subr.bf16.mxu0 %v2006_v44 }
  0xa2   :  { %1382 = vmatmul.mubr.bf16.vlgmr.msra.gmra.mrb[8].mxu1 %v2273_v11 }
  0xa3   :  { %1325 = vmatpush1.bf16.msra.mxu0 %v2004_v45 }
  0xa4   :  { %1326 = vmatprep.subr.bf16.mxu0 %v2011_v47 }
  0xa7   :  { %1327 = vmatpush1.bf16.msra.mxu0 %v2009_v48 }
  0xa8   :  { %1328 = vmatprep.subr.bf16.mxu0 %v2016_v49 }
  0xab   :  { %1329 = vmatpush1.bf16.msra.mxu0 %v2014_v50 }
  0xac   :  { %1330 = vmatprep.subr.bf16.mxu0 %v2021_v51  ;;  %v1543_v51 = vrot.slane %v1535_v40, %v2633_v15 }
  0xaf   :  { %1331 = vmatpush1.bf16.msra.mxu0 %v2019_v52  ;;  %v1550_v52 = vrot.slane %v1536_v41, %v2633_v15 }
  0xb0   :  { %1332 = vmatprep.subr.bf16.mxu0 %v2026_v53 }
  0xb3   :  { %1333 = vmatpush1.bf16.msra.mxu0 %v2024_v54 }
  0xb4   :  { %1334 = vmatprep.subr.bf16.mxu0 %v2031_v55 }
  0xb7   :  { %1335 = vmatpush1.bf16.msra.mxu0 %v2029_v56 }
  0xb8   :  { %1336 = vmatprep.subr.bf16.mxu0 %v2036_v57 }
  0xbb   :  { %1337 = vmatpush1.bf16.msra.mxu0 %v2034_v59  ;;  %v1551_v59 = vcombine.low %v1543_v51, %v1550_v52 }
  0xbc   :  { %1338 = vmatprep.subr.bf16.mxu0 %v2041_v60 }
  0xbf   :  { %1339 = vmatpush1.bf16.msra.mxu0 %v2039_v61 }
  0xc2   :  { %1341 = vmatmul.mubr.bf16.vlgmr.msra.gmra.mrb[8].mxu0 %v2273_v11  ;;  %v1481_v11 = vrot.slane %v1470_v2, %v1480_v63 }
  0xc4   :  { %v1518_v9 = vcombine.low %v1477_v5, %v1481_v11  ;;  %v1471_v11 = vld [vmem:[%s2677_s2 + $0x8] sm:$0x7] }
  0xc5   :  { %v1509_v10 = vrot.slane %v1471_v11, %v1476_v62 }
  0xc6   :  { %v1526_v23 = vrot.slane %v1518_v9, %v2633_v15 }
  0xc8   :  { %v1534_v29 = vcombine.low %v1526_v23, %v1533_v24 }
 0x115   :  { %v1178_v13 = vpop.f32.mrb[0].mxu0  ;;  %v1219_v14 = vpop.f32.mrb[0].mxu1 }
 0x116   :  { %v1180_v17 = vpop.f32.mrb[1].mxu0  ;;  %v1221_v18 = vpop.f32.mrb[1].mxu1 }
 0x117   :  { %v1400_v19 = vcombine.low %v1178_v13, %v1180_v17  ;;  %v1401_v20 = vcombine.low %v1219_v14, %v1221_v18  ;;  %v1182_v21 = vpop.f32.mrb[2].mxu0  ;;  %v1223_v22 = vpop.f32.mrb[2].mxu1  ;;  %v1513_v13 = vrot.slane %v1471_v11, %v1480_v63  ;;  %v29_v18 = vld [vmem:[#allocation2 + $0x10] sm:$0x3f] }
 0x118   :  { %v1183_v25 = vpop.f32.mrb[3].mxu0  ;;  %v1224_v58 = vpop.f32.mrb[3].mxu1 }
 0x119   :  { %v1408_v26 = vrot.slane %v1400_v19, %v2633_v15  ;;  %v1415_v27 = vrot.slane %v1401_v20, %v2633_v15  ;;  %v1517_v20 = vrot.slane %v1471_v11, %v1484_v0  ;;  %v1552_v21 = vcombine.low %v1509_v10, %v1513_v13 }
 0x11b   :  { %v1416_v28 = vcombine.low %v1408_v26, %v1415_v27  ;;  %v1559_v23 = vrot.slane %v1552_v21, %v2633_v15  ;;  %v1566_v62 = vrot.slane %v1517_v20, %v2633_v15 }
 0x11d   :  { %v1571_v30 = vadd.f32 %v1534_v29, %v1416_v28  ;;  %v1567_v24 = vcombine.low %v1559_v23, %v1566_v62 }
 0x11f   :  { %v1574_v31 = vmax.f32 %v1571_v30, 0.0 }
 0x121   :  { %1577 = vst [vmem:[%s2678_s3] sm:$0xff] %v1574_v31 }
 0x155   :  { %v1260_v42 = vpop.f32.mrb[4].mxu0  ;;  %v1301_v43 = vpop.f32.mrb[4].mxu1 }
 0x156   :  { %v1262_v44 = vpop.f32.mrb[5].mxu0  ;;  %v1303_v45 = vpop.f32.mrb[5].mxu1 }
 0x157   :  { %v1417_v47 = vcombine.low %v1260_v42, %v1262_v44  ;;  %v1418_v48 = vcombine.low %v1301_v43, %v1303_v45  ;;  %v1264_v49 = vpop.f32.mrb[6].mxu0  ;;  %v1305_v50 = vpop.f32.mrb[6].mxu1 }
 0x158   :  { %v1265_v53 = vpop.f32.mrb[7].mxu0  ;;  %v1306_v54 = vpop.f32.mrb[7].mxu1 }
 0x159   :  { %v1425_v55 = vrot.slane %v1417_v47, %v2633_v15  ;;  %v1432_v56 = vrot.slane %v1418_v48, %v2633_v15 }
 0x15b   :  { %v1433_v57 = vcombine.low %v1425_v55, %v1432_v56 }
 0x15d   :  { %v1572_v60 = vadd.f32 %v1551_v59, %v1433_v57 }
 0x15f   :  { %v1575_v61 = vmax.f32 %v1572_v60, 0.0 }
 0x161   :  { %1578 = vst [vmem:[%s2678_s3 + $0x8] sm:$0xff] %v1575_v61 }
 0x175   :  { %v1777_v1 = vpop.f32.mrb[8].mxu1 }
 0x176   :  { %v1778_v2 = vpop.f32.mrb[9].mxu1 }
 0x177   :  { %v1779_v3 = vadd.f32 %v1778_v2, %v1777_v1  ;;  %v1780_v4 = vpop.f32.mrb[10].mxu1 }
 0x178   :  { %v1781_v5 = vpop.f32.mrb[11].mxu1 }
 0x179   :  { %v1448_v8 = vrot.slane %v1779_v3, %v2633_v15 }
 0x195   :  { %v1342_v6 = vpop.f32.mrb[8].mxu0 }
 0x196   :  { %v1344_v7 = vpop.f32.mrb[9].mxu0 }
 0x197   :  { %v1434_v9 = vcombine.low %v1342_v6, %v1344_v7  ;;  %v1346_v14 = vpop.f32.mrb[10].mxu0 }
 0x198   :  { %v1347_v16 = vpop.f32.mrb[11].mxu0 }
 0x199   :  { %v1441_v17 = vrot.slane %v1434_v9, %v2633_v15 }
 0x19b   :  { %v1449_v19 = vcombine.low %v1441_v17, %v1448_v8 }
 0x19d   :  { %v1455_v22 = vadd.f32 %v1449_v19, %v29_v18 }
 0x19f   :  { %1463 = vst.msk [vmem:[#allocation2 + $0x10] sm:$0x3f] %vm2628_vm4, %v1455_v22 }
 0x1a6   :  { %v1469_v63 = vld [vmem:[#allocation2 + $0x10] sm:$0x3f] }
 0x1a7   :  { %v1573_v25 = vadd.f32 %v1567_v24, %v1469_v63 }
 0x1a9   :  { %v1576_v58 = vmax.f32 %v1573_v25, 0.0 }
 0x1ab   :  { %1579 = vst.msk [vmem:[%s2678_s3 + $0x10] sm:$0x3f] %vm2628_vm4, %v1576_v58 }

</bundles_post_ra>
